<compile_context>
chip_gen: v7x
topology: tpu7x:2x2x1
jax: 0.10.0
libtpu: 0.0.40
codegen_flags: <defaults>
</compile_context>

<pallas_src>
import functools

import jax
import jax.numpy as jnp
from jax.experimental import pallas as pl
from jax.experimental.pallas import tpu as pltpu


def _round_up(x, m):
    return (x + m - 1) // m * m


@functools.lru_cache(maxsize=None)
def _vmem_limit_bytes():
    """Generation-aware scoped VMEM budget (v5e/v6e -> ~96MB, v7x -> ~48MB)."""
    cap = 64 * 1024 * 1024
    try:
        info = pltpu.get_tpu_info()
        cap = int(getattr(info, "vmem_capacity_bytes", cap))
    except Exception:
        pass
    return int(min(cap * 3 // 4, 96 * 1024 * 1024))


def _pick_row_tile(h):
    for t in (16, 8, 4, 2, 1):
        if h % t == 0:
            return t
    return 1


# ----------------------------------------------------------------------------
# Fused GEMM + BN(scale,bias) + optional ReLU    (used for 1x1 convs)
#   grid = (M tiles, K tiles); K last ('arbitrary'); f32 VMEM accumulator.
#   N is padded to a 128-lane multiple (unmasked stores, full MXU width).
# ----------------------------------------------------------------------------
def _gemm_kernel(x_ref, w_ref, s_ref, b_ref, o_ref, acc_ref, *, relu):
    k = pl.program_id(1)

    @pl.when(k == 0)
    def _init():
        acc_ref[...] = jnp.zeros_like(acc_ref)

    acc_ref[...] += jnp.dot(x_ref[...], w_ref[...],
                            preferred_element_type=jnp.float32)

    @pl.when(k == pl.num_programs(1) - 1)
    def _finalize():
        y = acc_ref[...] * s_ref[...] + b_ref[...]
        if relu:
            y = jnp.maximum(y, 0.0)
        o_ref[...] = y.astype(o_ref.dtype)


def fused_gemm(x, w, scale=None, bias=None, relu=False, out_dtype=jnp.bfloat16):
    """out = act((x @ w) * scale + bias).  x:(M,K), w:(K,N), scale/bias:(1,N)."""
    M, K = x.shape
    _, N = w.shape
    if scale is None:
        scale = jnp.ones((1, N), jnp.float32)
    if bias is None:
        bias = jnp.zeros((1, N), jnp.float32)

    # Lane-dense output: pad N up to a multiple of 128 and slice afterwards.
    Np = _round_up(N, 128)
    if Np != N:
        w = jnp.pad(w, ((0, 0), (0, Np - N)))
        scale = jnp.pad(scale, ((0, 0), (0, Np - N)))
        bias = jnp.pad(bias, ((0, 0), (0, Np - N)))

    x = x.astype(jnp.bfloat16)
    w = w.astype(jnp.bfloat16)
    scale = scale.astype(jnp.float32)
    bias = bias.astype(jnp.float32)

    # M tiling: big tiles to amortize grid overhead; keep >=2 parallel M blocks
    # whenever possible so both v7x TensorCores stay busy.
    if M >= 4096:
        tm = 512
    elif M >= 1024:
        tm = 256
    elif M >= 16:
        tm = _round_up(M, 16) // 2
    else:
        tm = _round_up(M, 8)
    Mp = _round_up(M, tm)
    if Mp != M:
        x = jnp.pad(x, ((0, Mp - M), (0, 0)))

    # K tiling: only tile (and pad) when K is actually large.
    tk = 512
    if K > tk:
        Kp = _round_up(K, tk)
        if Kp != K:
            x = jnp.pad(x, ((0, 0), (0, Kp - K)))
            w = jnp.pad(w, ((0, Kp - K), (0, 0)))
        nk = Kp // tk
    else:
        Kp, nk = K, 1
    tkk = Kp // nk

    out = pl.pallas_call(
        functools.partial(_gemm_kernel, relu=relu),
        out_shape=jax.ShapeDtypeStruct((Mp, Np), out_dtype),
        grid_spec=pltpu.PrefetchScalarGridSpec(
            num_scalar_prefetch=0,
            grid=(Mp // tm, nk),
            in_specs=[
                pl.BlockSpec((tm, tkk), lambda i, k: (i, k)),
                pl.BlockSpec((tkk, Np), lambda i, k: (k, 0)),
                pl.BlockSpec((1, Np), lambda i, k: (0, 0)),
                pl.BlockSpec((1, Np), lambda i, k: (0, 0)),
            ],
            out_specs=pl.BlockSpec((tm, Np), lambda i, k: (i, 0)),
            scratch_shapes=[pltpu.VMEM((tm, Np), jnp.float32)],
        ),
        compiler_params=pltpu.CompilerParams(
            dimension_semantics=("parallel", "arbitrary"),
            vmem_limit_bytes=_vmem_limit_bytes()),
        cost_estimate=pl.CostEstimate(
            flops=2 * Mp * Kp * Np,
            transcendentals=0,
            bytes_accessed=2 * (Mp * Kp + Kp * Np + Mp * Np)),
    )(x, w, scale, bias)

    if Mp != M:
        out = out[:M]
    if Np != N:
        out = out[:, :N]
    return out


def conv1x1_bn_act(x_nhwc, w, scale=None, bias=None, relu=False,
                   out_dtype=jnp.bfloat16):
    """1x1 conv, NHWC.  w:(Cin,Cout); eval-mode BN folded into (scale,bias)."""
    N, H, W, C = x_nhwc.shape
    out = fused_gemm(x_nhwc.reshape(N * H * W, C), w, scale, bias,
                     relu=relu, out_dtype=out_dtype)
    return out.reshape(N, H, W, w.shape[1])


# ----------------------------------------------------------------------------
# 3x3 conv (stride 1, pad 1, no conv bias) + folded BN + ReLU, NHWC.
# One grid step = one TH-row band of one image.  The padded image is bound
# once (constant over the band axis -> fetched from HBM once per image); the
# 9 taps are (TH*W, C) x (C, Cout) matmuls accumulated in an f32 VMEM scratch.
# An optional trailing 1x1 "head" (the classifier, output padded to 128 lanes)
# is fused into the epilogue.
# ----------------------------------------------------------------------------
def _conv3x3_kernel(*refs, relu, fuse_head, th, out_w):
    if fuse_head:
        x_ref, w_ref, s_ref, b_ref, hw_ref, hb_ref, o_ref, acc_ref = refs
    else:
        x_ref, w_ref, s_ref, b_ref, o_ref, acc_ref = refs

    rb = pl.program_id(1)
    r0 = pl.multiple_of(rb * th, th)

    first = True
    for kh in range(3):
        band = x_ref[pl.ds(r0 + kh, th)]                 # (th, W+2, Cin) bf16
        for kw in range(3):
            tap = band[:, kw:kw + out_w, :].reshape(th * out_w, -1)
            part = jnp.dot(tap, w_ref[kh, kw],
                           preferred_element_type=jnp.float32)
            if first:
                acc_ref[...] = part
                first = False
            else:
                acc_ref[...] += part

    y = acc_ref[...] * s_ref[...] + b_ref[...]
    if relu:
        y = jnp.maximum(y, 0.0)
    if fuse_head:
        # f32 head matmul keeps classifier logits at full precision.
        y = jnp.dot(y, hw_ref[...], preferred_element_type=jnp.float32)
        y = y + hb_ref[...]
    o_ref[...] = y.astype(o_ref.dtype)


def conv3x3_bn_act(x_nhwc, w, scale, bias, relu=True,
                   head_w=None, head_b=None, out_dtype=jnp.bfloat16):
    N, H, W, C = x_nhwc.shape
    Cout = w.shape[-1]
    fuse_head = head_w is not None

    if fuse_head:
        n_real = head_w.shape[1]
        nout = _round_up(n_real, 128)          # lane-dense classifier stores
        if nout != n_real:
            head_w = jnp.pad(head_w, ((0, 0), (0, nout - n_real)))
            head_b = jnp.pad(head_b, ((0, 0), (0, nout - n_real)))
    else:
        n_real = nout = Cout

    th = _pick_row_tile(H)

    # TODO(synk): remove this pad by masking borders in-kernel.
    xp = jnp.pad(x_nhwc.astype(jnp.bfloat16),
                 ((0, 0), (1, 1), (1, 1), (0, 0)))       # (N, H+2, W+2, C)

    in_specs = [
        pl.BlockSpec((None, H + 2, W + 2, C), lambda n, rb: (n, 0, 0, 0)),
        pl.BlockSpec((3, 3, C, Cout), lambda n, rb: (0, 0, 0, 0)),
        pl.BlockSpec((1, Cout), lambda n, rb: (0, 0)),
        pl.BlockSpec((1, Cout), lambda n, rb: (0, 0)),
    ]
    args = [xp, w.astype(jnp.bfloat16),
            scale.astype(jnp.float32), bias.astype(jnp.float32)]
    if fuse_head:
        in_specs += [
            pl.BlockSpec((Cout, nout), lambda n, rb: (0, 0)),
            pl.BlockSpec((1, nout), lambda n, rb: (0, 0)),
        ]
        args += [head_w.astype(jnp.float32), head_b.astype(jnp.float32)]

    flops = 2 * N * H * W * 9 * C * Cout
    if fuse_head:
        flops += 2 * N * H * W * Cout * nout
    bytes_accessed = (2 * N * (H + 2) * (W + 2) * C + 2 * 9 * C * Cout
                      + 4 * N * H * W * nout)

    out = pl.pallas_call(
        functools.partial(_conv3x3_kernel, relu=relu, fuse_head=fuse_head,
                          th=th, out_w=W),
        out_shape=jax.ShapeDtypeStruct((N, H * W, nout), out_dtype),
        grid_spec=pltpu.PrefetchScalarGridSpec(
            num_scalar_prefetch=0,
            grid=(N, H // th),
            in_specs=in_specs,
            out_specs=pl.BlockSpec((None, th * W, nout),
                                   lambda n, rb: (n, rb, 0)),
            scratch_shapes=[pltpu.VMEM((th * W, Cout), jnp.float32)],
        ),
        compiler_params=pltpu.CompilerParams(
            dimension_semantics=("parallel", "arbitrary"),
            vmem_limit_bytes=_vmem_limit_bytes()),
        cost_estimate=pl.CostEstimate(
            flops=flops, transcendentals=0, bytes_accessed=bytes_accessed),
    )(*args)

    out = out.reshape(N, H, W, nout)
    if nout != n_real:
        out = out[..., :n_real]
    return out


# ----------------------------------------------------------------------------
# Bilinear resize (align_corners=True)
# ----------------------------------------------------------------------------
def _interp_coeffs(out_size, in_size):
    if out_size == 1 or in_size == 1:
        src = jnp.zeros((out_size,), jnp.float32)
    else:
        src = (jnp.arange(out_size, dtype=jnp.float32)
               * (in_size - 1) / (out_size - 1))
    lo = jnp.clip(jnp.floor(src).astype(jnp.int32), 0, in_size - 1)
    hi = jnp.clip(lo + 1, 0, in_size - 1)
    frac = src - lo.astype(jnp.float32)
    return lo, hi, frac


def _interp_matrix(out_size, in_size):
    lo, hi, frac = _interp_coeffs(out_size, in_size)
    a = jnp.zeros((out_size, in_size), jnp.float32)
    a = a.at[jnp.arange(out_size), lo].add(1.0 - frac)
    a = a.at[jnp.arange(out_size), hi].add(frac)
    return a


# --- NHWC resize, tiled over output rows (used mid-network) -----------------
def _resize_rows_kernel(hlo_ref, hhi_ref, hfrac_ref, aw_ref, x_ref, o_ref, *,
                        tho):
    rb = pl.program_id(1)
    base = pl.multiple_of(rb * tho, tho)
    for j in range(tho):
        ho = base + j
        lo = hlo_ref[ho]
        hi = hhi_ref[ho]
        f = hfrac_ref[ho]
        # 2-tap VPU blend along H of the VMEM-resident image.
        row = ((1.0 - f) * x_ref[lo].astype(jnp.float32)
               + f * x_ref[hi].astype(jnp.float32))              # (W, C)
        # W axis via one small matmul with the (Wo, W) interpolation matrix.
        o_ref[j] = jnp.dot(aw_ref[...], row,
                           preferred_element_type=jnp.float32).astype(o_ref.dtype)


def bilinear_resize_nhwc(x_nhwc, out_h, out_w, out_dtype=None):
    N, H, W, C = x_nhwc.shape
    out_dtype = out_dtype or x_nhwc.dtype
    if (out_h, out_w) == (H, W):
        return x_nhwc.astype(out_dtype)
    hlo, hhi, hfrac = _interp_coeffs(out_h, H)
    aw = _interp_matrix(out_w, W)
    tho = _pick_row_tile(out_h)
    return pl.pallas_call(
        functools.partial(_resize_rows_kernel, tho=tho),
        out_shape=jax.ShapeDtypeStruct((N, out_h, out_w, C), out_dtype),
        grid_spec=pltpu.PrefetchScalarGridSpec(
            num_scalar_prefetch=0,
            grid=(N, out_h // tho),
            in_specs=[
                pl.BlockSpec(memory_space=pltpu.MemorySpace.SMEM),   # h lo idx
                pl.BlockSpec(memory_space=pltpu.MemorySpace.SMEM),   # h hi idx
                pl.BlockSpec(memory_space=pltpu.MemorySpace.SMEM),   # h frac
                pl.BlockSpec((out_w, W), lambda n, rb: (0, 0)),
                pl.BlockSpec((None, H, W, C), lambda n, rb: (n, 0, 0, 0)),
            ],
            out_specs=pl.BlockSpec((None, tho, out_w, C),
                                   lambda n, rb: (n, rb, 0, 0)),
        ),
        compiler_params=pltpu.CompilerParams(
            dimension_semantics=("parallel", "arbitrary"),
            vmem_limit_bytes=_vmem_limit_bytes()),
        cost_estimate=pl.CostEstimate(
            flops=2 * N * out_h * out_w * W * C,
            transcendentals=0,
            bytes_accessed=2 * N * H * W * C + 4 * N * out_h * out_w * C),
    )(hlo, hhi, hfrac, aw, x_nhwc)


# --- final upsample: separable matmuls, writes NCHW directly ----------------
def _resize_nchw_kernel(ah_ref, awt_ref, x_ref, o_ref):
    t = jnp.dot(ah_ref[...], x_ref[...].astype(jnp.float32),
                preferred_element_type=jnp.float32)              # (out_h, W)
    o_ref[...] = jnp.dot(t, awt_ref[...],
                         preferred_element_type=jnp.float32).astype(o_ref.dtype)


def bilinear_resize_to_nchw(x_nchw, out_h, out_w, out_dtype=jnp.float32):
    N, C, H, W = x_nchw.shape
    if (out_h, out_w) == (H, W):
        return x_nchw.astype(out_dtype)
    ah = _interp_matrix(out_h, H)              # (out_h, H)
    awt = _interp_matrix(out_w, W).T           # (W, out_w) -- out_w in lanes
    return pl.pallas_call(
        _resize_nchw_kernel,
        out_shape=jax.ShapeDtypeStruct((N, C, out_h, out_w), out_dtype),
        grid_spec=pltpu.PrefetchScalarGridSpec(
            num_scalar_prefetch=0,
            grid=(N, C),
            in_specs=[
                pl.BlockSpec((out_h, H), lambda n, c: (0, 0)),
                pl.BlockSpec((W, out_w), lambda n, c: (0, 0)),
                pl.BlockSpec((None, None, H, W), lambda n, c: (n, c, 0, 0)),
            ],
            out_specs=pl.BlockSpec((None, None, out_h, out_w),
                                   lambda n, c: (n, c, 0, 0)),
        ),
        compiler_params=pltpu.CompilerParams(
            dimension_semantics=("parallel", "parallel"),
            vmem_limit_bytes=_vmem_limit_bytes()),
        cost_estimate=pl.CostEstimate(
            flops=2 * N * C * (out_h * H * W + out_h * W * out_w),
            transcendentals=0,
            bytes_accessed=4 * N * C * (H * W + out_h * out_w)),
    )(ah, awt, x_nchw)


def avgpool2x2(x_nhwc):
    # Backbone stand-in downsample; tiny XLA glue (not perf critical here).
    N, H, W, C = x_nhwc.shape
    y = x_nhwc.astype(jnp.float32).reshape(N, H // 2, 2, W // 2, 2, C)
    return y.mean(axis=(2, 4)).astype(x_nhwc.dtype)


# ----------------------------------------------------------------------------
# Deterministic parameter construction (eval-mode BatchNorm folded)
# ----------------------------------------------------------------------------
def _bn_fold(key, c, eps=1e-5):
    k1, k2, k3, k4 = jax.random.split(key, 4)
    gamma = 1.0 + 0.1 * jax.random.normal(k1, (c,), jnp.float32)
    beta = 0.1 * jax.random.normal(k2, (c,), jnp.float32)
    mean = 0.1 * jax.random.normal(k3, (c,), jnp.float32)
    var = 1.0 + 0.1 * jax.random.uniform(k4, (c,), jnp.float32)
    scale = gamma / jnp.sqrt(var + eps)
    bias = beta - mean * scale
    return scale.reshape(1, c), bias.reshape(1, c)


def _conv3_w(key, cin, cout):
    return jax.random.normal(key, (3, 3, cin, cout), jnp.float32) / jnp.sqrt(9.0 * cin)


def _conv1_w(key, cin, cout):
    return jax.random.normal(key, (cin, cout), jnp.float32) / jnp.sqrt(1.0 * cin)


def make_params(key, num_classes=8, c_low=16, c_high=32, c_aspp=24, c_red=12):
    ks = jax.random.split(key, 16)
    p = {}
    # backbone stand-in (TODO(synk): real build_backbone not provided)
    p["bb1_w"] = _conv3_w(ks[0], 3, c_low)
    p["bb1_s"], p["bb1_b"] = _bn_fold(ks[1], c_low)
    p["bb2_w"] = _conv3_w(ks[2], c_low, c_high)
    p["bb2_s"], p["bb2_b"] = _bn_fold(ks[3], c_high)
    # aspp stand-in (TODO(synk): real build_aspp not provided)
    p["aspp_w"] = _conv1_w(ks[4], c_high, c_aspp)
    p["aspp_s"], p["aspp_b"] = _bn_fold(ks[5], c_aspp)
    # decoder stand-in (TODO(synk): real build_decoder not provided)
    p["dec_red_w"] = _conv1_w(ks[6], c_low, c_red)
    p["dec_red_s"], p["dec_red_b"] = _bn_fold(ks[7], c_red)
    p["dec_c3_w"] = _conv3_w(ks[8], c_aspp + c_red, c_aspp)
    p["dec_c3_s"], p["dec_c3_b"] = _bn_fold(ks[9], c_aspp)
    p["dec_cls_w"] = _conv1_w(ks[10], c_aspp, num_classes)
    p["dec_cls_b"] = 0.01 * jax.random.normal(ks[11], (1, num_classes), jnp.float32)
    return p


# ----------------------------------------------------------------------------
# DeepLab.forward:  backbone -> aspp -> decoder -> bilinear to input size
# ----------------------------------------------------------------------------
def deeplab_forward(params, x_nchw):
    """x: (N, 3, H, W) float32, NCHW.  Returns (N, num_classes, H, W) f32."""
    N, _, H, W = x_nchw.shape
    x = jnp.transpose(x_nchw, (0, 2, 3, 1)).astype(jnp.bfloat16)      # NHWC

    # --- backbone: (x_deep, low_level_feat) ---
    feat = conv3x3_bn_act(x, params["bb1_w"], params["bb1_s"], params["bb1_b"])
    low_level_feat = avgpool2x2(feat)                                  # H/2
    deep = conv3x3_bn_act(low_level_feat, params["bb2_w"],
                          params["bb2_s"], params["bb2_b"])
    deep = avgpool2x2(deep)                                            # H/4

    # --- aspp ---
    deep = conv1x1_bn_act(deep, params["aspp_w"], params["aspp_s"],
                          params["aspp_b"], relu=True)

    # --- decoder (1x1 classifier fused into the 3x3 conv epilogue) ---
    ll = conv1x1_bn_act(low_level_feat, params["dec_red_w"],
                        params["dec_red_s"], params["dec_red_b"], relu=True)
    up = bilinear_resize_nhwc(deep, ll.shape[1], ll.shape[2])
    cat = jnp.concatenate([up, ll.astype(up.dtype)], axis=-1)
    logits = conv3x3_bn_act(cat, params["dec_c3_w"], params["dec_c3_s"],
                            params["dec_c3_b"], relu=True,
                            head_w=params["dec_cls_w"],
                            head_b=params["dec_cls_b"],
                            out_dtype=jnp.float32)                     # NHWC

    # --- final bilinear upsample (align_corners=True), NCHW out ---
    logits_nchw = jnp.transpose(logits, (0, 3, 1, 2))   # tiny (num_classes ch)
    out = bilinear_resize_to_nchw(logits_nchw, H, W, out_dtype=jnp.float32)
    return out                                                         # NCHW


if __name__ == "__main__":
    key = jax.random.PRNGKey(0)
    k_in, k_par = jax.random.split(key)
    x = jax.random.normal(k_in, (2, 3, 16, 16), jnp.float32)           # NCHW
    params = make_params(k_par, num_classes=8)

    fwd = jax.jit(deeplab_forward)
    out = fwd(params, x)
    out = jax.block_until_ready(out)

    assert out.shape == (2, 8, 16, 16), out.shape
    assert out.dtype == jnp.float32
    assert bool(jnp.all(jnp.isfinite(out)))
    print("KERNEL_OK")
</pallas_src>

<mosaic_0001>
module attributes {stable_mosaic.version = 11 : i64} {
  func.func private @main(%arg0: i32) attributes {dimension_semantics = [#tpu.dimension_semantics<core_parallel>], iteration_bounds = array<i64: 2>, tpu.core_type = #tpu.core_type<sc_scalar_subcore>, window_params = []} {
    return
  }
}

module attributes {stable_mosaic.version = 11 : i64} {
  func.func private @main(%arg0: i32) attributes {dimension_semantics = [#tpu.dimension_semantics<core_parallel>], iteration_bounds = array<i64: 2>, tpu.core_type = #tpu.core_type<sc_scalar_subcore>, window_params = []} {
    return
  }
}

module attributes {stable_mosaic.version = 11 : i64} {
  func.func @_conv3x3_kernel(%arg0: i32, %arg1: i32, %arg2: memref<1x18x18x3xbf16, #tpu.memory_space<vmem>>, %arg3: memref<3x3x3x16xbf16, #tpu.memory_space<vmem>>, %arg4: memref<1x16xf32, #tpu.memory_space<vmem>>, %arg5: memref<1x16xf32, #tpu.memory_space<vmem>>, %arg6: memref<1x256x16xbf16, #tpu.memory_space<vmem>>, %arg7: memref<256x16xf32, #tpu.memory_space<vmem>>) attributes {dimension_semantics = [#tpu.dimension_semantics<parallel>, #tpu.dimension_semantics<arbitrary>], iteration_bounds = array<i64: 2, 1>, scalar_prefetch = 0 : i64, scratch_operands = 1 : i64, tpu.core_type = #tpu.core_type<tc>, window_params = [{transform_indices = @transform_0, window_bounds = array<i64: 1, 18, 18, 3>}, {pipeline_mode = #tpu.pipeline_mode<synchronous>, transform_indices = @transform_1, window_bounds = array<i64: 3, 3, 3, 16>}, {pipeline_mode = #tpu.pipeline_mode<synchronous>, transform_indices = @transform_2, window_bounds = array<i64: 1, 16>}, {pipeline_mode = #tpu.pipeline_mode<synchronous>, transform_indices = @transform_3, window_bounds = array<i64: 1, 16>}, {transform_indices = @transform_4, window_bounds = array<i64: 1, 256, 16>}]} {
    %c16_i32 = arith.constant 16 : i32
    %0 = arith.muli %arg1, %c16_i32 : i32
    %1 = tpu.assume_multiple %0, 16 : i32
    %c0_i32 = arith.constant 0 : i32
    %2 = arith.addi %1, %c0_i32 : i32
    %c0 = arith.constant 0 : index
    %3 = arith.index_cast %2 : i32 to index
    %c0_0 = arith.constant 0 : index
    %c0_1 = arith.constant 0 : index
    %4 = vector.load %arg2[%c0, %3, %c0_0, %c0_1] : memref<1x18x18x3xbf16, #tpu.memory_space<vmem>>, vector<1x16x18x3xbf16>
    %5 = vector.shape_cast %4 : vector<1x16x18x3xbf16> to vector<16x18x3xbf16>
    %6 = vector.extract_strided_slice %5 {offsets = [0, 0, 0], sizes = [16, 16, 3], strides = [1, 1, 1]} : vector<16x18x3xbf16> to vector<16x16x3xbf16>
    %7 = vector.shape_cast %6 : vector<16x16x3xbf16> to vector<256x3xbf16>
    %c0_2 = arith.constant 0 : index
    %c0_3 = arith.constant 0 : index
    %c0_4 = arith.constant 0 : index
    %c0_5 = arith.constant 0 : index
    %8 = vector.load %arg3[%c0_2, %c0_3, %c0_4, %c0_5] : memref<3x3x3x16xbf16, #tpu.memory_space<vmem>>, vector<1x1x3x16xbf16>
    %9 = vector.shape_cast %8 : vector<1x1x3x16xbf16> to vector<3x16xbf16>
    %cst = arith.constant dense<0.000000e+00> : vector<256x16xf32>
    %10 = tpu.matmul %7, %9, %cst {dimension_numbers = #tpu.dot_dimension_numbers<[1], [0], [0], [1], [0, 0, 1, 1], [], []>} : vector<256x3xbf16>, vector<3x16xbf16>, vector<256x16xf32> -> vector<256x16xf32>
    %c0_6 = arith.constant 0 : index
    %c0_7 = arith.constant 0 : index
    %11 = vector.load %arg7[%c0_6, %c0_7] : memref<256x16xf32, #tpu.memory_space<vmem>>, vector<256x16xf32>
    tpu.vector_store %arg7[%c0_6, %c0_7], %10 {strides = array<i32>} : memref<256x16xf32, #tpu.memory_space<vmem>>, vector<256x16xf32>,
    %12 = vector.extract_strided_slice %5 {offsets = [0, 1, 0], sizes = [16, 16, 3], strides = [1, 1, 1]} : vector<16x18x3xbf16> to vector<16x16x3xbf16>
    %13 = vector.shape_cast %12 : vector<16x16x3xbf16> to vector<256x3xbf16>
    %c0_8 = arith.constant 0 : index
    %c1 = arith.constant 1 : index
    %c0_9 = arith.constant 0 : index
    %c0_10 = arith.constant 0 : index
    %14 = vector.load %arg3[%c0_8, %c1, %c0_9, %c0_10] : memref<3x3x3x16xbf16, #tpu.memory_space<vmem>>, vector<1x1x3x16xbf16>
    %15 = vector.shape_cast %14 : vector<1x1x3x16xbf16> to vector<3x16xbf16>
    %cst_11 = arith.constant dense<0.000000e+00> : vector<256x16xf32>
    %16 = tpu.matmul %13, %15, %cst_11 {dimension_numbers = #tpu.dot_dimension_numbers<[1], [0], [0], [1], [0, 0, 1, 1], [], []>} : vector<256x3xbf16>, vector<3x16xbf16>, vector<256x16xf32> -> vector<256x16xf32>
    %c0_12 = arith.constant 0 : index
    %c0_13 = arith.constant 0 : index
    %17 = vector.load %arg7[%c0_12, %c0_13] : memref<256x16xf32, #tpu.memory_space<vmem>>, vector<256x16xf32>
    %18 = arith.addf %17, %16 : vector<256x16xf32>
    %c0_14 = arith.constant 0 : index
    %c0_15 = arith.constant 0 : index
    %19 = vector.load %arg7[%c0_14, %c0_15] : memref<256x16xf32, #tpu.memory_space<vmem>>, vector<256x16xf32>
    tpu.vector_store %arg7[%c0_14, %c0_15], %18 {strides = array<i32>} : memref<256x16xf32, #tpu.memory_space<vmem>>, vector<256x16xf32>,
    %20 = vector.extract_strided_slice %5 {offsets = [0, 2, 0], sizes = [16, 16, 3], strides = [1, 1, 1]} : vector<16x18x3xbf16> to vector<16x16x3xbf16>
    %21 = vector.shape_cast %20 : vector<16x16x3xbf16> to vector<256x3xbf16>
    %c0_16 = arith.constant 0 : index
    %c2 = arith.constant 2 : index
    %c0_17 = arith.constant 0 : index
    %c0_18 = arith.constant 0 : index
    %22 = vector.load %arg3[%c0_16, %c2, %c0_17, %c0_18] : memref<3x3x3x16xbf16, #tpu.memory_space<vmem>>, vector<1x1x3x16xbf16>
    %23 = vector.shape_cast %22 : vector<1x1x3x16xbf16> to vector<3x16xbf16>
    %cst_19 = arith.constant dense<0.000000e+00> : vector<256x16xf32>
    %24 = tpu.matmul %21, %23, %cst_19 {dimension_numbers = #tpu.dot_dimension_numbers<[1], [0], [0], [1], [0, 0, 1, 1], [], []>} : vector<256x3xbf16>, vector<3x16xbf16>, vector<256x16xf32> -> vector<256x16xf32>
    %c0_20 = arith.constant 0 : index
    %c0_21 = arith.constant 0 : index
    %25 = vector.load %arg7[%c0_20, %c0_21] : memref<256x16xf32, #tpu.memory_space<vmem>>, vector<256x16xf32>
    %26 = arith.addf %25, %24 : vector<256x16xf32>
    %c0_22 = arith.constant 0 : index
    %c0_23 = arith.constant 0 : index
    %27 = vector.load %arg7[%c0_22, %c0_23] : memref<256x16xf32, #tpu.memory_space<vmem>>, vector<256x16xf32>
    tpu.vector_store %arg7[%c0_22, %c0_23], %26 {strides = array<i32>} : memref<256x16xf32, #tpu.memory_space<vmem>>, vector<256x16xf32>,
    %c1_i32 = arith.constant 1 : i32
    %28 = arith.addi %1, %c1_i32 : i32
    %c0_24 = arith.constant 0 : index
    %29 = arith.index_cast %28 : i32 to index
    %c0_25 = arith.constant 0 : index
    %c0_26 = arith.constant 0 : index
    %30 = vector.load %arg2[%c0_24, %29, %c0_25, %c0_26] : memref<1x18x18x3xbf16, #tpu.memory_space<vmem>>, vector<1x16x18x3xbf16>
    %31 = vector.shape_cast %30 : vector<1x16x18x3xbf16> to vector<16x18x3xbf16>
    %32 = vector.extract_strided_slice %31 {offsets = [0, 0, 0], sizes = [16, 16, 3], strides = [1, 1, 1]} : vector<16x18x3xbf16> to vector<16x16x3xbf16>
    %33 = vector.shape_cast %32 : vector<16x16x3xbf16> to vector<256x3xbf16>
    %c1_27 = arith.constant 1 : index
    %c0_28 = arith.constant 0 : index
    %c0_29 = arith.constant 0 : index
    %c0_30 = arith.constant 0 : index
    %34 = vector.load %arg3[%c1_27, %c0_28, %c0_29, %c0_30] : memref<3x3x3x16xbf16, #tpu.memory_space<vmem>>, vector<1x1x3x16xbf16>
    %35 = vector.shape_cast %34 : vector<1x1x3x16xbf16> to vector<3x16xbf16>
    %cst_31 = arith.constant dense<0.000000e+00> : vector<256x16xf32>
    %36 = tpu.matmul %33, %35, %cst_31 {dimension_numbers = #tpu.dot_dimension_numbers<[1], [0], [0], [1], [0, 0, 1, 1], [], []>} : vector<256x3xbf16>, vector<3x16xbf16>, vector<256x16xf32> -> vector<256x16xf32>
    %c0_32 = arith.constant 0 : index
    %c0_33 = arith.constant 0 : index
    %37 = vector.load %arg7[%c0_32, %c0_33] : memref<256x16xf32, #tpu.memory_space<vmem>>, vector<256x16xf32>
    %38 = arith.addf %37, %36 : vector<256x16xf32>
    %c0_34 = arith.constant 0 : index
    %c0_35 = arith.constant 0 : index
    %39 = vector.load %arg7[%c0_34, %c0_35] : memref<256x16xf32, #tpu.memory_space<vmem>>, vector<256x16xf32>
    tpu.vector_store %arg7[%c0_34, %c0_35], %38 {strides = array<i32>} : memref<256x16xf32, #tpu.memory_space<vmem>>, vector<256x16xf32>,
    %40 = vector.extract_strided_slice %31 {offsets = [0, 1, 0], sizes = [16, 16, 3], strides = [1, 1, 1]} : vector<16x18x3xbf16> to vector<16x16x3xbf16>
    %41 = vector.shape_cast %40 : vector<16x16x3xbf16> to vector<256x3xbf16>
    %c1_36 = arith.constant 1 : index
    %c1_37 = arith.constant 1 : index
    %c0_38 = arith.constant 0 : index
    %c0_39 = arith.constant 0 : index
    %42 = vector.load %arg3[%c1_36, %c1_37, %c0_38, %c0_39] : memref<3x3x3x16xbf16, #tpu.memory_space<vmem>>, vector<1x1x3x16xbf16>
    %43 = vector.shape_cast %42 : vector<1x1x3x16xbf16> to vector<3x16xbf16>
    %cst_40 = arith.constant dense<0.000000e+00> : vector<256x16xf32>
    %44 = tpu.matmul %41, %43, %cst_40 {dimension_numbers = #tpu.dot_dimension_numbers<[1], [0], [0], [1], [0, 0, 1, 1], [], []>} : vector<256x3xbf16>, vector<3x16xbf16>, vector<256x16xf32> -> vector<256x16xf32>
    %c0_41 = arith.constant 0 : index
    %c0_42 = arith.constant 0 : index
    %45 = vector.load %arg7[%c0_41, %c0_42] : memref<256x16xf32, #tpu.memory_space<vmem>>, vector<256x16xf32>
    %46 = arith.addf %45, %44 : vector<256x16xf32>
    %c0_43 = arith.constant 0 : index
    %c0_44 = arith.constant 0 : index
    %47 = vector.load %arg7[%c0_43, %c0_44] : memref<256x16xf32, #tpu.memory_space<vmem>>, vector<256x16xf32>
    tpu.vector_store %arg7[%c0_43, %c0_44], %46 {strides = array<i32>} : memref<256x16xf32, #tpu.memory_space<vmem>>, vector<256x16xf32>,
    %48 = vector.extract_strided_slice %31 {offsets = [0, 2, 0], sizes = [16, 16, 3], strides = [1, 1, 1]} : vector<16x18x3xbf16> to vector<16x16x3xbf16>
    %49 = vector.shape_cast %48 : vector<16x16x3xbf16> to vector<256x3xbf16>
    %c1_45 = arith.constant 1 : index
    %c2_46 = arith.constant 2 : index
    %c0_47 = arith.constant 0 : index
    %c0_48 = arith.constant 0 : index
    %50 = vector.load %arg3[%c1_45, %c2_46, %c0_47, %c0_48] : memref<3x3x3x16xbf16, #tpu.memory_space<vmem>>, vector<1x1x3x16xbf16>
    %51 = vector.shape_cast %50 : vector<1x1x3x16xbf16> to vector<3x16xbf16>
    %cst_49 = arith.constant dense<0.000000e+00> : vector<256x16xf32>
    %52 = tpu.matmul %49, %51, %cst_49 {dimension_numbers = #tpu.dot_dimension_numbers<[1], [0], [0], [1], [0, 0, 1, 1], [], []>} : vector<256x3xbf16>, vector<3x16xbf16>, vector<256x16xf32> -> vector<256x16xf32>
    %c0_50 = arith.constant 0 : index
    %c0_51 = arith.constant 0 : index
    %53 = vector.load %arg7[%c0_50, %c0_51] : memref<256x16xf32, #tpu.memory_space<vmem>>, vector<256x16xf32>
    %54 = arith.addf %53, %52 : vector<256x16xf32>
    %c0_52 = arith.constant 0 : index
    %c0_53 = arith.constant 0 : index
    %55 = vector.load %arg7[%c0_52, %c0_53] : memref<256x16xf32, #tpu.memory_space<vmem>>, vector<256x16xf32>
    tpu.vector_store %arg7[%c0_52, %c0_53], %54 {strides = array<i32>} : memref<256x16xf32, #tpu.memory_space<vmem>>, vector<256x16xf32>,
    %c2_i32 = arith.constant 2 : i32
    %56 = arith.addi %1, %c2_i32 : i32
    %c0_54 = arith.constant 0 : index
    %57 = arith.index_cast %56 : i32 to index
    %c0_55 = arith.constant 0 : index
    %c0_56 = arith.constant 0 : index
    %58 = vector.load %arg2[%c0_54, %57, %c0_55, %c0_56] : memref<1x18x18x3xbf16, #tpu.memory_space<vmem>>, vector<1x16x18x3xbf16>
    %59 = vector.shape_cast %58 : vector<1x16x18x3xbf16> to vector<16x18x3xbf16>
    %60 = vector.extract_strided_slice %59 {offsets = [0, 0, 0], sizes = [16, 16, 3], strides = [1, 1, 1]} : vector<16x18x3xbf16> to vector<16x16x3xbf16>
    %61 = vector.shape_cast %60 : vector<16x16x3xbf16> to vector<256x3xbf16>
    %c2_57 = arith.constant 2 : index
    %c0_58 = arith.constant 0 : index
    %c0_59 = arith.constant 0 : index
    %c0_60 = arith.constant 0 : index
    %62 = vector.load %arg3[%c2_57, %c0_58, %c0_59, %c0_60] : memref<3x3x3x16xbf16, #tpu.memory_space<vmem>>, vector<1x1x3x16xbf16>
    %63 = vector.shape_cast %62 : vector<1x1x3x16xbf16> to vector<3x16xbf16>
    %cst_61 = arith.constant dense<0.000000e+00> : vector<256x16xf32>
    %64 = tpu.matmul %61, %63, %cst_61 {dimension_numbers = #tpu.dot_dimension_numbers<[1], [0], [0], [1], [0, 0, 1, 1], [], []>} : vector<256x3xbf16>, vector<3x16xbf16>, vector<256x16xf32> -> vector<256x16xf32>
    %c0_62 = arith.constant 0 : index
    %c0_63 = arith.constant 0 : index
    %65 = vector.load %arg7[%c0_62, %c0_63] : memref<256x16xf32, #tpu.memory_space<vmem>>, vector<256x16xf32>
    %66 = arith.addf %65, %64 : vector<256x16xf32>
    %c0_64 = arith.constant 0 : index
    %c0_65 = arith.constant 0 : index
    %67 = vector.load %arg7[%c0_64, %c0_65] : memref<256x16xf32, #tpu.memory_space<vmem>>, vector<256x16xf32>
    tpu.vector_store %arg7[%c0_64, %c0_65], %66 {strides = array<i32>} : memref<256x16xf32, #tpu.memory_space<vmem>>, vector<256x16xf32>,
    %68 = vector.extract_strided_slice %59 {offsets = [0, 1, 0], sizes = [16, 16, 3], strides = [1, 1, 1]} : vector<16x18x3xbf16> to vector<16x16x3xbf16>
    %69 = vector.shape_cast %68 : vector<16x16x3xbf16> to vector<256x3xbf16>
    %c2_66 = arith.constant 2 : index
    %c1_67 = arith.constant 1 : index
    %c0_68 = arith.constant 0 : index
    %c0_69 = arith.constant 0 : index
    %70 = vector.load %arg3[%c2_66, %c1_67, %c0_68, %c0_69] : memref<3x3x3x16xbf16, #tpu.memory_space<vmem>>, vector<1x1x3x16xbf16>
    %71 = vector.shape_cast %70 : vector<1x1x3x16xbf16> to vector<3x16xbf16>
    %cst_70 = arith.constant dense<0.000000e+00> : vector<256x16xf32>
    %72 = tpu.matmul %69, %71, %cst_70 {dimension_numbers = #tpu.dot_dimension_numbers<[1], [0], [0], [1], [0, 0, 1, 1], [], []>} : vector<256x3xbf16>, vector<3x16xbf16>, vector<256x16xf32> -> vector<256x16xf32>
    %c0_71 = arith.constant 0 : index
    %c0_72 = arith.constant 0 : index
    %73 = vector.load %arg7[%c0_71, %c0_72] : memref<256x16xf32, #tpu.memory_space<vmem>>, vector<256x16xf32>
    %74 = arith.addf %73, %72 : vector<256x16xf32>
    %c0_73 = arith.constant 0 : index
    %c0_74 = arith.constant 0 : index
    %75 = vector.load %arg7[%c0_73, %c0_74] : memref<256x16xf32, #tpu.memory_space<vmem>>, vector<256x16xf32>
    tpu.vector_store %arg7[%c0_73, %c0_74], %74 {strides = array<i32>} : memref<256x16xf32, #tpu.memory_space<vmem>>, vector<256x16xf32>,
    %76 = vector.extract_strided_slice %59 {offsets = [0, 2, 0], sizes = [16, 16, 3], strides = [1, 1, 1]} : vector<16x18x3xbf16> to vector<16x16x3xbf16>
    %77 = vector.shape_cast %76 : vector<16x16x3xbf16> to vector<256x3xbf16>
    %c2_75 = arith.constant 2 : index
    %c2_76 = arith.constant 2 : index
    %c0_77 = arith.constant 0 : index
    %c0_78 = arith.constant 0 : index
    %78 = vector.load %arg3[%c2_75, %c2_76, %c0_77, %c0_78] : memref<3x3x3x16xbf16, #tpu.memory_space<vmem>>, vector<1x1x3x16xbf16>
    %79 = vector.shape_cast %78 : vector<1x1x3x16xbf16> to vector<3x16xbf16>
    %cst_79 = arith.constant dense<0.000000e+00> : vector<256x16xf32>
    %80 = tpu.matmul %77, %79, %cst_79 {dimension_numbers = #tpu.dot_dimension_numbers<[1], [0], [0], [1], [0, 0, 1, 1], [], []>} : vector<256x3xbf16>, vector<3x16xbf16>, vector<256x16xf32> -> vector<256x16xf32>
    %c0_80 = arith.constant 0 : index
    %c0_81 = arith.constant 0 : index
    %81 = vector.load %arg7[%c0_80, %c0_81] : memref<256x16xf32, #tpu.memory_space<vmem>>, vector<256x16xf32>
    %82 = arith.addf %81, %80 : vector<256x16xf32>
    %c0_82 = arith.constant 0 : index
    %c0_83 = arith.constant 0 : index
    %83 = vector.load %arg7[%c0_82, %c0_83] : memref<256x16xf32, #tpu.memory_space<vmem>>, vector<256x16xf32>
    tpu.vector_store %arg7[%c0_82, %c0_83], %82 {strides = array<i32>} : memref<256x16xf32, #tpu.memory_space<vmem>>, vector<256x16xf32>,
    %c0_84 = arith.constant 0 : index
    %c0_85 = arith.constant 0 : index
    %84 = vector.load %arg7[%c0_84, %c0_85] : memref<256x16xf32, #tpu.memory_space<vmem>>, vector<256x16xf32>
    %c0_86 = arith.constant 0 : index
    %c0_87 = arith.constant 0 : index
    %85 = vector.load %arg4[%c0_86, %c0_87] : memref<1x16xf32, #tpu.memory_space<vmem>>, vector<1x16xf32>
    %86 = vector.broadcast %85 : vector<1x16xf32> to vector<256x16xf32>
    %87 = arith.mulf %84, %86 : vector<256x16xf32>
    %c0_88 = arith.constant 0 : index
    %c0_89 = arith.constant 0 : index
    %88 = vector.load %arg5[%c0_88, %c0_89] : memref<1x16xf32, #tpu.memory_space<vmem>>, vector<1x16xf32>
    %89 = vector.broadcast %88 : vector<1x16xf32> to vector<256x16xf32>
    %90 = arith.addf %87, %89 : vector<256x16xf32>
    %cst_90 = arith.constant 0.000000e+00 : f32
    %91 = vector.broadcast %cst_90 : f32 to vector<256x16xf32>
    %92 = arith.maximumf %90, %91 : vector<256x16xf32>
    %93 = arith.truncf %92 : vector<256x16xf32> to vector<256x16xbf16>
    %c0_91 = arith.constant 0 : index
    %c0_92 = arith.constant 0 : index
    %c0_93 = arith.constant 0 : index
    %94 = vector.load %arg6[%c0_91, %c0_92, %c0_93] : memref<1x256x16xbf16, #tpu.memory_space<vmem>>, vector<1x256x16xbf16>
    %95 = vector.shape_cast %94 : vector<1x256x16xbf16> to vector<256x16xbf16>
    %96 = vector.shape_cast %93 : vector<256x16xbf16> to vector<1x256x16xbf16>
    tpu.vector_store %arg6[%c0_91, %c0_92, %c0_93], %96 {strides = array<i32>} : memref<1x256x16xbf16, #tpu.memory_space<vmem>>, vector<1x256x16xbf16>,
    return
  }
  func.func @transform_0(%arg0: i32, %arg1: i32) -> (i32, i32, i32, i32) {
    %c0_i32 = arith.constant 0 : i32
    %c0_i32_0 = arith.constant 0 : i32
    %c0_i32_1 = arith.constant 0 : i32
    %c0_i32_2 = arith.constant 0 : i32
    return %arg0, %c0_i32, %c0_i32_0, %c0_i32_1 : i32, i32, i32, i32
  }
  func.func @transform_1(%arg0: i32, %arg1: i32) -> (i32, i32, i32, i32) {
    %c0_i32 = arith.constant 0 : i32
    %c0_i32_0 = arith.constant 0 : i32
    %c0_i32_1 = arith.constant 0 : i32
    %c0_i32_2 = arith.constant 0 : i32
    %c0_i32_3 = arith.constant 0 : i32
    return %c0_i32, %c0_i32_0, %c0_i32_1, %c0_i32_2 : i32, i32, i32, i32
  }
  func.func @transform_2(%arg0: i32, %arg1: i32) -> (i32, i32) {
    %c0_i32 = arith.constant 0 : i32
    %c0_i32_0 = arith.constant 0 : i32
    %c0_i32_1 = arith.constant 0 : i32
    return %c0_i32, %c0_i32_0 : i32, i32
  }
  func.func @transform_3(%arg0: i32, %arg1: i32) -> (i32, i32) {
    %c0_i32 = arith.constant 0 : i32
    %c0_i32_0 = arith.constant 0 : i32
    %c0_i32_1 = arith.constant 0 : i32
    return %c0_i32, %c0_i32_0 : i32, i32
  }
  func.func @transform_4(%arg0: i32, %arg1: i32) -> (i32, i32, i32) {
    %c0_i32 = arith.constant 0 : i32
    %c0_i32_0 = arith.constant 0 : i32
    return %arg0, %arg1, %c0_i32 : i32, i32, i32
  }
}

module attributes {stable_mosaic.version = 11 : i64} {
  func.func @_conv3x3_kernel(%arg0: i32, %arg1: i32, %arg2: memref<1x10x10x16xbf16, #tpu.memory_space<vmem>>, %arg3: memref<3x3x16x32xbf16, #tpu.memory_space<vmem>>, %arg4: memref<1x32xf32, #tpu.memory_space<vmem>>, %arg5: memref<1x32xf32, #tpu.memory_space<vmem>>, %arg6: memref<1x64x32xbf16, #tpu.memory_space<vmem>>, %arg7: memref<64x32xf32, #tpu.memory_space<vmem>>) attributes {dimension_semantics = [#tpu.dimension_semantics<parallel>, #tpu.dimension_semantics<arbitrary>], iteration_bounds = array<i64: 2, 1>, scalar_prefetch = 0 : i64, scratch_operands = 1 : i64, tpu.core_type = #tpu.core_type<tc>, window_params = [{transform_indices = @transform_0, window_bounds = array<i64: 1, 10, 10, 16>}, {pipeline_mode = #tpu.pipeline_mode<synchronous>, transform_indices = @transform_1, window_bounds = array<i64: 3, 3, 16, 32>}, {pipeline_mode = #tpu.pipeline_mode<synchronous>, transform_indices = @transform_2, window_bounds = array<i64: 1, 32>}, {pipeline_mode = #tpu.pipeline_mode<synchronous>, transform_indices = @transform_3, window_bounds = array<i64: 1, 32>}, {transform_indices = @transform_4, window_bounds = array<i64: 1, 64, 32>}]} {
    %c8_i32 = arith.constant 8 : i32
    %0 = arith.muli %arg1, %c8_i32 : i32
    %1 = tpu.assume_multiple %0, 8 : i32
    %c0_i32 = arith.constant 0 : i32
    %2 = arith.addi %1, %c0_i32 : i32
    %c0 = arith.constant 0 : index
    %3 = arith.index_cast %2 : i32 to index
    %c0_0 = arith.constant 0 : index
    %c0_1 = arith.constant 0 : index
    %4 = vector.load %arg2[%c0, %3, %c0_0, %c0_1] : memref<1x10x10x16xbf16, #tpu.memory_space<vmem>>, vector<1x8x10x16xbf16>
    %5 = vector.shape_cast %4 : vector<1x8x10x16xbf16> to vector<8x10x16xbf16>
    %6 = vector.extract_strided_slice %5 {offsets = [0, 0, 0], sizes = [8, 8, 16], strides = [1, 1, 1]} : vector<8x10x16xbf16> to vector<8x8x16xbf16>
    %7 = vector.shape_cast %6 : vector<8x8x16xbf16> to vector<64x16xbf16>
    %c0_2 = arith.constant 0 : index
    %c0_3 = arith.constant 0 : index
    %c0_4 = arith.constant 0 : index
    %c0_5 = arith.constant 0 : index
    %8 = vector.load %arg3[%c0_2, %c0_3, %c0_4, %c0_5] : memref<3x3x16x32xbf16, #tpu.memory_space<vmem>>, vector<1x1x16x32xbf16>
    %9 = vector.shape_cast %8 : vector<1x1x16x32xbf16> to vector<16x32xbf16>
    %cst = arith.constant dense<0.000000e+00> : vector<64x32xf32>
    %10 = tpu.matmul %7, %9, %cst {dimension_numbers = #tpu.dot_dimension_numbers<[1], [0], [0], [1], [0, 0, 1, 1], [], []>} : vector<64x16xbf16>, vector<16x32xbf16>, vector<64x32xf32> -> vector<64x32xf32>
    %c0_6 = arith.constant 0 : index
    %c0_7 = arith.constant 0 : index
    %11 = vector.load %arg7[%c0_6, %c0_7] : memref<64x32xf32, #tpu.memory_space<vmem>>, vector<64x32xf32>
    tpu.vector_store %arg7[%c0_6, %c0_7], %10 {strides = array<i32>} : memref<64x32xf32, #tpu.memory_space<vmem>>, vector<64x32xf32>,
    %12 = vector.extract_strided_slice %5 {offsets = [0, 1, 0], sizes = [8, 8, 16], strides = [1, 1, 1]} : vector<8x10x16xbf16> to vector<8x8x16xbf16>
    %13 = vector.shape_cast %12 : vector<8x8x16xbf16> to vector<64x16xbf16>
    %c0_8 = arith.constant 0 : index
    %c1 = arith.constant 1 : index
    %c0_9 = arith.constant 0 : index
    %c0_10 = arith.constant 0 : index
    %14 = vector.load %arg3[%c0_8, %c1, %c0_9, %c0_10] : memref<3x3x16x32xbf16, #tpu.memory_space<vmem>>, vector<1x1x16x32xbf16>
    %15 = vector.shape_cast %14 : vector<1x1x16x32xbf16> to vector<16x32xbf16>
    %cst_11 = arith.constant dense<0.000000e+00> : vector<64x32xf32>
    %16 = tpu.matmul %13, %15, %cst_11 {dimension_numbers = #tpu.dot_dimension_numbers<[1], [0], [0], [1], [0, 0, 1, 1], [], []>} : vector<64x16xbf16>, vector<16x32xbf16>, vector<64x32xf32> -> vector<64x32xf32>
    %c0_12 = arith.constant 0 : index
    %c0_13 = arith.constant 0 : index
    %17 = vector.load %arg7[%c0_12, %c0_13] : memref<64x32xf32, #tpu.memory_space<vmem>>, vector<64x32xf32>
    %18 = arith.addf %17, %16 : vector<64x32xf32>
    %c0_14 = arith.constant 0 : index
    %c0_15 = arith.constant 0 : index
    %19 = vector.load %arg7[%c0_14, %c0_15] : memref<64x32xf32, #tpu.memory_space<vmem>>, vector<64x32xf32>
    tpu.vector_store %arg7[%c0_14, %c0_15], %18 {strides = array<i32>} : memref<64x32xf32, #tpu.memory_space<vmem>>, vector<64x32xf32>,
    %20 = vector.extract_strided_slice %5 {offsets = [0, 2, 0], sizes = [8, 8, 16], strides = [1, 1, 1]} : vector<8x10x16xbf16> to vector<8x8x16xbf16>
    %21 = vector.shape_cast %20 : vector<8x8x16xbf16> to vector<64x16xbf16>
    %c0_16 = arith.constant 0 : index
    %c2 = arith.constant 2 : index
    %c0_17 = arith.constant 0 : index
    %c0_18 = arith.constant 0 : index
    %22 = vector.load %arg3[%c0_16, %c2, %c0_17, %c0_18] : memref<3x3x16x32xbf16, #tpu.memory_space<vmem>>, vector<1x1x16x32xbf16>
    %23 = vector.shape_cast %22 : vector<1x1x16x32xbf16> to vector<16x32xbf16>
    %cst_19 = arith.constant dense<0.000000e+00> : vector<64x32xf32>
    %24 = tpu.matmul %21, %23, %cst_19 {dimension_numbers = #tpu.dot_dimension_numbers<[1], [0], [0], [1], [0, 0, 1, 1], [], []>} : vector<64x16xbf16>, vector<16x32xbf16>, vector<64x32xf32> -> vector<64x32xf32>
    %c0_20 = arith.constant 0 : index
    %c0_21 = arith.constant 0 : index
    %25 = vector.load %arg7[%c0_20, %c0_21] : memref<64x32xf32, #tpu.memory_space<vmem>>, vector<64x32xf32>
    %26 = arith.addf %25, %24 : vector<64x32xf32>
    %c0_22 = arith.constant 0 : index
    %c0_23 = arith.constant 0 : index
    %27 = vector.load %arg7[%c0_22, %c0_23] : memref<64x32xf32, #tpu.memory_space<vmem>>, vector<64x32xf32>
    tpu.vector_store %arg7[%c0_22, %c0_23], %26 {strides = array<i32>} : memref<64x32xf32, #tpu.memory_space<vmem>>, vector<64x32xf32>,
    %c1_i32 = arith.constant 1 : i32
    %28 = arith.addi %1, %c1_i32 : i32
    %c0_24 = arith.constant 0 : index
    %29 = arith.index_cast %28 : i32 to index
    %c0_25 = arith.constant 0 : index
    %c0_26 = arith.constant 0 : index
    %30 = vector.load %arg2[%c0_24, %29, %c0_25, %c0_26] : memref<1x10x10x16xbf16, #tpu.memory_space<vmem>>, vector<1x8x10x16xbf16>
    %31 = vector.shape_cast %30 : vector<1x8x10x16xbf16> to vector<8x10x16xbf16>
    %32 = vector.extract_strided_slice %31 {offsets = [0, 0, 0], sizes = [8, 8, 16], strides = [1, 1, 1]} : vector<8x10x16xbf16> to vector<8x8x16xbf16>
    %33 = vector.shape_cast %32 : vector<8x8x16xbf16> to vector<64x16xbf16>
    %c1_27 = arith.constant 1 : index
    %c0_28 = arith.constant 0 : index
    %c0_29 = arith.constant 0 : index
    %c0_30 = arith.constant 0 : index
    %34 = vector.load %arg3[%c1_27, %c0_28, %c0_29, %c0_30] : memref<3x3x16x32xbf16, #tpu.memory_space<vmem>>, vector<1x1x16x32xbf16>
    %35 = vector.shape_cast %34 : vector<1x1x16x32xbf16> to vector<16x32xbf16>
    %cst_31 = arith.constant dense<0.000000e+00> : vector<64x32xf32>
    %36 = tpu.matmul %33, %35, %cst_31 {dimension_numbers = #tpu.dot_dimension_numbers<[1], [0], [0], [1], [0, 0, 1, 1], [], []>} : vector<64x16xbf16>, vector<16x32xbf16>, vector<64x32xf32> -> vector<64x32xf32>
    %c0_32 = arith.constant 0 : index
    %c0_33 = arith.constant 0 : index
    %37 = vector.load %arg7[%c0_32, %c0_33] : memref<64x32xf32, #tpu.memory_space<vmem>>, vector<64x32xf32>
    %38 = arith.addf %37, %36 : vector<64x32xf32>
    %c0_34 = arith.constant 0 : index
    %c0_35 = arith.constant 0 : index
    %39 = vector.load %arg7[%c0_34, %c0_35] : memref<64x32xf32, #tpu.memory_space<vmem>>, vector<64x32xf32>
    tpu.vector_store %arg7[%c0_34, %c0_35], %38 {strides = array<i32>} : memref<64x32xf32, #tpu.memory_space<vmem>>, vector<64x32xf32>,
    %40 = vector.extract_strided_slice %31 {offsets = [0, 1, 0], sizes = [8, 8, 16], strides = [1, 1, 1]} : vector<8x10x16xbf16> to vector<8x8x16xbf16>
    %41 = vector.shape_cast %40 : vector<8x8x16xbf16> to vector<64x16xbf16>
    %c1_36 = arith.constant 1 : index
    %c1_37 = arith.constant 1 : index
    %c0_38 = arith.constant 0 : index
    %c0_39 = arith.constant 0 : index
    %42 = vector.load %arg3[%c1_36, %c1_37, %c0_38, %c0_39] : memref<3x3x16x32xbf16, #tpu.memory_space<vmem>>, vector<1x1x16x32xbf16>
    %43 = vector.shape_cast %42 : vector<1x1x16x32xbf16> to vector<16x32xbf16>
    %cst_40 = arith.constant dense<0.000000e+00> : vector<64x32xf32>
    %44 = tpu.matmul %41, %43, %cst_40 {dimension_numbers = #tpu.dot_dimension_numbers<[1], [0], [0], [1], [0, 0, 1, 1], [], []>} : vector<64x16xbf16>, vector<16x32xbf16>, vector<64x32xf32> -> vector<64x32xf32>
    %c0_41 = arith.constant 0 : index
    %c0_42 = arith.constant 0 : index
    %45 = vector.load %arg7[%c0_41, %c0_42] : memref<64x32xf32, #tpu.memory_space<vmem>>, vector<64x32xf32>
    %46 = arith.addf %45, %44 : vector<64x32xf32>
    %c0_43 = arith.constant 0 : index
    %c0_44 = arith.constant 0 : index
    %47 = vector.load %arg7[%c0_43, %c0_44] : memref<64x32xf32, #tpu.memory_space<vmem>>, vector<64x32xf32>
    tpu.vector_store %arg7[%c0_43, %c0_44], %46 {strides = array<i32>} : memref<64x32xf32, #tpu.memory_space<vmem>>, vector<64x32xf32>,
    %48 = vector.extract_strided_slice %31 {offsets = [0, 2, 0], sizes = [8, 8, 16], strides = [1, 1, 1]} : vector<8x10x16xbf16> to vector<8x8x16xbf16>
    %49 = vector.shape_cast %48 : vector<8x8x16xbf16> to vector<64x16xbf16>
    %c1_45 = arith.constant 1 : index
    %c2_46 = arith.constant 2 : index
    %c0_47 = arith.constant 0 : index
    %c0_48 = arith.constant 0 : index
    %50 = vector.load %arg3[%c1_45, %c2_46, %c0_47, %c0_48] : memref<3x3x16x32xbf16, #tpu.memory_space<vmem>>, vector<1x1x16x32xbf16>
    %51 = vector.shape_cast %50 : vector<1x1x16x32xbf16> to vector<16x32xbf16>
    %cst_49 = arith.constant dense<0.000000e+00> : vector<64x32xf32>
    %52 = tpu.matmul %49, %51, %cst_49 {dimension_numbers = #tpu.dot_dimension_numbers<[1], [0], [0], [1], [0, 0, 1, 1], [], []>} : vector<64x16xbf16>, vector<16x32xbf16>, vector<64x32xf32> -> vector<64x32xf32>
    %c0_50 = arith.constant 0 : index
    %c0_51 = arith.constant 0 : index
    %53 = vector.load %arg7[%c0_50, %c0_51] : memref<64x32xf32, #tpu.memory_space<vmem>>, vector<64x32xf32>
    %54 = arith.addf %53, %52 : vector<64x32xf32>
    %c0_52 = arith.constant 0 : index
    %c0_53 = arith.constant 0 : index
    %55 = vector.load %arg7[%c0_52, %c0_53] : memref<64x32xf32, #tpu.memory_space<vmem>>, vector<64x32xf32>
    tpu.vector_store %arg7[%c0_52, %c0_53], %54 {strides = array<i32>} : memref<64x32xf32, #tpu.memory_space<vmem>>, vector<64x32xf32>,
    %c2_i32 = arith.constant 2 : i32
    %56 = arith.addi %1, %c2_i32 : i32
    %c0_54 = arith.constant 0 : index
    %57 = arith.index_cast %56 : i32 to index
    %c0_55 = arith.constant 0 : index
    %c0_56 = arith.constant 0 : index
    %58 = vector.load %arg2[%c0_54, %57, %c0_55, %c0_56] : memref<1x10x10x16xbf16, #tpu.memory_space<vmem>>, vector<1x8x10x16xbf16>
    %59 = vector.shape_cast %58 : vector<1x8x10x16xbf16> to vector<8x10x16xbf16>
    %60 = vector.extract_strided_slice %59 {offsets = [0, 0, 0], sizes = [8, 8, 16], strides = [1, 1, 1]} : vector<8x10x16xbf16> to vector<8x8x16xbf16>
    %61 = vector.shape_cast %60 : vector<8x8x16xbf16> to vector<64x16xbf16>
    %c2_57 = arith.constant 2 : index
    %c0_58 = arith.constant 0 : index
    %c0_59 = arith.constant 0 : index
    %c0_60 = arith.constant 0 : index
    %62 = vector.load %arg3[%c2_57, %c0_58, %c0_59, %c0_60] : memref<3x3x16x32xbf16, #tpu.memory_space<vmem>>, vector<1x1x16x32xbf16>
    %63 = vector.shape_cast %62 : vector<1x1x16x32xbf16> to vector<16x32xbf16>
    %cst_61 = arith.constant dense<0.000000e+00> : vector<64x32xf32>
    %64 = tpu.matmul %61, %63, %cst_61 {dimension_numbers = #tpu.dot_dimension_numbers<[1], [0], [0], [1], [0, 0, 1, 1], [], []>} : vector<64x16xbf16>, vector<16x32xbf16>, vector<64x32xf32> -> vector<64x32xf32>
    %c0_62 = arith.constant 0 : index
    %c0_63 = arith.constant 0 : index
    %65 = vector.load %arg7[%c0_62, %c0_63] : memref<64x32xf32, #tpu.memory_space<vmem>>, vector<64x32xf32>
    %66 = arith.addf %65, %64 : vector<64x32xf32>
    %c0_64 = arith.constant 0 : index
    %c0_65 = arith.constant 0 : index
    %67 = vector.load %arg7[%c0_64, %c0_65] : memref<64x32xf32, #tpu.memory_space<vmem>>, vector<64x32xf32>
    tpu.vector_store %arg7[%c0_64, %c0_65], %66 {strides = array<i32>} : memref<64x32xf32, #tpu.memory_space<vmem>>, vector<64x32xf32>,
    %68 = vector.extract_strided_slice %59 {offsets = [0, 1, 0], sizes = [8, 8, 16], strides = [1, 1, 1]} : vector<8x10x16xbf16> to vector<8x8x16xbf16>
    %69 = vector.shape_cast %68 : vector<8x8x16xbf16> to vector<64x16xbf16>
    %c2_66 = arith.constant 2 : index
    %c1_67 = arith.constant 1 : index
    %c0_68 = arith.constant 0 : index
    %c0_69 = arith.constant 0 : index
    %70 = vector.load %arg3[%c2_66, %c1_67, %c0_68, %c0_69] : memref<3x3x16x32xbf16, #tpu.memory_space<vmem>>, vector<1x1x16x32xbf16>
    %71 = vector.shape_cast %70 : vector<1x1x16x32xbf16> to vector<16x32xbf16>
    %cst_70 = arith.constant dense<0.000000e+00> : vector<64x32xf32>
    %72 = tpu.matmul %69, %71, %cst_70 {dimension_numbers = #tpu.dot_dimension_numbers<[1], [0], [0], [1], [0, 0, 1, 1], [], []>} : vector<64x16xbf16>, vector<16x32xbf16>, vector<64x32xf32> -> vector<64x32xf32>
    %c0_71 = arith.constant 0 : index
    %c0_72 = arith.constant 0 : index
    %73 = vector.load %arg7[%c0_71, %c0_72] : memref<64x32xf32, #tpu.memory_space<vmem>>, vector<64x32xf32>
    %74 = arith.addf %73, %72 : vector<64x32xf32>
    %c0_73 = arith.constant 0 : index
    %c0_74 = arith.constant 0 : index
    %75 = vector.load %arg7[%c0_73, %c0_74] : memref<64x32xf32, #tpu.memory_space<vmem>>, vector<64x32xf32>
    tpu.vector_store %arg7[%c0_73, %c0_74], %74 {strides = array<i32>} : memref<64x32xf32, #tpu.memory_space<vmem>>, vector<64x32xf32>,
    %76 = vector.extract_strided_slice %59 {offsets = [0, 2, 0], sizes = [8, 8, 16], strides = [1, 1, 1]} : vector<8x10x16xbf16> to vector<8x8x16xbf16>
    %77 = vector.shape_cast %76 : vector<8x8x16xbf16> to vector<64x16xbf16>
    %c2_75 = arith.constant 2 : index
    %c2_76 = arith.constant 2 : index
    %c0_77 = arith.constant 0 : index
    %c0_78 = arith.constant 0 : index
    %78 = vector.load %arg3[%c2_75, %c2_76, %c0_77, %c0_78] : memref<3x3x16x32xbf16, #tpu.memory_space<vmem>>, vector<1x1x16x32xbf16>
    %79 = vector.shape_cast %78 : vector<1x1x16x32xbf16> to vector<16x32xbf16>
    %cst_79 = arith.constant dense<0.000000e+00> : vector<64x32xf32>
    %80 = tpu.matmul %77, %79, %cst_79 {dimension_numbers = #tpu.dot_dimension_numbers<[1], [0], [0], [1], [0, 0, 1, 1], [], []>} : vector<64x16xbf16>, vector<16x32xbf16>, vector<64x32xf32> -> vector<64x32xf32>
    %c0_80 = arith.constant 0 : index
    %c0_81 = arith.constant 0 : index
    %81 = vector.load %arg7[%c0_80, %c0_81] : memref<64x32xf32, #tpu.memory_space<vmem>>, vector<64x32xf32>
    %82 = arith.addf %81, %80 : vector<64x32xf32>
    %c0_82 = arith.constant 0 : index
    %c0_83 = arith.constant 0 : index
    %83 = vector.load %arg7[%c0_82, %c0_83] : memref<64x32xf32, #tpu.memory_space<vmem>>, vector<64x32xf32>
    tpu.vector_store %arg7[%c0_82, %c0_83], %82 {strides = array<i32>} : memref<64x32xf32, #tpu.memory_space<vmem>>, vector<64x32xf32>,
    %c0_84 = arith.constant 0 : index
    %c0_85 = arith.constant 0 : index
    %84 = vector.load %arg7[%c0_84, %c0_85] : memref<64x32xf32, #tpu.memory_space<vmem>>, vector<64x32xf32>
    %c0_86 = arith.constant 0 : index
    %c0_87 = arith.constant 0 : index
    %85 = vector.load %arg4[%c0_86, %c0_87] : memref<1x32xf32, #tpu.memory_space<vmem>>, vector<1x32xf32>
    %86 = vector.broadcast %85 : vector<1x32xf32> to vector<64x32xf32>
    %87 = arith.mulf %84, %86 : vector<64x32xf32>
    %c0_88 = arith.constant 0 : index
    %c0_89 = arith.constant 0 : index
    %88 = vector.load %arg5[%c0_88, %c0_89] : memref<1x32xf32, #tpu.memory_space<vmem>>, vector<1x32xf32>
    %89 = vector.broadcast %88 : vector<1x32xf32> to vector<64x32xf32>
    %90 = arith.addf %87, %89 : vector<64x32xf32>
    %cst_90 = arith.constant 0.000000e+00 : f32
    %91 = vector.broadcast %cst_90 : f32 to vector<64x32xf32>
    %92 = arith.maximumf %90, %91 : vector<64x32xf32>
    %93 = arith.truncf %92 : vector<64x32xf32> to vector<64x32xbf16>
    %c0_91 = arith.constant 0 : index
    %c0_92 = arith.constant 0 : index
    %c0_93 = arith.constant 0 : index
    %94 = vector.load %arg6[%c0_91, %c0_92, %c0_93] : memref<1x64x32xbf16, #tpu.memory_space<vmem>>, vector<1x64x32xbf16>
    %95 = vector.shape_cast %94 : vector<1x64x32xbf16> to vector<64x32xbf16>
    %96 = vector.shape_cast %93 : vector<64x32xbf16> to vector<1x64x32xbf16>
    tpu.vector_store %arg6[%c0_91, %c0_92, %c0_93], %96 {strides = array<i32>} : memref<1x64x32xbf16, #tpu.memory_space<vmem>>, vector<1x64x32xbf16>,
    return
  }
  func.func @transform_0(%arg0: i32, %arg1: i32) -> (i32, i32, i32, i32) {
    %c0_i32 = arith.constant 0 : i32
    %c0_i32_0 = arith.constant 0 : i32
    %c0_i32_1 = arith.constant 0 : i32
    %c0_i32_2 = arith.constant 0 : i32
    return %arg0, %c0_i32, %c0_i32_0, %c0_i32_1 : i32, i32, i32, i32
  }
  func.func @transform_1(%arg0: i32, %arg1: i32) -> (i32, i32, i32, i32) {
    %c0_i32 = arith.constant 0 : i32
    %c0_i32_0 = arith.constant 0 : i32
    %c0_i32_1 = arith.constant 0 : i32
    %c0_i32_2 = arith.constant 0 : i32
    %c0_i32_3 = arith.constant 0 : i32
    return %c0_i32, %c0_i32_0, %c0_i32_1, %c0_i32_2 : i32, i32, i32, i32
  }
  func.func @transform_2(%arg0: i32, %arg1: i32) -> (i32, i32) {
    %c0_i32 = arith.constant 0 : i32
    %c0_i32_0 = arith.constant 0 : i32
    %c0_i32_1 = arith.constant 0 : i32
    return %c0_i32, %c0_i32_0 : i32, i32
  }
  func.func @transform_3(%arg0: i32, %arg1: i32) -> (i32, i32) {
    %c0_i32 = arith.constant 0 : i32
    %c0_i32_0 = arith.constant 0 : i32
    %c0_i32_1 = arith.constant 0 : i32
    return %c0_i32, %c0_i32_0 : i32, i32
  }
  func.func @transform_4(%arg0: i32, %arg1: i32) -> (i32, i32, i32) {
    %c0_i32 = arith.constant 0 : i32
    %c0_i32_0 = arith.constant 0 : i32
    return %arg0, %arg1, %c0_i32 : i32, i32, i32
  }
}

module attributes {stable_mosaic.version = 11 : i64} {
  func.func @_gemm_kernel(%arg0: i32, %arg1: i32, %arg2: memref<16x32xbf16, #tpu.memory_space<vmem>>, %arg3: memref<32x128xbf16, #tpu.memory_space<vmem>>, %arg4: memref<1x128xf32, #tpu.memory_space<vmem>>, %arg5: memref<1x128xf32, #tpu.memory_space<vmem>>, %arg6: memref<16x128xbf16, #tpu.memory_space<vmem>>, %arg7: memref<16x128xf32, #tpu.memory_space<vmem>>) attributes {dimension_semantics = [#tpu.dimension_semantics<parallel>, #tpu.dimension_semantics<arbitrary>], iteration_bounds = array<i64: 2, 1>, scalar_prefetch = 0 : i64, scratch_operands = 1 : i64, tpu.core_type = #tpu.core_type<tc>, window_params = [{transform_indices = @transform_0, window_bounds = array<i64: 16, 32>}, {transform_indices = @transform_1, window_bounds = array<i64: 32, 128>}, {pipeline_mode = #tpu.pipeline_mode<synchronous>, transform_indices = @transform_2, window_bounds = array<i64: 1, 128>}, {pipeline_mode = #tpu.pipeline_mode<synchronous>, transform_indices = @transform_3, window_bounds = array<i64: 1, 128>}, {transform_indices = @transform_4, window_bounds = array<i64: 16, 128>}]} {
    %c0_i32 = arith.constant 0 : i32
    %0 = arith.cmpi eq, %arg1, %c0_i32 : i32
    %1 = arith.extui %0 : i1 to i32
    %c0_i32_0 = arith.constant 0 : i32
    %2 = arith.cmpi ne, %1, %c0_i32_0 : i32
    scf.if %2 {
      %cst_10 = arith.constant 0.000000e+00 : f32
      %12 = vector.broadcast %cst_10 : f32 to vector<16x128xf32>
      %c0_11 = arith.constant 0 : index
      %c0_12 = arith.constant 0 : index
      %13 = vector.load %arg7[%c0_11, %c0_12] : memref<16x128xf32, #tpu.memory_space<vmem>>, vector<16x128xf32>
      tpu.vector_store %arg7[%c0_11, %c0_12], %12 {strides = array<i32>} : memref<16x128xf32, #tpu.memory_space<vmem>>, vector<16x128xf32>,
    } else {
    }
    %c0 = arith.constant 0 : index
    %c0_1 = arith.constant 0 : index
    %3 = vector.load %arg7[%c0, %c0_1] : memref<16x128xf32, #tpu.memory_space<vmem>>, vector<16x128xf32>
    %c0_2 = arith.constant 0 : index
    %c0_3 = arith.constant 0 : index
    %4 = vector.load %arg2[%c0_2, %c0_3] : memref<16x32xbf16, #tpu.memory_space<vmem>>, vector<16x32xbf16>
    %c0_4 = arith.constant 0 : index
    %c0_5 = arith.constant 0 : index
    %5 = vector.load %arg3[%c0_4, %c0_5] : memref<32x128xbf16, #tpu.memory_space<vmem>>, vector<32x128xbf16>
    %cst = arith.constant dense<0.000000e+00> : vector<16x128xf32>
    %6 = tpu.matmul %4, %5, %cst {dimension_numbers = #tpu.dot_dimension_numbers<[1], [0], [0], [1], [0, 0, 1, 1], [], []>} : vector<16x32xbf16>, vector<32x128xbf16>, vector<16x128xf32> -> vector<16x128xf32>
    %7 = arith.addf %3, %6 : vector<16x128xf32>
    %c0_6 = arith.constant 0 : index
    %c0_7 = arith.constant 0 : index
    %8 = vector.load %arg7[%c0_6, %c0_7] : memref<16x128xf32, #tpu.memory_space<vmem>>, vector<16x128xf32>
    tpu.vector_store %arg7[%c0_6, %c0_7], %7 {strides = array<i32>} : memref<16x128xf32, #tpu.memory_space<vmem>>, vector<16x128xf32>,
    %c0_i32_8 = arith.constant 0 : i32
    %9 = arith.cmpi eq, %arg1, %c0_i32_8 : i32
    %10 = arith.extui %9 : i1 to i32
    %c0_i32_9 = arith.constant 0 : i32
    %11 = arith.cmpi ne, %10, %c0_i32_9 : i32
    scf.if %11 {
      %c0_10 = arith.constant 0 : index
      %c0_11 = arith.constant 0 : index
      %12 = vector.load %arg7[%c0_10, %c0_11] : memref<16x128xf32, #tpu.memory_space<vmem>>, vector<16x128xf32>
      %c0_12 = arith.constant 0 : index
      %c0_13 = arith.constant 0 : index
      %13 = vector.load %arg4[%c0_12, %c0_13] : memref<1x128xf32, #tpu.memory_space<vmem>>, vector<1x128xf32>
      %14 = vector.broadcast %13 : vector<1x128xf32> to vector<16x128xf32>
      %15 = arith.mulf %12, %14 : vector<16x128xf32>
      %c0_14 = arith.constant 0 : index
      %c0_15 = arith.constant 0 : index
      %16 = vector.load %arg5[%c0_14, %c0_15] : memref<1x128xf32, #tpu.memory_space<vmem>>, vector<1x128xf32>
      %17 = vector.broadcast %16 : vector<1x128xf32> to vector<16x128xf32>
      %18 = arith.addf %15, %17 : vector<16x128xf32>
      %cst_16 = arith.constant 0.000000e+00 : f32
      %19 = vector.broadcast %cst_16 : f32 to vector<16x128xf32>
      %20 = arith.maximumf %18, %19 : vector<16x128xf32>
      %21 = arith.truncf %20 : vector<16x128xf32> to vector<16x128xbf16>
      %c0_17 = arith.constant 0 : index
      %c0_18 = arith.constant 0 : index
      %22 = vector.load %arg6[%c0_17, %c0_18] : memref<16x128xbf16, #tpu.memory_space<vmem>>, vector<16x128xbf16>
      tpu.vector_store %arg6[%c0_17, %c0_18], %21 {strides = array<i32>} : memref<16x128xbf16, #tpu.memory_space<vmem>>, vector<16x128xbf16>,
    } else {
    }
    return
  }
  func.func @transform_0(%arg0: i32, %arg1: i32) -> (i32, i32) {
    %c0_i32 = arith.constant 0 : i32
    return %arg0, %arg1 : i32, i32
  }
  func.func @transform_1(%arg0: i32, %arg1: i32) -> (i32, i32) {
    %c0_i32 = arith.constant 0 : i32
    %c0_i32_0 = arith.constant 0 : i32
    return %arg1, %c0_i32 : i32, i32
  }
  func.func @transform_2(%arg0: i32, %arg1: i32) -> (i32, i32) {
    %c0_i32 = arith.constant 0 : i32
    %c0_i32_0 = arith.constant 0 : i32
    %c0_i32_1 = arith.constant 0 : i32
    return %c0_i32, %c0_i32_0 : i32, i32
  }
  func.func @transform_3(%arg0: i32, %arg1: i32) -> (i32, i32) {
    %c0_i32 = arith.constant 0 : i32
    %c0_i32_0 = arith.constant 0 : i32
    %c0_i32_1 = arith.constant 0 : i32
    return %c0_i32, %c0_i32_0 : i32, i32
  }
  func.func @transform_4(%arg0: i32, %arg1: i32) -> (i32, i32) {
    %c0_i32 = arith.constant 0 : i32
    %c0_i32_0 = arith.constant 0 : i32
    return %arg0, %c0_i32 : i32, i32
  }
}

module attributes {stable_mosaic.version = 11 : i64} {
  func.func @_resize_rows_kernel(%arg0: i32, %arg1: i32, %arg2: memref<8xi32, #tpu.memory_space<smem>>, %arg3: memref<8xi32, #tpu.memory_space<smem>>, %arg4: memref<8xf32, #tpu.memory_space<smem>>, %arg5: memref<8x4xf32, #tpu.memory_space<vmem>>, %arg6: memref<1x4x4x24xbf16, #tpu.memory_space<vmem>>, %arg7: memref<1x8x8x24xbf16, #tpu.memory_space<vmem>>) attributes {dimension_semantics = [#tpu.dimension_semantics<parallel>, #tpu.dimension_semantics<arbitrary>], iteration_bounds = array<i64: 2, 1>, scalar_prefetch = 0 : i64, scratch_operands = 0 : i64, tpu.core_type = #tpu.core_type<tc>, window_params = [{transform_indices = @transform_0, window_bounds = array<i64: 8>}, {transform_indices = @transform_1, window_bounds = array<i64: 8>}, {transform_indices = @transform_2, window_bounds = array<i64: 8>}, {pipeline_mode = #tpu.pipeline_mode<synchronous>, transform_indices = @transform_3, window_bounds = array<i64: 8, 4>}, {transform_indices = @transform_4, window_bounds = array<i64: 1, 4, 4, 24>}, {transform_indices = @transform_5, window_bounds = array<i64: 1, 8, 8, 24>}]} {
    %c8_i32 = arith.constant 8 : i32
    %0 = arith.muli %arg1, %c8_i32 : i32
    %1 = tpu.assume_multiple %0, 8 : i32
    %c0_i32 = arith.constant 0 : i32
    %2 = arith.addi %1, %c0_i32 : i32
    %3 = arith.index_cast %2 : i32 to index
    %4 = memref.load %arg2[%3] : memref<8xi32, #tpu.memory_space<smem>>
    %5 = arith.index_cast %2 : i32 to index
    %6 = memref.load %arg3[%5] : memref<8xi32, #tpu.memory_space<smem>>
    %7 = arith.index_cast %2 : i32 to index
    %8 = memref.load %arg4[%7] : memref<8xf32, #tpu.memory_space<smem>>
    %cst = arith.constant 1.000000e+00 : f32
    %9 = arith.subf %cst, %8 : f32
    %c0 = arith.constant 0 : index
    %10 = arith.index_cast %4 : i32 to index
    %c0_0 = arith.constant 0 : index
    %c0_1 = arith.constant 0 : index
    %11 = vector.load %arg6[%c0, %10, %c0_0, %c0_1] : memref<1x4x4x24xbf16, #tpu.memory_space<vmem>>, vector<1x1x4x24xbf16>
    %12 = vector.shape_cast %11 : vector<1x1x4x24xbf16> to vector<4x24xbf16>
    %13 = arith.extf %12 : vector<4x24xbf16> to vector<4x24xf32>
    %14 = vector.broadcast %9 : f32 to vector<4x24xf32>
    %15 = arith.mulf %14, %13 : vector<4x24xf32>
    %c0_2 = arith.constant 0 : index
    %16 = arith.index_cast %6 : i32 to index
    %c0_3 = arith.constant 0 : index
    %c0_4 = arith.constant 0 : index
    %17 = vector.load %arg6[%c0_2, %16, %c0_3, %c0_4] : memref<1x4x4x24xbf16, #tpu.memory_space<vmem>>, vector<1x1x4x24xbf16>
    %18 = vector.shape_cast %17 : vector<1x1x4x24xbf16> to vector<4x24xbf16>
    %19 = arith.extf %18 : vector<4x24xbf16> to vector<4x24xf32>
    %20 = vector.broadcast %8 : f32 to vector<4x24xf32>
    %21 = arith.mulf %20, %19 : vector<4x24xf32>
    %22 = arith.addf %15, %21 : vector<4x24xf32>
    %c0_5 = arith.constant 0 : index
    %c0_6 = arith.constant 0 : index
    %23 = vector.load %arg5[%c0_5, %c0_6] : memref<8x4xf32, #tpu.memory_space<vmem>>, vector<8x4xf32>
    %cst_7 = arith.constant dense<0.000000e+00> : vector<8x24xf32>
    %24 = tpu.matmul %23, %22, %cst_7 {dimension_numbers = #tpu.dot_dimension_numbers<[1], [0], [0], [1], [0, 0, 1, 1], [], []>} : vector<8x4xf32>, vector<4x24xf32>, vector<8x24xf32> -> vector<8x24xf32>
    %25 = arith.truncf %24 : vector<8x24xf32> to vector<8x24xbf16>
    %c0_8 = arith.constant 0 : index
    %c0_9 = arith.constant 0 : index
    %c0_10 = arith.constant 0 : index
    %c0_11 = arith.constant 0 : index
    %26 = vector.load %arg7[%c0_8, %c0_9, %c0_10, %c0_11] : memref<1x8x8x24xbf16, #tpu.memory_space<vmem>>, vector<1x1x8x24xbf16>
    %27 = vector.shape_cast %26 : vector<1x1x8x24xbf16> to vector<8x24xbf16>
    %28 = vector.shape_cast %25 : vector<8x24xbf16> to vector<1x1x8x24xbf16>
    tpu.vector_store %arg7[%c0_8, %c0_9, %c0_10, %c0_11], %28 {strides = array<i32>} : memref<1x8x8x24xbf16, #tpu.memory_space<vmem>>, vector<1x1x8x24xbf16>,
    %c1_i32 = arith.constant 1 : i32
    %29 = arith.addi %1, %c1_i32 : i32
    %30 = arith.index_cast %29 : i32 to index
    %31 = memref.load %arg2[%30] : memref<8xi32, #tpu.memory_space<smem>>
    %32 = arith.index_cast %29 : i32 to index
    %33 = memref.load %arg3[%32] : memref<8xi32, #tpu.memory_space<smem>>
    %34 = arith.index_cast %29 : i32 to index
    %35 = memref.load %arg4[%34] : memref<8xf32, #tpu.memory_space<smem>>
    %cst_12 = arith.constant 1.000000e+00 : f32
    %36 = arith.subf %cst_12, %35 : f32
    %c0_13 = arith.constant 0 : index
    %37 = arith.index_cast %31 : i32 to index
    %c0_14 = arith.constant 0 : index
    %c0_15 = arith.constant 0 : index
    %38 = vector.load %arg6[%c0_13, %37, %c0_14, %c0_15] : memref<1x4x4x24xbf16, #tpu.memory_space<vmem>>, vector<1x1x4x24xbf16>
    %39 = vector.shape_cast %38 : vector<1x1x4x24xbf16> to vector<4x24xbf16>
    %40 = arith.extf %39 : vector<4x24xbf16> to vector<4x24xf32>
    %41 = vector.broadcast %36 : f32 to vector<4x24xf32>
    %42 = arith.mulf %41, %40 : vector<4x24xf32>
    %c0_16 = arith.constant 0 : index
    %43 = arith.index_cast %33 : i32 to index
    %c0_17 = arith.constant 0 : index
    %c0_18 = arith.constant 0 : index
    %44 = vector.load %arg6[%c0_16, %43, %c0_17, %c0_18] : memref<1x4x4x24xbf16, #tpu.memory_space<vmem>>, vector<1x1x4x24xbf16>
    %45 = vector.shape_cast %44 : vector<1x1x4x24xbf16> to vector<4x24xbf16>
    %46 = arith.extf %45 : vector<4x24xbf16> to vector<4x24xf32>
    %47 = vector.broadcast %35 : f32 to vector<4x24xf32>
    %48 = arith.mulf %47, %46 : vector<4x24xf32>
    %49 = arith.addf %42, %48 : vector<4x24xf32>
    %c0_19 = arith.constant 0 : index
    %c0_20 = arith.constant 0 : index
    %50 = vector.load %arg5[%c0_19, %c0_20] : memref<8x4xf32, #tpu.memory_space<vmem>>, vector<8x4xf32>
    %cst_21 = arith.constant dense<0.000000e+00> : vector<8x24xf32>
    %51 = tpu.matmul %50, %49, %cst_21 {dimension_numbers = #tpu.dot_dimension_numbers<[1], [0], [0], [1], [0, 0, 1, 1], [], []>} : vector<8x4xf32>, vector<4x24xf32>, vector<8x24xf32> -> vector<8x24xf32>
    %52 = arith.truncf %51 : vector<8x24xf32> to vector<8x24xbf16>
    %c0_22 = arith.constant 0 : index
    %c1 = arith.constant 1 : index
    %c0_23 = arith.constant 0 : index
    %c0_24 = arith.constant 0 : index
    %53 = vector.load %arg7[%c0_22, %c1, %c0_23, %c0_24] : memref<1x8x8x24xbf16, #tpu.memory_space<vmem>>, vector<1x1x8x24xbf16>
    %54 = vector.shape_cast %53 : vector<1x1x8x24xbf16> to vector<8x24xbf16>
    %55 = vector.shape_cast %52 : vector<8x24xbf16> to vector<1x1x8x24xbf16>
    tpu.vector_store %arg7[%c0_22, %c1, %c0_23, %c0_24], %55 {strides = array<i32>} : memref<1x8x8x24xbf16, #tpu.memory_space<vmem>>, vector<1x1x8x24xbf16>,
    %c2_i32 = arith.constant 2 : i32
    %56 = arith.addi %1, %c2_i32 : i32
    %57 = arith.index_cast %56 : i32 to index
    %58 = memref.load %arg2[%57] : memref<8xi32, #tpu.memory_space<smem>>
    %59 = arith.index_cast %56 : i32 to index
    %60 = memref.load %arg3[%59] : memref<8xi32, #tpu.memory_space<smem>>
    %61 = arith.index_cast %56 : i32 to index
    %62 = memref.load %arg4[%61] : memref<8xf32, #tpu.memory_space<smem>>
    %cst_25 = arith.constant 1.000000e+00 : f32
    %63 = arith.subf %cst_25, %62 : f32
    %c0_26 = arith.constant 0 : index
    %64 = arith.index_cast %58 : i32 to index
    %c0_27 = arith.constant 0 : index
    %c0_28 = arith.constant 0 : index
    %65 = vector.load %arg6[%c0_26, %64, %c0_27, %c0_28] : memref<1x4x4x24xbf16, #tpu.memory_space<vmem>>, vector<1x1x4x24xbf16>
    %66 = vector.shape_cast %65 : vector<1x1x4x24xbf16> to vector<4x24xbf16>
    %67 = arith.extf %66 : vector<4x24xbf16> to vector<4x24xf32>
    %68 = vector.broadcast %63 : f32 to vector<4x24xf32>
    %69 = arith.mulf %68, %67 : vector<4x24xf32>
    %c0_29 = arith.constant 0 : index
    %70 = arith.index_cast %60 : i32 to index
    %c0_30 = arith.constant 0 : index
    %c0_31 = arith.constant 0 : index
    %71 = vector.load %arg6[%c0_29, %70, %c0_30, %c0_31] : memref<1x4x4x24xbf16, #tpu.memory_space<vmem>>, vector<1x1x4x24xbf16>
    %72 = vector.shape_cast %71 : vector<1x1x4x24xbf16> to vector<4x24xbf16>
    %73 = arith.extf %72 : vector<4x24xbf16> to vector<4x24xf32>
    %74 = vector.broadcast %62 : f32 to vector<4x24xf32>
    %75 = arith.mulf %74, %73 : vector<4x24xf32>
    %76 = arith.addf %69, %75 : vector<4x24xf32>
    %c0_32 = arith.constant 0 : index
    %c0_33 = arith.constant 0 : index
    %77 = vector.load %arg5[%c0_32, %c0_33] : memref<8x4xf32, #tpu.memory_space<vmem>>, vector<8x4xf32>
    %cst_34 = arith.constant dense<0.000000e+00> : vector<8x24xf32>
    %78 = tpu.matmul %77, %76, %cst_34 {dimension_numbers = #tpu.dot_dimension_numbers<[1], [0], [0], [1], [0, 0, 1, 1], [], []>} : vector<8x4xf32>, vector<4x24xf32>, vector<8x24xf32> -> vector<8x24xf32>
    %79 = arith.truncf %78 : vector<8x24xf32> to vector<8x24xbf16>
    %c0_35 = arith.constant 0 : index
    %c2 = arith.constant 2 : index
    %c0_36 = arith.constant 0 : index
    %c0_37 = arith.constant 0 : index
    %80 = vector.load %arg7[%c0_35, %c2, %c0_36, %c0_37] : memref<1x8x8x24xbf16, #tpu.memory_space<vmem>>, vector<1x1x8x24xbf16>
    %81 = vector.shape_cast %80 : vector<1x1x8x24xbf16> to vector<8x24xbf16>
    %82 = vector.shape_cast %79 : vector<8x24xbf16> to vector<1x1x8x24xbf16>
    tpu.vector_store %arg7[%c0_35, %c2, %c0_36, %c0_37], %82 {strides = array<i32>} : memref<1x8x8x24xbf16, #tpu.memory_space<vmem>>, vector<1x1x8x24xbf16>,
    %c3_i32 = arith.constant 3 : i32
    %83 = arith.addi %1, %c3_i32 : i32
    %84 = arith.index_cast %83 : i32 to index
    %85 = memref.load %arg2[%84] : memref<8xi32, #tpu.memory_space<smem>>
    %86 = arith.index_cast %83 : i32 to index
    %87 = memref.load %arg3[%86] : memref<8xi32, #tpu.memory_space<smem>>
    %88 = arith.index_cast %83 : i32 to index
    %89 = memref.load %arg4[%88] : memref<8xf32, #tpu.memory_space<smem>>
    %cst_38 = arith.constant 1.000000e+00 : f32
    %90 = arith.subf %cst_38, %89 : f32
    %c0_39 = arith.constant 0 : index
    %91 = arith.index_cast %85 : i32 to index
    %c0_40 = arith.constant 0 : index
    %c0_41 = arith.constant 0 : index
    %92 = vector.load %arg6[%c0_39, %91, %c0_40, %c0_41] : memref<1x4x4x24xbf16, #tpu.memory_space<vmem>>, vector<1x1x4x24xbf16>
    %93 = vector.shape_cast %92 : vector<1x1x4x24xbf16> to vector<4x24xbf16>
    %94 = arith.extf %93 : vector<4x24xbf16> to vector<4x24xf32>
    %95 = vector.broadcast %90 : f32 to vector<4x24xf32>
    %96 = arith.mulf %95, %94 : vector<4x24xf32>
    %c0_42 = arith.constant 0 : index
    %97 = arith.index_cast %87 : i32 to index
    %c0_43 = arith.constant 0 : index
    %c0_44 = arith.constant 0 : index
    %98 = vector.load %arg6[%c0_42, %97, %c0_43, %c0_44] : memref<1x4x4x24xbf16, #tpu.memory_space<vmem>>, vector<1x1x4x24xbf16>
    %99 = vector.shape_cast %98 : vector<1x1x4x24xbf16> to vector<4x24xbf16>
    %100 = arith.extf %99 : vector<4x24xbf16> to vector<4x24xf32>
    %101 = vector.broadcast %89 : f32 to vector<4x24xf32>
    %102 = arith.mulf %101, %100 : vector<4x24xf32>
    %103 = arith.addf %96, %102 : vector<4x24xf32>
    %c0_45 = arith.constant 0 : index
    %c0_46 = arith.constant 0 : index
    %104 = vector.load %arg5[%c0_45, %c0_46] : memref<8x4xf32, #tpu.memory_space<vmem>>, vector<8x4xf32>
    %cst_47 = arith.constant dense<0.000000e+00> : vector<8x24xf32>
    %105 = tpu.matmul %104, %103, %cst_47 {dimension_numbers = #tpu.dot_dimension_numbers<[1], [0], [0], [1], [0, 0, 1, 1], [], []>} : vector<8x4xf32>, vector<4x24xf32>, vector<8x24xf32> -> vector<8x24xf32>
    %106 = arith.truncf %105 : vector<8x24xf32> to vector<8x24xbf16>
    %c0_48 = arith.constant 0 : index
    %c3 = arith.constant 3 : index
    %c0_49 = arith.constant 0 : index
    %c0_50 = arith.constant 0 : index
    %107 = vector.load %arg7[%c0_48, %c3, %c0_49, %c0_50] : memref<1x8x8x24xbf16, #tpu.memory_space<vmem>>, vector<1x1x8x24xbf16>
    %108 = vector.shape_cast %107 : vector<1x1x8x24xbf16> to vector<8x24xbf16>
    %109 = vector.shape_cast %106 : vector<8x24xbf16> to vector<1x1x8x24xbf16>
    tpu.vector_store %arg7[%c0_48, %c3, %c0_49, %c0_50], %109 {strides = array<i32>} : memref<1x8x8x24xbf16, #tpu.memory_space<vmem>>, vector<1x1x8x24xbf16>,
    %c4_i32 = arith.constant 4 : i32
    %110 = arith.addi %1, %c4_i32 : i32
    %111 = arith.index_cast %110 : i32 to index
    %112 = memref.load %arg2[%111] : memref<8xi32, #tpu.memory_space<smem>>
    %113 = arith.index_cast %110 : i32 to index
    %114 = memref.load %arg3[%113] : memref<8xi32, #tpu.memory_space<smem>>
    %115 = arith.index_cast %110 : i32 to index
    %116 = memref.load %arg4[%115] : memref<8xf32, #tpu.memory_space<smem>>
    %cst_51 = arith.constant 1.000000e+00 : f32
    %117 = arith.subf %cst_51, %116 : f32
    %c0_52 = arith.constant 0 : index
    %118 = arith.index_cast %112 : i32 to index
    %c0_53 = arith.constant 0 : index
    %c0_54 = arith.constant 0 : index
    %119 = vector.load %arg6[%c0_52, %118, %c0_53, %c0_54] : memref<1x4x4x24xbf16, #tpu.memory_space<vmem>>, vector<1x1x4x24xbf16>
    %120 = vector.shape_cast %119 : vector<1x1x4x24xbf16> to vector<4x24xbf16>
    %121 = arith.extf %120 : vector<4x24xbf16> to vector<4x24xf32>
    %122 = vector.broadcast %117 : f32 to vector<4x24xf32>
    %123 = arith.mulf %122, %121 : vector<4x24xf32>
    %c0_55 = arith.constant 0 : index
    %124 = arith.index_cast %114 : i32 to index
    %c0_56 = arith.constant 0 : index
    %c0_57 = arith.constant 0 : index
    %125 = vector.load %arg6[%c0_55, %124, %c0_56, %c0_57] : memref<1x4x4x24xbf16, #tpu.memory_space<vmem>>, vector<1x1x4x24xbf16>
    %126 = vector.shape_cast %125 : vector<1x1x4x24xbf16> to vector<4x24xbf16>
    %127 = arith.extf %126 : vector<4x24xbf16> to vector<4x24xf32>
    %128 = vector.broadcast %116 : f32 to vector<4x24xf32>
    %129 = arith.mulf %128, %127 : vector<4x24xf32>
    %130 = arith.addf %123, %129 : vector<4x24xf32>
    %c0_58 = arith.constant 0 : index
    %c0_59 = arith.constant 0 : index
    %131 = vector.load %arg5[%c0_58, %c0_59] : memref<8x4xf32, #tpu.memory_space<vmem>>, vector<8x4xf32>
    %cst_60 = arith.constant dense<0.000000e+00> : vector<8x24xf32>
    %132 = tpu.matmul %131, %130, %cst_60 {dimension_numbers = #tpu.dot_dimension_numbers<[1], [0], [0], [1], [0, 0, 1, 1], [], []>} : vector<8x4xf32>, vector<4x24xf32>, vector<8x24xf32> -> vector<8x24xf32>
    %133 = arith.truncf %132 : vector<8x24xf32> to vector<8x24xbf16>
    %c0_61 = arith.constant 0 : index
    %c4 = arith.constant 4 : index
    %c0_62 = arith.constant 0 : index
    %c0_63 = arith.constant 0 : index
    %134 = vector.load %arg7[%c0_61, %c4, %c0_62, %c0_63] : memref<1x8x8x24xbf16, #tpu.memory_space<vmem>>, vector<1x1x8x24xbf16>
    %135 = vector.shape_cast %134 : vector<1x1x8x24xbf16> to vector<8x24xbf16>
    %136 = vector.shape_cast %133 : vector<8x24xbf16> to vector<1x1x8x24xbf16>
    tpu.vector_store %arg7[%c0_61, %c4, %c0_62, %c0_63], %136 {strides = array<i32>} : memref<1x8x8x24xbf16, #tpu.memory_space<vmem>>, vector<1x1x8x24xbf16>,
    %c5_i32 = arith.constant 5 : i32
    %137 = arith.addi %1, %c5_i32 : i32
    %138 = arith.index_cast %137 : i32 to index
    %139 = memref.load %arg2[%138] : memref<8xi32, #tpu.memory_space<smem>>
    %140 = arith.index_cast %137 : i32 to index
    %141 = memref.load %arg3[%140] : memref<8xi32, #tpu.memory_space<smem>>
    %142 = arith.index_cast %137 : i32 to index
    %143 = memref.load %arg4[%142] : memref<8xf32, #tpu.memory_space<smem>>
    %cst_64 = arith.constant 1.000000e+00 : f32
    %144 = arith.subf %cst_64, %143 : f32
    %c0_65 = arith.constant 0 : index
    %145 = arith.index_cast %139 : i32 to index
    %c0_66 = arith.constant 0 : index
    %c0_67 = arith.constant 0 : index
    %146 = vector.load %arg6[%c0_65, %145, %c0_66, %c0_67] : memref<1x4x4x24xbf16, #tpu.memory_space<vmem>>, vector<1x1x4x24xbf16>
    %147 = vector.shape_cast %146 : vector<1x1x4x24xbf16> to vector<4x24xbf16>
    %148 = arith.extf %147 : vector<4x24xbf16> to vector<4x24xf32>
    %149 = vector.broadcast %144 : f32 to vector<4x24xf32>
    %150 = arith.mulf %149, %148 : vector<4x24xf32>
    %c0_68 = arith.constant 0 : index
    %151 = arith.index_cast %141 : i32 to index
    %c0_69 = arith.constant 0 : index
    %c0_70 = arith.constant 0 : index
    %152 = vector.load %arg6[%c0_68, %151, %c0_69, %c0_70] : memref<1x4x4x24xbf16, #tpu.memory_space<vmem>>, vector<1x1x4x24xbf16>
    %153 = vector.shape_cast %152 : vector<1x1x4x24xbf16> to vector<4x24xbf16>
    %154 = arith.extf %153 : vector<4x24xbf16> to vector<4x24xf32>
    %155 = vector.broadcast %143 : f32 to vector<4x24xf32>
    %156 = arith.mulf %155, %154 : vector<4x24xf32>
    %157 = arith.addf %150, %156 : vector<4x24xf32>
    %c0_71 = arith.constant 0 : index
    %c0_72 = arith.constant 0 : index
    %158 = vector.load %arg5[%c0_71, %c0_72] : memref<8x4xf32, #tpu.memory_space<vmem>>, vector<8x4xf32>
    %cst_73 = arith.constant dense<0.000000e+00> : vector<8x24xf32>
    %159 = tpu.matmul %158, %157, %cst_73 {dimension_numbers = #tpu.dot_dimension_numbers<[1], [0], [0], [1], [0, 0, 1, 1], [], []>} : vector<8x4xf32>, vector<4x24xf32>, vector<8x24xf32> -> vector<8x24xf32>
    %160 = arith.truncf %159 : vector<8x24xf32> to vector<8x24xbf16>
    %c0_74 = arith.constant 0 : index
    %c5 = arith.constant 5 : index
    %c0_75 = arith.constant 0 : index
    %c0_76 = arith.constant 0 : index
    %161 = vector.load %arg7[%c0_74, %c5, %c0_75, %c0_76] : memref<1x8x8x24xbf16, #tpu.memory_space<vmem>>, vector<1x1x8x24xbf16>
    %162 = vector.shape_cast %161 : vector<1x1x8x24xbf16> to vector<8x24xbf16>
    %163 = vector.shape_cast %160 : vector<8x24xbf16> to vector<1x1x8x24xbf16>
    tpu.vector_store %arg7[%c0_74, %c5, %c0_75, %c0_76], %163 {strides = array<i32>} : memref<1x8x8x24xbf16, #tpu.memory_space<vmem>>, vector<1x1x8x24xbf16>,
    %c6_i32 = arith.constant 6 : i32
    %164 = arith.addi %1, %c6_i32 : i32
    %165 = arith.index_cast %164 : i32 to index
    %166 = memref.load %arg2[%165] : memref<8xi32, #tpu.memory_space<smem>>
    %167 = arith.index_cast %164 : i32 to index
    %168 = memref.load %arg3[%167] : memref<8xi32, #tpu.memory_space<smem>>
    %169 = arith.index_cast %164 : i32 to index
    %170 = memref.load %arg4[%169] : memref<8xf32, #tpu.memory_space<smem>>
    %cst_77 = arith.constant 1.000000e+00 : f32
    %171 = arith.subf %cst_77, %170 : f32
    %c0_78 = arith.constant 0 : index
    %172 = arith.index_cast %166 : i32 to index
    %c0_79 = arith.constant 0 : index
    %c0_80 = arith.constant 0 : index
    %173 = vector.load %arg6[%c0_78, %172, %c0_79, %c0_80] : memref<1x4x4x24xbf16, #tpu.memory_space<vmem>>, vector<1x1x4x24xbf16>
    %174 = vector.shape_cast %173 : vector<1x1x4x24xbf16> to vector<4x24xbf16>
    %175 = arith.extf %174 : vector<4x24xbf16> to vector<4x24xf32>
    %176 = vector.broadcast %171 : f32 to vector<4x24xf32>
    %177 = arith.mulf %176, %175 : vector<4x24xf32>
    %c0_81 = arith.constant 0 : index
    %178 = arith.index_cast %168 : i32 to index
    %c0_82 = arith.constant 0 : index
    %c0_83 = arith.constant 0 : index
    %179 = vector.load %arg6[%c0_81, %178, %c0_82, %c0_83] : memref<1x4x4x24xbf16, #tpu.memory_space<vmem>>, vector<1x1x4x24xbf16>
    %180 = vector.shape_cast %179 : vector<1x1x4x24xbf16> to vector<4x24xbf16>
    %181 = arith.extf %180 : vector<4x24xbf16> to vector<4x24xf32>
    %182 = vector.broadcast %170 : f32 to vector<4x24xf32>
    %183 = arith.mulf %182, %181 : vector<4x24xf32>
    %184 = arith.addf %177, %183 : vector<4x24xf32>
    %c0_84 = arith.constant 0 : index
    %c0_85 = arith.constant 0 : index
    %185 = vector.load %arg5[%c0_84, %c0_85] : memref<8x4xf32, #tpu.memory_space<vmem>>, vector<8x4xf32>
    %cst_86 = arith.constant dense<0.000000e+00> : vector<8x24xf32>
    %186 = tpu.matmul %185, %184, %cst_86 {dimension_numbers = #tpu.dot_dimension_numbers<[1], [0], [0], [1], [0, 0, 1, 1], [], []>} : vector<8x4xf32>, vector<4x24xf32>, vector<8x24xf32> -> vector<8x24xf32>
    %187 = arith.truncf %186 : vector<8x24xf32> to vector<8x24xbf16>
    %c0_87 = arith.constant 0 : index
    %c6 = arith.constant 6 : index
    %c0_88 = arith.constant 0 : index
    %c0_89 = arith.constant 0 : index
    %188 = vector.load %arg7[%c0_87, %c6, %c0_88, %c0_89] : memref<1x8x8x24xbf16, #tpu.memory_space<vmem>>, vector<1x1x8x24xbf16>
    %189 = vector.shape_cast %188 : vector<1x1x8x24xbf16> to vector<8x24xbf16>
    %190 = vector.shape_cast %187 : vector<8x24xbf16> to vector<1x1x8x24xbf16>
    tpu.vector_store %arg7[%c0_87, %c6, %c0_88, %c0_89], %190 {strides = array<i32>} : memref<1x8x8x24xbf16, #tpu.memory_space<vmem>>, vector<1x1x8x24xbf16>,
    %c7_i32 = arith.constant 7 : i32
    %191 = arith.addi %1, %c7_i32 : i32
    %192 = arith.index_cast %191 : i32 to index
    %193 = memref.load %arg2[%192] : memref<8xi32, #tpu.memory_space<smem>>
    %194 = arith.index_cast %191 : i32 to index
    %195 = memref.load %arg3[%194] : memref<8xi32, #tpu.memory_space<smem>>
    %196 = arith.index_cast %191 : i32 to index
    %197 = memref.load %arg4[%196] : memref<8xf32, #tpu.memory_space<smem>>
    %cst_90 = arith.constant 1.000000e+00 : f32
    %198 = arith.subf %cst_90, %197 : f32
    %c0_91 = arith.constant 0 : index
    %199 = arith.index_cast %193 : i32 to index
    %c0_92 = arith.constant 0 : index
    %c0_93 = arith.constant 0 : index
    %200 = vector.load %arg6[%c0_91, %199, %c0_92, %c0_93] : memref<1x4x4x24xbf16, #tpu.memory_space<vmem>>, vector<1x1x4x24xbf16>
    %201 = vector.shape_cast %200 : vector<1x1x4x24xbf16> to vector<4x24xbf16>
    %202 = arith.extf %201 : vector<4x24xbf16> to vector<4x24xf32>
    %203 = vector.broadcast %198 : f32 to vector<4x24xf32>
    %204 = arith.mulf %203, %202 : vector<4x24xf32>
    %c0_94 = arith.constant 0 : index
    %205 = arith.index_cast %195 : i32 to index
    %c0_95 = arith.constant 0 : index
    %c0_96 = arith.constant 0 : index
    %206 = vector.load %arg6[%c0_94, %205, %c0_95, %c0_96] : memref<1x4x4x24xbf16, #tpu.memory_space<vmem>>, vector<1x1x4x24xbf16>
    %207 = vector.shape_cast %206 : vector<1x1x4x24xbf16> to vector<4x24xbf16>
    %208 = arith.extf %207 : vector<4x24xbf16> to vector<4x24xf32>
    %209 = vector.broadcast %197 : f32 to vector<4x24xf32>
    %210 = arith.mulf %209, %208 : vector<4x24xf32>
    %211 = arith.addf %204, %210 : vector<4x24xf32>
    %c0_97 = arith.constant 0 : index
    %c0_98 = arith.constant 0 : index
    %212 = vector.load %arg5[%c0_97, %c0_98] : memref<8x4xf32, #tpu.memory_space<vmem>>, vector<8x4xf32>
    %cst_99 = arith.constant dense<0.000000e+00> : vector<8x24xf32>
    %213 = tpu.matmul %212, %211, %cst_99 {dimension_numbers = #tpu.dot_dimension_numbers<[1], [0], [0], [1], [0, 0, 1, 1], [], []>} : vector<8x4xf32>, vector<4x24xf32>, vector<8x24xf32> -> vector<8x24xf32>
    %214 = arith.truncf %213 : vector<8x24xf32> to vector<8x24xbf16>
    %c0_100 = arith.constant 0 : index
    %c7 = arith.constant 7 : index
    %c0_101 = arith.constant 0 : index
    %c0_102 = arith.constant 0 : index
    %215 = vector.load %arg7[%c0_100, %c7, %c0_101, %c0_102] : memref<1x8x8x24xbf16, #tpu.memory_space<vmem>>, vector<1x1x8x24xbf16>
    %216 = vector.shape_cast %215 : vector<1x1x8x24xbf16> to vector<8x24xbf16>
    %217 = vector.shape_cast %214 : vector<8x24xbf16> to vector<1x1x8x24xbf16>
    tpu.vector_store %arg7[%c0_100, %c7, %c0_101, %c0_102], %217 {strides = array<i32>} : memref<1x8x8x24xbf16, #tpu.memory_space<vmem>>, vector<1x1x8x24xbf16>,
    return
  }
  func.func @transform_0(%arg0: i32, %arg1: i32) -> i32 {
    %c0_i32 = arith.constant 0 : i32
    %c0_i32_0 = arith.constant 0 : i32
    return %c0_i32 : i32
  }
  func.func @transform_1(%arg0: i32, %arg1: i32) -> i32 {
    %c0_i32 = arith.constant 0 : i32
    %c0_i32_0 = arith.constant 0 : i32
    return %c0_i32 : i32
  }
  func.func @transform_2(%arg0: i32, %arg1: i32) -> i32 {
    %c0_i32 = arith.constant 0 : i32
    %c0_i32_0 = arith.constant 0 : i32
    return %c0_i32 : i32
  }
  func.func @transform_3(%arg0: i32, %arg1: i32) -> (i32, i32) {
    %c0_i32 = arith.constant 0 : i32
    %c0_i32_0 = arith.constant 0 : i32
    %c0_i32_1 = arith.constant 0 : i32
    return %c0_i32, %c0_i32_0 : i32, i32
  }
  func.func @transform_4(%arg0: i32, %arg1: i32) -> (i32, i32, i32, i32) {
    %c0_i32 = arith.constant 0 : i32
    %c0_i32_0 = arith.constant 0 : i32
    %c0_i32_1 = arith.constant 0 : i32
    %c0_i32_2 = arith.constant 0 : i32
    return %arg0, %c0_i32, %c0_i32_0, %c0_i32_1 : i32, i32, i32, i32
  }
  func.func @transform_5(%arg0: i32, %arg1: i32) -> (i32, i32, i32, i32) {
    %c0_i32 = arith.constant 0 : i32
    %c0_i32_0 = arith.constant 0 : i32
    %c0_i32_1 = arith.constant 0 : i32
    return %arg0, %arg1, %c0_i32, %c0_i32_0 : i32, i32, i32, i32
  }
}

module attributes {stable_mosaic.version = 11 : i64} {
  func.func @_gemm_kernel(%arg0: i32, %arg1: i32, %arg2: memref<64x16xbf16, #tpu.memory_space<vmem>>, %arg3: memref<16x128xbf16, #tpu.memory_space<vmem>>, %arg4: memref<1x128xf32, #tpu.memory_space<vmem>>, %arg5: memref<1x128xf32, #tpu.memory_space<vmem>>, %arg6: memref<64x128xbf16, #tpu.memory_space<vmem>>, %arg7: memref<64x128xf32, #tpu.memory_space<vmem>>) attributes {dimension_semantics = [#tpu.dimension_semantics<parallel>, #tpu.dimension_semantics<arbitrary>], iteration_bounds = array<i64: 2, 1>, scalar_prefetch = 0 : i64, scratch_operands = 1 : i64, tpu.core_type = #tpu.core_type<tc>, window_params = [{transform_indices = @transform_0, window_bounds = array<i64: 64, 16>}, {transform_indices = @transform_1, window_bounds = array<i64: 16, 128>}, {pipeline_mode = #tpu.pipeline_mode<synchronous>, transform_indices = @transform_2, window_bounds = array<i64: 1, 128>}, {pipeline_mode = #tpu.pipeline_mode<synchronous>, transform_indices = @transform_3, window_bounds = array<i64: 1, 128>}, {transform_indices = @transform_4, window_bounds = array<i64: 64, 128>}]} {
    %c0_i32 = arith.constant 0 : i32
    %0 = arith.cmpi eq, %arg1, %c0_i32 : i32
    %1 = arith.extui %0 : i1 to i32
    %c0_i32_0 = arith.constant 0 : i32
    %2 = arith.cmpi ne, %1, %c0_i32_0 : i32
    scf.if %2 {
      %cst_10 = arith.constant 0.000000e+00 : f32
      %12 = vector.broadcast %cst_10 : f32 to vector<64x128xf32>
      %c0_11 = arith.constant 0 : index
      %c0_12 = arith.constant 0 : index
      %13 = vector.load %arg7[%c0_11, %c0_12] : memref<64x128xf32, #tpu.memory_space<vmem>>, vector<64x128xf32>
      tpu.vector_store %arg7[%c0_11, %c0_12], %12 {strides = array<i32>} : memref<64x128xf32, #tpu.memory_space<vmem>>, vector<64x128xf32>,
    } else {
    }
    %c0 = arith.constant 0 : index
    %c0_1 = arith.constant 0 : index
    %3 = vector.load %arg7[%c0, %c0_1] : memref<64x128xf32, #tpu.memory_space<vmem>>, vector<64x128xf32>
    %c0_2 = arith.constant 0 : index
    %c0_3 = arith.constant 0 : index
    %4 = vector.load %arg2[%c0_2, %c0_3] : memref<64x16xbf16, #tpu.memory_space<vmem>>, vector<64x16xbf16>
    %c0_4 = arith.constant 0 : index
    %c0_5 = arith.constant 0 : index
    %5 = vector.load %arg3[%c0_4, %c0_5] : memref<16x128xbf16, #tpu.memory_space<vmem>>, vector<16x128xbf16>
    %cst = arith.constant dense<0.000000e+00> : vector<64x128xf32>
    %6 = tpu.matmul %4, %5, %cst {dimension_numbers = #tpu.dot_dimension_numbers<[1], [0], [0], [1], [0, 0, 1, 1], [], []>} : vector<64x16xbf16>, vector<16x128xbf16>, vector<64x128xf32> -> vector<64x128xf32>
    %7 = arith.addf %3, %6 : vector<64x128xf32>
    %c0_6 = arith.constant 0 : index
    %c0_7 = arith.constant 0 : index
    %8 = vector.load %arg7[%c0_6, %c0_7] : memref<64x128xf32, #tpu.memory_space<vmem>>, vector<64x128xf32>
    tpu.vector_store %arg7[%c0_6, %c0_7], %7 {strides = array<i32>} : memref<64x128xf32, #tpu.memory_space<vmem>>, vector<64x128xf32>,
    %c0_i32_8 = arith.constant 0 : i32
    %9 = arith.cmpi eq, %arg1, %c0_i32_8 : i32
    %10 = arith.extui %9 : i1 to i32
    %c0_i32_9 = arith.constant 0 : i32
    %11 = arith.cmpi ne, %10, %c0_i32_9 : i32
    scf.if %11 {
      %c0_10 = arith.constant 0 : index
      %c0_11 = arith.constant 0 : index
      %12 = vector.load %arg7[%c0_10, %c0_11] : memref<64x128xf32, #tpu.memory_space<vmem>>, vector<64x128xf32>
      %c0_12 = arith.constant 0 : index
      %c0_13 = arith.constant 0 : index
      %13 = vector.load %arg4[%c0_12, %c0_13] : memref<1x128xf32, #tpu.memory_space<vmem>>, vector<1x128xf32>
      %14 = vector.broadcast %13 : vector<1x128xf32> to vector<64x128xf32>
      %15 = arith.mulf %12, %14 : vector<64x128xf32>
      %c0_14 = arith.constant 0 : index
      %c0_15 = arith.constant 0 : index
      %16 = vector.load %arg5[%c0_14, %c0_15] : memref<1x128xf32, #tpu.memory_space<vmem>>, vector<1x128xf32>
      %17 = vector.broadcast %16 : vector<1x128xf32> to vector<64x128xf32>
      %18 = arith.addf %15, %17 : vector<64x128xf32>
      %cst_16 = arith.constant 0.000000e+00 : f32
      %19 = vector.broadcast %cst_16 : f32 to vector<64x128xf32>
      %20 = arith.maximumf %18, %19 : vector<64x128xf32>
      %21 = arith.truncf %20 : vector<64x128xf32> to vector<64x128xbf16>
      %c0_17 = arith.constant 0 : index
      %c0_18 = arith.constant 0 : index
      %22 = vector.load %arg6[%c0_17, %c0_18] : memref<64x128xbf16, #tpu.memory_space<vmem>>, vector<64x128xbf16>
      tpu.vector_store %arg6[%c0_17, %c0_18], %21 {strides = array<i32>} : memref<64x128xbf16, #tpu.memory_space<vmem>>, vector<64x128xbf16>,
    } else {
    }
    return
  }
  func.func @transform_0(%arg0: i32, %arg1: i32) -> (i32, i32) {
    %c0_i32 = arith.constant 0 : i32
    return %arg0, %arg1 : i32, i32
  }
  func.func @transform_1(%arg0: i32, %arg1: i32) -> (i32, i32) {
    %c0_i32 = arith.constant 0 : i32
    %c0_i32_0 = arith.constant 0 : i32
    return %arg1, %c0_i32 : i32, i32
  }
  func.func @transform_2(%arg0: i32, %arg1: i32) -> (i32, i32) {
    %c0_i32 = arith.constant 0 : i32
    %c0_i32_0 = arith.constant 0 : i32
    %c0_i32_1 = arith.constant 0 : i32
    return %c0_i32, %c0_i32_0 : i32, i32
  }
  func.func @transform_3(%arg0: i32, %arg1: i32) -> (i32, i32) {
    %c0_i32 = arith.constant 0 : i32
    %c0_i32_0 = arith.constant 0 : i32
    %c0_i32_1 = arith.constant 0 : i32
    return %c0_i32, %c0_i32_0 : i32, i32
  }
  func.func @transform_4(%arg0: i32, %arg1: i32) -> (i32, i32) {
    %c0_i32 = arith.constant 0 : i32
    %c0_i32_0 = arith.constant 0 : i32
    return %arg0, %c0_i32 : i32, i32
  }
}

module attributes {stable_mosaic.version = 11 : i64} {
  func.func @_conv3x3_kernel(%arg0: i32, %arg1: i32, %arg2: memref<1x10x10x36xbf16, #tpu.memory_space<vmem>>, %arg3: memref<3x3x36x24xbf16, #tpu.memory_space<vmem>>, %arg4: memref<1x24xf32, #tpu.memory_space<vmem>>, %arg5: memref<1x24xf32, #tpu.memory_space<vmem>>, %arg6: memref<24x128xf32, #tpu.memory_space<vmem>>, %arg7: memref<1x128xf32, #tpu.memory_space<vmem>>, %arg8: memref<1x64x128xf32, #tpu.memory_space<vmem>>, %arg9: memref<64x24xf32, #tpu.memory_space<vmem>>) attributes {dimension_semantics = [#tpu.dimension_semantics<parallel>, #tpu.dimension_semantics<arbitrary>], iteration_bounds = array<i64: 2, 1>, scalar_prefetch = 0 : i64, scratch_operands = 1 : i64, tpu.core_type = #tpu.core_type<tc>, window_params = [{transform_indices = @transform_0, window_bounds = array<i64: 1, 10, 10, 36>}, {pipeline_mode = #tpu.pipeline_mode<synchronous>, transform_indices = @transform_1, window_bounds = array<i64: 3, 3, 36, 24>}, {pipeline_mode = #tpu.pipeline_mode<synchronous>, transform_indices = @transform_2, window_bounds = array<i64: 1, 24>}, {pipeline_mode = #tpu.pipeline_mode<synchronous>, transform_indices = @transform_3, window_bounds = array<i64: 1, 24>}, {pipeline_mode = #tpu.pipeline_mode<synchronous>, transform_indices = @transform_4, window_bounds = array<i64: 24, 128>}, {pipeline_mode = #tpu.pipeline_mode<synchronous>, transform_indices = @transform_5, window_bounds = array<i64: 1, 128>}, {transform_indices = @transform_6, window_bounds = array<i64: 1, 64, 128>}]} {
    %c8_i32 = arith.constant 8 : i32
    %0 = arith.muli %arg1, %c8_i32 : i32
    %1 = tpu.assume_multiple %0, 8 : i32
    %c0_i32 = arith.constant 0 : i32
    %2 = arith.addi %1, %c0_i32 : i32
    %c0 = arith.constant 0 : index
    %3 = arith.index_cast %2 : i32 to index
    %c0_0 = arith.constant 0 : index
    %c0_1 = arith.constant 0 : index
    %4 = vector.load %arg2[%c0, %3, %c0_0, %c0_1] : memref<1x10x10x36xbf16, #tpu.memory_space<vmem>>, vector<1x8x10x36xbf16>
    %5 = vector.shape_cast %4 : vector<1x8x10x36xbf16> to vector<8x10x36xbf16>
    %6 = vector.extract_strided_slice %5 {offsets = [0, 0, 0], sizes = [8, 8, 36], strides = [1, 1, 1]} : vector<8x10x36xbf16> to vector<8x8x36xbf16>
    %7 = vector.shape_cast %6 : vector<8x8x36xbf16> to vector<64x36xbf16>
    %c0_2 = arith.constant 0 : index
    %c0_3 = arith.constant 0 : index
    %c0_4 = arith.constant 0 : index
    %c0_5 = arith.constant 0 : index
    %8 = vector.load %arg3[%c0_2, %c0_3, %c0_4, %c0_5] : memref<3x3x36x24xbf16, #tpu.memory_space<vmem>>, vector<1x1x36x24xbf16>
    %9 = vector.shape_cast %8 : vector<1x1x36x24xbf16> to vector<36x24xbf16>
    %cst = arith.constant dense<0.000000e+00> : vector<64x24xf32>
    %10 = tpu.matmul %7, %9, %cst {dimension_numbers = #tpu.dot_dimension_numbers<[1], [0], [0], [1], [0, 0, 1, 1], [], []>} : vector<64x36xbf16>, vector<36x24xbf16>, vector<64x24xf32> -> vector<64x24xf32>
    %c0_6 = arith.constant 0 : index
    %c0_7 = arith.constant 0 : index
    %11 = vector.load %arg9[%c0_6, %c0_7] : memref<64x24xf32, #tpu.memory_space<vmem>>, vector<64x24xf32>
    tpu.vector_store %arg9[%c0_6, %c0_7], %10 {strides = array<i32>} : memref<64x24xf32, #tpu.memory_space<vmem>>, vector<64x24xf32>,
    %12 = vector.extract_strided_slice %5 {offsets = [0, 1, 0], sizes = [8, 8, 36], strides = [1, 1, 1]} : vector<8x10x36xbf16> to vector<8x8x36xbf16>
    %13 = vector.shape_cast %12 : vector<8x8x36xbf16> to vector<64x36xbf16>
    %c0_8 = arith.constant 0 : index
    %c1 = arith.constant 1 : index
    %c0_9 = arith.constant 0 : index
    %c0_10 = arith.constant 0 : index
    %14 = vector.load %arg3[%c0_8, %c1, %c0_9, %c0_10] : memref<3x3x36x24xbf16, #tpu.memory_space<vmem>>, vector<1x1x36x24xbf16>
    %15 = vector.shape_cast %14 : vector<1x1x36x24xbf16> to vector<36x24xbf16>
    %cst_11 = arith.constant dense<0.000000e+00> : vector<64x24xf32>
    %16 = tpu.matmul %13, %15, %cst_11 {dimension_numbers = #tpu.dot_dimension_numbers<[1], [0], [0], [1], [0, 0, 1, 1], [], []>} : vector<64x36xbf16>, vector<36x24xbf16>, vector<64x24xf32> -> vector<64x24xf32>
    %c0_12 = arith.constant 0 : index
    %c0_13 = arith.constant 0 : index
    %17 = vector.load %arg9[%c0_12, %c0_13] : memref<64x24xf32, #tpu.memory_space<vmem>>, vector<64x24xf32>
    %18 = arith.addf %17, %16 : vector<64x24xf32>
    %c0_14 = arith.constant 0 : index
    %c0_15 = arith.constant 0 : index
    %19 = vector.load %arg9[%c0_14, %c0_15] : memref<64x24xf32, #tpu.memory_space<vmem>>, vector<64x24xf32>
    tpu.vector_store %arg9[%c0_14, %c0_15], %18 {strides = array<i32>} : memref<64x24xf32, #tpu.memory_space<vmem>>, vector<64x24xf32>,
    %20 = vector.extract_strided_slice %5 {offsets = [0, 2, 0], sizes = [8, 8, 36], strides = [1, 1, 1]} : vector<8x10x36xbf16> to vector<8x8x36xbf16>
    %21 = vector.shape_cast %20 : vector<8x8x36xbf16> to vector<64x36xbf16>
    %c0_16 = arith.constant 0 : index
    %c2 = arith.constant 2 : index
    %c0_17 = arith.constant 0 : index
    %c0_18 = arith.constant 0 : index
    %22 = vector.load %arg3[%c0_16, %c2, %c0_17, %c0_18] : memref<3x3x36x24xbf16, #tpu.memory_space<vmem>>, vector<1x1x36x24xbf16>
    %23 = vector.shape_cast %22 : vector<1x1x36x24xbf16> to vector<36x24xbf16>
    %cst_19 = arith.constant dense<0.000000e+00> : vector<64x24xf32>
    %24 = tpu.matmul %21, %23, %cst_19 {dimension_numbers = #tpu.dot_dimension_numbers<[1], [0], [0], [1], [0, 0, 1, 1], [], []>} : vector<64x36xbf16>, vector<36x24xbf16>, vector<64x24xf32> -> vector<64x24xf32>
    %c0_20 = arith.constant 0 : index
    %c0_21 = arith.constant 0 : index
    %25 = vector.load %arg9[%c0_20, %c0_21] : memref<64x24xf32, #tpu.memory_space<vmem>>, vector<64x24xf32>
    %26 = arith.addf %25, %24 : vector<64x24xf32>
    %c0_22 = arith.constant 0 : index
    %c0_23 = arith.constant 0 : index
    %27 = vector.load %arg9[%c0_22, %c0_23] : memref<64x24xf32, #tpu.memory_space<vmem>>, vector<64x24xf32>
    tpu.vector_store %arg9[%c0_22, %c0_23], %26 {strides = array<i32>} : memref<64x24xf32, #tpu.memory_space<vmem>>, vector<64x24xf32>,
    %c1_i32 = arith.constant 1 : i32
    %28 = arith.addi %1, %c1_i32 : i32
    %c0_24 = arith.constant 0 : index
    %29 = arith.index_cast %28 : i32 to index
    %c0_25 = arith.constant 0 : index
    %c0_26 = arith.constant 0 : index
    %30 = vector.load %arg2[%c0_24, %29, %c0_25, %c0_26] : memref<1x10x10x36xbf16, #tpu.memory_space<vmem>>, vector<1x8x10x36xbf16>
    %31 = vector.shape_cast %30 : vector<1x8x10x36xbf16> to vector<8x10x36xbf16>
    %32 = vector.extract_strided_slice %31 {offsets = [0, 0, 0], sizes = [8, 8, 36], strides = [1, 1, 1]} : vector<8x10x36xbf16> to vector<8x8x36xbf16>
    %33 = vector.shape_cast %32 : vector<8x8x36xbf16> to vector<64x36xbf16>
    %c1_27 = arith.constant 1 : index
    %c0_28 = arith.constant 0 : index
    %c0_29 = arith.constant 0 : index
    %c0_30 = arith.constant 0 : index
    %34 = vector.load %arg3[%c1_27, %c0_28, %c0_29, %c0_30] : memref<3x3x36x24xbf16, #tpu.memory_space<vmem>>, vector<1x1x36x24xbf16>
    %35 = vector.shape_cast %34 : vector<1x1x36x24xbf16> to vector<36x24xbf16>
    %cst_31 = arith.constant dense<0.000000e+00> : vector<64x24xf32>
    %36 = tpu.matmul %33, %35, %cst_31 {dimension_numbers = #tpu.dot_dimension_numbers<[1], [0], [0], [1], [0, 0, 1, 1], [], []>} : vector<64x36xbf16>, vector<36x24xbf16>, vector<64x24xf32> -> vector<64x24xf32>
    %c0_32 = arith.constant 0 : index
    %c0_33 = arith.constant 0 : index
    %37 = vector.load %arg9[%c0_32, %c0_33] : memref<64x24xf32, #tpu.memory_space<vmem>>, vector<64x24xf32>
    %38 = arith.addf %37, %36 : vector<64x24xf32>
    %c0_34 = arith.constant 0 : index
    %c0_35 = arith.constant 0 : index
    %39 = vector.load %arg9[%c0_34, %c0_35] : memref<64x24xf32, #tpu.memory_space<vmem>>, vector<64x24xf32>
    tpu.vector_store %arg9[%c0_34, %c0_35], %38 {strides = array<i32>} : memref<64x24xf32, #tpu.memory_space<vmem>>, vector<64x24xf32>,
    %40 = vector.extract_strided_slice %31 {offsets = [0, 1, 0], sizes = [8, 8, 36], strides = [1, 1, 1]} : vector<8x10x36xbf16> to vector<8x8x36xbf16>
    %41 = vector.shape_cast %40 : vector<8x8x36xbf16> to vector<64x36xbf16>
    %c1_36 = arith.constant 1 : index
    %c1_37 = arith.constant 1 : index
    %c0_38 = arith.constant 0 : index
    %c0_39 = arith.constant 0 : index
    %42 = vector.load %arg3[%c1_36, %c1_37, %c0_38, %c0_39] : memref<3x3x36x24xbf16, #tpu.memory_space<vmem>>, vector<1x1x36x24xbf16>
    %43 = vector.shape_cast %42 : vector<1x1x36x24xbf16> to vector<36x24xbf16>
    %cst_40 = arith.constant dense<0.000000e+00> : vector<64x24xf32>
    %44 = tpu.matmul %41, %43, %cst_40 {dimension_numbers = #tpu.dot_dimension_numbers<[1], [0], [0], [1], [0, 0, 1, 1], [], []>} : vector<64x36xbf16>, vector<36x24xbf16>, vector<64x24xf32> -> vector<64x24xf32>
    %c0_41 = arith.constant 0 : index
    %c0_42 = arith.constant 0 : index
    %45 = vector.load %arg9[%c0_41, %c0_42] : memref<64x24xf32, #tpu.memory_space<vmem>>, vector<64x24xf32>
    %46 = arith.addf %45, %44 : vector<64x24xf32>
    %c0_43 = arith.constant 0 : index
    %c0_44 = arith.constant 0 : index
    %47 = vector.load %arg9[%c0_43, %c0_44] : memref<64x24xf32, #tpu.memory_space<vmem>>, vector<64x24xf32>
    tpu.vector_store %arg9[%c0_43, %c0_44], %46 {strides = array<i32>} : memref<64x24xf32, #tpu.memory_space<vmem>>, vector<64x24xf32>,
    %48 = vector.extract_strided_slice %31 {offsets = [0, 2, 0], sizes = [8, 8, 36], strides = [1, 1, 1]} : vector<8x10x36xbf16> to vector<8x8x36xbf16>
    %49 = vector.shape_cast %48 : vector<8x8x36xbf16> to vector<64x36xbf16>
    %c1_45 = arith.constant 1 : index
    %c2_46 = arith.constant 2 : index
    %c0_47 = arith.constant 0 : index
    %c0_48 = arith.constant 0 : index
    %50 = vector.load %arg3[%c1_45, %c2_46, %c0_47, %c0_48] : memref<3x3x36x24xbf16, #tpu.memory_space<vmem>>, vector<1x1x36x24xbf16>
    %51 = vector.shape_cast %50 : vector<1x1x36x24xbf16> to vector<36x24xbf16>
    %cst_49 = arith.constant dense<0.000000e+00> : vector<64x24xf32>
    %52 = tpu.matmul %49, %51, %cst_49 {dimension_numbers = #tpu.dot_dimension_numbers<[1], [0], [0], [1], [0, 0, 1, 1], [], []>} : vector<64x36xbf16>, vector<36x24xbf16>, vector<64x24xf32> -> vector<64x24xf32>
    %c0_50 = arith.constant 0 : index
    %c0_51 = arith.constant 0 : index
    %53 = vector.load %arg9[%c0_50, %c0_51] : memref<64x24xf32, #tpu.memory_space<vmem>>, vector<64x24xf32>
    %54 = arith.addf %53, %52 : vector<64x24xf32>
    %c0_52 = arith.constant 0 : index
    %c0_53 = arith.constant 0 : index
    %55 = vector.load %arg9[%c0_52, %c0_53] : memref<64x24xf32, #tpu.memory_space<vmem>>, vector<64x24xf32>
    tpu.vector_store %arg9[%c0_52, %c0_53], %54 {strides = array<i32>} : memref<64x24xf32, #tpu.memory_space<vmem>>, vector<64x24xf32>,
    %c2_i32 = arith.constant 2 : i32
    %56 = arith.addi %1, %c2_i32 : i32
    %c0_54 = arith.constant 0 : index
    %57 = arith.index_cast %56 : i32 to index
    %c0_55 = arith.constant 0 : index
    %c0_56 = arith.constant 0 : index
    %58 = vector.load %arg2[%c0_54, %57, %c0_55, %c0_56] : memref<1x10x10x36xbf16, #tpu.memory_space<vmem>>, vector<1x8x10x36xbf16>
    %59 = vector.shape_cast %58 : vector<1x8x10x36xbf16> to vector<8x10x36xbf16>
    %60 = vector.extract_strided_slice %59 {offsets = [0, 0, 0], sizes = [8, 8, 36], strides = [1, 1, 1]} : vector<8x10x36xbf16> to vector<8x8x36xbf16>
    %61 = vector.shape_cast %60 : vector<8x8x36xbf16> to vector<64x36xbf16>
    %c2_57 = arith.constant 2 : index
    %c0_58 = arith.constant 0 : index
    %c0_59 = arith.constant 0 : index
    %c0_60 = arith.constant 0 : index
    %62 = vector.load %arg3[%c2_57, %c0_58, %c0_59, %c0_60] : memref<3x3x36x24xbf16, #tpu.memory_space<vmem>>, vector<1x1x36x24xbf16>
    %63 = vector.shape_cast %62 : vector<1x1x36x24xbf16> to vector<36x24xbf16>
    %cst_61 = arith.constant dense<0.000000e+00> : vector<64x24xf32>
    %64 = tpu.matmul %61, %63, %cst_61 {dimension_numbers = #tpu.dot_dimension_numbers<[1], [0], [0], [1], [0, 0, 1, 1], [], []>} : vector<64x36xbf16>, vector<36x24xbf16>, vector<64x24xf32> -> vector<64x24xf32>
    %c0_62 = arith.constant 0 : index
    %c0_63 = arith.constant 0 : index
    %65 = vector.load %arg9[%c0_62, %c0_63] : memref<64x24xf32, #tpu.memory_space<vmem>>, vector<64x24xf32>
    %66 = arith.addf %65, %64 : vector<64x24xf32>
    %c0_64 = arith.constant 0 : index
    %c0_65 = arith.constant 0 : index
    %67 = vector.load %arg9[%c0_64, %c0_65] : memref<64x24xf32, #tpu.memory_space<vmem>>, vector<64x24xf32>
    tpu.vector_store %arg9[%c0_64, %c0_65], %66 {strides = array<i32>} : memref<64x24xf32, #tpu.memory_space<vmem>>, vector<64x24xf32>,
    %68 = vector.extract_strided_slice %59 {offsets = [0, 1, 0], sizes = [8, 8, 36], strides = [1, 1, 1]} : vector<8x10x36xbf16> to vector<8x8x36xbf16>
    %69 = vector.shape_cast %68 : vector<8x8x36xbf16> to vector<64x36xbf16>
    %c2_66 = arith.constant 2 : index
    %c1_67 = arith.constant 1 : index
    %c0_68 = arith.constant 0 : index
    %c0_69 = arith.constant 0 : index
    %70 = vector.load %arg3[%c2_66, %c1_67, %c0_68, %c0_69] : memref<3x3x36x24xbf16, #tpu.memory_space<vmem>>, vector<1x1x36x24xbf16>
    %71 = vector.shape_cast %70 : vector<1x1x36x24xbf16> to vector<36x24xbf16>
    %cst_70 = arith.constant dense<0.000000e+00> : vector<64x24xf32>
    %72 = tpu.matmul %69, %71, %cst_70 {dimension_numbers = #tpu.dot_dimension_numbers<[1], [0], [0], [1], [0, 0, 1, 1], [], []>} : vector<64x36xbf16>, vector<36x24xbf16>, vector<64x24xf32> -> vector<64x24xf32>
    %c0_71 = arith.constant 0 : index
    %c0_72 = arith.constant 0 : index
    %73 = vector.load %arg9[%c0_71, %c0_72] : memref<64x24xf32, #tpu.memory_space<vmem>>, vector<64x24xf32>
    %74 = arith.addf %73, %72 : vector<64x24xf32>
    %c0_73 = arith.constant 0 : index
    %c0_74 = arith.constant 0 : index
    %75 = vector.load %arg9[%c0_73, %c0_74] : memref<64x24xf32, #tpu.memory_space<vmem>>, vector<64x24xf32>
    tpu.vector_store %arg9[%c0_73, %c0_74], %74 {strides = array<i32>} : memref<64x24xf32, #tpu.memory_space<vmem>>, vector<64x24xf32>,
    %76 = vector.extract_strided_slice %59 {offsets = [0, 2, 0], sizes = [8, 8, 36], strides = [1, 1, 1]} : vector<8x10x36xbf16> to vector<8x8x36xbf16>
    %77 = vector.shape_cast %76 : vector<8x8x36xbf16> to vector<64x36xbf16>
    %c2_75 = arith.constant 2 : index
    %c2_76 = arith.constant 2 : index
    %c0_77 = arith.constant 0 : index
    %c0_78 = arith.constant 0 : index
    %78 = vector.load %arg3[%c2_75, %c2_76, %c0_77, %c0_78] : memref<3x3x36x24xbf16, #tpu.memory_space<vmem>>, vector<1x1x36x24xbf16>
    %79 = vector.shape_cast %78 : vector<1x1x36x24xbf16> to vector<36x24xbf16>
    %cst_79 = arith.constant dense<0.000000e+00> : vector<64x24xf32>
    %80 = tpu.matmul %77, %79, %cst_79 {dimension_numbers = #tpu.dot_dimension_numbers<[1], [0], [0], [1], [0, 0, 1, 1], [], []>} : vector<64x36xbf16>, vector<36x24xbf16>, vector<64x24xf32> -> vector<64x24xf32>
    %c0_80 = arith.constant 0 : index
    %c0_81 = arith.constant 0 : index
    %81 = vector.load %arg9[%c0_80, %c0_81] : memref<64x24xf32, #tpu.memory_space<vmem>>, vector<64x24xf32>
    %82 = arith.addf %81, %80 : vector<64x24xf32>
    %c0_82 = arith.constant 0 : index
    %c0_83 = arith.constant 0 : index
    %83 = vector.load %arg9[%c0_82, %c0_83] : memref<64x24xf32, #tpu.memory_space<vmem>>, vector<64x24xf32>
    tpu.vector_store %arg9[%c0_82, %c0_83], %82 {strides = array<i32>} : memref<64x24xf32, #tpu.memory_space<vmem>>, vector<64x24xf32>,
    %c0_84 = arith.constant 0 : index
    %c0_85 = arith.constant 0 : index
    %84 = vector.load %arg9[%c0_84, %c0_85] : memref<64x24xf32, #tpu.memory_space<vmem>>, vector<64x24xf32>
    %c0_86 = arith.constant 0 : index
    %c0_87 = arith.constant 0 : index
    %85 = vector.load %arg4[%c0_86, %c0_87] : memref<1x24xf32, #tpu.memory_space<vmem>>, vector<1x24xf32>
    %86 = vector.broadcast %85 : vector<1x24xf32> to vector<64x24xf32>
    %87 = arith.mulf %84, %86 : vector<64x24xf32>
    %c0_88 = arith.constant 0 : index
    %c0_89 = arith.constant 0 : index
    %88 = vector.load %arg5[%c0_88, %c0_89] : memref<1x24xf32, #tpu.memory_space<vmem>>, vector<1x24xf32>
    %89 = vector.broadcast %88 : vector<1x24xf32> to vector<64x24xf32>
    %90 = arith.addf %87, %89 : vector<64x24xf32>
    %cst_90 = arith.constant 0.000000e+00 : f32
    %91 = vector.broadcast %cst_90 : f32 to vector<64x24xf32>
    %92 = arith.maximumf %90, %91 : vector<64x24xf32>
    %c0_91 = arith.constant 0 : index
    %c0_92 = arith.constant 0 : index
    %93 = vector.load %arg6[%c0_91, %c0_92] : memref<24x128xf32, #tpu.memory_space<vmem>>, vector<24x128xf32>
    %cst_93 = arith.constant dense<0.000000e+00> : vector<64x128xf32>
    %94 = tpu.matmul %92, %93, %cst_93 {dimension_numbers = #tpu.dot_dimension_numbers<[1], [0], [0], [1], [0, 0, 1, 1], [], []>} : vector<64x24xf32>, vector<24x128xf32>, vector<64x128xf32> -> vector<64x128xf32>
    %c0_94 = arith.constant 0 : index
    %c0_95 = arith.constant 0 : index
    %95 = vector.load %arg7[%c0_94, %c0_95] : memref<1x128xf32, #tpu.memory_space<vmem>>, vector<1x128xf32>
    %96 = vector.broadcast %95 : vector<1x128xf32> to vector<64x128xf32>
    %97 = arith.addf %94, %96 : vector<64x128xf32>
    %c0_96 = arith.constant 0 : index
    %c0_97 = arith.constant 0 : index
    %c0_98 = arith.constant 0 : index
    %98 = vector.load %arg8[%c0_96, %c0_97, %c0_98] : memref<1x64x128xf32, #tpu.memory_space<vmem>>, vector<1x64x128xf32>
    %99 = vector.shape_cast %98 : vector<1x64x128xf32> to vector<64x128xf32>
    %100 = vector.shape_cast %97 : vector<64x128xf32> to vector<1x64x128xf32>
    tpu.vector_store %arg8[%c0_96, %c0_97, %c0_98], %100 {strides = array<i32>} : memref<1x64x128xf32, #tpu.memory_space<vmem>>, vector<1x64x128xf32>,
    return
  }
  func.func @transform_0(%arg0: i32, %arg1: i32) -> (i32, i32, i32, i32) {
    %c0_i32 = arith.constant 0 : i32
    %c0_i32_0 = arith.constant 0 : i32
    %c0_i32_1 = arith.constant 0 : i32
    %c0_i32_2 = arith.constant 0 : i32
    return %arg0, %c0_i32, %c0_i32_0, %c0_i32_1 : i32, i32, i32, i32
  }
  func.func @transform_1(%arg0: i32, %arg1: i32) -> (i32, i32, i32, i32) {
    %c0_i32 = arith.constant 0 : i32
    %c0_i32_0 = arith.constant 0 : i32
    %c0_i32_1 = arith.constant 0 : i32
    %c0_i32_2 = arith.constant 0 : i32
    %c0_i32_3 = arith.constant 0 : i32
    return %c0_i32, %c0_i32_0, %c0_i32_1, %c0_i32_2 : i32, i32, i32, i32
  }
  func.func @transform_2(%arg0: i32, %arg1: i32) -> (i32, i32) {
    %c0_i32 = arith.constant 0 : i32
    %c0_i32_0 = arith.constant 0 : i32
    %c0_i32_1 = arith.constant 0 : i32
    return %c0_i32, %c0_i32_0 : i32, i32
  }
  func.func @transform_3(%arg0: i32, %arg1: i32) -> (i32, i32) {
    %c0_i32 = arith.constant 0 : i32
    %c0_i32_0 = arith.constant 0 : i32
    %c0_i32_1 = arith.constant 0 : i32
    return %c0_i32, %c0_i32_0 : i32, i32
  }
  func.func @transform_4(%arg0: i32, %arg1: i32) -> (i32, i32) {
    %c0_i32 = arith.constant 0 : i32
    %c0_i32_0 = arith.constant 0 : i32
    %c0_i32_1 = arith.constant 0 : i32
    return %c0_i32, %c0_i32_0 : i32, i32
  }
  func.func @transform_5(%arg0: i32, %arg1: i32) -> (i32, i32) {
    %c0_i32 = arith.constant 0 : i32
    %c0_i32_0 = arith.constant 0 : i32
    %c0_i32_1 = arith.constant 0 : i32
    return %c0_i32, %c0_i32_0 : i32, i32
  }
  func.func @transform_6(%arg0: i32, %arg1: i32) -> (i32, i32, i32) {
    %c0_i32 = arith.constant 0 : i32
    %c0_i32_0 = arith.constant 0 : i32
    return %arg0, %arg1, %c0_i32 : i32, i32, i32
  }
}

module attributes {stable_mosaic.version = 11 : i64} {
  func.func @_resize_nchw_kernel(%arg0: i32, %arg1: i32, %arg2: memref<16x8xf32, #tpu.memory_space<vmem>>, %arg3: memref<8x16xf32, #tpu.memory_space<vmem>>, %arg4: memref<1x1x8x8xf32, #tpu.memory_space<vmem>>, %arg5: memref<1x1x16x16xf32, #tpu.memory_space<vmem>>) attributes {dimension_semantics = [#tpu.dimension_semantics<parallel>, #tpu.dimension_semantics<parallel>], iteration_bounds = array<i64: 2, 8>, scalar_prefetch = 0 : i64, scratch_operands = 0 : i64, tpu.core_type = #tpu.core_type<tc>, window_params = [{pipeline_mode = #tpu.pipeline_mode<synchronous>, transform_indices = @transform_0, window_bounds = array<i64: 16, 8>}, {pipeline_mode = #tpu.pipeline_mode<synchronous>, transform_indices = @transform_1, window_bounds = array<i64: 8, 16>}, {transform_indices = @transform_2, window_bounds = array<i64: 1, 1, 8, 8>}, {transform_indices = @transform_3, window_bounds = array<i64: 1, 1, 16, 16>}]} {
    %c0 = arith.constant 0 : index
    %c0_0 = arith.constant 0 : index
    %0 = vector.load %arg2[%c0, %c0_0] : memref<16x8xf32, #tpu.memory_space<vmem>>, vector<16x8xf32>
    %c0_1 = arith.constant 0 : index
    %c0_2 = arith.constant 0 : index
    %c0_3 = arith.constant 0 : index
    %c0_4 = arith.constant 0 : index
    %1 = vector.load %arg4[%c0_1, %c0_2, %c0_3, %c0_4] : memref<1x1x8x8xf32, #tpu.memory_space<vmem>>, vector<1x1x8x8xf32>
    %2 = vector.shape_cast %1 : vector<1x1x8x8xf32> to vector<8x8xf32>
    %cst = arith.constant dense<0.000000e+00> : vector<16x8xf32>
    %3 = tpu.matmul %0, %2, %cst {dimension_numbers = #tpu.dot_dimension_numbers<[1], [0], [0], [1], [0, 0, 1, 1], [], []>} : vector<16x8xf32>, vector<8x8xf32>, vector<16x8xf32> -> vector<16x8xf32>
    %c0_5 = arith.constant 0 : index
    %c0_6 = arith.constant 0 : index
    %4 = vector.load %arg3[%c0_5, %c0_6] : memref<8x16xf32, #tpu.memory_space<vmem>>, vector<8x16xf32>
    %cst_7 = arith.constant dense<0.000000e+00> : vector<16x16xf32>
    %5 = tpu.matmul %3, %4, %cst_7 {dimension_numbers = #tpu.dot_dimension_numbers<[1], [0], [0], [1], [0, 0, 1, 1], [], []>} : vector<16x8xf32>, vector<8x16xf32>, vector<16x16xf32> -> vector<16x16xf32>
    %c0_8 = arith.constant 0 : index
    %c0_9 = arith.constant 0 : index
    %c0_10 = arith.constant 0 : index
    %c0_11 = arith.constant 0 : index
    %6 = vector.load %arg5[%c0_8, %c0_9, %c0_10, %c0_11] : memref<1x1x16x16xf32, #tpu.memory_space<vmem>>, vector<1x1x16x16xf32>
    %7 = vector.shape_cast %6 : vector<1x1x16x16xf32> to vector<16x16xf32>
    %8 = vector.shape_cast %5 : vector<16x16xf32> to vector<1x1x16x16xf32>
    tpu.vector_store %arg5[%c0_8, %c0_9, %c0_10, %c0_11], %8 {strides = array<i32>} : memref<1x1x16x16xf32, #tpu.memory_space<vmem>>, vector<1x1x16x16xf32>,
    return
  }
  func.func @transform_0(%arg0: i32, %arg1: i32) -> (i32, i32) {
    %c0_i32 = arith.constant 0 : i32
    %c0_i32_0 = arith.constant 0 : i32
    %c0_i32_1 = arith.constant 0 : i32
    return %c0_i32, %c0_i32_0 : i32, i32
  }
  func.func @transform_1(%arg0: i32, %arg1: i32) -> (i32, i32) {
    %c0_i32 = arith.constant 0 : i32
    %c0_i32_0 = arith.constant 0 : i32
    %c0_i32_1 = arith.constant 0 : i32
    return %c0_i32, %c0_i32_0 : i32, i32
  }
  func.func @transform_2(%arg0: i32, %arg1: i32) -> (i32, i32, i32, i32) {
    %c0_i32 = arith.constant 0 : i32
    %c0_i32_0 = arith.constant 0 : i32
    %c0_i32_1 = arith.constant 0 : i32
    return %arg0, %arg1, %c0_i32, %c0_i32_0 : i32, i32, i32, i32
  }
  func.func @transform_3(%arg0: i32, %arg1: i32) -> (i32, i32, i32, i32) {
    %c0_i32 = arith.constant 0 : i32
    %c0_i32_0 = arith.constant 0 : i32
    %c0_i32_1 = arith.constant 0 : i32
    return %arg0, %arg1, %c0_i32, %c0_i32_0 : i32, i32, i32, i32
  }
}

</mosaic_0001>

<bundles_post_ra>
// kernel: deeplab_forward.8
= control target key start
LH: loop header
LB: loop body
LE: loop exit
PB: predicated region body
PF: predicated region fallthrough
CT: control target
= control target key end

     0   :  { %s2443_s15 = smov 0   ;;  %s2445_s16 = smov 0   ;;  %s3056_s0 = inlined_call_operand.vmem [shape: bf16[2,10,10,16], index: 0, kind: input, shape index: {}]   ;;  %s3057_s1 = inlined_call_operand.vmem [shape: bf16[3,3,16,32], index: 1, kind: input, shape index: {}]   ;;  %s3058_s2 = inlined_call_operand.vmem [shape: f32[1,32], index: 2, kind: input, shape index: {}]   ;;  %s3059_s3 = inlined_call_operand.vmem [shape: f32[1,32], index: 3, kind: input, shape index: {}]   ;;  %s3060_s4 = inlined_call_operand.vmem [shape: bf16[2,64,32], index: 4, kind: output, shape index: {}]  }
   0x1   :  { %s2447_s17 = smov 0  }
   0x2 LB: > { %s26_s18 = sadd.s32 1, %s2412_s16  ;;  %p2033_p0 = scmp.ge.s32.totalorder %s2416_s17, 1  ;;  %s2416_s17 = sphi %s2447_s17, %s14_s17   ;;  %s2412_s16 = sphi %s2445_s16, %s3066_s16   ;;  %s2408_s15 = sphi %s2443_s15, %s3065_s15  }
   0x3   : > { %p28_p1 = scmp.ge.s32.totalorder %s26_s18, 2  ;;  %p176_p2 = scmp.lt.s32.totalorder %s2416_s17, 3 }
   0x5   : > { %s3068_s18 = smov (%p28_p1, %s26_s18), 0  ;;  %p177_p3 = pnand %p2033_p0, %p176_p2 }
   0x6   : > { %v2373_v0 = vld [vmem:[%s3057_s1] sm:$0xff] (!%p177_p3)   ;;  %p206_p4 = scmp.lt.s32.totalorder (!%p177_p3), %s2408_s15, 1  ;;  %v2467_v1 = vld [vmem:[%s3057_s1 + $0x8] sm:$0xff] (!%p177_p3)   ;;  %v2474_v2 = vld [vmem:[%s3057_s1 + $0x10] sm:$0xff] (!%p177_p3)   ;;  %vm270_vm0 = vcmask (!%p177_p3), 130048   ;;  %vm602_vm1 = vcmask (!%p177_p3), 1042432  }
   0x7   : > { %180 = sbr.rel (%p177_p3) target bundleno = 353 (0x161), region = 36  ;;  %2346 = vmatprep.subr.bf16.mxu1 (!%p177_p3), %v2373_v0  ;;  %2256 = vmatprep.subr.bf16.mxu0 (!%p177_p3), %v2373_v0  ;;  %vm603_vm2 = vcmask (!%p177_p3), 1046532   ;;  %vm357_vm3 = vsmask.f32 (!%p177_p3), 3328  ;;  %vm358_vm4 = vsmask.f32 (!%p177_p3), 7440 }
   0x8   : > { %2347 = vmatpush3.bf16.msra.mxu1 (!%p177_p3), %v2373_v0  ;;  %2257 = vmatpush3.bf16.msra.mxu0 (!%p177_p3), %v2373_v0  ;;  %v2535_v39 = vld [vmem:[%s3057_s1 + $0x18] sm:$0xff] (!%p177_p3)   ;;  %v2552_v51 = vld [vmem:[%s3057_s1 + $0x20] sm:$0xff] (!%p177_p3)   ;;  %vm2565_vm5 = vmor (!%p177_p3), %vm602_vm1, %vm603_vm2  ;;  %vm348_vm7 = vcmask (!%p177_p3), 261120   ;;  %vm1929_vm8 = vcmask (!%p177_p3), 257024  }
   0x9   : > { %2266 = vmatprep.subr.bf16.mxu1 (!%p177_p3), %v2467_v1  ;;  %2276 = vmatprep.subr.bf16.mxu0 (!%p177_p3), %v2474_v2  ;;  %vm2571_vm6 = vmor (!%p177_p3), %vm357_vm3, %vm358_vm4 }
   0xe   : > { %s3070_s15 = smov (!%p206_p4, %s2408_s15), 1 }
   0xf   : > { %s2348_s25 = smul.u32 80, %s3070_s15  ;;  %s2202_s23 = sshll.u32 %s3070_s15, 5 }
  0x10   : > { %s3028_s15 = scalar_lea.vmem %s3060_s4, %s2202_s23 }
  0x11   : > { %s2482_s28 = scalar_lea.vmem %s3056_s0, %s2348_s25 }
  0x12   : > { %v2485_v3 = vld [vmem:[%s2482_s28 + $0x20] sm:$0xf]  ;;  %v2488_v4 = vld [vmem:[%s2482_s28 + $0x28] sm:$0xf]  ;;  %v2509_v19 = vld [vmem:[%s2482_s28 + $0x30] sm:$0xf] }
  0x13   : > { %v2491_v5 = vld [vmem:[%s2482_s28] sm:$0xf]  ;;  %v2039_v6 = vcombine.low %v2485_v3, %v2488_v4  ;;  %v417_v7 = vshrl.u32 %v2485_v3, 16  ;;  %v420_v8 = vshll.u32 %v2485_v3, 16  ;;  %v431_v9 = vshrl.u32 %v2488_v4, 16 }
  0x14   : > { %v2499_v10 = vld [vmem:[%s2482_s28 + $0x8] sm:$0xf]  ;;  %v434_v11 = vshll.u32 %v2488_v4, 16  ;;  %v2061_v12 = vrot.slane %v2485_v3, 9  ;;  %v2062_v13 = vrot.slane %v2488_v4, 9  ;;  %v361_v18 = vshrl.u32 %v2491_v5, 16 }
  0x15   : > { %v2037_v14 = vcombine.low %v2491_v5, %v2499_v10  ;;  %2262 = vmatprep.mubr.msk.bf16.mxu1 %vm270_vm0, %v2039_v6  ;;  %v419_v15 = vrot.slane %v417_v7, 4  ;;  %v422_v16 = vrot.slane %v420_v8, 5  ;;  %v433_v17 = vrot.slane %v431_v9, 4  ;;  %v2516_v24 = vld [vmem:[%s2482_s28 + $0x38] sm:$0xf] }
  0x16   : > { %v436_v20 = vrot.slane %v434_v11, 5  ;;  %v364_v21 = vshll.u32 %v2491_v5, 16  ;;  %v375_v22 = vshrl.u32 %v2499_v10, 16  ;;  %v378_v23 = vshll.u32 %v2499_v10, 16  ;;  %v2521_v29 = vld [vmem:[%s2482_s28 + $0x10] sm:$0xf] }
  0x17   : > { %2258 = vmatprep.mubr.msk.bf16.mxu0 %vm270_vm0, %v2037_v14  ;;  %v423_v25 = vor.u32 %v422_v16, %v419_v15  ;;  %v363_v26 = vrot.slane %v361_v18, 4  ;;  %v2057_v27 = vrot.slane %v2491_v5, 9  ;;  %v2058_v28 = vrot.slane %v2499_v10, 9  ;;  %v2524_v34 = vld [vmem:[%s2482_s28 + $0x18] sm:$0xf] }
  0x18   : > { %v437_v30 = vor.u32 %v436_v20, %v433_v17  ;;  %v366_v31 = vrot.slane %v364_v21, 5  ;;  %v377_v32 = vrot.slane %v375_v22, 4  ;;  %v380_v33 = vrot.slane %v378_v23, 5  ;;  %v227_v44 = vld [vmem:[%s2482_s28 + $0x4] sm:$0x1] }
  0x19   : > { %v2526_v35 = vrot.slane %v423_v25, 4  ;;  %v2040_v36 = vcombine.low %v2509_v19, %v2516_v24  ;;  %v445_v37 = vshrl.u32 %v2509_v19, 16  ;;  %v448_v38 = vshll.u32 %v2509_v19, 16  ;;  %v229_v45 = vld [vmem:[%s2482_s28 + $0xc] sm:$0x1] }
  0x1a   : > { %v2537_v40 = vrot.slane %v437_v30, 4  ;;  %v367_v41 = vor.u32 %v366_v31, %v363_v26  ;;  %v381_v42 = vor.u32 %v380_v33, %v377_v32  ;;  %v459_v43 = vshrl.u32 %v2516_v24, 16  ;;  %v231_v50 = vld [vmem:[%s2482_s28 + $0x14] sm:$0x1]  ;;  %v233_v56 = vld [vmem:[%s2482_s28 + $0x1c] sm:$0x1] }
  0x1b   : > { %2263 = vmatmul.mubr.msk.bf16.vlgmr.msra.gmra.mrb[0].mxu1 %vm270_vm0, %v2040_v36  ;;  %v462_v46 = vshll.u32 %v2516_v24, 16  ;;  %v2038_v47 = vcombine.low %v2521_v29, %v2524_v34  ;;  %v389_v48 = vshrl.u32 %v2521_v29, 16  ;;  %v392_v49 = vshll.u32 %v2521_v29, 16  ;;  %v235_v16 = vld [vmem:[%s2482_s28 + $0x24] sm:$0x1] }
  0x1c   : > { %v368_v52 = vrot.slane %v367_v41, 4  ;;  %v382_v53 = vrot.slane %v381_v42, 4  ;;  %v403_v54 = vshrl.u32 %v2524_v34, 16  ;;  %v406_v55 = vshll.u32 %v2524_v34, 16  ;;  %2267 = vmatpush3.bf16.msra.mxu1 %v2467_v1  ;;  %v237_v22 = vld [vmem:[%s2482_s28 + $0x2c] sm:$0x1] }
  0x1d   : > { %2259 = vmatmul.mubr.msk.bf16.vlgmr.msra.gmra.mrb[0].mxu0 %vm270_vm0, %v2038_v47  ;;  %v391_v57 = vrot.slane %v389_v48, 4  ;;  %v394_v58 = vrot.slane %v392_v49, 5  ;;  %v2059_v59 = vrot.slane %v2521_v29, 9  ;;  %v2060_v60 = vrot.slane %v2524_v34, 9  ;;  %2286 = vmatprep.subr.bf16.mxu1 %v2535_v39  ;;  %v239_v33 = vld [vmem:[%s2482_s28 + $0x34] sm:$0x1] }
  0x1e   : > { %v405_v61 = vrot.slane %v403_v54, 4  ;;  %v408_v62 = vrot.slane %v406_v55, 5  ;;  %v370_v63 = vshll.u32 %v227_v44, 16  ;;  %v384_v0 = vshll.u32 %v229_v45, 16  ;;  %2277 = vmatpush3.bf16.msra.mxu0 %v2474_v2  ;;  %v2603_v48 = vld [vmem:[%s3057_s1 + $0x28] sm:$0xff]  }
  0x1f   : > { %v395_v6 = vor.u32 %v394_v58, %v391_v57  ;;  %v398_v7 = vshll.u32 %v231_v50, 16  ;;  %v412_v8 = vshll.u32 %v233_v56, 16  ;;  %v607_v9 = vrot.slane %v227_v44, 5  ;;  %2296 = vmatprep.subr.bf16.mxu0 %v2552_v51 }
  0x20   : > { %v372_v2 = vrot.slane %v370_v63, 5  ;;  %v386_v11 = vrot.slane %v384_v0, 5  ;;  %v409_v14 = vor.u32 %v408_v62, %v405_v61  ;;  %v611_v15 = vrot.slane %v229_v45, 5  ;;  %v2631_v63 = vld [vmem:[%s2482_s28 + $0x10] sm:$0xf] }
  0x21   : > { %v396_v17 = vrot.slane %v395_v6, 4  ;;  %v400_v18 = vrot.slane %v398_v7, 5  ;;  %v414_v20 = vrot.slane %v412_v8, 5  ;;  %v608_v21 = vsel %vm2565_vm5, %v2057_v27, %v607_v9  ;;  %v2637_v7 = vld [vmem:[%s2482_s28 + $0x18] sm:$0xf] }
  0x22   : > { %v373_v23 = vsel %vm2571_vm6, %v368_v52, %v372_v2  ;;  %v387_v25 = vsel %vm2571_vm6, %v382_v53, %v386_v11  ;;  %v410_v26 = vrot.slane %v409_v14, 4  ;;  %v612_v29 = vsel %vm2565_vm5, %v2058_v28, %v611_v15  ;;  %v241_v28 = vld [vmem:[%s2482_s28 + $0x3c] sm:$0x1]  ;;  %v2652_v2 = vld [vmem:[%s2482_s28 + $0x20] sm:$0xf] }
  0x23   : > { %v2048_v30 = vcombine.low %v373_v23, %v387_v25  ;;  %v401_v31 = vsel %vm2571_vm6, %v396_v17, %v400_v18  ;;  %v2067_v32 = vcombine.low %v608_v21, %v612_v29  ;;  %v426_v27 = vshll.u32 %v235_v16, 16  ;;  %v2655_v11 = vld [vmem:[%s2482_s28 + $0x28] sm:$0xf]  ;;  %v2666_v17 = vld [vmem:[%s2482_s28 + $0x30] sm:$0xf] }
  0x24   : > { %v415_v34 = vsel %vm2571_vm6, %v410_v26, %v414_v20  ;;  %v440_v36 = vshll.u32 %v237_v22, 16  ;;  %v615_v41 = vrot.slane %v231_v50, 5  ;;  %v619_v42 = vrot.slane %v233_v56, 5  ;;  %v2618_v56 = vld [vmem:[%s3057_s1 + $0x30] sm:$0xff]   ;;  %v2677_v23 = vld [vmem:[%s2482_s28 + $0x38] sm:$0xf] }
  0x25   : > { %2268 = vmatprep.mubr.msk.bf16.mxu1 %vm270_vm0, %v2048_v30  ;;  %v2049_v44 = vcombine.low %v401_v31, %v415_v34  ;;  %2278 = vmatprep.mubr.msk.bf16.mxu0 %vm270_vm0, %v2067_v32  ;;  %v428_v10 = vrot.slane %v426_v27, 5  ;;  %v447_v45 = vrot.slane %v445_v37, 4  ;;  %v450_v47 = vrot.slane %v448_v38, 5  ;;  %v2680_v25 = vld [vmem:[%s2482_s28 + $0x40] sm:$0xf] }
  0x26   : > { %v442_v49 = vrot.slane %v440_v36, 5  ;;  %v616_v50 = vsel %vm2565_vm5, %v2059_v59, %v615_v41  ;;  %v620_v52 = vsel %vm2565_vm5, %v2060_v60, %v619_v42  ;;  %v454_v53 = vshll.u32 %v239_v33, 16  ;;  %v2627_v60 = vld [vmem:[%s2482_s28 + $0x8] sm:$0xf]  ;;  %v2685_v32 = vld [vmem:[%s2482_s28 + $0xc] sm:$0x1] }
  0x27   : > { %2269 = vmatmul.mubr.msk.bf16.vlgmr.msra.gmra.mrb[4].mxu1 %vm270_vm0, %v2049_v44  ;;  %v429_v37 = vsel %vm2571_vm6, %v2526_v35, %v428_v10  ;;  %v2068_v38 = vcombine.low %v616_v50, %v620_v52  ;;  %v451_v54 = vor.u32 %v450_v47, %v447_v45  ;;  %v461_v55 = vrot.slane %v459_v43, 4  ;;  %v2708_v52 = vld [vmem:[%s2482_s28 + $0x1c] sm:$0x1] }
  0x28   : > { %2287 = vmatpush3.bf16.msra.mxu1 %v2535_v39  ;;  %v443_v57 = vsel %vm2571_vm6, %v2537_v40, %v442_v49  ;;  %v456_v58 = vrot.slane %v454_v53, 5  ;;  %v464_v35 = vrot.slane %v462_v46, 5  ;;  %v468_v59 = vshll.u32 %v241_v28, 16 }
  0x29   : > { %v2050_v43 = vcombine.low %v429_v37, %v443_v57  ;;  %2279 = vmatmul.mubr.msk.bf16.vlgmr.msra.gmra.mrb[4].mxu0 %vm270_vm0, %v2068_v38  ;;  %v452_v61 = vrot.slane %v451_v54, 4  ;;  %v623_v62 = vrot.slane %v235_v16, 5  ;;  %v627_v39 = vrot.slane %v237_v22, 5  ;;  %2306 = vmatprep.subr.bf16.mxu1 %v2603_v48 }
  0x2a   : > { %v465_v40 = vor.u32 %v464_v35, %v461_v55  ;;  %v470_v0 = vrot.slane %v468_v59, 5  ;;  %2297 = vmatpush3.bf16.msra.mxu0 %v2552_v51  ;;  %v2063_v46 = vrot.slane %v2509_v19, 9  ;;  %v631_v6 = vrot.slane %v239_v33, 5 }
  0x2b   : > { %2272 = vmatprep.mubr.msk.bf16.mxu1 %vm270_vm0, %v2050_v43  ;;  %v457_v8 = vsel %vm2571_vm6, %v452_v61, %v456_v58  ;;  %v624_v9 = vsel %vm2565_vm5, %v2061_v12, %v623_v62  ;;  %v628_v51 = vsel %vm2565_vm5, %v2062_v13, %v627_v39  ;;  %v2064_v19 = vrot.slane %v2516_v24, 9  ;;  %2316 = vmatprep.subr.bf16.mxu0 %v2618_v56  ;;  %v2713_v58 = vld [vmem:[%s2482_s28 + $0x24] sm:$0x1] }
  0x2c   : > { %v466_v14 = vrot.slane %v465_v40, 4  ;;  %v2069_v3 = vcombine.low %v624_v9, %v628_v51  ;;  %v632_v12 = vsel %vm2565_vm5, %v2063_v46, %v631_v6  ;;  %v635_v15 = vrot.slane %v241_v28, 5  ;;  %v2700_v28 = vld [vmem:[%s2482_s28 + $0x14] sm:$0x1] }
  0x2d   : > { %v2094_v4 = vcombine.low %v2627_v60, %v2631_v63  ;;  %v910_v13 = vshrl.u32 %v2627_v60, 16  ;;  %v913_v24 = vshll.u32 %v2627_v60, 16  ;;  %v924_v16 = vshrl.u32 %v2631_v63, 16 }
  0x2e   : > { %v471_v18 = vsel %vm2571_vm6, %v466_v14, %v470_v0  ;;  %2282 = vmatprep.mubr.msk.bf16.mxu0 %vm270_vm0, %v2069_v3  ;;  %v636_v20 = vsel %vm2565_vm5, %v2064_v19, %v635_v15  ;;  %v927_v21 = vshll.u32 %v2631_v63, 16  ;;  %v2095_v22 = vcombine.low %v2637_v7, %v2652_v2  ;;  %v2723_v3 = vld [vmem:[%s3057_s1 + $0x38] sm:$0xff]  }
  0x2f   : > { %v2051_v26 = vcombine.low %v457_v8, %v471_v18  ;;  %v2070_v29 = vcombine.low %v632_v12, %v636_v20  ;;  %v938_v30 = vshrl.u32 %v2637_v7, 16  ;;  %v941_v31 = vshll.u32 %v2637_v7, 16  ;;  %v2717_v8 = vld [vmem:[%s2482_s28 + $0x2c] sm:$0x1] }
  0x30   : > { %v952_v27 = vshrl.u32 %v2652_v2, 16  ;;  %v955_v33 = vshll.u32 %v2652_v2, 16  ;;  %v2096_v34 = vcombine.low %v2655_v11, %v2666_v17  ;;  %v966_v36 = vshrl.u32 %v2655_v11, 16 }
  0x31   : > { %2273 = vmatmul.mubr.msk.bf16.gmra.mrb[8].mxu1 %vm270_vm0, %v2051_v26  ;;  %2283 = vmatmul.mubr.msk.bf16.gmra.mrb[8].mxu0 %vm270_vm0, %v2070_v29  ;;  %v969_v41 = vshll.u32 %v2655_v11, 16  ;;  %v980_v42 = vshrl.u32 %v2666_v17, 16  ;;  %v983_v44 = vshll.u32 %v2666_v17, 16  ;;  %v2097_v10 = vcombine.low %v2677_v23, %v2680_v25 }
  0x32   : > { %2288 = vmatprep.mubr.msk.bf16.mxu1 %vm270_vm0, %v2094_v4  ;;  %v994_v45 = vshrl.u32 %v2677_v23, 16  ;;  %v997_v47 = vshll.u32 %v2677_v23, 16  ;;  %v1008_v49 = vshrl.u32 %v2680_v25, 16  ;;  %v1011_v50 = vshll.u32 %v2680_v25, 16 }
  0x33   : > { %v912_v53 = vrot.slane %v910_v13, 4  ;;  %v915_v37 = vrot.slane %v913_v24, 5  ;;  %v919_v38 = vshll.u32 %v2685_v32, 16  ;;  %v926_v54 = vrot.slane %v924_v16, 4  ;;  %v2726_v13 = vld [vmem:[%s2482_s28 + $0x34] sm:$0x1] }
  0x34   : > { %v929_v55 = vrot.slane %v927_v21, 5  ;;  %v933_v57 = vshll.u32 %v2700_v28, 16  ;;  %v940_v35 = vrot.slane %v938_v30, 4  ;;  %v943_v59 = vrot.slane %v941_v31, 5  ;;  %v2739_v31 = vld [vmem:[%s2482_s28 + $0x3c] sm:$0x1] }
  0x35   : > { %v916_v43 = vor.u32 %v915_v37, %v912_v53  ;;  %v921_v61 = vrot.slane %v919_v38, 5  ;;  %v947_v62 = vshll.u32 %v2708_v52, 16  ;;  %v954_v39 = vrot.slane %v952_v27, 4 }
  0x36   : > { %v930_v40 = vor.u32 %v929_v55, %v926_v54  ;;  %v935_v0 = vrot.slane %v933_v57, 5  ;;  %v944_v46 = vor.u32 %v943_v59, %v940_v35  ;;  %v957_v6 = vrot.slane %v955_v33, 5 }
  0x37   : > { %v917_v9 = vrot.slane %v916_v43, 4  ;;  %v949_v51 = vrot.slane %v947_v62, 5  ;;  %v961_v19 = vshll.u32 %v2713_v58, 16  ;;  %v968_v14 = vrot.slane %v966_v36, 4 }
  0x38   : > { %v931_v12 = vrot.slane %v930_v40, 4  ;;  %v945_v15 = vrot.slane %v944_v46, 4  ;;  %v958_v4 = vor.u32 %v957_v6, %v954_v39  ;;  %v971_v24 = vrot.slane %v969_v41, 5 }
  0x39   : > { %2289 = vmatmul.mubr.msk.bf16.vlgmr.msra.gmra.mrb[12].mxu1 %vm270_vm0, %v2095_v22  ;;  %v922_v16 = vsel %vm2571_vm6, %v917_v9, %v921_v61  ;;  %v963_v18 = vrot.slane %v961_v19, 5  ;;  %v975_v20 = vshll.u32 %v2717_v8, 16  ;;  %v982_v21 = vrot.slane %v980_v42, 4  ;;  %v2746_v42 = vld [vmem:[%s2482_s28 + $0x44] sm:$0x1] }
  0x3a   : > { %2292 = vmatprep.mubr.msk.bf16.mxu1 %vm270_vm0, %v2096_v34  ;;  %2307 = vmatpush3.bf16.msra.mxu1 %v2603_v48  ;;  %v936_v26 = vsel %vm2571_vm6, %v931_v12, %v935_v0  ;;  %v950_v29 = vsel %vm2571_vm6, %v945_v15, %v949_v51  ;;  %v959_v30 = vrot.slane %v958_v4, 4  ;;  %v972_v22 = vor.u32 %v971_v24, %v968_v14  ;;  %v2787_v24 = vld [vmem:[%s2482_s28 + $0x10] sm:$0xf] }
  0x3b   : > { %v2105_v27 = vcombine.low %v922_v16, %v936_v26  ;;  %v977_v33 = vrot.slane %v975_v20, 5  ;;  %v985_v36 = vrot.slane %v983_v44, 5  ;;  %v989_v41 = vshll.u32 %v2726_v13, 16  ;;  %2326 = vmatprep.subr.bf16.mxu1 %v2723_v3  ;;  %v2753_v44 = vld [vmem:[%s3057_s1 + $0x40] sm:$0xff]   ;;  %v2790_v16 = vld [vmem:[%s2482_s28 + $0x18] sm:$0xf] }
  0x3c   : > { %v964_v48 = vsel %vm2571_vm6, %v959_v30, %v963_v18  ;;  %v973_v34 = vrot.slane %v972_v22, 4  ;;  %v996_v53 = vrot.slane %v994_v45, 4  ;;  %v999_v37 = vrot.slane %v997_v47, 5  ;;  %v2803_v26 = vld [vmem:[%s2482_s28 + $0x20] sm:$0xf] }
  0x3d   : > { %2298 = vmatprep.mubr.msk.bf16.mxu0 %vm270_vm0, %v2105_v27  ;;  %v2106_v38 = vcombine.low %v950_v29, %v964_v48  ;;  %v986_v54 = vor.u32 %v985_v36, %v982_v21  ;;  %v991_v55 = vrot.slane %v989_v41, 5  ;;  %v1003_v57 = vshll.u32 %v2739_v31, 16  ;;  %v2806_v29 = vld [vmem:[%s2482_s28 + $0x28] sm:$0xf]  ;;  %v2823_v41 = vld [vmem:[%s2482_s28 + $0x38] sm:$0xf] }
  0x3e   : > { %v978_v35 = vsel %vm2571_vm6, %v973_v34, %v977_v33  ;;  %v1000_v59 = vor.u32 %v999_v37, %v996_v53  ;;  %v1010_v43 = vrot.slane %v1008_v49, 4  ;;  %v1013_v61 = vrot.slane %v1011_v50, 5  ;;  %v2833_v53 = vld [vmem:[%s2482_s28 + $0x40] sm:$0xf]  ;;  %v2836_v37 = vld [vmem:[%s2482_s28 + $0x48] sm:$0xf] }
  0x3f   : > { %2299 = vmatmul.mubr.msk.bf16.vlgmr.msra.gmra.mrb[12].mxu0 %vm270_vm0, %v2106_v38  ;;  %v987_v45 = vrot.slane %v986_v54, 4  ;;  %v1005_v47 = vrot.slane %v1003_v57, 5  ;;  %v1017_v62 = vshll.u32 %v2746_v42, 16  ;;  %v2114_v39 = vrot.slane %v2627_v60, 9 }
  0x40   : > { %2317 = vmatpush3.bf16.msra.mxu0 %v2618_v56  ;;  %v1001_v40 = vrot.slane %v1000_v59, 4  ;;  %v1014_v0 = vor.u32 %v1013_v61, %v1010_v43  ;;  %v1153_v46 = vrot.slane %v2685_v32, 5  ;;  %v2115_v6 = vrot.slane %v2631_v63, 9  ;;  %v2850_v61 = vld [vmem:[%s2482_s28 + $0x14] sm:$0x1] }
  0x41   : > { %2293 = vmatmul.mubr.msk.bf16.gmra.mrb[16].mxu1 %vm270_vm0, %v2097_v10  ;;  %v992_v49 = vsel %vm2571_vm6, %v987_v45, %v991_v55  ;;  %v1019_v50 = vrot.slane %v1017_v62, 5  ;;  %v1157_v9 = vrot.slane %v2700_v28, 5  ;;  %v2116_v56 = vrot.slane %v2637_v7, 9  ;;  %2336 = vmatprep.subr.bf16.mxu0 %v2753_v44 }
  0x42   : > { %v2107_v60 = vcombine.low %v978_v35, %v992_v49  ;;  %v1006_v63 = vsel %vm2571_vm6, %v1001_v40, %v1005_v47  ;;  %v1015_v32 = vrot.slane %v1014_v0, 4  ;;  %v1154_v10 = vsel %vm2565_vm5, %v2114_v39, %v1153_v46  ;;  %v2858_v40 = vld [vmem:[%s2482_s28 + $0x1c] sm:$0x1] }
  0x43   : > { %v1158_v51 = vsel %vm2565_vm5, %v2115_v6, %v1157_v9  ;;  %v1161_v19 = vrot.slane %v2708_v52, 5  ;;  %v2117_v28 = vrot.slane %v2652_v2, 9  ;;  %v1165_v7 = vrot.slane %v2713_v58, 5 }
  0x44   : > { %2302 = vmatprep.mubr.msk.bf16.mxu0 %vm270_vm0, %v2107_v60  ;;  %v1020_v14 = vsel %vm2571_vm6, %v1015_v32, %v1019_v50  ;;  %v2124_v12 = vcombine.low %v1154_v10, %v1158_v51  ;;  %v2118_v15 = vrot.slane %v2655_v11, 9  ;;  %v1169_v4 = vrot.slane %v2717_v8, 5  ;;  %v2865_v50 = vld [vmem:[%s2482_s28 + $0x24] sm:$0x1]  ;;  %v2871_v51 = vld [vmem:[%s2482_s28 + $0x2c] sm:$0x1] }
  0x45   : > { %v2108_v52 = vcombine.low %v1006_v63, %v1020_v14  ;;  %v1162_v2 = vsel %vm2565_vm5, %v2116_v56, %v1161_v19  ;;  %v1166_v58 = vsel %vm2565_vm5, %v2117_v28, %v1165_v7  ;;  %v2119_v18 = vrot.slane %v2666_v17, 9 }
  0x46   : > { %2308 = vmatprep.mubr.msk.bf16.mxu1 %vm270_vm0, %v2124_v12  ;;  %v2125_v20 = vcombine.low %v1162_v2, %v1166_v58  ;;  %v1170_v11 = vsel %vm2565_vm5, %v2118_v15, %v1169_v4  ;;  %v1173_v8 = vrot.slane %v2726_v13, 5  ;;  %v2120_v21 = vrot.slane %v2677_v23, 9  ;;  %v2815_v13 = vld [vmem:[%s2482_s28 + $0x30] sm:$0xf] }
  0x47   : > { %2303 = vmatmul.mubr.msk.bf16.gmra.mrb[16].mxu0 %vm270_vm0, %v2108_v52  ;;  %v1177_v30 = vrot.slane %v2739_v31, 5  ;;  %v2121_v17 = vrot.slane %v2680_v25, 9  ;;  %v1181_v22 = vrot.slane %v2746_v42, 5  ;;  %v2151_v27 = vcombine.low %v2787_v24, %v2790_v16 }
  0x48   : > { %v1174_v23 = vsel %vm2565_vm5, %v2119_v18, %v1173_v8  ;;  %v1456_v33 = vshrl.u32 %v2787_v24, 16  ;;  %v1459_v36 = vshll.u32 %v2787_v24, 16  ;;  %v1470_v31 = vshrl.u32 %v2790_v16, 16  ;;  %v2878_v18 = vld [vmem:[%s2482_s28 + $0x34] sm:$0x1] }
  0x49   : > { %2309 = vmatmul.mubr.msk.bf16.vlgmr.msra.gmra.mrb[20].mxu1 %vm270_vm0, %v2125_v20  ;;  %v2126_v25 = vcombine.low %v1170_v11, %v1174_v23  ;;  %v1178_v48 = vsel %vm2565_vm5, %v2120_v21, %v1177_v30  ;;  %v1182_v34 = vsel %vm2565_vm5, %v2121_v17, %v1181_v22  ;;  %2318 = vmatprep.mubr.msk.bf16.mxu0 %vm270_vm0, %v2151_v27  ;;  %v1473_v42 = vshll.u32 %v2790_v16, 16  ;;  %v2882_v22 = vld [vmem:[%s2482_s28 + $0x3c] sm:$0x1] }
  0x4a   : > { %2327 = vmatpush3.bf16.msra.mxu1 %v2723_v3  ;;  %v2127_v38 = vcombine.low %v1178_v48, %v1182_v34  ;;  %v2152_v54 = vcombine.low %v2803_v26, %v2806_v29  ;;  %v1484_v55 = vshrl.u32 %v2803_v26, 16  ;;  %v1487_v57 = vshll.u32 %v2803_v26, 16 }
  0x4b   : > { %2312 = vmatprep.mubr.msk.bf16.mxu1 %vm270_vm0, %v2126_v25  ;;  %v1498_v35 = vshrl.u32 %v2806_v29, 16  ;;  %v1501_v59 = vshll.u32 %v2806_v29, 16  ;;  %v2153_v43 = vcombine.low %v2815_v13, %v2823_v41  ;;  %v1512_v3 = vshrl.u32 %v2815_v13, 16 }
  0x4c   : > { %v1515_v45 = vshll.u32 %v2815_v13, 16  ;;  %v1526_v47 = vshrl.u32 %v2823_v41, 16  ;;  %v1529_v62 = vshll.u32 %v2823_v41, 16  ;;  %v2154_v39 = vcombine.low %v2833_v53, %v2836_v37 }
  0x4d   : > { %v1540_v0 = vshrl.u32 %v2833_v53, 16  ;;  %v1543_v46 = vshll.u32 %v2833_v53, 16  ;;  %v1554_v6 = vshrl.u32 %v2836_v37, 16  ;;  %v1557_v49 = vshll.u32 %v2836_v37, 16 }
  0x4e   : > { %v1458_v9 = vrot.slane %v1456_v33, 4  ;;  %v1461_v56 = vrot.slane %v1459_v36, 5  ;;  %v1465_v60 = vshll.u32 %v2850_v61, 16  ;;  %v1472_v63 = vrot.slane %v1470_v31, 4 }
  0x4f   : > { %2319 = vmatmul.mubr.msk.bf16.vlgmr.msra.gmra.mrb[20].mxu0 %vm270_vm0, %v2152_v54  ;;  %v1475_v32 = vrot.slane %v1473_v42, 5  ;;  %v1479_v10 = vshll.u32 %v2858_v40, 16  ;;  %v1486_v19 = vrot.slane %v1484_v55, 4  ;;  %v1489_v28 = vrot.slane %v1487_v57, 5 }
  0x50   : > { %2322 = vmatprep.mubr.msk.bf16.mxu0 %vm270_vm0, %v2153_v43  ;;  %2337 = vmatpush3.bf16.msra.mxu0 %v2753_v44  ;;  %v1462_v7 = vor.u32 %v1461_v56, %v1458_v9  ;;  %v1467_v14 = vrot.slane %v1465_v60, 5  ;;  %v1493_v12 = vshll.u32 %v2865_v50, 16  ;;  %v1500_v15 = vrot.slane %v1498_v35, 4 }
  0x51   : > { %2313 = vmatmul.mubr.msk.bf16.gmra.mrb[24].mxu1 %vm270_vm0, %v2127_v38  ;;  %v1476_v4 = vor.u32 %v1475_v32, %v1472_v63  ;;  %v1481_v52 = vrot.slane %v1479_v10, 5  ;;  %v1490_v2 = vor.u32 %v1489_v28, %v1486_v19  ;;  %v1503_v58 = vrot.slane %v1501_v59, 5  ;;  %v2892_v38 = vld [vmem:[%s2482_s28 + $0x44] sm:$0x1] }
  0x52   : > { %v1463_v20 = vrot.slane %v1462_v7, 4  ;;  %v1495_v11 = vrot.slane %v1493_v12, 5  ;;  %v1507_v8 = vshll.u32 %v2871_v51, 16  ;;  %v1514_v44 = vrot.slane %v1512_v3, 4  ;;  %v2148_v3 = vld [vmem:[%s2482_s28 + $0x4c] sm:$0x1] }
  0x53   : > { %v1477_v21 = vrot.slane %v1476_v4, 4  ;;  %v1491_v30 = vrot.slane %v1490_v2, 4  ;;  %v1504_v17 = vor.u32 %v1503_v58, %v1500_v15  ;;  %v1517_v27 = vrot.slane %v1515_v45, 5 }
  0x54   : > { %v1468_v23 = vsel %vm2571_vm6, %v1463_v20, %v1467_v14  ;;  %v1509_v33 = vrot.slane %v1507_v8, 5  ;;  %v1521_v36 = vshll.u32 %v2878_v18, 16  ;;  %v1528_v31 = vrot.slane %v1526_v47, 4 }
  0x55   : > { %v1482_v25 = vsel %vm2571_vm6, %v1477_v21, %v1481_v52  ;;  %v1496_v48 = vsel %vm2571_vm6, %v1491_v30, %v1495_v11  ;;  %v1505_v34 = vrot.slane %v1504_v17, 4  ;;  %v1518_v42 = vor.u32 %v1517_v27, %v1514_v44 }
  0x56   : > { %v2162_v54 = vcombine.low %v1468_v23, %v1482_v25  ;;  %v1523_v55 = vrot.slane %v1521_v36, 5  ;;  %v1531_v57 = vrot.slane %v1529_v62, 5  ;;  %v1535_v35 = vshll.u32 %v2882_v22, 16 }
  0x57   : > { %2323 = vmatmul.mubr.msk.bf16.gmra.mrb[24].mxu0 %vm270_vm0, %v2154_v39  ;;  %v1510_v59 = vsel %vm2571_vm6, %v1505_v34, %v1509_v33  ;;  %v1519_v43 = vrot.slane %v1518_v42, 4  ;;  %v1542_v45 = vrot.slane %v1540_v0, 4  ;;  %v1545_v47 = vrot.slane %v1543_v46, 5 }
  0x58   : > { %2328 = vmatprep.mubr.msk.bf16.mxu1 %vm270_vm0, %v2162_v54  ;;  %v2163_v9 = vcombine.low %v1496_v48, %v1510_v59  ;;  %v1532_v56 = vor.u32 %v1531_v57, %v1528_v31  ;;  %v1537_v60 = vrot.slane %v1535_v35, 5  ;;  %v1549_v63 = vshll.u32 %v2892_v38, 16 }
  0x59   : > { %v1524_v62 = vsel %vm2571_vm6, %v1519_v43, %v1523_v55  ;;  %v1546_v32 = vor.u32 %v1545_v47, %v1542_v45  ;;  %v1556_v10 = vrot.slane %v1554_v6, 4  ;;  %v1559_v39 = vrot.slane %v1557_v49, 5 }
  0x5a   : > { %2329 = vmatmul.mubr.msk.bf16.vlgmr.msra.gmra.mrb[28].mxu1 %vm270_vm0, %v2163_v9  ;;  %v1533_v19 = vrot.slane %v1532_v56, 4  ;;  %v1551_v28 = vrot.slane %v1549_v63, 5  ;;  %v1563_v7 = vshll.u32 %v2148_v3, 16  ;;  %v2171_v0 = vrot.slane %v2787_v24, 9 }
  0x5b   : > { %v1547_v46 = vrot.slane %v1546_v32, 4  ;;  %v1560_v14 = vor.u32 %v1559_v39, %v1556_v10  ;;  %v1699_v12 = vrot.slane %v2850_v61, 5  ;;  %v2172_v15 = vrot.slane %v2790_v16, 9 }
  0x5c   : > { %v1538_v4 = vsel %vm2571_vm6, %v1533_v19, %v1537_v60  ;;  %v1565_v52 = vrot.slane %v1563_v7, 5  ;;  %v1703_v6 = vrot.slane %v2858_v40, 5  ;;  %v2173_v49 = vrot.slane %v2803_v26, 9 }
  0x5d   : > { %v2164_v2 = vcombine.low %v1524_v62, %v1538_v4  ;;  %v1552_v58 = vsel %vm2571_vm6, %v1547_v46, %v1551_v28  ;;  %v1561_v20 = vrot.slane %v1560_v14, 4  ;;  %v1700_v24 = vsel %vm2565_vm5, %v2171_v0, %v1699_v12 }
  0x5e   : > { %v1704_v61 = vsel %vm2565_vm5, %v2172_v15, %v1703_v6  ;;  %v1707_v16 = vrot.slane %v2865_v50, 5  ;;  %v2174_v11 = vrot.slane %v2806_v29, 9  ;;  %v1711_v8 = vrot.slane %v2871_v51, 5 }
  0x5f   : > { %2332 = vmatprep.mubr.msk.bf16.mxu1 %vm270_vm0, %v2164_v2  ;;  %v1566_v26 = vsel %vm2571_vm6, %v1561_v20, %v1565_v52  ;;  %v2181_v40 = vcombine.low %v1700_v24, %v1704_v61  ;;  %v2175_v44 = vrot.slane %v2815_v13, 9  ;;  %v1715_v21 = vrot.slane %v2878_v18, 5 }
  0x60   : > { %v2165_v30 = vcombine.low %v1552_v58, %v1566_v26  ;;  %v1708_v17 = vsel %vm2565_vm5, %v2173_v49, %v1707_v16  ;;  %v1712_v50 = vsel %vm2565_vm5, %v2174_v11, %v1711_v8  ;;  %v2176_v29 = vrot.slane %v2823_v41, 9 }
  0x61   : > { %2338 = vmatprep.mubr.msk.bf16.mxu0 %vm270_vm0, %v2181_v40  ;;  %v2182_v51 = vcombine.low %v1708_v17, %v1712_v50  ;;  %v1716_v5 = vsel %vm2565_vm5, %v2175_v44, %v1715_v21  ;;  %v1719_v27 = vrot.slane %v2882_v22, 5  ;;  %v2177_v13 = vrot.slane %v2833_v53, 9 }
  0x62   : > { %2333 = vmatmul.mubr.msk.bf16.gmra.mrb[32].mxu1 %vm270_vm0, %v2165_v30  ;;  %v1723_v18 = vrot.slane %v2892_v38, 5  ;;  %v2178_v23 = vrot.slane %v2836_v37, 9  ;;  %v1727_v33 = vrot.slane %v2148_v3, 5 }
  0x63   : > { %2339 = vmatmul.mubr.msk.bf16.vlgmr.msra.gmra.mrb[28].mxu0 %vm270_vm0, %v2182_v51  ;;  %v1720_v41 = vsel %vm2565_vm5, %v2176_v29, %v1719_v27 }
  0x64   : > { %v2183_v36 = vcombine.low %v1716_v5, %v1720_v41  ;;  %v1724_v31 = vsel %vm2565_vm5, %v2177_v13, %v1723_v18  ;;  %v1728_v22 = vsel %vm2565_vm5, %v2178_v23, %v1727_v33 }
  0x65   : > { %v2184_v53 = vcombine.low %v1724_v31, %v1728_v22 }
  0x66   : > { %2342 = vmatprep.mubr.msk.bf16.mxu0 %vm270_vm0, %v2183_v36 }
  0x6b   : > { %2343 = vmatmul.mubr.msk.bf16.gmra.mrb[32].mxu0 %vm270_vm0, %v2184_v53 }
  0xee   : > { %v2264_v37 = vpop.f32.mrb[0].mxu1 }
  0xef   : > { %355 = vst.msk [vmem:[#allocation2 + $0x30] sm:$0xff] %vm348_vm7, %v2264_v37  ;;  %v333_v25 = vpop.f32.mrb[1].mxu1 }
  0xf0   : > { %v2260_v48 = vpop.f32.mrb[0].mxu0  ;;  %353 = vst.msk [vmem:[#allocation2 + $0x20] sm:$0xff] %vm348_vm7, %v333_v25  ;;  %v2265_v34 = vpop.f32.mrb[2].mxu1 }
  0xf1   : > { %351 = vst.msk [vmem:[#allocation2 + $0x10] sm:$0xff] %vm348_vm7, %v2260_v48  ;;  %v317_v42 = vpop.f32.mrb[1].mxu0  ;;  %356 = vst.msk [vmem:[#allocation2 + $0x38] sm:$0xff] %vm348_vm7, %v2265_v34  ;;  %v336_v1 = vpop.f32.mrb[3].mxu1 }
  0xf2   : > { %349 = vst.msk [vmem:[#allocation2] sm:$0xff] %vm348_vm7, %v317_v42  ;;  %v2261_v38 = vpop.f32.mrb[2].mxu0  ;;  %354 = vst.msk [vmem:[#allocation2 + $0x28] sm:$0xff] %vm348_vm7, %v336_v1 }
  0xf3   : > { %352 = vst.msk [vmem:[#allocation2 + $0x18] sm:$0xff] %vm348_vm7, %v2261_v38  ;;  %v320_v54 = vpop.f32.mrb[3].mxu0 }
  0xf4   : > { %350 = vst.msk [vmem:[#allocation2 + $0x8] sm:$0xff] %vm348_vm7, %v320_v54 }
  0xf6   : > { %v576_v7 = vld [vmem:[#allocation2 + $0x30] sm:$0xff] }
  0xf7   : > { %v574_v4 = vld [vmem:[#allocation2 + $0x20] sm:$0xff] }
  0xf8   : > { %v572_v55 = vld [vmem:[#allocation2 + $0x10] sm:$0xff]  ;;  %v577_v20 = vld [vmem:[#allocation2 + $0x38] sm:$0xff] }
  0xf9   : > { %v570_v57 = vld [vmem:[#allocation2] sm:$0xff]  ;;  %v575_v26 = vld [vmem:[#allocation2 + $0x28] sm:$0xff] }
  0xfa   : > { %v2270_v35 = vpop.f32.mrb[4].mxu1  ;;  %v573_v59 = vld [vmem:[#allocation2 + $0x18] sm:$0xff] }
  0xfb   : > { %v580_v43 = vadd.f32 %v2270_v35, %v572_v55  ;;  %v539_v3 = vpop.f32.mrb[5].mxu1  ;;  %v571_v45 = vld [vmem:[#allocation2 + $0x8] sm:$0xff] }
  0xfc   : > { %v578_v47 = vadd.f32 %v570_v57, %v539_v3  ;;  %v2271_v9 = vpop.f32.mrb[6].mxu1  ;;  %v2280_v56 = vpop.f32.mrb[4].mxu0 }
  0xfd   : > { %588 = vst.msk [vmem:[#allocation2 + $0x10] sm:$0xff] %vm348_vm7, %v580_v43  ;;  %v581_v60 = vadd.f32 %v2271_v9, %v573_v59  ;;  %v542_v63 = vpop.f32.mrb[7].mxu1  ;;  %v704_v62 = vpop.f32.mrb[5].mxu0 }
  0xfe   : > { %586 = vst.msk [vmem:[#allocation2] sm:$0xff] %vm348_vm7, %v578_v47  ;;  %v579_v32 = vadd.f32 %v571_v45, %v542_v63  ;;  %v2281_v10 = vpop.f32.mrb[6].mxu0 }
  0xff   : > { %589 = vst.msk [vmem:[#allocation2 + $0x18] sm:$0xff] %vm348_vm7, %v581_v60  ;;  %v707_v39 = vpop.f32.mrb[7].mxu0 }
 0x100   : > { %587 = vst.msk [vmem:[#allocation2 + $0x8] sm:$0xff] %vm348_vm7, %v579_v32 }
 0x104   : > { %v737_v19 = vld [vmem:[#allocation2 + $0x10] sm:$0xff]  ;;  %v2274_v28 = vpop.f32.mrb[8].mxu1  ;;  %v2284_v0 = vpop.f32.mrb[8].mxu0 }
 0x105   : > { %v745_v46 = vadd.f32 %v2280_v56, %v737_v19  ;;  %v584_v14 = vadd.f32 %v2274_v28, %v576_v7  ;;  %v735_v12 = vld [vmem:[#allocation2] sm:$0xff]  ;;  %v555_v15 = vpop.f32.mrb[9].mxu1  ;;  %v720_v52 = vpop.f32.mrb[9].mxu0 }
 0x106   : > { %v743_v6 = vadd.f32 %v735_v12, %v704_v62  ;;  %v582_v49 = vadd.f32 %v574_v4, %v555_v15  ;;  %v738_v2 = vld [vmem:[#allocation2 + $0x18] sm:$0xff]  ;;  %v2275_v58 = vpop.f32.mrb[10].mxu1  ;;  %v2285_v24 = vpop.f32.mrb[10].mxu0 }
 0x107   : > { %753 = vst.msk [vmem:[#allocation2 + $0x10] sm:$0xff] %vm348_vm7, %v745_v46  ;;  %592 = vst.msk [vmem:[#allocation2 + $0x30] sm:$0xff] %vm348_vm7, %v584_v14  ;;  %v746_v61 = vadd.f32 %v2281_v10, %v738_v2  ;;  %v585_v16 = vadd.f32 %v2275_v58, %v577_v20  ;;  %v736_v11 = vld [vmem:[#allocation2 + $0x8] sm:$0xff]  ;;  %v558_v8 = vpop.f32.mrb[11].mxu1  ;;  %v723_v40 = vpop.f32.mrb[11].mxu0 }
 0x108   : > { %751 = vst.msk [vmem:[#allocation2] sm:$0xff] %vm348_vm7, %v743_v6  ;;  %590 = vst.msk [vmem:[#allocation2 + $0x20] sm:$0xff] %vm348_vm7, %v582_v49  ;;  %v744_v44 = vadd.f32 %v736_v11, %v707_v39  ;;  %v583_v21 = vadd.f32 %v575_v26, %v558_v8 }
 0x109   : > { %754 = vst.msk [vmem:[#allocation2 + $0x18] sm:$0xff] %vm348_vm7, %v746_v61  ;;  %593 = vst.msk [vmem:[#allocation2 + $0x38] sm:$0xff] %vm348_vm7, %v585_v16 }
 0x10a   : > { %752 = vst.msk [vmem:[#allocation2 + $0x8] sm:$0xff] %vm348_vm7, %v744_v44  ;;  %591 = vst.msk [vmem:[#allocation2 + $0x28] sm:$0xff] %vm348_vm7, %v583_v21 }
 0x10c   : > { %v2290_v30 = vpop.f32.mrb[12].mxu1 }
 0x10d   : > { %v854_v17 = vpop.f32.mrb[13].mxu1 }
 0x10e   : > { %v741_v50 = vld [vmem:[#allocation2 + $0x30] sm:$0xff]  ;;  %v2291_v51 = vpop.f32.mrb[14].mxu1 }
 0x10f   : > { %v887_v29 = vld [vmem:[#allocation2 + $0x10] sm:$0xff]  ;;  %v749_v5 = vadd.f32 %v2284_v0, %v741_v50  ;;  %v739_v27 = vld [vmem:[#allocation2 + $0x20] sm:$0xff]  ;;  %v857_v23 = vpop.f32.mrb[15].mxu1 }
 0x110   : > { %v895_v13 = vadd.f32 %v2290_v30, %v887_v29  ;;  %v885_v18 = vld [vmem:[#allocation2] sm:$0xff]  ;;  %v747_v33 = vadd.f32 %v739_v27, %v720_v52  ;;  %v742_v41 = vld [vmem:[#allocation2 + $0x38] sm:$0xff] }
 0x111   : > { %v893_v36 = vadd.f32 %v885_v18, %v854_v17  ;;  %v888_v31 = vld [vmem:[#allocation2 + $0x18] sm:$0xff]  ;;  %757 = vst.msk [vmem:[#allocation2 + $0x30] sm:$0xff] %vm348_vm7, %v749_v5  ;;  %v750_v22 = vadd.f32 %v2285_v24, %v742_v41  ;;  %v740_v53 = vld [vmem:[#allocation2 + $0x28] sm:$0xff] }
 0x112   : > { %903 = vst.msk [vmem:[#allocation2 + $0x10] sm:$0xff] %vm348_vm7, %v895_v13  ;;  %v896_v37 = vadd.f32 %v2291_v51, %v888_v31  ;;  %v886_v25 = vld [vmem:[#allocation2 + $0x8] sm:$0xff]  ;;  %755 = vst.msk [vmem:[#allocation2 + $0x20] sm:$0xff] %vm348_vm7, %v747_v33  ;;  %v748_v48 = vadd.f32 %v740_v53, %v723_v40  ;;  %v2300_v42 = vpop.f32.mrb[12].mxu0 }
 0x113   : > { %901 = vst.msk [vmem:[#allocation2] sm:$0xff] %vm348_vm7, %v893_v36  ;;  %v894_v34 = vadd.f32 %v886_v25, %v857_v23  ;;  %758 = vst.msk [vmem:[#allocation2 + $0x38] sm:$0xff] %vm348_vm7, %v750_v22  ;;  %v1088_v1 = vpop.f32.mrb[13].mxu0 }
 0x114   : > { %904 = vst.msk [vmem:[#allocation2 + $0x18] sm:$0xff] %vm348_vm7, %v896_v37  ;;  %756 = vst.msk [vmem:[#allocation2 + $0x28] sm:$0xff] %vm348_vm7, %v748_v48  ;;  %v2294_v38 = vpop.f32.mrb[16].mxu1  ;;  %v2301_v54 = vpop.f32.mrb[14].mxu0 }
 0x115   : > { %902 = vst.msk [vmem:[#allocation2 + $0x8] sm:$0xff] %vm348_vm7, %v894_v34  ;;  %v870_v55 = vpop.f32.mrb[17].mxu1  ;;  %v1091_v57 = vpop.f32.mrb[15].mxu0 }
 0x116   : > { %v2295_v35 = vpop.f32.mrb[18].mxu1 }
 0x117   : > { %v873_v59 = vpop.f32.mrb[19].mxu1 }
 0x118   : > { %v891_v43 = vld [vmem:[#allocation2 + $0x30] sm:$0xff] }
 0x119   : > { %v1121_v3 = vld [vmem:[#allocation2 + $0x10] sm:$0xff]  ;;  %v899_v45 = vadd.f32 %v2294_v38, %v891_v43  ;;  %v889_v47 = vld [vmem:[#allocation2 + $0x20] sm:$0xff] }
 0x11a   : > { %v1129_v9 = vadd.f32 %v2300_v42, %v1121_v3  ;;  %v1119_v56 = vld [vmem:[#allocation2] sm:$0xff]  ;;  %v897_v60 = vadd.f32 %v889_v47, %v870_v55  ;;  %v892_v63 = vld [vmem:[#allocation2 + $0x38] sm:$0xff]  ;;  %v2304_v10 = vpop.f32.mrb[16].mxu0 }
 0x11b   : > { %v1127_v62 = vadd.f32 %v1119_v56, %v1088_v1  ;;  %v1122_v32 = vld [vmem:[#allocation2 + $0x18] sm:$0xff]  ;;  %907 = vst.msk [vmem:[#allocation2 + $0x30] sm:$0xff] %vm348_vm7, %v899_v45  ;;  %v900_v39 = vadd.f32 %v2295_v35, %v892_v63  ;;  %v890_v19 = vld [vmem:[#allocation2 + $0x28] sm:$0xff]  ;;  %v1104_v0 = vpop.f32.mrb[17].mxu0 }
 0x11c   : > { %1137 = vst.msk [vmem:[#allocation2 + $0x10] sm:$0xff] %vm348_vm7, %v1129_v9  ;;  %v1130_v28 = vadd.f32 %v2301_v54, %v1122_v32  ;;  %v1120_v7 = vld [vmem:[#allocation2 + $0x8] sm:$0xff]  ;;  %905 = vst.msk [vmem:[#allocation2 + $0x20] sm:$0xff] %vm348_vm7, %v897_v60  ;;  %v898_v46 = vadd.f32 %v890_v19, %v873_v59  ;;  %v2305_v12 = vpop.f32.mrb[18].mxu0  ;;  %v2310_v15 = vpop.f32.mrb[20].mxu1 }
 0x11d   : > { %1135 = vst.msk [vmem:[#allocation2] sm:$0xff] %vm348_vm7, %v1127_v62  ;;  %v1128_v14 = vadd.f32 %v1120_v7, %v1091_v57  ;;  %908 = vst.msk [vmem:[#allocation2 + $0x38] sm:$0xff] %vm348_vm7, %v900_v39  ;;  %v1107_v4 = vpop.f32.mrb[19].mxu0  ;;  %v1250_v52 = vpop.f32.mrb[21].mxu1 }
 0x11e   : > { %1138 = vst.msk [vmem:[#allocation2 + $0x18] sm:$0xff] %vm348_vm7, %v1130_v28  ;;  %906 = vst.msk [vmem:[#allocation2 + $0x28] sm:$0xff] %vm348_vm7, %v898_v46  ;;  %v2311_v6 = vpop.f32.mrb[22].mxu1 }
 0x11f   : > { %1136 = vst.msk [vmem:[#allocation2 + $0x8] sm:$0xff] %vm348_vm7, %v1128_v14  ;;  %v1253_v49 = vpop.f32.mrb[23].mxu1 }
 0x122   : > { %v1125_v2 = vld [vmem:[#allocation2 + $0x30] sm:$0xff]  ;;  %v2320_v20 = vpop.f32.mrb[20].mxu0 }
 0x123   : > { %v1283_v58 = vld [vmem:[#allocation2 + $0x10] sm:$0xff]  ;;  %v1133_v24 = vadd.f32 %v2304_v10, %v1125_v2  ;;  %v1123_v61 = vld [vmem:[#allocation2 + $0x20] sm:$0xff]  ;;  %v1400_v8 = vpop.f32.mrb[21].mxu0 }
 0x124   : > { %v1291_v16 = vadd.f32 %v2310_v15, %v1283_v58  ;;  %v1281_v11 = vld [vmem:[#allocation2] sm:$0xff]  ;;  %v1131_v26 = vadd.f32 %v1123_v61, %v1104_v0  ;;  %v1126_v40 = vld [vmem:[#allocation2 + $0x38] sm:$0xff]  ;;  %v2314_v30 = vpop.f32.mrb[24].mxu1  ;;  %v2321_v17 = vpop.f32.mrb[22].mxu0 }
 0x125   : > { %v1289_v44 = vadd.f32 %v1281_v11, %v1250_v52  ;;  %v1284_v21 = vld [vmem:[#allocation2 + $0x18] sm:$0xff]  ;;  %1141 = vst.msk [vmem:[#allocation2 + $0x30] sm:$0xff] %vm348_vm7, %v1133_v24  ;;  %v1134_v50 = vadd.f32 %v2305_v12, %v1126_v40  ;;  %v1124_v29 = vld [vmem:[#allocation2 + $0x28] sm:$0xff]  ;;  %v1266_v27 = vpop.f32.mrb[25].mxu1  ;;  %v1403_v13 = vpop.f32.mrb[23].mxu0 }
 0x126   : > { %1299 = vst.msk [vmem:[#allocation2 + $0x10] sm:$0xff] %vm348_vm7, %v1291_v16  ;;  %v1292_v51 = vadd.f32 %v2311_v6, %v1284_v21  ;;  %v1282_v5 = vld [vmem:[#allocation2 + $0x8] sm:$0xff]  ;;  %1139 = vst.msk [vmem:[#allocation2 + $0x20] sm:$0xff] %vm348_vm7, %v1131_v26  ;;  %v1132_v18 = vadd.f32 %v1124_v29, %v1107_v4  ;;  %v2315_v33 = vpop.f32.mrb[26].mxu1 }
 0x127   : > { %1297 = vst.msk [vmem:[#allocation2] sm:$0xff] %vm348_vm7, %v1289_v44  ;;  %v1290_v23 = vadd.f32 %v1282_v5, %v1253_v49  ;;  %1142 = vst.msk [vmem:[#allocation2 + $0x38] sm:$0xff] %vm348_vm7, %v1134_v50  ;;  %v1269_v41 = vpop.f32.mrb[27].mxu1 }
 0x128   : > { %1300 = vst.msk [vmem:[#allocation2 + $0x18] sm:$0xff] %vm348_vm7, %v1292_v51  ;;  %1140 = vst.msk [vmem:[#allocation2 + $0x28] sm:$0xff] %vm348_vm7, %v1132_v18 }
 0x129   : > { %1298 = vst.msk [vmem:[#allocation2 + $0x8] sm:$0xff] %vm348_vm7, %v1290_v23 }
 0x12a   : > { %v2324_v36 = vpop.f32.mrb[24].mxu0 }
 0x12b   : > { %v1416_v31 = vpop.f32.mrb[25].mxu0 }
 0x12c   : > { %v1287_v22 = vld [vmem:[#allocation2 + $0x30] sm:$0xff]  ;;  %v2325_v37 = vpop.f32.mrb[26].mxu0 }
 0x12d   : > { %v1433_v53 = vld [vmem:[#allocation2 + $0x10] sm:$0xff]  ;;  %v1295_v25 = vadd.f32 %v2314_v30, %v1287_v22  ;;  %v1285_v48 = vld [vmem:[#allocation2 + $0x20] sm:$0xff]  ;;  %v2330_v1 = vpop.f32.mrb[28].mxu1  ;;  %v1419_v38 = vpop.f32.mrb[27].mxu0 }
 0x12e   : > { %v1441_v34 = vadd.f32 %v2320_v20, %v1433_v53  ;;  %v1431_v42 = vld [vmem:[#allocation2] sm:$0xff]  ;;  %v1293_v54 = vadd.f32 %v1285_v48, %v1266_v27  ;;  %v1288_v55 = vld [vmem:[#allocation2 + $0x38] sm:$0xff]  ;;  %v1634_v59 = vpop.f32.mrb[29].mxu1 }
 0x12f   : > { %v1439_v57 = vadd.f32 %v1431_v42, %v1400_v8  ;;  %v1434_v35 = vld [vmem:[#allocation2 + $0x18] sm:$0xff]  ;;  %1303 = vst.msk [vmem:[#allocation2 + $0x30] sm:$0xff] %vm348_vm7, %v1295_v25  ;;  %v1296_v43 = vadd.f32 %v2315_v33, %v1288_v55  ;;  %v1286_v3 = vld [vmem:[#allocation2 + $0x28] sm:$0xff]  ;;  %v2331_v9 = vpop.f32.mrb[30].mxu1  ;;  %v2191_v48 = vld [vmem:[%s3059_s3] ss:$0 sm:$0xff] }
 0x130   : > { %1449 = vst.msk [vmem:[#allocation2 + $0x10] sm:$0xff] %vm348_vm7, %v1441_v34  ;;  %v1442_v45 = vadd.f32 %v2321_v17, %v1434_v35  ;;  %v1432_v47 = vld [vmem:[#allocation2 + $0x8] sm:$0xff]  ;;  %1301 = vst.msk [vmem:[#allocation2 + $0x20] sm:$0xff] %vm348_vm7, %v1293_v54  ;;  %v1294_v56 = vadd.f32 %v1286_v3, %v1269_v41  ;;  %v1637_v63 = vpop.f32.mrb[31].mxu1 }
 0x131   : > { %1447 = vst.msk [vmem:[#allocation2] sm:$0xff] %vm348_vm7, %v1439_v57  ;;  %v1440_v60 = vadd.f32 %v1432_v47, %v1403_v13  ;;  %1304 = vst.msk [vmem:[#allocation2 + $0x38] sm:$0xff] %vm348_vm7, %v1296_v43 }
 0x132   : > { %1450 = vst.msk [vmem:[#allocation2 + $0x18] sm:$0xff] %vm348_vm7, %v1442_v45  ;;  %1302 = vst.msk [vmem:[#allocation2 + $0x28] sm:$0xff] %vm348_vm7, %v1294_v56 }
 0x133   : > { %1448 = vst.msk [vmem:[#allocation2 + $0x8] sm:$0xff] %vm348_vm7, %v1440_v60 }
 0x135   : > { %v2334_v62 = vpop.f32.mrb[32].mxu1 }
 0x136   : > { %v1437_v32 = vld [vmem:[#allocation2 + $0x30] sm:$0xff]  ;;  %v1650_v39 = vpop.f32.mrb[33].mxu1  ;;  %v2340_v19 = vpop.f32.mrb[28].mxu0 }
 0x137   : > { %v1667_v10 = vld [vmem:[#allocation2 + $0x10] sm:$0xff]  ;;  %v1445_v28 = vadd.f32 %v2324_v36, %v1437_v32  ;;  %v1435_v7 = vld [vmem:[#allocation2 + $0x20] sm:$0xff]  ;;  %v2335_v14 = vpop.f32.mrb[34].mxu1  ;;  %v1796_v12 = vpop.f32.mrb[29].mxu0 }
 0x138   : > { %v1675_v0 = vadd.f32 %v2330_v1, %v1667_v10  ;;  %v1665_v46 = vld [vmem:[#allocation2] sm:$0xff]  ;;  %v1443_v15 = vadd.f32 %v1435_v7, %v1416_v31  ;;  %v1438_v4 = vld [vmem:[#allocation2 + $0x38] sm:$0xff]  ;;  %v1653_v49 = vpop.f32.mrb[35].mxu1  ;;  %v2341_v2 = vpop.f32.mrb[30].mxu0 }
 0x139   : > { %v1673_v52 = vadd.f32 %v1665_v46, %v1634_v59  ;;  %v1668_v6 = vld [vmem:[#allocation2 + $0x18] sm:$0xff]  ;;  %1453 = vst.msk [vmem:[#allocation2 + $0x30] sm:$0xff] %vm348_vm7, %v1445_v28  ;;  %v1446_v58 = vadd.f32 %v2325_v37, %v1438_v4  ;;  %v1436_v20 = vld [vmem:[#allocation2 + $0x28] sm:$0xff]  ;;  %v1799_v16 = vpop.f32.mrb[31].mxu0  ;;  %v2190_v37 = vld [vmem:[%s3058_s2] ss:$0 sm:$0xff] }
 0x13a   : > { %1683 = vst.msk [vmem:[#allocation2 + $0x10] sm:$0xff] %vm348_vm7, %v1675_v0  ;;  %v1676_v24 = vadd.f32 %v2331_v9, %v1668_v6  ;;  %v1666_v61 = vld [vmem:[#allocation2 + $0x8] sm:$0xff]  ;;  %1451 = vst.msk [vmem:[#allocation2 + $0x20] sm:$0xff] %vm348_vm7, %v1443_v15  ;;  %v1444_v11 = vadd.f32 %v1436_v20, %v1419_v38 }
 0x13b   : > { %1681 = vst.msk [vmem:[#allocation2] sm:$0xff] %vm348_vm7, %v1673_v52  ;;  %v1674_v8 = vadd.f32 %v1666_v61, %v1637_v63  ;;  %1454 = vst.msk [vmem:[#allocation2 + $0x38] sm:$0xff] %vm348_vm7, %v1446_v58 }
 0x13c   : > { %1684 = vst.msk [vmem:[#allocation2 + $0x18] sm:$0xff] %vm348_vm7, %v1676_v24  ;;  %1452 = vst.msk [vmem:[#allocation2 + $0x28] sm:$0xff] %vm348_vm7, %v1444_v11 }
 0x13d   : > { %1682 = vst.msk [vmem:[#allocation2 + $0x8] sm:$0xff] %vm348_vm7, %v1674_v8 }
 0x13e   : > { %v2344_v26 = vpop.f32.mrb[32].mxu0 }
 0x13f   : > { %v1812_v40 = vpop.f32.mrb[33].mxu0 }
 0x140   : > { %v1671_v44 = vld [vmem:[#allocation2 + $0x30] sm:$0xff]  ;;  %v2345_v30 = vpop.f32.mrb[34].mxu0 }
 0x141   : > { %v1829_v21 = vld [vmem:[#allocation2 + $0x10] sm:$0xff]  ;;  %v1679_v17 = vadd.f32 %v2334_v62, %v1671_v44  ;;  %v1669_v50 = vld [vmem:[#allocation2 + $0x20] sm:$0xff]  ;;  %v1815_v5 = vpop.f32.mrb[35].mxu0 }
 0x142   : > { %v1837_v29 = vadd.f32 %v2340_v19, %v1829_v21  ;;  %v1827_v51 = vld [vmem:[#allocation2] sm:$0xff]  ;;  %v1677_v27 = vadd.f32 %v1669_v50, %v1650_v39  ;;  %v1672_v13 = vld [vmem:[#allocation2 + $0x38] sm:$0xff] }
 0x143   : > { %v1835_v18 = vadd.f32 %v1827_v51, %v1796_v12  ;;  %v1830_v23 = vld [vmem:[#allocation2 + $0x18] sm:$0xff]  ;;  %1687 = vst.msk [vmem:[#allocation2 + $0x30] sm:$0xff] %vm348_vm7, %v1679_v17  ;;  %v1680_v33 = vadd.f32 %v2335_v14, %v1672_v13  ;;  %v1670_v41 = vld [vmem:[#allocation2 + $0x28] sm:$0xff] }
 0x144   : > { %1845 = vst.msk [vmem:[#allocation2 + $0x10] sm:$0xff] %vm348_vm7, %v1837_v29  ;;  %v1838_v36 = vadd.f32 %v2341_v2, %v1830_v23  ;;  %v1828_v31 = vld [vmem:[#allocation2 + $0x8] sm:$0xff]  ;;  %1685 = vst.msk [vmem:[#allocation2 + $0x20] sm:$0xff] %vm348_vm7, %v1677_v27  ;;  %v1678_v22 = vadd.f32 %v1670_v41, %v1653_v49 }
 0x145   : > { %1843 = vst.msk [vmem:[#allocation2] sm:$0xff] %vm348_vm7, %v1835_v18  ;;  %v1836_v53 = vadd.f32 %v1828_v31, %v1799_v16  ;;  %1688 = vst.msk [vmem:[#allocation2 + $0x38] sm:$0xff] %vm348_vm7, %v1680_v33 }
 0x146   : > { %1846 = vst.msk [vmem:[#allocation2 + $0x18] sm:$0xff] %vm348_vm7, %v1838_v36  ;;  %1686 = vst.msk [vmem:[#allocation2 + $0x28] sm:$0xff] %vm348_vm7, %v1678_v22 }
 0x147   : > { %1844 = vst.msk [vmem:[#allocation2 + $0x8] sm:$0xff] %vm348_vm7, %v1836_v53 }
 0x14a   : > { %v1833_v34 = vld [vmem:[#allocation2 + $0x30] sm:$0xff] }
 0x14b   : > { %v1853_v25 = vld [vmem:[#allocation2 + $0x10] sm:$0xff]  ;;  %v1841_v38 = vadd.f32 %v2344_v26, %v1833_v34  ;;  %v1831_v54 = vld [vmem:[#allocation2 + $0x20] sm:$0xff] }
 0x14c   : > { %v1868_v42 = vmul.f32 %v2190_v37, %v1853_v25  ;;  %v1851_v1 = vld [vmem:[#allocation2] sm:$0xff]  ;;  %v1839_v35 = vadd.f32 %v1831_v54, %v1812_v40  ;;  %v1834_v59 = vld [vmem:[#allocation2 + $0x38] sm:$0xff] }
 0x14d   : > { %v1866_v55 = vmul.f32 %v2190_v37, %v1851_v1  ;;  %v1854_v57 = vld [vmem:[#allocation2 + $0x18] sm:$0xff]  ;;  %1849 = vst.msk [vmem:[#allocation2 + $0x30] sm:$0xff] %vm348_vm7, %v1841_v38  ;;  %v1842_v47 = vadd.f32 %v2345_v30, %v1834_v59  ;;  %v1832_v9 = vld [vmem:[#allocation2 + $0x28] sm:$0xff] }
 0x14e   : > { %v1883_v43 = vadd.f32 %v2191_v48, %v1868_v42  ;;  %v1869_v3 = vmul.f32 %v2190_v37, %v1854_v57  ;;  %v1852_v45 = vld [vmem:[#allocation2 + $0x8] sm:$0xff]  ;;  %1847 = vst.msk [vmem:[#allocation2 + $0x20] sm:$0xff] %vm348_vm7, %v1839_v35  ;;  %v1840_v63 = vadd.f32 %v1832_v9, %v1815_v5 }
 0x14f   : > { %v1881_v56 = vadd.f32 %v2191_v48, %v1866_v55  ;;  %v1867_v60 = vmul.f32 %v2190_v37, %v1852_v45  ;;  %1850 = vst.msk [vmem:[#allocation2 + $0x38] sm:$0xff] %vm348_vm7, %v1842_v47 }
 0x150   : > { %v1891_v62 = vmax.f32 %v1883_v43, 0.0  ;;  %v1884_v32 = vadd.f32 %v2191_v48, %v1869_v3  ;;  %1848 = vst.msk [vmem:[#allocation2 + $0x28] sm:$0xff] %vm348_vm7, %v1840_v63 }
 0x151   : > { %v1889_v10 = vmax.f32 %v1881_v56, 0.0  ;;  %v1882_v39 = vadd.f32 %v2191_v48, %v1867_v60 }
 0x152   : > { %v2205_v19 = vpack.c.bf16 %v1891_v62, %v1891_v62  ;;  %v1892_v28 = vmax.f32 %v1884_v32, 0.0 }
 0x153   : > { %v2203_v7 = vpack.c.bf16 %v1889_v10, %v1889_v10  ;;  %v1890_v0 = vmax.f32 %v1882_v39, 0.0 }
 0x154   : > { %1932 = vst.msk [vmem:[%s3028_s15 + $0x8] sm:$0xf] %vm1929_vm8, %v2205_v19  ;;  %v2206_v46 = vpack.c.bf16 %v1892_v28, %v1892_v28  ;;  %v1857_v12 = vld [vmem:[#allocation2 + $0x30] sm:$0xff] }
 0x155   : > { %1930 = vst.msk [vmem:[%s3028_s15] sm:$0xf] %vm1929_vm8, %v2203_v7  ;;  %v2204_v14 = vpack.c.bf16 %v1890_v0, %v1890_v0  ;;  %v1872_v15 = vmul.f32 %v2190_v37, %v1857_v12  ;;  %v1855_v4 = vld [vmem:[#allocation2 + $0x20] sm:$0xff] }
 0x156   : > { %1933 = vst.msk [vmem:[%s3028_s15 + $0xc] sm:$0xf] %vm1929_vm8, %v2206_v46  ;;  %v1870_v52 = vmul.f32 %v2190_v37, %v1855_v4  ;;  %v1858_v6 = vld [vmem:[#allocation2 + $0x38] sm:$0xff] }
 0x157   : > { %1931 = vst.msk [vmem:[%s3028_s15 + $0x4] sm:$0xf] %vm1929_vm8, %v2204_v14  ;;  %v1887_v49 = vadd.f32 %v2191_v48, %v1872_v15  ;;  %v1873_v2 = vmul.f32 %v2190_v37, %v1858_v6  ;;  %v1856_v58 = vld [vmem:[#allocation2 + $0x28] sm:$0xff] }
 0x158   : > { %v1885_v20 = vadd.f32 %v2191_v48, %v1870_v52  ;;  %v1871_v24 = vmul.f32 %v2190_v37, %v1856_v58 }
 0x159   : > { %v1895_v61 = vmax.f32 %v1887_v49, 0.0  ;;  %v1888_v16 = vadd.f32 %v2191_v48, %v1873_v2 }
 0x15a   : > { %v1893_v11 = vmax.f32 %v1885_v20, 0.0  ;;  %v1886_v8 = vadd.f32 %v2191_v48, %v1871_v24 }
 0x15b   : > { %v2209_v26 = vpack.c.bf16 %v1895_v61, %v1895_v61  ;;  %v1896_v40 = vmax.f32 %v1888_v16, 0.0 }
 0x15c   : > { %v2207_v44 = vpack.c.bf16 %v1893_v11, %v1893_v11  ;;  %v1894_v21 = vmax.f32 %v1886_v8, 0.0 }
 0x15d   : > { %1936 = vst.msk [vmem:[%s3028_s15 + $0x18] sm:$0xf] %vm1929_vm8, %v2209_v26  ;;  %v2210_v30 = vpack.c.bf16 %v1896_v40, %v1896_v40 }
 0x15e   : > { %1934 = vst.msk [vmem:[%s3028_s15 + $0x10] sm:$0xf] %vm1929_vm8, %v2207_v44  ;;  %v2208_v17 = vpack.c.bf16 %v1894_v21, %v1894_v21 }
 0x15f   : > { %1937 = vst.msk [vmem:[%s3028_s15 + $0x1c] sm:$0xf] %vm1929_vm8, %v2210_v30 }
 0x160   : > { %1935 = vst.msk [vmem:[%s3028_s15 + $0x14] sm:$0xf] %vm1929_vm8, %v2208_v17 }
 0x161 PF: > { %s14_s17 = sadd.s32 1, %s2416_s17   ;;  %s3065_s15 = smov %s2412_s16 }
 0x162   : > { %p11_p5 = scmp.ge.s32.totalorder %s14_s17, 4   ;;  %s3066_s16 = smov %s3068_s18 }
 0x164   :  { %13 = sbr.rel (!%p11_p5) target bundleno = 2 (0x2), region = 77 }

// kernel: deeplab_forward.9
= control target key start
LH: loop header
LB: loop body
LE: loop exit
PB: predicated region body
PF: predicated region fallthrough
CT: control target
= control target key end

     0   :  { %s563_s15 = smov 0   ;;  %s565_s16 = smov 0   ;;  %s608_s0 = inlined_call_operand.vmem [shape: bf16[32,32], index: 0, kind: input, shape index: {}]   ;;  %s609_s1 = inlined_call_operand.vmem [shape: bf16[32,128], index: 1, kind: input, shape index: {}]   ;;  %s610_s2 = inlined_call_operand.vmem [shape: f32[1,128], index: 2, kind: input, shape index: {}]   ;;  %s611_s3 = inlined_call_operand.vmem [shape: f32[1,128], index: 3, kind: input, shape index: {}]   ;;  %s612_s4 = inlined_call_operand.vmem [shape: bf16[32,128], index: 4, kind: output, shape index: {}]  }
   0x1   :  { %s567_s17 = smov 0  }
   0x2 LB: > { %s26_s18 = sadd.s32 1, %s530_s16  ;;  %p450_p0 = scmp.ge.s32.totalorder %s534_s17, 1  ;;  %s534_s17 = sphi %s567_s17, %s14_s17   ;;  %s530_s16 = sphi %s565_s16, %s614_s16   ;;  %s526_s15 = sphi %s563_s15, %s613_s15  }
   0x3   : > { %p28_p1 = scmp.ge.s32.totalorder %s26_s18, 2  ;;  %p191_p2 = scmp.lt.s32.totalorder %s534_s17, 3 }
   0x5   : > { %s616_s18 = smov (%p28_p1, %s26_s18), 0  ;;  %p192_p3 = pnand %p450_p0, %p191_p2 }
   0x6   : > { %v509_v0 = vld [vmem:[%s609_s1] sm:$0xff] (!%p192_p3)   ;;  %v536_v1 = vmov (!%p192_p3), 0.0   ;;  %v510_v2 = vld [vmem:[%s609_s1 + $0x8] sm:$0xff] (!%p192_p3)   ;;  %vm537_vm0 = vmmov (!%p192_p3), 0   ;;  %s451_s23 = sshll.u32 (!%p192_p3), %s526_s15, 1  ;;  %vm278_vm1 = vcmask (!%p192_p3), 261120  }
   0x7   : > { %195 = sbr.rel (%p192_p3) target bundleno = 241 (0xf1), region = 36  ;;  %475 = vmatprep.subr.bf16.mxu0 (!%p192_p3), %v536_v1  ;;  %479 = vmatprep.mubr.msk.bf16.mxu0 (!%p192_p3), %vm537_vm0, %v536_v1  ;;  %p226_p4 = scmp.lt.s32.totalorder (!%p192_p3), %s451_s23, 3  ;;  %v459_v4 = vld [vmem:[%s610_s2] ss:$0 sm:$0xff] (!%p192_p3) }
   0x8   : > { %476 = vmatpush3.bf16.msra.mxu0 (!%p192_p3), %v509_v0  ;;  %v460_v6 = vld [vmem:[%s611_s3] ss:$0 sm:$0xff] (!%p192_p3) }
   0x9   : > { %477 = vmatprep.subr.bf16.mxu0 (!%p192_p3), %v536_v1 }
   0xc   : > { %478 = vmatpush3.bf16.msra.mxu0 (!%p192_p3), %v510_v2 }
   0xe   : > { %s618_s23 = smov (!%p226_p4, %s451_s23), 3 }
   0xf   : > { %s452_s24 = sshll.u32 %s618_s23, 2 }
  0x10   : > { %s232_s27 = scalar_lea.vmem %s608_s0, %s452_s24  ;;  %s244_s8 = scalar_lea.vmem %s612_s4, %s452_s24 }
  0x11   : > { %v511_v3 = vld [vmem:[%s232_s27] sm:$0xff]  }
  0x12   : > { %480 = vmatmul.mubr.msk.bf16.vlgmr.msra.gmra.mrb[0].mxu0 %vm278_vm1, %v511_v3 }
  0xe5   : > { %v316_v5 = vpop.f32.mrb[0].mxu0 }
  0xe6   : > { %v339_v7 = vmul.f32 %v459_v4, %v316_v5  ;;  %v481_v8 = vpop.f32.mrb[1].mxu0 }
  0xe7   : > { %v319_v9 = vpop.f32.mrb[2].mxu0 }
  0xe8   : > { %v348_v10 = vadd.f32 %v460_v6, %v339_v7  ;;  %v340_v11 = vmul.f32 %v459_v4, %v319_v9  ;;  %v482_v12 = vpop.f32.mrb[3].mxu0 }
  0xea   : > { %v349_v13 = vadd.f32 %v460_v6, %v340_v11  ;;  %v350_v14 = vmax.f32 %v348_v10, 0.0 }
  0xec   : > { %v351_v15 = vmax.f32 %v349_v13, 0.0 }
  0xee   : > { %v470_v16 = vpack.c.bf16 %v351_v15, %v350_v14 }
  0xf0   : > { %471 = vst [vmem:[%s244_s8] sm:$0xff] %v470_v16  }
  0xf1 PF: > { %s14_s17 = sadd.s32 1, %s534_s17   ;;  %s613_s15 = smov %s530_s16 }
  0xf2   : > { %p11_p5 = scmp.ge.s32.totalorder %s14_s17, 4   ;;  %s614_s16 = smov %s616_s18 }
  0xf4   :  { %13 = sbr.rel (!%p11_p5) target bundleno = 2 (0x2), region = 77 }

// kernel: deeplab_forward.10
= control target key start
LH: loop header
LB: loop body
LE: loop exit
PB: predicated region body
PF: predicated region fallthrough
CT: control target
= control target key end

     0   :  { %s726_s15 = smov 0   ;;  %s728_s16 = smov 0   ;;  %s775_s0 = inlined_call_operand.vmem [shape: bf16[128,16], index: 0, kind: input, shape index: {}]   ;;  %s776_s1 = inlined_call_operand.vmem [shape: bf16[16,128], index: 1, kind: input, shape index: {}]   ;;  %s777_s2 = inlined_call_operand.vmem [shape: f32[1,128], index: 2, kind: input, shape index: {}]   ;;  %s778_s3 = inlined_call_operand.vmem [shape: f32[1,128], index: 3, kind: input, shape index: {}]   ;;  %s779_s4 = inlined_call_operand.vmem [shape: bf16[128,128], index: 4, kind: output, shape index: {}]  }
   0x1   :  { %s730_s17 = smov 0  }
   0x2 LB: > { %s26_s18 = sadd.s32 1, %s695_s16  ;;  %p574_p0 = scmp.ge.s32.totalorder %s699_s17, 1  ;;  %s699_s17 = sphi %s730_s17, %s14_s17   ;;  %s695_s16 = sphi %s728_s16, %s781_s16   ;;  %s691_s15 = sphi %s726_s15, %s780_s15  }
   0x3   : > { %p28_p1 = scmp.ge.s32.totalorder %s26_s18, 2  ;;  %p191_p2 = scmp.lt.s32.totalorder %s699_s17, 3 }
   0x5   : > { %s783_s18 = smov (%p28_p1, %s26_s18), 0  ;;  %p192_p3 = pnand %p574_p0, %p191_p2 }
   0x6   : > { %v672_v0 = vld [vmem:[%s776_s1] sm:$0xff] (!%p192_p3)   ;;  %s575_s21 = sshll.u32 (!%p192_p3), %s691_s15, 3  ;;  %vm303_vm0 = vcmask (!%p192_p3), 130048  }
   0x7   : > { %195 = sbr.rel (%p192_p3) target bundleno = 243 (0xf3), region = 36  ;;  %p226_p4 = scmp.lt.s32.totalorder (!%p192_p3), %s575_s21, 15  ;;  %636 = vmatprep.subr.bf16.mxu0 (!%p192_p3), %v672_v0  ;;  %646 = vmatprep.subr.bf16.mxu1 (!%p192_p3), %v672_v0  ;;  %v588_v5 = vld [vmem:[%s777_s2] ss:$0 sm:$0xff] (!%p192_p3) }
   0x8   : > { %637 = vmatpush3.bf16.msra.mxu0 (!%p192_p3), %v672_v0  ;;  %647 = vmatpush3.bf16.msra.mxu1 (!%p192_p3), %v672_v0  ;;  %v589_v7 = vld [vmem:[%s778_s3] ss:$0 sm:$0xff] (!%p192_p3) }
   0xe   : > { %s785_s21 = smov (!%p226_p4, %s575_s21), 15 }
   0xf   : > { %s576_s22 = sshll.u32 %s785_s21, 2 }
  0x10   : > { %s232_s25 = scalar_lea.vmem %s775_s0, %s576_s22  ;;  %s244_s6 = scalar_lea.vmem %s779_s4, %s576_s22 }
  0x11   : > { %v673_v1 = vld [vmem:[%s232_s25] sm:$0xff]   ;;  %v674_v2 = vld [vmem:[%s232_s25 + $0x10] sm:$0xff]   ;;  %v675_v3 = vld [vmem:[%s232_s25 + $0x8] sm:$0xff]  }
  0x12   : > { %638 = vmatprep.mubr.msk.bf16.mxu0 %vm303_vm0, %v673_v1  ;;  %642 = vmatprep.mubr.msk.bf16.mxu1 %vm303_vm0, %v674_v2  ;;  %v676_v4 = vld [vmem:[%s232_s25 + $0x18] sm:$0xff]  }
  0x13   : > { %639 = vmatmul.mubr.msk.bf16.vlgmr.msra.gmra.mrb[0].mxu0 %vm303_vm0, %v675_v3  ;;  %643 = vmatmul.mubr.msk.bf16.vlgmr.msra.gmra.mrb[0].mxu1 %vm303_vm0, %v676_v4 }
  0xe6   : > { %v640_v6 = vpop.f32.mrb[0].mxu0  ;;  %v644_v9 = vpop.f32.mrb[0].mxu1 }
  0xe7   : > { %v417_v8 = vmul.f32 %v640_v6, %v588_v5  ;;  %v350_v10 = vpop.f32.mrb[1].mxu0  ;;  %v421_v11 = vmul.f32 %v644_v9, %v588_v5  ;;  %v366_v13 = vpop.f32.mrb[1].mxu1 }
  0xe8   : > { %v415_v12 = vmul.f32 %v588_v5, %v350_v10  ;;  %v641_v14 = vpop.f32.mrb[2].mxu0  ;;  %v419_v16 = vmul.f32 %v588_v5, %v366_v13  ;;  %v645_v18 = vpop.f32.mrb[2].mxu1 }
  0xe9   : > { %v432_v15 = vadd.f32 %v589_v7, %v417_v8  ;;  %v418_v17 = vmul.f32 %v641_v14, %v588_v5  ;;  %v353_v19 = vpop.f32.mrb[3].mxu0  ;;  %v436_v20 = vadd.f32 %v589_v7, %v421_v11  ;;  %v422_v22 = vmul.f32 %v645_v18, %v588_v5  ;;  %v369_v24 = vpop.f32.mrb[3].mxu1 }
  0xea   : > { %v430_v21 = vadd.f32 %v589_v7, %v415_v12  ;;  %v416_v23 = vmul.f32 %v588_v5, %v353_v19  ;;  %v434_v25 = vadd.f32 %v589_v7, %v419_v16  ;;  %v420_v27 = vmul.f32 %v588_v5, %v369_v24 }
  0xeb   : > { %v433_v26 = vadd.f32 %v589_v7, %v418_v17  ;;  %v437_v28 = vadd.f32 %v589_v7, %v422_v22  ;;  %v440_v30 = vmax.f32 %v432_v15, 0.0  ;;  %v444_v33 = vmax.f32 %v436_v20, 0.0 }
  0xec   : > { %v431_v29 = vadd.f32 %v589_v7, %v416_v23  ;;  %v435_v32 = vadd.f32 %v589_v7, %v420_v27  ;;  %v438_v34 = vmax.f32 %v430_v21, 0.0  ;;  %v442_v37 = vmax.f32 %v434_v25, 0.0 }
  0xed   : > { %v441_v31 = vmax.f32 %v433_v26, 0.0  ;;  %v445_v35 = vmax.f32 %v437_v28, 0.0 }
  0xee   : > { %v439_v36 = vmax.f32 %v431_v29, 0.0  ;;  %v443_v39 = vmax.f32 %v435_v32, 0.0 }
  0xef   : > { %v616_v38 = vpack.c.bf16 %v441_v31, %v440_v30  ;;  %v626_v40 = vpack.c.bf16 %v445_v35, %v444_v33 }
  0xf0   : > { %v611_v41 = vpack.c.bf16 %v439_v36, %v438_v34  ;;  %v621_v42 = vpack.c.bf16 %v443_v39, %v442_v37 }
  0xf1   : > { %628 = vst [vmem:[%s244_s6 + $0x8] sm:$0xff] %v616_v38   ;;  %630 = vst [vmem:[%s244_s6 + $0x18] sm:$0xff] %v626_v40  }
  0xf2   : > { %612 = vst [vmem:[%s244_s6] sm:$0xff] %v611_v41   ;;  %629 = vst [vmem:[%s244_s6 + $0x10] sm:$0xff] %v621_v42  }
  0xf3 PF: > { %s14_s17 = sadd.s32 1, %s699_s17   ;;  %s780_s15 = smov %s695_s16 }
  0xf4   : > { %p11_p5 = scmp.ge.s32.totalorder %s14_s17, 4   ;;  %s781_s16 = smov %s783_s18 }
  0xf6   :  { %13 = sbr.rel (!%p11_p5) target bundleno = 2 (0x2), region = 77 }

// kernel: deeplab_forward.11
= control target key start
LH: loop header
LB: loop body
LE: loop exit
PB: predicated region body
PF: predicated region fallthrough
CT: control target
= control target key end

     0   :  { %10 = vsyncpa [#allocation3], 0  ;;  %s1765_s0 = inlined_call_operand.vmem [shape: s32[8], index: 0, kind: input, shape index: {}]   ;;  %s1766_s1 = inlined_call_operand.vmem [shape: s32[8], index: 1, kind: input, shape index: {}]   ;;  %s1767_s2 = inlined_call_operand.vmem [shape: f32[8], index: 2, kind: input, shape index: {}]   ;;  %s1768_s3 = inlined_call_operand.vmem [shape: f32[8,4], index: 3, kind: input, shape index: {}]   ;;  %s1769_s4 = inlined_call_operand.vmem [shape: bf16[2,4,4,24], index: 4, kind: input, shape index: {}]   ;;  %s1770_s5 = inlined_call_operand.vmem [shape: bf16[2,8,8,24], index: 5, kind: output, shape index: {}]  }
   0x1   :  { %11 = vsyncpa [#allocation5], 0  ;;  %s1521_s18 = smov 0   ;;  %s1523_s19 = smov 0  }
   0x2   :  { %s1525_s20 = smov 0  }
   0x3 LB: > { %s196_s23 = sshll.u32 %s1766_s1, 4  ;;  %s1217_s24 = sadd.s32 4294967295, %s1484_s20   ;;  %s1484_s20 = sphi %s1525_s20, %s17_s20   ;;  %s1480_s19 = sphi %s1523_s19, %s1781_s19   ;;  %s1476_s18 = sphi %s1521_s18, %s1780_s18   ;;  %s197_s23 = int_to_ptr.vmem [resolvable:$true] %s196_s23 }
   0x4   : > { %p1219_p0 = scmp.ge.s32.totalorder %s1484_s20, 1  ;;  %p172_p1 = scmp.lt.s32.totalorder %s1484_s20, 3 }
   0x5   : > { %p1542_p2 = scmp.eq.s32.totalorder %s1217_s24, 0  ;;  %s29_s27 = sadd.s32 1, %s1480_s19 }
   0x6   : > { %p1546_p3 = pnand %p1219_p0, %p172_p1  ;;  %s185_s30 = sshll.u32 %s1765_s0, 4  ;;  %s186_s30 = int_to_ptr.vmem [resolvable:$true] %s185_s30 }
   0x7   : > { %s1774_s25 = scalar_select %p1542_p2, 1, 0 }
   0x8   : > { %s1775_s26 = scalar_select %p1546_p3, 1, 0 }
   0x9   : > { %p1364_p4 = pneg %p1546_p3  ;;  %p1562_p6 = scmp.ge.s32.totalorder %s29_s27, 2 }
   0xa   : > { %s207_s10 = sshll.u32 %s1767_s2, 4  ;;  %s1409_s11 = scalar_lea.vmem %s197_s23, 16  ;;  %s208_s10 = int_to_ptr.vmem [resolvable:$true] %s207_s10 }
   0xb   : > { %p1558_p5 = pnand %p1542_p2, %p1364_p4  ;;  %p1410_p7 = scmp.ne.s32.totalorder %s197_s23, %s1409_s11 }
   0xc   : > { %p1417_p11 = scmp.lt.s32.totalorder %s197_s23, %s197_s23  ;;  %p1418_p12 = scmp.lt.s32.totalorder %s1409_s11, %s1409_s11 }
   0xd   : > { %p1411_p8 = pneg %p1558_p5 }
   0xe   : > { %p1419_p13 = por %p1418_p12, %p1417_p11 }
   0xf   : > { %p1412_p9 = pnand %p1411_p8, %p1410_p7 }
  0x11   : > { %p1413_p10 = pneg %p1412_p9 }
  0x13   : > { %p1420_p0 = pnand %p1419_p13, %p1413_p10 }
  0x15   : > { %1423 = shalt.err (!%p1420_p0)
}
  0x16   : > { %s1486_s12 = smov [#allocation4]   ;;  %s1783_s27 = smov (%p1562_p6, %s29_s27), 0 }
  0x17   : > { %1370 = dma.vmem_to_smem (!%p1558_p5), %s197_s23, 16, %s1486_s12, [#allocation5]  }
  0x18   : > { %s1424_s13 = scalar_lea.vmem %s186_s30, 16  ;;  %p1432_p9 = scmp.lt.s32.totalorder %s186_s30, %s186_s30 }
  0x19   : > { %p1425_p1 = scmp.ne.s32.totalorder %s186_s30, %s1424_s13  ;;  %p1433_p2 = scmp.lt.s32.totalorder %s1424_s13, %s1424_s13 }
  0x1b   : > { %p1427_p4 = pnand %p1425_p1, %p1411_p8  ;;  %p1434_p11 = por %p1433_p2, %p1432_p9 }
  0x1d   : > { %p1428_p7 = pneg %p1427_p4 }
  0x1f   : > { %p1435_p10 = pnand %p1434_p11, %p1428_p7 }
  0x21   : > { %1438 = shalt.err (!%p1435_p10)
}
  0x22   : > { %s1487_s14 = smov [#allocation2]   ;;  %s1439_s15 = scalar_lea.vmem %s208_s10, 16 }
  0x23   : > { %1367 = dma.vmem_to_smem (!%p1558_p5), %s186_s30, 16, %s1487_s14, [#allocation3]  }
  0x24   : > { %p1440_p6 = scmp.ne.s32.totalorder %s208_s10, %s1439_s15  ;;  %p1447_p0 = scmp.lt.s32.totalorder %s208_s10, %s208_s10 }
  0x25   : > { %p1448_p1 = scmp.lt.s32.totalorder %s1439_s15, %s1439_s15 }
  0x26   : > { %p1442_p12 = pnand %p1440_p6, %p1411_p8 }
  0x27   : > { %p1449_p4 = por %p1448_p1, %p1447_p0 }
  0x28   : > { %p1443_p13 = pneg %p1442_p12 }
  0x2a   : > { %p1450_p3 = pnand %p1449_p4, %p1443_p13 }
  0x2c   : > { %1453 = shalt.err (!%p1450_p3)
}
  0x2d   : > { %s1488_s16 = smov [#allocation6]   ;;  %p1778_p2 = scmp.ne.s32.totalorder %s1775_s26, 0 }
  0x2e   : > { %1373 = dma.vmem_to_smem (!%p1558_p5), %s208_s10, 16, %s1488_s16, [#allocation5]  }
  0x2f   : > { %231 = sbr.rel (%p1778_p2) target bundleno = 321 (0x141), region = 40  ;;  %p1779_p7 = scmp.ne.s32.totalorder (!%p1778_p2), %s1774_s25, 0 }
  0x36   : > { %1467 = dma.done.wait (%p1779_p7), [#allocation3], 16  }
  0x37   : > { %1469 = vsyncadd (%p1779_p7), [#allocation3], 4294967280 }
  0x38   : > { %1471 = dma.done.wait (%p1779_p7), [#allocation5], 32  }
  0x39   : > { %1473 = vsyncadd (%p1779_p7), [#allocation5], 4294967264 }
  0x3a   : > { %245 = sfence }
  0x3b   : > { %p272_p3 = scmp.lt.s32.totalorder %s1476_s18, 1  ;;  %s288_s17 = sld [smem:[#allocation2]]  ;;  %v1489_v0 = vmov 0.0   ;;  %vm1490_vm0 = vmmov 0   ;;  %vm310_vm1 = vcmask 1043456   ;;  %v1637_v17 = vld [vmem:[%s1768_s3] sm:$0xff] }
  0x3c   : > { %1312 = vmatprep.subr.mxu0 %v1489_v0  ;;  %1317 = vmatprep.subr.mxu1 %v1489_v0  ;;  %s289_s21 = sld [smem:[#allocation4]]  ;;  %s1236_s23 = sld [smem:[#allocation2 + $0x1]]  ;;  %vm306_vm2 = vcmask 31744   ;;  %vm385_vm3 = vcmask 191488  }
  0x3d   : > { %s1603_s22 = sld [smem:[#allocation6]]  ;;  %s1785_s18 = smov (!%p272_p3, %s1476_s18), 1  ;;  %1314 = vmatprep.mubr.msk.f32.mxu0 %vm1490_vm0, %v1489_v0  ;;  %1319 = vmatprep.mubr.msk.f32.mxu1 %vm1490_vm0, %v1489_v0 }
  0x3e   : > { %s1237_s24 = sld [smem:[#allocation4 + $0x1]]  ;;  %s1294_s25 = sshll.u32 %s1785_s18, 3 }
  0x3f   : > { %s1613_s26 = sld [smem:[#allocation6 + $0x1]]  ;;  %s1618_s30 = scalar_lea.vmem %s1769_s4, %s1294_s25 }
  0x40   : > { %s1244_s6 = sld [smem:[#allocation2 + $0x2]] }
  0x41   : > { %s1232_s7 = sshll.u32 %s288_s17, 1  ;;  %s1620_s8 = sld [smem:[#allocation4 + $0x2]] }
  0x42   : > { %s293_s10 = scalar_lea.vmem %s1618_s30, %s1232_s7  ;;  %s1233_s11 = sshll.u32 %s289_s21, 1 }
  0x43   : > { %s291_s9 = ssub.f32 1.0, %s1603_s22  ;;  %v294_v1 = vld [vmem:[%s293_s10] sm:$0x3]  ;;  %s1624_s12 = sld [smem:[#allocation6 + $0x2]]  ;;  %v302_v5 = vstv %s1603_s22 }
  0x44   : > { %v295_v2 = vunpack.c.l.bf16 %v294_v1  ;;  %s299_s13 = scalar_lea.vmem %s1618_s30, %s1233_s11  ;;  %s1239_s14 = sshll.u32 %s1236_s23, 1 }
  0x45   : > { %v296_v3 = vstv %s291_s9  ;;  %v300_v4 = vld [vmem:[%s299_s13] sm:$0x3]  ;;  %s391_s15 = ssub.f32 1.0, %s1613_s26  ;;  %s393_s16 = scalar_lea.vmem %s1618_s30, %s1239_s14  ;;  %v402_v13 = vstv %s1613_s26 }
  0x46   : > { %v297_v6 = vmul.f32 %v296_v3, %v295_v2  ;;  %v301_v7 = vunpack.c.l.bf16 %v300_v4  ;;  %v394_v8 = vld [vmem:[%s393_s16] sm:$0x3]  ;;  %s1240_s17 = sshll.u32 %s1237_s24, 1  ;;  %s1247_s21 = sshll.u32 %s1244_s6, 1 }
  0x47   : > { %v395_v9 = vunpack.c.l.bf16 %v394_v8  ;;  %v396_v10 = vstv %s391_s15  ;;  %s399_s25 = scalar_lea.vmem %s1618_s30, %s1240_s17  ;;  %s491_s28 = scalar_lea.vmem %s1618_s30, %s1247_s21 }
  0x48   : > { %v303_v11 = vmul.f32 %v302_v5, %v301_v7  ;;  %v400_v12 = vld [vmem:[%s399_s25] sm:$0x3]  ;;  %s1248_s22 = sshll.u32 %s1620_s8, 1  ;;  %s1642_s7 = sld [smem:[#allocation2 + $0x3]] }
  0x49   : > { %v492_v14 = vld [vmem:[%s491_s28] sm:$0x3]  ;;  %v397_v15 = vmul.f32 %v396_v10, %v395_v9  ;;  %v401_v16 = vunpack.c.l.bf16 %v400_v12  ;;  %s489_s24 = ssub.f32 1.0, %s1624_s12  ;;  %s497_s6 = scalar_lea.vmem %s1618_s30, %s1248_s22  ;;  %v500_v21 = vstv %s1624_s12 }
  0x4a   : > { %v493_v18 = vunpack.c.l.bf16 %v492_v14  ;;  %v304_v19 = vadd.f32 %v303_v11, %v297_v6  ;;  %v498_v20 = vld [vmem:[%s497_s6] sm:$0x3]  ;;  %s1644_s9 = sld [smem:[#allocation4 + $0x3]]  ;;  %s1648_s8 = sld [smem:[#allocation2 + $0x4]] }
  0x4b   : > { %v403_v22 = vmul.f32 %v402_v13, %v401_v16  ;;  %v494_v23 = vstv %s489_s24  ;;  %v499_v24 = vunpack.c.l.bf16 %v498_v20  ;;  %s1646_s26 = sld [smem:[#allocation6 + $0x3]]  ;;  %s1651_s10 = sld [smem:[#allocation4 + $0x4]] }
  0x4c   : > { %1313 = vmatpush3.msk.msra.mxu0 %vm310_vm1, %v304_v19  ;;  %v495_v25 = vmul.f32 %v494_v23, %v493_v18  ;;  %s1653_s11 = sld [smem:[#allocation6 + $0x4]]  ;;  %s1658_s12 = sld [smem:[#allocation2 + $0x5]] }
  0x4d   : > { %v404_v26 = vadd.f32 %v403_v22, %v397_v15  ;;  %1315 = vmatmul.mubr.msk.f32.vlgmr.msra.gmra.mrb[0].mxu0 %vm306_vm2, %v1637_v17  ;;  %1322 = vmatprep.subr.mxu0 %v1489_v0  ;;  %v501_v27 = vmul.f32 %v500_v21, %v499_v24  ;;  %s1660_s13 = sld [smem:[#allocation4 + $0x5]]  ;;  %s1666_s15 = sld [smem:[#allocation2 + $0x6]] }
  0x4e   : > { %1324 = vmatprep.mubr.msk.f32.mxu0 %vm1490_vm0, %v1489_v0  ;;  %s1664_s14 = sld [smem:[#allocation6 + $0x5]]  ;;  %s1669_s16 = sld [smem:[#allocation4 + $0x6]] }
  0x4f   : > { %1318 = vmatpush3.msk.msra.mxu1 %vm310_vm1, %v404_v26  ;;  %v502_v28 = vadd.f32 %v501_v27, %v495_v25  ;;  %s1671_s17 = sld [smem:[#allocation6 + $0x6]]  ;;  %s1255_s21 = sshll.u32 %s1642_s7, 1 }
  0x50   : > { %1320 = vmatmul.mubr.msk.f32.vlgmr.msra.gmra.mrb[0].mxu1 %vm306_vm2, %v1637_v17  ;;  %1327 = vmatprep.subr.mxu1 %v1489_v0  ;;  %s1256_s25 = sshll.u32 %s1644_s9, 1  ;;  %s589_s22 = scalar_lea.vmem %s1618_s30, %s1255_s21 }
  0x51   : > { %1323 = vmatpush3.msk.msra.mxu0 %vm310_vm1, %v502_v28  ;;  %s587_s28 = ssub.f32 1.0, %s1646_s26  ;;  %1329 = vmatprep.mubr.msk.f32.mxu1 %vm1490_vm0, %v1489_v0  ;;  %v590_v29 = vld [vmem:[%s589_s22] sm:$0x3]  ;;  %s595_s23 = scalar_lea.vmem %s1618_s30, %s1256_s25  ;;  %v598_v33 = vstv %s1646_s26 }
  0x52   : > { %1325 = vmatmul.mubr.msk.f32.vlgmr.msra.gmra.mrb[2].mxu0 %vm306_vm2, %v1637_v17  ;;  %1332 = vmatprep.subr.mxu0 %v1489_v0  ;;  %s685_s29 = ssub.f32 1.0, %s1653_s11  ;;  %v591_v30 = vunpack.c.l.bf16 %v590_v29  ;;  %v596_v32 = vld [vmem:[%s595_s23] sm:$0x3]  ;;  %s1263_s24 = sshll.u32 %s1648_s8, 1  ;;  %v696_v39 = vstv %s1653_s11 }
  0x53   : > { %v592_v31 = vstv %s587_s28  ;;  %s1264_s6 = sshll.u32 %s1651_s10, 1  ;;  %1334 = vmatprep.mubr.msk.f32.mxu0 %vm1490_vm0, %v1489_v0  ;;  %v597_v34 = vunpack.c.l.bf16 %v596_v32  ;;  %s687_s7 = scalar_lea.vmem %s1618_s30, %s1263_s24 }
  0x54   : > { %s693_s9 = scalar_lea.vmem %s1618_s30, %s1264_s6  ;;  %v593_v35 = vmul.f32 %v592_v31, %v591_v30  ;;  %v688_v36 = vld [vmem:[%s687_s7] sm:$0x3]  ;;  %v690_v37 = vstv %s685_s29  ;;  %s783_s21 = ssub.f32 1.0, %s1664_s14  ;;  %v794_v45 = vstv %s1664_s14 }
  0x55   : > { %v694_v38 = vld [vmem:[%s693_s9] sm:$0x3]  ;;  %s1271_s26 = sshll.u32 %s1658_s12, 1  ;;  %v599_v40 = vmul.f32 %v598_v33, %v597_v34  ;;  %v689_v41 = vunpack.c.l.bf16 %v688_v36  ;;  %s1272_s10 = sshll.u32 %s1660_s13, 1  ;;  %v892_v57 = vstv %s1671_s17 }
  0x56   : > { %v695_v42 = vunpack.c.l.bf16 %v694_v38  ;;  %s785_s8 = scalar_lea.vmem %s1618_s30, %s1271_s26  ;;  %v788_v44 = vstv %s783_s21  ;;  %s791_s25 = scalar_lea.vmem %s1618_s30, %s1272_s10 }
  0x57   : > { %v786_v43 = vld [vmem:[%s785_s8] sm:$0x3]  ;;  %s881_s28 = ssub.f32 1.0, %s1671_s17  ;;  %v600_v46 = vadd.f32 %v599_v40, %v593_v35  ;;  %v691_v47 = vmul.f32 %v690_v37, %v689_v41  ;;  %s1279_s11 = sshll.u32 %s1666_s15, 1 }
  0x58   : > { %v697_v48 = vmul.f32 %v696_v39, %v695_v42  ;;  %v787_v49 = vunpack.c.l.bf16 %v786_v43  ;;  %v792_v50 = vld [vmem:[%s791_s25] sm:$0x3]  ;;  %s1280_s12 = sshll.u32 %s1669_s16, 1  ;;  %s883_s22 = scalar_lea.vmem %s1618_s30, %s1279_s11 }
  0x59   : > { %v793_v51 = vunpack.c.l.bf16 %v792_v50  ;;  %s889_s23 = scalar_lea.vmem %s1618_s30, %s1280_s12  ;;  %1328 = vmatpush3.msk.msra.mxu1 %vm310_vm1, %v600_v46  ;;  %v884_v54 = vld [vmem:[%s883_s22] sm:$0x3]  ;;  %v886_v55 = vstv %s881_s28  ;;  %s1284_s13 = sld [smem:[#allocation2 + $0x7]] }
  0x5a   : > { %v698_v52 = vadd.f32 %v697_v48, %v691_v47  ;;  %v789_v53 = vmul.f32 %v788_v44, %v787_v49  ;;  %v890_v56 = vld [vmem:[%s889_s23] sm:$0x3]  ;;  %1330 = vmatmul.mubr.msk.f32.vlgmr.msra.gmra.mrb[2].mxu1 %vm306_vm2, %v1637_v17  ;;  %1337 = vmatprep.subr.mxu1 %v1489_v0  ;;  %v885_v59 = vunpack.c.l.bf16 %v884_v54  ;;  %s1285_s14 = sld [smem:[#allocation4 + $0x7]]  ;;  %s1295_s7 = sshll.u32 %s1785_s18, 5 }
  0x5b   : > { %v795_v58 = vmul.f32 %v794_v45, %v793_v51  ;;  %v891_v60 = vunpack.c.l.bf16 %v890_v56  ;;  %s1286_s15 = sld [smem:[#allocation6 + $0x7]]  ;;  %1339 = vmatprep.mubr.msk.f32.mxu1 %vm1490_vm0, %v1489_v0  ;;  %s1738_s26 = scalar_lea.vmem %s1770_s5, %s1295_s7 }
  0x5c   : > { %1333 = vmatpush3.msk.msra.mxu0 %vm310_vm1, %v698_v52  ;;  %v887_v62 = vmul.f32 %v886_v55, %v885_v59 }
  0x5d   : > { %v796_v61 = vadd.f32 %v795_v58, %v789_v53  ;;  %1335 = vmatmul.mubr.msk.f32.vlgmr.msra.gmra.mrb[4].mxu0 %vm306_vm2, %v1637_v17  ;;  %1342 = vmatprep.subr.mxu0 %v1489_v0  ;;  %v893_v63 = vmul.f32 %v892_v57, %v891_v60 }
  0x5e   : > { %1344 = vmatprep.mubr.msk.f32.mxu0 %vm1490_vm0, %v1489_v0 }
  0x5f   : > { %1338 = vmatpush3.msk.msra.mxu1 %vm310_vm1, %v796_v61  ;;  %v894_v1 = vadd.f32 %v893_v63, %v887_v62  ;;  %s1287_s16 = sshll.u32 %s1284_s13, 1 }
  0x60   : > { %1340 = vmatmul.mubr.msk.f32.vlgmr.msra.gmra.mrb[4].mxu1 %vm306_vm2, %v1637_v17  ;;  %1347 = vmatprep.subr.mxu1 %v1489_v0  ;;  %s981_s29 = scalar_lea.vmem %s1618_s30, %s1287_s16  ;;  %s1288_s24 = sshll.u32 %s1285_s14, 1 }
  0x61   : > { %1343 = vmatpush3.msk.msra.mxu0 %vm310_vm1, %v894_v1  ;;  %s979_s17 = ssub.f32 1.0, %s1286_s15  ;;  %1349 = vmatprep.mubr.msk.f32.mxu1 %vm1490_vm0, %v1489_v0  ;;  %v982_v2 = vld [vmem:[%s981_s29] sm:$0x3]  ;;  %s987_s6 = scalar_lea.vmem %s1618_s30, %s1288_s24  ;;  %v990_v6 = vstv %s1286_s15 }
  0x62   : > { %1345 = vmatmul.mubr.msk.f32.vlgmr.msra.gmra.mrb[6].mxu0 %vm306_vm2, %v1637_v17  ;;  %v983_v3 = vunpack.c.l.bf16 %v982_v2  ;;  %v988_v5 = vld [vmem:[%s987_s6] sm:$0x3] }
  0x63   : > { %v984_v4 = vstv %s979_s17  ;;  %v989_v8 = vunpack.c.l.bf16 %v988_v5 }
  0x64   : > { %v985_v7 = vmul.f32 %v984_v4, %v983_v3 }
  0x65   : > { %v991_v9 = vmul.f32 %v990_v6, %v989_v8 }
  0x67   : > { %v992_v10 = vadd.f32 %v991_v9, %v985_v7 }
  0x69   : > { %1348 = vmatpush3.msk.msra.mxu1 %vm310_vm1, %v992_v10 }
  0x6a   : > { %1350 = vmatmul.mubr.msk.f32.vlgmr.msra.gmra.mrb[6].mxu1 %vm306_vm2, %v1637_v17 }
 0x120   : > { %v380_v0 = vpop.f32.mrb[0].mxu0 }
 0x121   : > { %v384_v11 = vpack.c.bf16 %v380_v0, %v380_v0  ;;  %v1316_v12 = vpop.f32.mrb[1].mxu0 }
 0x123   : > { %386 = vst.msk [vmem:[%s1738_s26] sm:$0xf] %vm385_vm3, %v384_v11  ;;  %v478_v13 = vpop.f32.mrb[0].mxu1 }
 0x124   : > { %v482_v14 = vpack.c.bf16 %v478_v13, %v478_v13  ;;  %v1321_v15 = vpop.f32.mrb[1].mxu1 }
 0x125   : > { %v576_v16 = vpop.f32.mrb[2].mxu0 }
 0x126   : > { %1243 = vst.msk [vmem:[%s1738_s26 + $0x4] sm:$0xf] %vm385_vm3, %v482_v14  ;;  %v580_v17 = vpack.c.bf16 %v576_v16, %v576_v16  ;;  %v1326_v18 = vpop.f32.mrb[3].mxu0 }
 0x128   : > { %1251 = vst.msk [vmem:[%s1738_s26 + $0x8] sm:$0xf] %vm385_vm3, %v580_v17 }
 0x12d   : > { %v674_v19 = vpop.f32.mrb[2].mxu1 }
 0x12e   : > { %v678_v20 = vpack.c.bf16 %v674_v19, %v674_v19  ;;  %v1331_v21 = vpop.f32.mrb[3].mxu1 }
 0x130   : > { %v772_v22 = vpop.f32.mrb[4].mxu0  ;;  %1259 = vst.msk [vmem:[%s1738_s26 + $0xc] sm:$0xf] %vm385_vm3, %v678_v20 }
 0x131   : > { %v776_v23 = vpack.c.bf16 %v772_v22, %v772_v22  ;;  %v1336_v24 = vpop.f32.mrb[5].mxu0 }
 0x133   : > { %1267 = vst.msk [vmem:[%s1738_s26 + $0x10] sm:$0xf] %vm385_vm3, %v776_v23  ;;  %v870_v25 = vpop.f32.mrb[4].mxu1 }
 0x134   : > { %v874_v26 = vpack.c.bf16 %v870_v25, %v870_v25  ;;  %v1341_v27 = vpop.f32.mrb[5].mxu1 }
 0x135   : > { %v968_v28 = vpop.f32.mrb[6].mxu0 }
 0x136   : > { %1275 = vst.msk [vmem:[%s1738_s26 + $0x14] sm:$0xf] %vm385_vm3, %v874_v26  ;;  %v972_v29 = vpack.c.bf16 %v968_v28, %v968_v28  ;;  %v1346_v30 = vpop.f32.mrb[7].mxu0 }
 0x138   : > { %1283 = vst.msk [vmem:[%s1738_s26 + $0x18] sm:$0xf] %vm385_vm3, %v972_v29 }
 0x13d   : > { %v1066_v31 = vpop.f32.mrb[6].mxu1 }
 0x13e   : > { %v1070_v32 = vpack.c.bf16 %v1066_v31, %v1066_v31  ;;  %v1351_v33 = vpop.f32.mrb[7].mxu1 }
 0x140   : > { %1291 = vst.msk [vmem:[%s1738_s26 + $0x1c] sm:$0xf] %vm385_vm3, %v1070_v32 }
 0x141 PF: > { %s17_s20 = sadd.s32 1, %s1484_s20   ;;  %s1780_s18 = smov %s1480_s19 }
 0x142   : > { %p14_p5 = scmp.ge.s32.totalorder %s17_s20, 4   ;;  %s1781_s19 = smov %s1783_s27 }
 0x144   :  { %16 = sbr.rel (!%p14_p5) target bundleno = 3 (0x3), region = 106 }
 0x14b   :  { %1103 = vsyncpa [#allocation3], 1 }
 0x14c   :  { %1105 = vsyncpa [#allocation3 + $0x1], 1 }
 0x14d   :  { %1106 = vsyncpa [#allocation5], 1 }

// kernel: deeplab_forward.7
= control target key start
LH: loop header
LB: loop body
LE: loop exit
PB: predicated region body
PF: predicated region fallthrough
CT: control target
= control target key end

     0   :  { %s6687_s15 = smov 0   ;;  %s6689_s16 = smov 0   ;;  %s9103_s0 = inlined_call_operand.vmem [shape: bf16[2,18,18,3], index: 0, kind: input, shape index: {}]   ;;  %s9104_s1 = inlined_call_operand.vmem [shape: bf16[3,3,3,16], index: 1, kind: input, shape index: {}]   ;;  %s9105_s2 = inlined_call_operand.vmem [shape: f32[1,16], index: 2, kind: input, shape index: {}]   ;;  %s9106_s3 = inlined_call_operand.vmem [shape: f32[1,16], index: 3, kind: input, shape index: {}]   ;;  %s9107_s4 = inlined_call_operand.vmem [shape: bf16[2,256,16], index: 4, kind: output, shape index: {}]  }
   0x1   :  { %s6691_s17 = smov 0  }
   0x2 LB: > { %s26_s18 = sadd.s32 1, %s6655_s16  ;;  %p5577_p0 = scmp.ge.s32.totalorder %s6659_s17, 1  ;;  %s6659_s17 = sphi %s6691_s17, %s14_s17   ;;  %s6655_s16 = sphi %s6689_s16, %s9269_s16   ;;  %s6651_s15 = sphi %s6687_s15, %s9268_s15  }
   0x3   : > { %p28_p1 = scmp.ge.s32.totalorder %s26_s18, 2  ;;  %p176_p2 = scmp.lt.s32.totalorder %s6659_s17, 3 }
   0x5   : > { %s9271_s18 = smov (%p28_p1, %s26_s18), 0  ;;  %p177_p3 = pnand %p5577_p0, %p176_p2 }
   0x7   : > { %180 = sbr.rel (%p177_p3) target bundleno = 590 (0x24e), region = 36 }
   0xe   : > { %v274_v0 = vld [vmem:[%s9104_s1] sm:$0x3]  ;;  %vm404_vm0 = vcmask 1040384   ;;  %vm405_vm1 = vcmask 1041408   ;;  %p206_p4 = scmp.lt.s32.totalorder %s6651_s15, 1  ;;  %v6661_v1 = vmov 65535  }
   0xf   : > { %v406_v2 = vsel %vm404_vm0, 4294967295, %v6661_v1  ;;  %v5613_v3 = vld [vmem:[%s9104_s1 + $0x2] sm:$0x3]  ;;  %v5662_v4 = vld [vmem:[%s9104_s1 + $0x4] sm:$0x3]  ;;  %vm355_vm2 = vcmask 23552  }
  0x10   : > { %v6714_v5 = vsel %vm405_vm1, %v406_v2, 0  ;;  %s9273_s15 = smov (!%p206_p4, %s6651_s15), 1  ;;  %v5743_v9 = vld [vmem:[%s9104_s1 + $0x6] sm:$0x3]  ;;  %v5776_v10 = vld [vmem:[%s9104_s1 + $0x8] sm:$0x3] }
  0x11   : > { %9134 = vst [vmem:[#allocation3_spill] sm:$0xff] %v6714_v5  ;;  %v409_v6 = vand.u32 %v6714_v5, %v274_v0  ;;  %v1091_v7 = vand.u32 %v5613_v3, %v6714_v5  ;;  %v6721_v8 = vand.u32 %v5662_v4, %v6714_v5  ;;  %s6551_s29 = smul.u32 216, %s9273_s15  ;;  %v5825_v11 = vld [vmem:[%s9104_s1 + $0xa] sm:$0x3]  ;;  %v5906_v12 = vld [vmem:[%s9104_s1 + $0xc] sm:$0x3]  ;;  %v6742_v13 = vand.u32 %v5743_v9, %v6714_v5 }
  0x12   : > { %v6755_v17 = vand.u32 %v5776_v10, %v6714_v5  ;;  %v6758_v18 = vand.u32 %v5825_v11, %v6714_v5  ;;  %v6761_v19 = vand.u32 %v5906_v12, %v6714_v5  ;;  %vm605_vm3 = vsmask.f32 3328  ;;  %s6057_s23 = sshll.u32 %s9273_s15, 7 }
  0x13   : > { %6549 = vmatprep.subr.bf16.mxu1 %v409_v6  ;;  %6243 = vmatprep.subr.bf16.mxu0 %v409_v6  ;;  %s6739_s10 = scalar_lea.vmem %s9103_s0, %s6551_s29  ;;  %vm606_vm4 = vsmask.f32 7440  ;;  %vm1366_vm5 = vcmask 1042432   ;;  %vm1367_vm6 = vcmask 1046532   ;;  %vm572_vm9 = vcmask 130048   ;;  %s8927_s25 = scalar_lea.vmem %s9107_s4, %s6057_s23 }
  0x14   : > { %6550 = vmatpush3.bf16.msra.mxu1 %v409_v6  ;;  %6244 = vmatpush3.bf16.msra.mxu0 %v409_v6  ;;  %v6745_v14 = vld [vmem:[%s6739_s10 + $0x60] sm:$0xf]  ;;  %v6748_v15 = vld [vmem:[%s6739_s10 + $0x64] sm:$0xf]  ;;  %v6751_v16 = vld [vmem:[%s6739_s10 + $0x6c] sm:$0xf] }
  0x15   : > { %6277 = vmatprep.subr.bf16.mxu1 %v1091_v7  ;;  %6311 = vmatprep.subr.bf16.mxu0 %v6721_v8  ;;  %v5589_v20 = vcombine.low %v6745_v14, %v6748_v15  ;;  %v801_v21 = vshrl.u32 %v6745_v14, 16  ;;  %v804_v22 = vshll.u32 %v6745_v14, 16  ;;  %v810_v23 = vshll.u32 %v6748_v15, 16  ;;  %v6769_v24 = vld [vmem:[%s6739_s10 + $0x70] sm:$0xf]  ;;  %vm6940_vm7 = vmor %vm605_vm3, %vm606_vm4 }
  0x16   : > { %v814_v25 = vshrl.u32 %v6748_v15, 16  ;;  %v9108_v27 = vrot.slane %v6748_v15, 5  ;;  %v5590_v28 = vcombine.low %v6751_v16, %v6769_v24  ;;  %v6777_v29 = vld [vmem:[%s6739_s10] sm:$0xf]  ;;  %v6784_v34 = vld [vmem:[%s6739_s10 + $0x4] sm:$0xf]  ;;  %vm6963_vm8 = vmor %vm1366_vm5, %vm1367_vm6 }
  0x17   : > { %6261 = vmatprep.mubr.msk.bf16.mxu1 %vm355_vm2, %v5589_v20  ;;  %v803_v30 = vrot.slane %v801_v21, 4  ;;  %v806_v31 = vrot.slane %v804_v22, 5  ;;  %v6780_v32 = vrot.slane %v810_v23, 5  ;;  %v5581_v40 = vcombine.low %v6777_v29, %v6784_v34  ;;  %v6798_v43 = vld [vmem:[%s6739_s10 + $0xc] sm:$0xf] }
  0x18   : > { %v816_v35 = vrot.slane %v814_v25, 4  ;;  %v6788_v36 = vrot.slane %v9108_v27, 4  ;;  %6262 = vmatmul.mubr.msk.bf16.vlgmr.msra.gmra.mrb[0].mxu1 %vm355_vm2, %v5590_v28  ;;  %v609_v41 = vshrl.u32 %v6777_v29, 16  ;;  %v612_v42 = vshll.u32 %v6777_v29, 16  ;;  %v6801_v44 = vld [vmem:[%s6739_s10 + $0x10] sm:$0xf] }
  0x19   : > { %v807_v39 = vor.u32 %v806_v31, %v803_v30  ;;  %6278 = vmatpush3.bf16.msra.mxu1 %v1091_v7  ;;  %v618_v46 = vshll.u32 %v6784_v34, 16  ;;  %v622_v47 = vshrl.u32 %v6784_v34, 16  ;;  %v5646_v48 = vrot.slane %v6777_v29, 9  ;;  %6245 = vmatprep.mubr.msk.bf16.mxu0 %vm355_vm2, %v5581_v40  ;;  %v6813_v53 = vld [vmem:[%s6739_s10 + $0x78] sm:$0xf] }
  0x1a   : > { %v817_v45 = vor.u32 %v816_v35, %v6780_v32  ;;  %6345 = vmatprep.subr.bf16.mxu1 %v6742_v13  ;;  %v611_v50 = vrot.slane %v609_v41, 4  ;;  %v614_v51 = vrot.slane %v612_v42, 5  ;;  %v1371_v52 = vrot.slane %v6784_v34, 5  ;;  %v6822_v58 = vld [vmem:[%s6739_s10 + $0x7c] sm:$0xf] }
  0x1b   : > { %v6808_v49 = vrot.slane %v807_v39, 4  ;;  %v6817_v55 = vrot.slane %v618_v46, 5  ;;  %v624_v56 = vrot.slane %v622_v47, 4  ;;  %v5582_v57 = vcombine.low %v6798_v43, %v6801_v44  ;;  %v6831_v63 = vld [vmem:[%s6739_s10 + $0x84] sm:$0xf] }
  0x1c   : > { %v6815_v54 = vrot.slane %v817_v45, 4  ;;  %v615_v59 = vor.u32 %v614_v51, %v611_v50  ;;  %v6826_v60 = vrot.slane %v1371_v52, 4  ;;  %v633_v61 = vshrl.u32 %v6798_v43, 16  ;;  %v6834_v0 = vld [vmem:[%s6739_s10 + $0x88] sm:$0xf] }
  0x1d   : > { %v636_v62 = vshll.u32 %v6798_v43, 16  ;;  %v625_v1 = vor.u32 %v624_v56, %v6817_v55  ;;  %6246 = vmatmul.mubr.msk.bf16.vlgmr.msra.gmra.mrb[0].mxu0 %vm355_vm2, %v5582_v57  ;;  %v642_v2 = vshll.u32 %v6801_v44, 16  ;;  %v646_v3 = vshrl.u32 %v6801_v44, 16  ;;  %v6842_v6 = vld [vmem:[%s6739_s10 + $0x18] sm:$0xf] }
  0x1e   : > { %v6844_v7 = vrot.slane %v615_v59, 4  ;;  %v635_v9 = vrot.slane %v633_v61, 4  ;;  %v9109_v11 = vrot.slane %v6801_v44, 5  ;;  %6312 = vmatpush3.bf16.msra.mxu0 %v6721_v8  ;;  %v6849_v12 = vld [vmem:[%s6739_s10 + $0x1c] sm:$0xf]  ;;  %v5591_v23 = vcombine.low %v6813_v53, %v6822_v58 }
  0x1f   : > { %v638_v10 = vrot.slane %v636_v62, 5  ;;  %v6851_v20 = vrot.slane %v625_v1, 4  ;;  %v6853_v21 = vrot.slane %v642_v2, 5  ;;  %v648_v22 = vrot.slane %v646_v3, 4  ;;  %v6858_v25 = vld [vmem:[%s6739_s10 + $0x24] sm:$0xf]  ;;  %6379 = vmatprep.subr.bf16.mxu0 %v6755_v17 }
  0x20   : > { %v6861_v28 = vld [vmem:[%s6739_s10 + $0x28] sm:$0xf]  ;;  %v6866_v30 = vrot.slane %v9109_v11, 4  ;;  %v6871_v39 = vld [vmem:[%s6739_s10 + $0x90] sm:$0xf]  ;;  %6265 = vmatprep.mubr.msk.bf16.mxu1 %vm355_vm2, %v5591_v23  ;;  %v5592_v42 = vcombine.low %v6831_v63, %v6834_v0  ;;  %v5583_v57 = vcombine.low %v6842_v6, %v6849_v12  ;;  %v657_v62 = vshrl.u32 %v6842_v6, 16 }
  0x21   : > { %v639_v8 = vor.u32 %v638_v10, %v635_v9  ;;  %v649_v40 = vor.u32 %v648_v22, %v6853_v21  ;;  %v6880_v46 = vld [vmem:[%s6739_s10 + $0x94] sm:$0xf]  ;;  %v6883_v47 = vld [vmem:[%s6739_s10 + $0x9c] sm:$0xf]  ;;  %v6892_v59 = vld [vmem:[%s6739_s10 + $0xa0] sm:$0xf]  ;;  %v5584_v9 = vcombine.low %v6858_v25, %v6861_v28 }
  0x22   : > { %9135 = vst [vmem:[#allocation4_spill] sm:$0xff] %v6892_v59  ;;  %6266 = vmatmul.mubr.msk.bf16.gmra.mrb[4].mxu1 %vm355_vm2, %v5592_v42  ;;  %v6901_v3 = vld [vmem:[%s6739_s10 + $0x30] sm:$0xf]  ;;  %6249 = vmatprep.mubr.msk.bf16.mxu0 %vm355_vm2, %v5583_v57  ;;  %v6918_v51 = vld [vmem:[%s6739_s10 + $0x3c] sm:$0xf]  ;;  %v5594_v45 = vcombine.low %v6883_v47, %v6892_v59  ;;  %v1372_v42 = vsel %vm6963_vm8, %v5646_v48, %v1371_v52  ;;  %v9144_v5 = vrot.slane %v6801_v44, 5 }
  0x23   : > { %v6885_v50 = vrot.slane %v639_v8, 4  ;;  %v6894_v61 = vrot.slane %v649_v40, 4  ;;  %v6910_v8 = vld [vmem:[%s6739_s10 + $0x34] sm:$0xf]  ;;  %v5593_v40 = vcombine.low %v6871_v39, %v6880_v46  ;;  %v6927_v26 = vld [vmem:[%s6739_s10 + $0x40] sm:$0xf] }
  0x24   : > { %v5585_v56 = vcombine.low %v6901_v3, %v6910_v8  ;;  %v6936_v41 = vld [vmem:[%s6739_s10 + $0xa8] sm:$0xf]  ;;  %v6950_v37 = vld [vmem:[%s6739_s10 + $0xac] sm:$0xf]  ;;  %v6959_v23 = vld [vmem:[%s6739_s10 + $0xb4] sm:$0xf] }
  0x25   : > { %6250 = vmatmul.mubr.msk.bf16.gmra.mrb[4].mxu0 %vm355_vm2, %v5584_v9  ;;  %6269 = vmatprep.mubr.msk.bf16.mxu1 %vm355_vm2, %v5593_v40  ;;  %9136 = vst [vmem:[#allocation5_spill] sm:$0xff] %v6936_v41  ;;  %v5586_v40 = vcombine.low %v6918_v51, %v6927_v26  ;;  %9139 = vst [vmem:[#allocation6_spill] sm:$0xff] %v6950_v37  ;;  %v5595_v33 = vcombine.low %v6936_v41, %v6950_v37  ;;  %v6973_v35 = vld [vmem:[%s6739_s10 + $0x48] sm:$0xf]  ;;  %v6988_v27 = vld [vmem:[%s6739_s10 + $0x4c] sm:$0xf] }
  0x26   : > { %6253 = vmatprep.mubr.msk.bf16.mxu0 %vm355_vm2, %v5585_v56  ;;  %9140 = vst [vmem:[#allocation7_spill] sm:$0xff] %v6959_v23  ;;  %v6968_v56 = vld [vmem:[%s6739_s10 + $0xb8] sm:$0xf]  ;;  %v621_v9 = vsel %vm6940_vm7, %v6844_v7, %v6817_v55  ;;  %v645_v57 = vsel %vm6940_vm7, %v6885_v50, %v6853_v21  ;;  %v5587_v7 = vcombine.low %v6973_v35, %v6988_v27  ;;  %v659_v55 = vrot.slane %v657_v62, 4  ;;  %v228_v1 = vld [vmem:[%s6739_s10 + $0x8] sm:$0x1] }
  0x27   : > { %9143 = vst [vmem:[#allocation8_spill] sm:$0xff] %v6968_v56  ;;  %v5596_v22 = vcombine.low %v6959_v23, %v6968_v56  ;;  %v7000_v50 = vld [vmem:[%s6739_s10 + $0x58] sm:$0xf]  ;;  %v628_v4 = vshll.u32 %v228_v1, 16  ;;  %v231_v34 = vld [vmem:[%s6739_s10 + $0x14] sm:$0x1] }
  0x28   : > { %v1374_v11 = vrot.slane %v228_v1, 5  ;;  %v234_v29 = vld [vmem:[%s6739_s10 + $0x20] sm:$0x1]  ;;  %v9145_v48 = vrot.slane %v6798_v43, 9  ;;  %v9146_v1 = vshll.u32 %v6842_v6, 16  ;;  %v666_v44 = vshll.u32 %v6849_v12, 16 }
  0x29   : > { %v9147_v43 = vshrl.u32 %v6849_v12, 16  ;;  %v630_v10 = vrot.slane %v628_v4, 5  ;;  %v1381_v56 = vrot.slane %v231_v34, 5  ;;  %v7045_v4 = vld [vmem:[%s6739_s10 + $0x2c] sm:$0x1]  ;;  %v9148_v59 = vshrl.u32 %v6858_v25, 16 }
  0x2a   : > { %6270 = vmatmul.mubr.msk.bf16.gmra.mrb[8].mxu1 %vm355_vm2, %v5594_v45  ;;  %v6997_v45 = vld [vmem:[%s6739_s10 + $0x54] sm:$0xf]  ;;  %v7023_v52 = vsel %vm6963_vm8, %v9145_v48, %v9144_v5  ;;  %v662_v21 = vrot.slane %v9146_v1, 5  ;;  %v1375_v5 = vsel %vm6963_vm8, %v6826_v60, %v1374_v11  ;;  %v676_v48 = vshll.u32 %v234_v29, 16 }
  0x2b   : > { %6273 = vmatprep.mubr.msk.bf16.mxu1 %vm355_vm2, %v5595_v33  ;;  %v5588_v33 = vcombine.low %v6997_v45, %v7000_v50  ;;  %v672_v2 = vrot.slane %v9147_v43, 4  ;;  %v5663_v23 = vcombine.low %v1372_v42, %v1375_v5  ;;  %v668_v37 = vrot.slane %v666_v44, 5 }
  0x2c   : > { %v631_v1 = vsel %vm6940_vm7, %v6851_v20, %v630_v10  ;;  %v678_v41 = vrot.slane %v676_v48, 5  ;;  %v1382_v43 = vsel %vm6963_vm8, %v6866_v30, %v1381_v56  ;;  %v683_v60 = vrot.slane %v9148_v59, 4  ;;  %v7070_v48 = vld [vmem:[%s6739_s10 + $0x38] sm:$0x1] }
  0x2d   : > { %6254 = vmatmul.mubr.msk.bf16.gmra.mrb[8].mxu0 %vm355_vm2, %v5586_v40  ;;  %v652_v40 = vshll.u32 %v231_v34, 16  ;;  %v5614_v11 = vcombine.low %v621_v9, %v631_v1  ;;  %v5664_v10 = vcombine.low %v7023_v52, %v1382_v43  ;;  %v9149_v34 = vshll.u32 %v6858_v25, 16 }
  0x2e   : > { %6257 = vmatprep.mubr.msk.bf16.mxu0 %vm355_vm2, %v5587_v7  ;;  %v663_v7 = vor.u32 %v662_v21, %v659_v55  ;;  %v673_v21 = vor.u32 %v672_v2, %v668_v37  ;;  %v690_v56 = vshll.u32 %v6861_v28, 16  ;;  %v9150_v9 = vshrl.u32 %v6861_v28, 16 }
  0x2f   : > { %v654_v62 = vrot.slane %v652_v40, 5  ;;  %v686_v30 = vrot.slane %v9149_v34, 5  ;;  %v700_v2 = vshll.u32 %v7045_v4, 16  ;;  %v1385_v40 = vrot.slane %v6849_v12, 5 }
  0x30   : > { %v664_v55 = vrot.slane %v663_v7, 4  ;;  %v692_v52 = vrot.slane %v690_v56, 5  ;;  %v1388_v5 = vrot.slane %v234_v29, 5  ;;  %v9151_v7 = vshrl.u32 %v6901_v3, 16 }
  0x31   : > { %v655_v42 = vsel %vm6940_vm7, %v6894_v61, %v654_v62  ;;  %v696_v61 = vrot.slane %v9150_v9, 4  ;;  %v5648_v62 = vrot.slane %v6842_v6, 9  ;;  %v9152_v12 = vshll.u32 %v6901_v3, 16 }
  0x32   : > { %6274 = vmatmul.mubr.msk.bf16.gmra.mrb[12].mxu1 %vm355_vm2, %v5596_v22  ;;  %v5615_v20 = vcombine.low %v645_v57, %v655_v42  ;;  %v669_v59 = vsel %vm6940_vm7, %v664_v55, %v668_v37  ;;  %v674_v22 = vrot.slane %v673_v21, 4  ;;  %v687_v57 = vor.u32 %v686_v30, %v683_v60 }
  0x33   : > { %6279 = vmatprep.mubr.msk.bf16.mxu1 %vm355_vm2, %v5614_v11  ;;  %v702_v37 = vrot.slane %v700_v2, 5  ;;  %v707_v1 = vrot.slane %v9151_v7, 4  ;;  %v697_v60 = vor.u32 %v696_v61, %v692_v52  ;;  %v1386_v6 = vsel %vm6963_vm8, %v5648_v62, %v1385_v40 }
  0x34   : > { %v679_v44 = vsel %vm6940_vm7, %v674_v22, %v678_v41  ;;  %v1387_v11 = vrot.slane %v1385_v40, 4  ;;  %v714_v42 = vshll.u32 %v6910_v8, 16  ;;  %v9153_v41 = vshrl.u32 %v6910_v8, 16 }
  0x35   : > { %6258 = vmatmul.mubr.msk.bf16.gmra.mrb[12].mxu0 %vm355_vm2, %v5588_v33  ;;  %v5616_v43 = vcombine.low %v669_v59, %v679_v44  ;;  %v688_v33 = vrot.slane %v687_v57, 4  ;;  %v698_v21 = vrot.slane %v697_v60, 4  ;;  %v724_v34 = vshll.u32 %v7070_v48, 16 }
  0x36   : > { %6313 = vmatprep.mubr.msk.bf16.mxu0 %vm355_vm2, %v5663_v23  ;;  %v710_v23 = vrot.slane %v9152_v12, 5  ;;  %v720_v29 = vrot.slane %v9153_v41, 4  ;;  %v5649_v30 = vrot.slane %v6858_v25, 9  ;;  %v1389_v56 = vsel %vm6963_vm8, %v1387_v11, %v1388_v5 }
  0x37   : > { %v693_v55 = vsel %vm6940_vm7, %v688_v33, %v692_v52  ;;  %v716_v22 = vrot.slane %v714_v42, 5  ;;  %v1392_v9 = vrot.slane %v6861_v28, 5  ;;  %v703_v61 = vsel %vm6940_vm7, %v698_v21, %v702_v37  ;;  %v7095_v52 = vld [vmem:[%s6739_s10 + $0x44] sm:$0x1] }
  0x38   : > { %v711_v59 = vor.u32 %v710_v23, %v707_v1  ;;  %v5665_v2 = vcombine.low %v1386_v6, %v1389_v56  ;;  %v726_v57 = vrot.slane %v724_v34, 5  ;;  %v1395_v25 = vrot.slane %v7045_v4, 5  ;;  %v7122_v56 = vld [vmem:[%s6739_s10 + $0x50] sm:$0x1] }
  0x39   : > { %v721_v40 = vor.u32 %v720_v29, %v716_v22  ;;  %v1393_v44 = vsel %vm6963_vm8, %v5649_v30, %v1392_v9  ;;  %v9154_v28 = vshrl.u32 %v6918_v51, 16  ;;  %v9155_v5 = vshll.u32 %v6918_v51, 16 }
  0x3a   : > { %6280 = vmatmul.mubr.msk.bf16.vlgmr.msra.gmra.mrb[16].mxu1 %vm355_vm2, %v5615_v20  ;;  %v5617_v20 = vcombine.low %v693_v55, %v703_v61  ;;  %v712_v62 = vrot.slane %v711_v59, 4  ;;  %v738_v4 = vshll.u32 %v6927_v26, 16  ;;  %v9156_v33 = vshrl.u32 %v6927_v26, 16 }
  0x3b   : > { %6346 = vmatpush3.bf16.msra.mxu1 %v6742_v13  ;;  %6283 = vmatprep.mubr.msk.bf16.mxu1 %vm355_vm2, %v5616_v43  ;;  %v1394_v13 = vrot.slane %v1392_v9, 4  ;;  %v731_v37 = vrot.slane %v9154_v28, 4  ;;  %v734_v7 = vrot.slane %v9155_v5, 5  ;;  %v722_v43 = vrot.slane %v721_v40, 4 }
  0x3c   : > { %6413 = vmatprep.subr.bf16.mxu1 %v6758_v18  ;;  %v717_v1 = vsel %vm6940_vm7, %v712_v62, %v716_v22  ;;  %v748_v60 = vshll.u32 %v7095_v52, 16  ;;  %v740_v12 = vrot.slane %v738_v4, 5  ;;  %v5650_v23 = vrot.slane %v6901_v3, 9 }
  0x3d   : > { %6314 = vmatmul.mubr.msk.bf16.vlgmr.msra.gmra.mrb[16].mxu0 %vm355_vm2, %v5664_v10  ;;  %v744_v10 = vrot.slane %v9156_v33, 4  ;;  %v1396_v6 = vsel %vm6963_vm8, %v1394_v13, %v1395_v25  ;;  %v735_v11 = vor.u32 %v734_v7, %v731_v37  ;;  %v1399_v29 = vrot.slane %v6910_v8, 5 }
  0x3e   : > { %6380 = vmatpush3.bf16.msra.mxu0 %v6755_v17  ;;  %6317 = vmatprep.mubr.msk.bf16.mxu0 %vm355_vm2, %v5665_v2  ;;  %v727_v17 = vsel %vm6940_vm7, %v722_v43, %v726_v57  ;;  %v5666_v42 = vcombine.low %v1393_v44, %v1396_v6  ;;  %v750_v41 = vrot.slane %v748_v60, 5  ;;  %v1402_v30 = vrot.slane %v7070_v48, 5 }
  0x3f   : > { %6447 = vmatprep.subr.bf16.mxu0 %v6761_v19  ;;  %v5618_v55 = vcombine.low %v717_v1, %v727_v17  ;;  %v736_v21 = vrot.slane %v735_v11, 4  ;;  %v745_v34 = vor.u32 %v744_v10, %v740_v12  ;;  %v1400_v3 = vsel %vm6963_vm8, %v5650_v23, %v1399_v29  ;;  %v249_v10 = vld [vmem:[%s6739_s10 + $0x5c] sm:$0x1] }
  0x40   : > { %v1401_v59 = vrot.slane %v1399_v29, 4  ;;  %v9157_v22 = vshrl.u32 %v6973_v35, 16  ;;  %v9158_v61 = vshll.u32 %v6973_v35, 16  ;;  %v762_v57 = vshll.u32 %v6988_v27, 16  ;;  %v252_v29 = vld [vmem:[%s6739_s10 + $0x68] sm:$0x1] }
  0x41   : > { %v741_v8 = vsel %vm6940_vm7, %v736_v21, %v740_v12  ;;  %v746_v48 = vrot.slane %v745_v34, 4  ;;  %v9159_v25 = vshrl.u32 %v6988_v27, 16  ;;  %v772_v44 = vshll.u32 %v7122_v56, 16 }
  0x42   : > { %6284 = vmatmul.mubr.msk.bf16.gmra.mrb[20].mxu1 %vm355_vm2, %v5617_v20  ;;  %v755_v9 = vrot.slane %v9157_v22, 4  ;;  %v758_v2 = vrot.slane %v9158_v61, 5  ;;  %v1403_v62 = vsel %vm6963_vm8, %v1401_v59, %v1402_v30  ;;  %v5651_v13 = vrot.slane %v6918_v51, 9 }
  0x43   : > { %6287 = vmatprep.mubr.msk.bf16.mxu1 %vm355_vm2, %v5618_v55  ;;  %v768_v20 = vrot.slane %v9159_v25, 4  ;;  %v751_v28 = vsel %vm6940_vm7, %v746_v48, %v750_v41  ;;  %v5667_v37 = vcombine.low %v1400_v3, %v1403_v62  ;;  %v764_v5 = vrot.slane %v762_v57, 5 }
  0x44   : > { %v759_v40 = vor.u32 %v758_v2, %v755_v9  ;;  %v1406_v7 = vrot.slane %v6927_v26, 5  ;;  %v5619_v4 = vcombine.low %v741_v8, %v751_v28  ;;  %v774_v43 = vrot.slane %v772_v44, 5 }
  0x45   : > { %6318 = vmatmul.mubr.msk.bf16.gmra.mrb[20].mxu0 %vm355_vm2, %v5666_v42  ;;  %v1409_v33 = vrot.slane %v7095_v52, 5  ;;  %v769_v60 = vor.u32 %v768_v20, %v764_v5  ;;  %v9160_v11 = vshrl.u32 %v6997_v45, 16  ;;  %v9161_v26 = vshll.u32 %v6997_v45, 16 }
  0x46   : > { %v760_v1 = vrot.slane %v759_v40, 4  ;;  %6321 = vmatprep.mubr.msk.bf16.mxu0 %vm355_vm2, %v5667_v37  ;;  %v1407_v51 = vsel %vm6963_vm8, %v5651_v13, %v1406_v7  ;;  %v1408_v6 = vrot.slane %v1406_v7, 4  ;;  %v786_v42 = vshll.u32 %v7000_v50, 16 }
  0x47   : > { %v779_v12 = vrot.slane %v9160_v11, 4  ;;  %v782_v17 = vrot.slane %v9161_v26, 5  ;;  %v9162_v52 = vshrl.u32 %v7000_v50, 16  ;;  %v770_v55 = vrot.slane %v769_v60, 4 }
  0x48   : > { %v765_v23 = vsel %vm6940_vm7, %v760_v1, %v764_v5  ;;  %v1410_v21 = vsel %vm6963_vm8, %v1408_v6, %v1409_v33  ;;  %v796_v34 = vshll.u32 %v249_v10, 16  ;;  %v5652_v30 = vrot.slane %v6973_v35, 9  ;;  %v255_v1 = vld [vmem:[%s6739_s10 + $0x74] sm:$0x1] }
  0x49   : > { %v792_v41 = vrot.slane %v9162_v52, 4  ;;  %v5668_v3 = vcombine.low %v1407_v51, %v1410_v21  ;;  %v783_v59 = vor.u32 %v782_v17, %v779_v12  ;;  %v788_v22 = vrot.slane %v786_v42, 5 }
  0x4a   : > { %6288 = vmatmul.mubr.msk.bf16.gmra.mrb[24].mxu1 %vm355_vm2, %v5619_v4  ;;  %v1413_v9 = vrot.slane %v6988_v27, 5  ;;  %v775_v61 = vsel %vm6940_vm7, %v770_v55, %v774_v43  ;;  %v798_v2 = vrot.slane %v796_v34, 5  ;;  %v1416_v8 = vrot.slane %v7122_v56, 5  ;;  %v7208_v55 = vld [vmem:[%s6739_s10 + $0x80] sm:$0x1] }
  0x4b   : > { %v820_v48 = vshll.u32 %v252_v29, 16  ;;  %v5620_v57 = vcombine.low %v765_v23, %v775_v61  ;;  %v784_v25 = vrot.slane %v783_v59, 4  ;;  %v793_v20 = vor.u32 %v792_v41, %v788_v22 }
  0x4c   : > { %v1414_v35 = vsel %vm6963_vm8, %v5652_v30, %v1413_v9  ;;  %v1415_v62 = vrot.slane %v1413_v9, 4  ;;  %v5653_v27 = vrot.slane %v6997_v45, 9  ;;  %v1420_v44 = vrot.slane %v7000_v50, 5 }
  0x4d   : > { %6322 = vmatmul.mubr.msk.bf16.gmra.mrb[24].mxu0 %vm355_vm2, %v5668_v3  ;;  %v822_v40 = vrot.slane %v820_v48, 5  ;;  %6291 = vmatprep.mubr.msk.bf16.mxu1 %vm355_vm2, %v5620_v57  ;;  %v789_v56 = vsel %vm6940_vm7, %v784_v25, %v788_v22  ;;  %v794_v13 = vrot.slane %v793_v20, 4  ;;  %v1423_v28 = vrot.slane %v249_v10, 5 }
  0x4e   : > { %v9163_v37 = vshrl.u32 %v6751_v16, 16  ;;  %v1417_v7 = vsel %vm6963_vm8, %v1415_v62, %v1416_v8  ;;  %v1421_v45 = vsel %vm6963_vm8, %v5653_v27, %v1420_v44  ;;  %v1422_v50 = vrot.slane %v1420_v44, 4 }
  0x4f   : > { %v823_v4 = vsel %vm6940_vm7, %v6815_v54, %v822_v40  ;;  %v799_v43 = vsel %vm6940_vm7, %v794_v13, %v798_v2  ;;  %v5669_v33 = vcombine.low %v1414_v35, %v1417_v7  ;;  %v9164_v10 = vsel %vm6940_vm7, %v6808_v49, %v6780_v32 }
  0x50   : > { %v827_v5 = vrot.slane %v9163_v37, 4  ;;  %v5622_v60 = vcombine.low %v9164_v10, %v823_v4  ;;  %v9165_v51 = vshll.u32 %v6751_v16, 16  ;;  %v5621_v54 = vcombine.low %v789_v56, %v799_v43 }
  0x51   : > { %v1424_v11 = vsel %vm6963_vm8, %v1422_v50, %v1423_v28  ;;  %v834_v12 = vshll.u32 %v6769_v24, 16  ;;  %v9166_v23 = vshrl.u32 %v6769_v24, 16  ;;  %6325 = vmatprep.mubr.msk.bf16.mxu0 %vm355_vm2, %v5669_v33  ;;  %v844_v52 = vshll.u32 %v255_v1, 16 }
  0x52   : > { %v830_v6 = vrot.slane %v9165_v51, 5  ;;  %v5670_v17 = vcombine.low %v1421_v45, %v1424_v11  ;;  %v9167_v32 = vrot.slane %v6748_v15, 5  ;;  %v9168_v49 = vrot.slane %v6745_v14, 9  ;;  %6292 = vmatmul.mubr.msk.bf16.gmra.mrb[28].mxu1 %vm355_vm2, %v5621_v54 }
  0x53   : > { %v840_v26 = vrot.slane %v9166_v23, 4  ;;  %v836_v21 = vrot.slane %v834_v12, 5  ;;  %v1430_v34 = vrot.slane %v252_v29, 5  ;;  %v9169_v30 = vshrl.u32 %v6813_v53, 16  ;;  %6295 = vmatprep.mubr.msk.bf16.mxu1 %vm355_vm2, %v5622_v60 }
  0x54   : > { %v831_v42 = vor.u32 %v830_v6, %v827_v5  ;;  %v1428_v41 = vsel %vm6963_vm8, %v9168_v49, %v9167_v32  ;;  %v9170_v59 = vshll.u32 %v6813_v53, 16  ;;  %v846_v9 = vrot.slane %v844_v52, 5 }
  0x55   : > { %v851_v3 = vrot.slane %v9169_v30, 4  ;;  %v858_v14 = vshll.u32 %v6822_v58, 16  ;;  %v9171_v61 = vshrl.u32 %v6822_v58, 16  ;;  %6326 = vmatmul.mubr.msk.bf16.gmra.mrb[28].mxu0 %vm355_vm2, %v5670_v17  ;;  %v841_v8 = vor.u32 %v840_v26, %v836_v21 }
  0x56   : > { %v854_v22 = vrot.slane %v9170_v59, 5  ;;  %v832_v15 = vrot.slane %v831_v42, 4  ;;  %v1431_v29 = vsel %vm6963_vm8, %v6788_v36, %v1430_v34  ;;  %v868_v57 = vshll.u32 %v7208_v55, 16  ;;  %v261_v36 = vld [vmem:[%s6739_s10 + $0x8c] sm:$0x1] }
  0x57   : > { %v864_v2 = vrot.slane %v9171_v61, 4  ;;  %v5671_v20 = vcombine.low %v1428_v41, %v1431_v29  ;;  %v860_v35 = vrot.slane %v858_v14, 5  ;;  %v5655_v62 = vrot.slane %v6751_v16, 9  ;;  %v7252_v41 = vld [vmem:[%s6739_s10 + $0x98] sm:$0x1] }
  0x58   : > { %v855_v48 = vor.u32 %v854_v22, %v851_v3  ;;  %v837_v25 = vsel %vm6940_vm7, %v832_v15, %v836_v21  ;;  %v842_v40 = vrot.slane %v841_v8, 4  ;;  %v870_v44 = vrot.slane %v868_v57, 5 }
  0x59   : > { %v1434_v56 = vrot.slane %v6769_v24, 5  ;;  %6329 = vmatprep.mubr.msk.bf16.mxu0 %vm355_vm2, %v5671_v20  ;;  %v865_v13 = vor.u32 %v864_v2, %v860_v35  ;;  %v1437_v28 = vrot.slane %v255_v1, 5  ;;  %v9172_v37 = vshrl.u32 %v6831_v63, 16 }
  0x5a   : > { %v856_v27 = vrot.slane %v855_v48, 4  ;;  %v9173_v7 = vshll.u32 %v6831_v63, 16  ;;  %v847_v45 = vsel %vm6940_vm7, %v842_v40, %v846_v9  ;;  %v882_v10 = vshll.u32 %v6834_v0, 16 }
  0x5b   : > { %v875_v5 = vrot.slane %v9172_v37, 4  ;;  %v1435_v24 = vsel %vm6963_vm8, %v5655_v62, %v1434_v56  ;;  %v1436_v50 = vrot.slane %v1434_v56, 4  ;;  %v5623_v43 = vcombine.low %v837_v25, %v847_v45 }
  0x5c   : > { %v878_v4 = vrot.slane %v9173_v7, 5  ;;  %v861_v16 = vsel %vm6940_vm7, %v856_v27, %v860_v35  ;;  %v866_v33 = vrot.slane %v865_v13, 4  ;;  %v9174_v51 = vshrl.u32 %v6834_v0, 16  ;;  %v7275_v27 = vld [vmem:[%s6739_s10 + $0xa4] sm:$0x1]  ;;  %v9180_v7 = vld [vmem:[#allocation4_spill] sm:$0xff] }
  0x5d   : > { %v1438_v60 = vsel %vm6963_vm8, %v1436_v50, %v1437_v28  ;;  %v892_v54 = vshll.u32 %v261_v36, 16  ;;  %v5656_v11 = vrot.slane %v6813_v53, 9  ;;  %6296 = vmatmul.mubr.msk.bf16.gmra.mrb[32].mxu1 %vm355_vm2, %v5623_v43  ;;  %v884_v17 = vrot.slane %v882_v10, 5 }
  0x5e   : > { %v879_v1 = vor.u32 %v878_v4, %v875_v5  ;;  %v888_v6 = vrot.slane %v9174_v51, 4  ;;  %v871_v12 = vsel %vm6940_vm7, %v866_v33, %v870_v44  ;;  %v5672_v23 = vcombine.low %v1435_v24, %v1438_v60 }
  0x5f   : > { %v5624_v42 = vcombine.low %v861_v16, %v871_v12  ;;  %v894_v52 = vrot.slane %v892_v54, 5  ;;  %v1441_v32 = vrot.slane %v6822_v58, 5  ;;  %v1444_v49 = vrot.slane %v7208_v55, 5  ;;  %v7299_v12 = vld [vmem:[%s6739_s10 + $0xb0] sm:$0x1] }
  0x60   : > { %v880_v26 = vrot.slane %v879_v1, 4  ;;  %6330 = vmatmul.mubr.msk.bf16.gmra.mrb[32].mxu0 %vm355_vm2, %v5672_v23  ;;  %v889_v21 = vor.u32 %v888_v6, %v884_v17  ;;  %v9175_v34 = vshrl.u32 %v6871_v39, 16  ;;  %v9176_v3 = vshll.u32 %v6871_v39, 16 }
  0x61   : > { %6299 = vmatprep.mubr.msk.bf16.mxu1 %vm355_vm2, %v5624_v42  ;;  %v1442_v58 = vsel %vm6963_vm8, %v5656_v11, %v1441_v32  ;;  %v1443_v55 = vrot.slane %v1441_v32, 4  ;;  %v906_v22 = vshll.u32 %v6880_v46, 16  ;;  %v9177_v15 = vshrl.u32 %v6880_v46, 16  ;;  %v9182_v42 = vld [vmem:[#allocation5_spill] sm:$0xff] }
  0x62   : > { %v885_v53 = vsel %vm6940_vm7, %v880_v26, %v884_v17  ;;  %v899_v30 = vrot.slane %v9175_v34, 4  ;;  %v902_v59 = vrot.slane %v9176_v3, 5  ;;  %v890_v14 = vrot.slane %v889_v21, 4 }
  0x63   : > { %v912_v9 = vrot.slane %v9177_v15, 4  ;;  %v916_v2 = vshll.u32 %v7252_v41, 16  ;;  %v5657_v8 = vrot.slane %v6831_v63, 9  ;;  %v1445_v29 = vsel %vm6963_vm8, %v1443_v55, %v1444_v49 }
  0x64   : > { %v903_v61 = vor.u32 %v902_v59, %v899_v30  ;;  %v908_v48 = vrot.slane %v906_v22, 5  ;;  %v1448_v57 = vrot.slane %v6834_v0, 5  ;;  %v1451_v25 = vrot.slane %v261_v36, 5 }
  0x65   : > { %v895_v20 = vsel %vm6940_vm7, %v890_v14, %v894_v52  ;;  %v5673_v35 = vcombine.low %v1442_v58, %v1445_v29  ;;  %v918_v40 = vrot.slane %v916_v2, 5  ;;  %v9178_v28 = vshrl.u32 %v6883_v47, 16 }
  0x66   : > { %v904_v62 = vrot.slane %v903_v61, 4  ;;  %v5625_v44 = vcombine.low %v885_v53, %v895_v20  ;;  %v913_v56 = vor.u32 %v912_v9, %v908_v48  ;;  %v1449_v63 = vsel %vm6963_vm8, %v5657_v8, %v1448_v57  ;;  %v273_v20 = vld [vmem:[%s6739_s10 + $0xbc] sm:$0x1] }
  0x67   : > { %v1450_v13 = vrot.slane %v1448_v57, 4  ;;  %6333 = vmatprep.mubr.msk.bf16.mxu0 %vm355_vm2, %v5673_v35  ;;  %v923_v36 = vrot.slane %v9178_v28, 4  ;;  %v9179_v37 = vshll.u32 %v6883_v47, 16  ;;  %v930_v4 = vshll.u32 %v9180_v7, 16 }
  0x68   : > { %v909_v0 = vsel %vm6940_vm7, %v904_v62, %v908_v48  ;;  %6300 = vmatmul.mubr.msk.bf16.gmra.mrb[36].mxu1 %vm355_vm2, %v5625_v44  ;;  %v914_v45 = vrot.slane %v913_v56, 4  ;;  %v9181_v24 = vshrl.u32 %v9180_v7, 16  ;;  %v940_v43 = vshll.u32 %v7275_v27, 16 }
  0x69   : > { %v926_v5 = vrot.slane %v9179_v37, 5  ;;  %v1452_v16 = vsel %vm6963_vm8, %v1450_v13, %v1451_v25  ;;  %v932_v10 = vrot.slane %v930_v4, 5  ;;  %v5658_v60 = vrot.slane %v6871_v39, 9 }
  0x6a   : > { %v936_v50 = vrot.slane %v9181_v24, 4  ;;  %v5674_v33 = vcombine.low %v1449_v63, %v1452_v16  ;;  %v919_v51 = vsel %vm6940_vm7, %v914_v45, %v918_v40  ;;  %v942_v6 = vrot.slane %v940_v43, 5 }
  0x6b   : > { %v927_v1 = vor.u32 %v926_v5, %v923_v36  ;;  %v1455_v54 = vrot.slane %v6880_v46, 5  ;;  %v1458_v11 = vrot.slane %v7252_v41, 5  ;;  %v5626_v23 = vcombine.low %v909_v0, %v919_v51  ;;  %v9185_v46 = vld [vmem:[#allocation6_spill] sm:$0xff]  ;;  %v9190_v0 = vld [vmem:[#allocation8_spill] sm:$0xff] }
  0x6c   : > { %6334 = vmatmul.mubr.msk.bf16.gmra.mrb[36].mxu0 %vm355_vm2, %v5674_v33  ;;  %v937_v17 = vor.u32 %v936_v50, %v932_v10  ;;  %v9183_v52 = vshrl.u32 %v9182_v42, 16  ;;  %v9184_v53 = vshll.u32 %v9182_v42, 16  ;;  %v954_v34 = vshll.u32 %v9185_v46, 16  ;;  %v7344_v51 = vld [vmem:[%s6739_s10 + $0xc] sm:$0xf] }
  0x6d   : > { %v928_v26 = vrot.slane %v927_v1, 4  ;;  %v1456_v39 = vsel %vm6963_vm8, %v5658_v60, %v1455_v54  ;;  %v1457_v49 = vrot.slane %v1455_v54, 4  ;;  %6303 = vmatprep.mubr.msk.bf16.mxu1 %vm355_vm2, %v5626_v23  ;;  %v9186_v3 = vshrl.u32 %v9185_v46, 16 }
  0x6e   : > { %v947_v32 = vrot.slane %v9183_v52, 4  ;;  %v950_v21 = vrot.slane %v9184_v53, 5  ;;  %v938_v30 = vrot.slane %v937_v17, 4  ;;  %v964_v58 = vshll.u32 %v7299_v12, 16 }
  0x6f   : > { %v933_v41 = vsel %vm6940_vm7, %v928_v26, %v932_v10  ;;  %v960_v59 = vrot.slane %v9186_v3, 4  ;;  %v1459_v55 = vsel %vm6963_vm8, %v1457_v49, %v1458_v11  ;;  %v956_v15 = vrot.slane %v954_v34, 5  ;;  %v7351_v26 = vld [vmem:[%s6739_s10 + $0x10] sm:$0xf] }
  0x70   : > { %v951_v22 = vor.u32 %v950_v21, %v947_v32  ;;  %v5659_v9 = vrot.slane %v6883_v47, 9  ;;  %v943_v14 = vsel %vm6940_vm7, %v938_v30, %v942_v6  ;;  %v5675_v61 = vcombine.low %v1456_v39, %v1459_v55  ;;  %v9187_v47 = vld [vmem:[#allocation7_spill] sm:$0xff]  ;;  %v7360_v32 = vld [vmem:[%s6739_s10 + $0x18] sm:$0xf] }
  0x71   : > { %v966_v2 = vrot.slane %v964_v58, 5  ;;  %v1462_v8 = vrot.slane %v9180_v7, 5  ;;  %v5627_v29 = vcombine.low %v933_v41, %v943_v14  ;;  %v961_v57 = vor.u32 %v960_v59, %v956_v15 }
  0x72   : > { %v952_v48 = vrot.slane %v951_v22, 4  ;;  %v1465_v25 = vrot.slane %v7275_v27, 5  ;;  %6337 = vmatprep.mubr.msk.bf16.mxu0 %vm355_vm2, %v5675_v61  ;;  %v9188_v40 = vshrl.u32 %v9187_v47, 16  ;;  %v9189_v56 = vshll.u32 %v9187_v47, 16 }
  0x73   : > { %v1463_v35 = vsel %vm6963_vm8, %v5659_v9, %v1462_v8  ;;  %v1464_v62 = vrot.slane %v1462_v8, 4  ;;  %6304 = vmatmul.mubr.msk.bf16.gmra.mrb[40].mxu1 %vm355_vm2, %v5627_v29  ;;  %v962_v27 = vrot.slane %v961_v57, 4  ;;  %v978_v28 = vshll.u32 %v9190_v0, 16  ;;  %v7382_v9 = vld [vmem:[%s6739_s10 + $0x24] sm:$0xf] }
  0x74   : > { %v971_v44 = vrot.slane %v9188_v40, 4  ;;  %v974_v63 = vrot.slane %v9189_v56, 5  ;;  %v957_v13 = vsel %vm6940_vm7, %v952_v48, %v956_v15  ;;  %v9191_v36 = vshrl.u32 %v9190_v0, 16  ;;  %v7379_v15 = vld [vmem:[%s6739_s10 + $0x14] sm:$0x1] }
  0x75   : > { %v1466_v5 = vsel %vm6963_vm8, %v1464_v62, %v1465_v25  ;;  %v988_v4 = vshll.u32 %v273_v20, 16  ;;  %v5660_v45 = vrot.slane %v9182_v42, 9  ;;  %v967_v16 = vsel %vm6940_vm7, %v962_v27, %v966_v2  ;;  %v7389_v29 = vld [vmem:[%s6739_s10 + $0x28] sm:$0xf] }
  0x76   : > { %v984_v37 = vrot.slane %v9191_v36, 4  ;;  %v975_v7 = vor.u32 %v974_v63, %v971_v44  ;;  %v5676_v24 = vcombine.low %v1463_v35, %v1466_v5  ;;  %v980_v50 = vrot.slane %v978_v28, 5  ;;  %v7399_v44 = vld [vmem:[%s6739_s10 + $0x20] sm:$0x1] }
  0x77   : > { %v1469_v43 = vrot.slane %v9185_v46, 5  ;;  %v5628_v33 = vcombine.low %v957_v13, %v967_v16  ;;  %v990_v10 = vrot.slane %v988_v4, 5  ;;  %v1472_v60 = vrot.slane %v7299_v12, 5  ;;  %v7367_v46 = vld [vmem:[%s6739_s10 + $0x1c] sm:$0xf] }
  0x78   : > { %v976_v1 = vrot.slane %v975_v7, 4  ;;  %6338 = vmatmul.mubr.msk.bf16.gmra.mrb[40].mxu0 %vm355_vm2, %v5676_v24  ;;  %v985_v6 = vor.u32 %v984_v37, %v980_v50  ;;  %v5661_v23 = vrot.slane %v9187_v47, 9  ;;  %v1476_v12 = vrot.slane %v9190_v0, 5  ;;  %v7405_v0 = vld [vmem:[%s6739_s10 + $0x30] sm:$0xf] }
  0x79   : > { %v1470_v54 = vsel %vm6963_vm8, %v5660_v45, %v1469_v43  ;;  %v1471_v11 = vrot.slane %v1469_v43, 4  ;;  %6307 = vmatprep.mubr.msk.bf16.mxu1 %vm355_vm2, %v5628_v33  ;;  %v1479_v42 = vrot.slane %v273_v20, 5  ;;  %v5744_v52 = vcombine.low %v7344_v51, %v7351_v26  ;;  %v7409_v7 = vld [vmem:[%s6739_s10 + $0x34] sm:$0xf] }
  0x7a   : > { %v981_v17 = vsel %vm6940_vm7, %v976_v1, %v980_v50  ;;  %v986_v39 = vrot.slane %v985_v6, 4  ;;  %v2282_v53 = vshrl.u32 %v7344_v51, 16  ;;  %v2285_v21 = vshll.u32 %v7344_v51, 16 }
  0x7b   : > { %v1473_v49 = vsel %vm6963_vm8, %v1471_v11, %v1472_v60  ;;  %v1477_v41 = vsel %vm6963_vm8, %v5661_v23, %v1476_v12  ;;  %v1478_v30 = vrot.slane %v1476_v12, 4  ;;  %v2295_v3 = vshrl.u32 %v7351_v26, 16 }
  0x7c   : > { %v5677_v34 = vcombine.low %v1470_v54, %v1473_v49  ;;  %v991_v59 = vsel %vm6940_vm7, %v986_v39, %v990_v10  ;;  %v5745_v58 = vcombine.low %v7360_v32, %v7367_v46  ;;  %v2306_v55 = vshrl.u32 %v7360_v32, 16  ;;  %v7417_v10 = vld [vmem:[%s6739_s10 + $0x2c] sm:$0x1] }
  0x7d   : > { %v2309_v22 = vshll.u32 %v7360_v32, 16  ;;  %v5629_v14 = vcombine.low %v981_v17, %v991_v59  ;;  %v1480_v61 = vsel %vm6963_vm8, %v1478_v30, %v1479_v42  ;;  %v2319_v2 = vshrl.u32 %v7367_v46, 16 }
  0x7e   : > { %6341 = vmatprep.mubr.msk.bf16.mxu0 %vm355_vm2, %v5677_v34  ;;  %v2284_v8 = vrot.slane %v2282_v53, 4  ;;  %v5678_v48 = vcombine.low %v1477_v41, %v1480_v61  ;;  %v2287_v57 = vrot.slane %v2285_v21, 5  ;;  %v2291_v25 = vshll.u32 %v7351_v26, 16  ;;  %v7430_v34 = vld [vmem:[%s6739_s10 + $0x40] sm:$0xf] }
  0x7f   : > { %v2297_v20 = vrot.slane %v2295_v3, 4  ;;  %6308 = vmatmul.mubr.msk.bf16.gmra.mrb[44].mxu1 %vm355_vm2, %v5629_v14  ;;  %v2301_v35 = vshll.u32 %v7379_v15, 16  ;;  %v5746_v62 = vcombine.low %v7382_v9, %v7389_v29  ;;  %v2330_v47 = vshrl.u32 %v7382_v9, 16 }
  0x80   : > { %v2333_v40 = vshll.u32 %v7382_v9, 16  ;;  %6342 = vmatmul.mubr.msk.bf16.gmra.mrb[44].mxu0 %vm355_vm2, %v5678_v48  ;;  %6347 = vmatprep.mubr.msk.bf16.mxu1 %vm355_vm2, %v5744_v52  ;;  %v2288_v56 = vor.u32 %v2287_v57, %v2284_v8  ;;  %v2293_v63 = vrot.slane %v2291_v25, 5  ;;  %v2343_v13 = vshrl.u32 %v7389_v29, 16  ;;  %v7423_v52 = vld [vmem:[%s6739_s10 + $0x3c] sm:$0xf] }
  0x81   : > { %v2308_v27 = vrot.slane %v2306_v55, 4  ;;  %v2303_v28 = vrot.slane %v2301_v35, 5  ;;  %v2311_v36 = vrot.slane %v2309_v22, 5  ;;  %v2315_v37 = vshll.u32 %v7367_v46, 16  ;;  %v7449_v57 = vld [vmem:[%s6739_s10 + $0x48] sm:$0xf] }
  0x82   : > { %v2321_v5 = vrot.slane %v2319_v2, 4  ;;  %v2289_v4 = vrot.slane %v2288_v56, 4  ;;  %v2298_v45 = vor.u32 %v2297_v20, %v2293_v63  ;;  %v2325_v16 = vshll.u32 %v7399_v44, 16 }
  0x83   : > { %v5747_v24 = vcombine.low %v7405_v0, %v7409_v7  ;;  %v2312_v50 = vor.u32 %v2311_v36, %v2308_v27  ;;  %v2317_v43 = vrot.slane %v2315_v37, 5  ;;  %v2354_v33 = vshrl.u32 %v7405_v0, 16 }
  0x84   : > { %v2357_v1 = vshll.u32 %v7405_v0, 16  ;;  %v2294_v60 = vsel %vm6940_vm7, %v2289_v4, %v2293_v63  ;;  %v2299_v6 = vrot.slane %v2298_v45, 4  ;;  %v2327_v54 = vrot.slane %v2325_v16, 5 }
  0x85   : > { %v2367_v11 = vshrl.u32 %v7409_v7, 16  ;;  %v2313_v23 = vrot.slane %v2312_v50, 4  ;;  %v2322_v17 = vor.u32 %v2321_v5, %v2317_v43  ;;  %v2332_v12 = vrot.slane %v2330_v47, 4  ;;  %v7452_v47 = vld [vmem:[%s6739_s10 + $0x4c] sm:$0xf] }
  0x86   : > { %v2335_v42 = vrot.slane %v2333_v40, 5  ;;  %v2304_v39 = vsel %vm6940_vm7, %v2299_v6, %v2303_v28  ;;  %v2339_v49 = vshll.u32 %v7389_v29, 16  ;;  %v2345_v53 = vrot.slane %v2343_v13, 4  ;;  %v7466_v50 = vld [vmem:[%s6739_s10 + $0x44] sm:$0x1] }
  0x87   : > { %v2349_v21 = vshll.u32 %v7417_v10, 16  ;;  %6348 = vmatmul.mubr.msk.bf16.vlgmr.msra.gmra.mrb[48].mxu1 %vm355_vm2, %v5745_v58  ;;  %v5777_v41 = vcombine.low %v2294_v60, %v2304_v39  ;;  %v2318_v30 = vsel %vm6940_vm7, %v2313_v23, %v2317_v43  ;;  %v2323_v3 = vrot.slane %v2322_v17, 4  ;;  %v7441_v58 = vld [vmem:[%s6739_s10 + $0x38] sm:$0x1]  ;;  %v7471_v6 = vld [vmem:[%s6739_s10 + $0x54] sm:$0xf] }
  0x88   : > { %v2336_v59 = vor.u32 %v2335_v42, %v2332_v12  ;;  %6414 = vmatpush3.bf16.msra.mxu1 %v6758_v18  ;;  %6351 = vmatprep.mubr.msk.bf16.mxu1 %vm355_vm2, %v5746_v62  ;;  %v2341_v55 = vrot.slane %v2339_v49, 5  ;;  %v5748_v14 = vcombine.low %v7423_v52, %v7430_v34  ;;  %v2378_v61 = vshrl.u32 %v7423_v52, 16  ;;  %v7479_v17 = vld [vmem:[%s6739_s10 + $0x58] sm:$0xf] }
  0x89   : > { %v2351_v22 = vrot.slane %v2349_v21, 5  ;;  %6381 = vmatprep.mubr.msk.bf16.mxu0 %vm355_vm2, %v5777_v41  ;;  %v2328_v2 = vsel %vm6940_vm7, %v2323_v3, %v2327_v54  ;;  %v2381_v18 = vshll.u32 %v7423_v52, 16  ;;  %v2391_v48 = vshrl.u32 %v7430_v34, 16 }
  0x8a   : > { %v2337_v8 = vrot.slane %v2336_v59, 4  ;;  %v5778_v25 = vcombine.low %v2318_v30, %v2328_v2  ;;  %v2346_v20 = vor.u32 %v2345_v53, %v2341_v55  ;;  %v2356_v35 = vrot.slane %v2354_v33, 4  ;;  %v7491_v30 = vld [vmem:[%s6739_s10 + $0x50] sm:$0x1] }
  0x8b   : > { %v2359_v62 = vrot.slane %v2357_v1, 5  ;;  %v2363_v56 = vshll.u32 %v7409_v7, 16  ;;  %v2369_v63 = vrot.slane %v2367_v11, 4  ;;  %v2373_v13 = vshll.u32 %v7441_v58, 16 }
  0x8c   : > { %v2342_v40 = vsel %vm6940_vm7, %v2337_v8, %v2341_v55  ;;  %6382 = vmatmul.mubr.msk.bf16.vlgmr.msra.gmra.mrb[48].mxu0 %vm355_vm2, %v5778_v25  ;;  %v2347_v27 = vrot.slane %v2346_v20, 4  ;;  %v5749_v36 = vcombine.low %v7449_v57, %v7452_v47  ;;  %v2402_v37 = vshrl.u32 %v7449_v57, 16 }
  0x8d   : > { %v2360_v28 = vor.u32 %v2359_v62, %v2356_v35  ;;  %6448 = vmatpush3.bf16.msra.mxu0 %v6761_v19  ;;  %v2365_v5 = vrot.slane %v2363_v56, 5  ;;  %v2375_v4 = vrot.slane %v2373_v13, 5  ;;  %v2405_v45 = vshll.u32 %v7449_v57, 16 }
  0x8e   : > { %v2415_v16 = vshrl.u32 %v7452_v47, 16  ;;  %v2352_v43 = vsel %vm6940_vm7, %v2347_v27, %v2351_v22  ;;  %v2380_v1 = vrot.slane %v2378_v61, 4  ;;  %v2383_v60 = vrot.slane %v2381_v18, 5  ;;  %v7498_v18 = vld [vmem:[%s6739_s10 + $0x60] sm:$0xf] }
  0x8f   : > { %v2361_v33 = vrot.slane %v2360_v28, 4  ;;  %6352 = vmatmul.mubr.msk.bf16.gmra.mrb[52].mxu1 %vm355_vm2, %v5747_v24  ;;  %v5779_v19 = vcombine.low %v2342_v40, %v2352_v43  ;;  %v2370_v54 = vor.u32 %v2369_v63, %v2365_v5  ;;  %v2387_v11 = vshll.u32 %v7430_v34, 16 }
  0x90   : > { %v2393_v23 = vrot.slane %v2391_v48, 4  ;;  %6355 = vmatprep.mubr.msk.bf16.mxu1 %vm355_vm2, %v5748_v14  ;;  %v2384_v42 = vor.u32 %v2383_v60, %v2380_v1  ;;  %v2397_v39 = vshll.u32 %v7466_v50, 16  ;;  %v5750_v24 = vcombine.low %v7471_v6, %v7479_v17  ;;  %v7501_v48 = vld [vmem:[%s6739_s10 + $0x64] sm:$0xf]  ;;  %v7519_v1 = vld [vmem:[%s6739_s10 + $0x6c] sm:$0xf] }
  0x91   : > { %v2366_v12 = vsel %vm6940_vm7, %v2361_v33, %v2365_v5  ;;  %6385 = vmatprep.mubr.msk.bf16.mxu0 %vm355_vm2, %v5779_v19  ;;  %v2371_v49 = vrot.slane %v2370_v54, 4  ;;  %v2389_v53 = vrot.slane %v2387_v11, 5  ;;  %v2426_v21 = vshrl.u32 %v7471_v6, 16 }
  0x92   : > { %v2429_v41 = vshll.u32 %v7471_v6, 16  ;;  %v2385_v3 = vrot.slane %v2384_v42, 4  ;;  %v2399_v59 = vrot.slane %v2397_v39, 5  ;;  %v2439_v55 = vshrl.u32 %v7479_v17, 16 }
  0x93   : > { %v2404_v22 = vrot.slane %v2402_v37, 4  ;;  %v2376_v14 = vsel %vm6940_vm7, %v2371_v49, %v2375_v4  ;;  %v2394_v61 = vor.u32 %v2393_v23, %v2389_v53  ;;  %v2407_v2 = vrot.slane %v2405_v45, 5  ;;  %v7513_v4 = vld [vmem:[%s6739_s10 + $0x5c] sm:$0x1]  ;;  %v7524_v23 = vld [vmem:[%s6739_s10 + $0x70] sm:$0xf] }
  0x94   : > { %v2411_v8 = vshll.u32 %v7452_v47, 16  ;;  %v5780_v25 = vcombine.low %v2366_v12, %v2376_v14  ;;  %v2390_v20 = vsel %vm6940_vm7, %v2385_v3, %v2389_v53  ;;  %v2417_v35 = vrot.slane %v2415_v16, 4  ;;  %v7541_v14 = vld [vmem:[%s6739_s10 + $0x78] sm:$0xf] }
  0x95   : > { %v2421_v62 = vshll.u32 %v7491_v30, 16  ;;  %v2395_v40 = vrot.slane %v2394_v61, 4  ;;  %v2408_v56 = vor.u32 %v2407_v2, %v2404_v22  ;;  %v5751_v13 = vcombine.low %v7498_v18, %v7501_v48 }
  0x96   : > { %v2413_v63 = vrot.slane %v2411_v8, 5  ;;  %6386 = vmatmul.mubr.msk.bf16.gmra.mrb[52].mxu0 %vm355_vm2, %v5780_v25  ;;  %v2450_v28 = vshrl.u32 %v7498_v18, 16  ;;  %v2453_v37 = vshll.u32 %v7498_v18, 16  ;;  %v2463_v5 = vshrl.u32 %v7501_v48, 16 }
  0x97   : > { %v2423_v27 = vrot.slane %v2421_v62, 5  ;;  %6356 = vmatmul.mubr.msk.bf16.gmra.mrb[56].mxu1 %vm355_vm2, %v5749_v36  ;;  %v2400_v45 = vsel %vm6940_vm7, %v2395_v40, %v2399_v59  ;;  %v2409_v16 = vrot.slane %v2408_v56, 4  ;;  %v2428_v33 = vrot.slane %v2426_v21, 4 }
  0x98   : > { %v2418_v43 = vor.u32 %v2417_v35, %v2413_v63  ;;  %v5781_v60 = vcombine.low %v2390_v20, %v2400_v45  ;;  %6359 = vmatprep.mubr.msk.bf16.mxu1 %vm355_vm2, %v5750_v24  ;;  %v2431_v19 = vrot.slane %v2429_v41, 5  ;;  %v2435_v54 = vshll.u32 %v7479_v17, 16  ;;  %v7535_v41 = vld [vmem:[%s6739_s10 + $0x68] sm:$0x1]  ;;  %v7544_v20 = vld [vmem:[%s6739_s10 + $0x7c] sm:$0xf] }
  0x99   : > { %v2441_v11 = vrot.slane %v2439_v55, 4  ;;  %v2414_v36 = vsel %vm6940_vm7, %v2409_v16, %v2413_v63  ;;  %v2445_v42 = vshll.u32 %v7513_v4, 16  ;;  %v5752_v39 = vcombine.low %v7519_v1, %v7524_v23 }
  0x9a   : > { %v2419_v12 = vrot.slane %v2418_v43, 4  ;;  %6389 = vmatprep.mubr.msk.bf16.mxu0 %vm355_vm2, %v5781_v60  ;;  %v2432_v24 = vor.u32 %v2431_v19, %v2428_v33  ;;  %v2437_v49 = vrot.slane %v2435_v54, 5  ;;  %v2474_v53 = vshrl.u32 %v7519_v1, 16  ;;  %v7558_v33 = vld [vmem:[%s6739_s10 + $0x74] sm:$0x1] }
  0x9b   : > { %v2477_v21 = vshll.u32 %v7519_v1, 16  ;;  %v2447_v59 = vrot.slane %v2445_v42, 5  ;;  %v2487_v55 = vshrl.u32 %v7524_v23, 16  ;;  %v2452_v22 = vrot.slane %v2450_v28, 4 }
  0x9c   : > { %v2424_v3 = vsel %vm6940_vm7, %v2419_v12, %v2423_v27  ;;  %v2433_v2 = vrot.slane %v2432_v24, 4  ;;  %v2442_v8 = vor.u32 %v2441_v11, %v2437_v49  ;;  %v2455_v25 = vrot.slane %v2453_v37, 5 }
  0x9d   : > { %v5782_v61 = vcombine.low %v2414_v36, %v2424_v3  ;;  %v2459_v35 = vshll.u32 %v7501_v48, 16  ;;  %v2465_v62 = vrot.slane %v2463_v5, 4  ;;  %v2469_v40 = vshll.u32 %v7535_v41, 16  ;;  %v7564_v36 = vld [vmem:[%s6739_s10 + $0x84] sm:$0xf] }
  0x9e   : > { %v5753_v56 = vcombine.low %v7541_v14, %v7544_v20  ;;  %v2438_v63 = vsel %vm6940_vm7, %v2433_v2, %v2437_v49  ;;  %v2443_v27 = vrot.slane %v2442_v8, 4  ;;  %v2456_v28 = vor.u32 %v2455_v25, %v2452_v22  ;;  %v7568_v49 = vld [vmem:[%s6739_s10 + $0x88] sm:$0xf]  ;;  %v7579_v2 = vld [vmem:[%s6739_s10 + $0x80] sm:$0x1] }
  0x9f   : > { %6390 = vmatmul.mubr.msk.bf16.gmra.mrb[56].mxu0 %vm355_vm2, %v5782_v61  ;;  %v2498_v37 = vshrl.u32 %v7541_v14, 16  ;;  %6360 = vmatmul.mubr.msk.bf16.gmra.mrb[60].mxu1 %vm355_vm2, %v5751_v13  ;;  %v2461_v45 = vrot.slane %v2459_v35, 5  ;;  %v2471_v5 = vrot.slane %v2469_v40, 5  ;;  %v2501_v16 = vshll.u32 %v7541_v14, 16 }
  0xa0   : > { %v2511_v43 = vshrl.u32 %v7544_v20, 16  ;;  %v2448_v60 = vsel %vm6940_vm7, %v2443_v27, %v2447_v59  ;;  %6363 = vmatprep.mubr.msk.bf16.mxu1 %vm355_vm2, %v5752_v39  ;;  %v2457_v19 = vrot.slane %v2456_v28, 4  ;;  %v2476_v54 = vrot.slane %v2474_v53, 4 }
  0xa1   : > { %v2479_v11 = vrot.slane %v2477_v21, 5  ;;  %v5783_v13 = vcombine.low %v2438_v63, %v2448_v60  ;;  %v2466_v12 = vor.u32 %v2465_v62, %v2461_v45  ;;  %v2483_v42 = vshll.u32 %v7524_v23, 16  ;;  %v7589_v60 = vld [vmem:[%s6739_s10 + $0x94] sm:$0xf] }
  0xa2   : > { %v2489_v24 = vrot.slane %v2487_v55, 4  ;;  %v2462_v3 = vsel %vm6940_vm7, %v2457_v19, %v2461_v45  ;;  %v2493_v59 = vshll.u32 %v7558_v33, 16  ;;  %v5754_v39 = vcombine.low %v7564_v36, %v7568_v49  ;;  %v7586_v45 = vld [vmem:[%s6739_s10 + $0x90] sm:$0xf]  ;;  %9193 = vst [vmem:[#allocation5_spill] sm:$0xff] %v7589_v60 }
  0xa3   : > { %v2480_v22 = vor.u32 %v2479_v11, %v2476_v54  ;;  %6393 = vmatprep.mubr.msk.bf16.mxu0 %vm355_vm2, %v5783_v13  ;;  %v2467_v53 = vrot.slane %v2466_v12, 4  ;;  %v2485_v21 = vrot.slane %v2483_v42, 5  ;;  %v2522_v61 = vshrl.u32 %v7564_v36, 16  ;;  %9192 = vst [vmem:[#allocation4_spill] sm:$0xff] %v7586_v45 }
  0xa4   : > { %v2525_v55 = vshll.u32 %v7564_v36, 16  ;;  %v2495_v25 = vrot.slane %v2493_v59, 5  ;;  %v2535_v35 = vshrl.u32 %v7568_v49, 16  ;;  %v2500_v62 = vrot.slane %v2498_v37, 4 }
  0xa5   : > { %v2481_v8 = vrot.slane %v2480_v22, 4  ;;  %v2472_v40 = vsel %vm6940_vm7, %v2467_v53, %v2471_v5  ;;  %v2490_v63 = vor.u32 %v2489_v24, %v2485_v21  ;;  %v2503_v27 = vrot.slane %v2501_v16, 5 }
  0xa6   : > { %v2507_v28 = vshll.u32 %v7544_v20, 16  ;;  %v5784_v19 = vcombine.low %v2462_v3, %v2472_v40  ;;  %v2513_v11 = vrot.slane %v2511_v43, 4  ;;  %v2517_v13 = vshll.u32 %v7579_v2, 16 }
  0xa7   : > { %v2486_v54 = vsel %vm6940_vm7, %v2481_v8, %v2485_v21  ;;  %6364 = vmatmul.mubr.msk.bf16.gmra.mrb[64].mxu1 %vm355_vm2, %v5753_v56  ;;  %v2491_v37 = vrot.slane %v2490_v63, 4  ;;  %v2504_v5 = vor.u32 %v2503_v27, %v2500_v62  ;;  %v5755_v12 = vcombine.low %v7586_v45, %v7589_v60  ;;  %v7603_v56 = vld [vmem:[%s6739_s10 + $0x8c] sm:$0x1]  ;;  %v7608_v8 = vld [vmem:[%s6739_s10 + $0x9c] sm:$0xf] }
  0xa8   : > { %v2509_v16 = vrot.slane %v2507_v28, 5  ;;  %6394 = vmatmul.mubr.msk.bf16.gmra.mrb[60].mxu0 %vm355_vm2, %v5784_v19  ;;  %6367 = vmatprep.mubr.msk.bf16.mxu1 %vm355_vm2, %v5754_v39  ;;  %v2519_v42 = vrot.slane %v2517_v13, 5  ;;  %v2546_v24 = vshrl.u32 %v7586_v45, 16  ;;  %v2549_v43 = vshll.u32 %v7586_v45, 16  ;;  %9194 = vst [vmem:[#allocation6_spill] sm:$0xff] %v7603_v56  ;;  %9195 = vst [vmem:[#allocation7_spill] sm:$0xff] %v7608_v8 }
  0xa9   : > { %v2559_v3 = vshrl.u32 %v7589_v60, 16  ;;  %v2496_v22 = vsel %vm6940_vm7, %v2491_v37, %v2495_v25  ;;  %v2505_v59 = vrot.slane %v2504_v5, 4  ;;  %v2524_v21 = vrot.slane %v2522_v61, 4  ;;  %v7612_v27 = vld [vmem:[%s6739_s10 + $0xa0] sm:$0xf] }
  0xaa   : > { %v2514_v53 = vor.u32 %v2513_v11, %v2509_v16  ;;  %v5785_v62 = vcombine.low %v2486_v54, %v2496_v22  ;;  %v2527_v39 = vrot.slane %v2525_v55, 5  ;;  %v2531_v40 = vshll.u32 %v7568_v49, 16  ;;  %9196 = vst [vmem:[#allocation8_spill] sm:$0xff] %v7612_v27  ;;  %v7623_v13 = vld [vmem:[%s6739_s10 + $0x98] sm:$0x1] }
  0xab   : > { %v2537_v63 = vrot.slane %v2535_v35, 4  ;;  %v2510_v28 = vsel %vm6940_vm7, %v2505_v59, %v2509_v16  ;;  %v2541_v25 = vshll.u32 %v7603_v56, 16  ;;  %v5756_v61 = vcombine.low %v7608_v8, %v7612_v27  ;;  %9197 = vst [vmem:[#allocation9_spill] sm:$0xff] %v7623_v13  ;;  %v7629_v59 = vld [vmem:[%s6739_s10 + $0xa8] sm:$0xf] }
  0xac   : > { %v2515_v19 = vrot.slane %v2514_v53, 4  ;;  %6397 = vmatprep.mubr.msk.bf16.mxu0 %vm355_vm2, %v5785_v62  ;;  %v2528_v54 = vor.u32 %v2527_v39, %v2524_v21  ;;  %v2533_v55 = vrot.slane %v2531_v40, 5  ;;  %v2570_v11 = vshrl.u32 %v7608_v8, 16  ;;  %9198 = vst [vmem:[#allocation10_spill] sm:$0xff] %v7629_v59  ;;  %v7632_v39 = vld [vmem:[%s6739_s10 + $0xac] sm:$0xf] }
  0xad   : > { %v2573_v35 = vshll.u32 %v7608_v8, 16  ;;  %v2543_v5 = vrot.slane %v2541_v25, 5  ;;  %v2583_v16 = vshrl.u32 %v7612_v27, 16  ;;  %v2548_v22 = vrot.slane %v2546_v24, 4  ;;  %9199 = vst [vmem:[#allocation11_spill] sm:$0xff] %v7632_v39 }
  0xae   : > { %v2520_v37 = vsel %vm6940_vm7, %v2515_v19, %v2519_v42  ;;  %v2529_v45 = vrot.slane %v2528_v54, 4  ;;  %v2538_v62 = vor.u32 %v2537_v63, %v2533_v55  ;;  %v2551_v21 = vrot.slane %v2549_v43, 5 }
  0xaf   : > { %v5786_v53 = vcombine.low %v2510_v28, %v2520_v37  ;;  %6368 = vmatmul.mubr.msk.bf16.gmra.mrb[68].mxu1 %vm355_vm2, %v5755_v12  ;;  %v2555_v40 = vshll.u32 %v7589_v60, 16  ;;  %v2561_v8 = vrot.slane %v2559_v3, 4  ;;  %v2565_v42 = vshll.u32 %v7623_v13, 16  ;;  %v7647_v37 = vld [vmem:[%s6739_s10 + $0xa4] sm:$0x1] }
  0xb0   : > { %v5757_v19 = vcombine.low %v7629_v59, %v7632_v39  ;;  %v2534_v24 = vsel %vm6940_vm7, %v2529_v45, %v2533_v55  ;;  %v2539_v43 = vrot.slane %v2538_v62, 4  ;;  %6371 = vmatprep.mubr.msk.bf16.mxu1 %vm355_vm2, %v5756_v61  ;;  %v2552_v63 = vor.u32 %v2551_v21, %v2548_v22  ;;  %9200 = vst [vmem:[#allocation12_spill] sm:$0xff] %v7647_v37  ;;  %v7652_v61 = vld [vmem:[%s6739_s10 + $0xb4] sm:$0xf] }
  0xb1   : > { %6398 = vmatmul.mubr.msk.bf16.gmra.mrb[64].mxu0 %vm355_vm2, %v5786_v53  ;;  %v2594_v12 = vshrl.u32 %v7629_v59, 16  ;;  %v2557_v28 = vrot.slane %v2555_v40, 5  ;;  %v2567_v3 = vrot.slane %v2565_v42, 5  ;;  %v2597_v25 = vshll.u32 %v7629_v59, 16  ;;  %9201 = vst [vmem:[#allocation13_spill] sm:$0xff] %v7652_v61 }
  0xb2   : > { %v2607_v54 = vshrl.u32 %v7632_v39, 16  ;;  %v2544_v53 = vsel %vm6940_vm7, %v2539_v43, %v2543_v5  ;;  %v2553_v13 = vrot.slane %v2552_v63, 4  ;;  %v2572_v45 = vrot.slane %v2570_v11, 4  ;;  %v7656_v42 = vld [vmem:[%s6739_s10 + $0xb8] sm:$0xf] }
  0xb3   : > { %v2575_v55 = vrot.slane %v2573_v35, 5  ;;  %v5787_v22 = vcombine.low %v2534_v24, %v2544_v53  ;;  %v2562_v62 = vor.u32 %v2561_v8, %v2557_v28  ;;  %v2579_v21 = vshll.u32 %v7612_v27, 16  ;;  %v7667_v24 = vld [vmem:[%s6739_s10 + $0xb0] sm:$0x1] }
  0xb4   : > { %v2585_v40 = vrot.slane %v2583_v16, 4  ;;  %v2558_v59 = vsel %vm6940_vm7, %v2553_v13, %v2557_v28  ;;  %v2589_v56 = vshll.u32 %v7647_v37, 16  ;;  %v5758_v11 = vcombine.low %v7652_v61, %v7656_v42  ;;  %9202 = vst [vmem:[#allocation14_spill] sm:$0xff] %v7667_v24 }
  0xb5   : > { %v2576_v60 = vor.u32 %v2575_v55, %v2572_v45  ;;  %6401 = vmatprep.mubr.msk.bf16.mxu0 %vm355_vm2, %v5787_v22  ;;  %v2563_v35 = vrot.slane %v2562_v62, 4  ;;  %v2581_v8 = vrot.slane %v2579_v21, 5  ;;  %v2618_v5 = vshrl.u32 %v7652_v61, 16  ;;  %v7675_v62 = vld [vmem:[%s6739_s10 + $0xc0] sm:$0xf] }
  0xb6   : > { %v2621_v16 = vshll.u32 %v7652_v61, 16  ;;  %v2591_v13 = vrot.slane %v2589_v56, 5  ;;  %v2631_v63 = vshrl.u32 %v7656_v42, 16  ;;  %v2596_v28 = vrot.slane %v2594_v12, 4  ;;  %9203 = vst [vmem:[#allocation15_spill] sm:$0xff] %v7675_v62 }
  0xb7   : > { %v2577_v43 = vrot.slane %v2576_v60, 4  ;;  %v2568_v53 = vsel %vm6940_vm7, %v2563_v35, %v2567_v3  ;;  %6372 = vmatmul.mubr.msk.bf16.gmra.mrb[72].mxu1 %vm355_vm2, %v5757_v19  ;;  %v2586_v45 = vor.u32 %v2585_v40, %v2581_v8  ;;  %v2599_v55 = vrot.slane %v2597_v25, 5  ;;  %v7678_v21 = vld [vmem:[%s6739_s10 + $0xc4] sm:$0xf] }
  0xb8   : > { %v2603_v22 = vshll.u32 %v7632_v39, 16  ;;  %v5788_v61 = vcombine.low %v2558_v59, %v2568_v53  ;;  %6375 = vmatprep.mubr.msk.bf16.mxu1 %vm355_vm2, %v5758_v11  ;;  %v2609_v56 = vrot.slane %v2607_v54, 4  ;;  %v2613_v12 = vshll.u32 %v7667_v24, 16  ;;  %v7691_v11 = vld [vmem:[%s6739_s10 + $0xbc] sm:$0x1] }
  0xb9   : > { %v2582_v60 = vsel %vm6940_vm7, %v2577_v43, %v2581_v8  ;;  %v2587_v3 = vrot.slane %v2586_v45, 4  ;;  %v2600_v19 = vor.u32 %v2599_v55, %v2596_v28  ;;  %v5759_v25 = vcombine.low %v7675_v62, %v7678_v21 }
  0xba   : > { %v2605_v40 = vrot.slane %v2603_v22, 5  ;;  %6402 = vmatmul.mubr.msk.bf16.gmra.mrb[68].mxu0 %vm355_vm2, %v5788_v61  ;;  %v2615_v35 = vrot.slane %v2613_v12, 5  ;;  %v2642_v59 = vshrl.u32 %v7675_v62, 16  ;;  %v2645_v53 = vshll.u32 %v7675_v62, 16  ;;  %v7697_v12 = vld [vmem:[%s6739_s10 + $0xc8] sm:$0x1] }
  0xbb   : > { %v2655_v8 = vshrl.u32 %v7678_v21, 16  ;;  %v2592_v54 = vsel %vm6940_vm7, %v2587_v3, %v2591_v13  ;;  %v2601_v43 = vrot.slane %v2600_v19, 4  ;;  %v2620_v45 = vrot.slane %v2618_v5, 4 }
  0xbc   : > { %v2610_v28 = vor.u32 %v2609_v56, %v2605_v40  ;;  %v5789_v55 = vcombine.low %v2582_v60, %v2592_v54  ;;  %v2623_v22 = vrot.slane %v2621_v16, 5  ;;  %v2627_v24 = vshll.u32 %v7656_v42, 16 }
  0xbd   : > { %v2633_v61 = vrot.slane %v2631_v63, 4  ;;  %v2606_v62 = vsel %vm6940_vm7, %v2601_v43, %v2605_v40  ;;  %v2637_v37 = vshll.u32 %v7691_v11, 16  ;;  %v2644_v27 = vrot.slane %v2642_v59, 4 }
  0xbe   : > { %v2611_v39 = vrot.slane %v2610_v28, 4  ;;  %6405 = vmatprep.mubr.msk.bf16.mxu0 %vm355_vm2, %v5789_v55  ;;  %v2624_v13 = vor.u32 %v2623_v22, %v2620_v45  ;;  %v2629_v3 = vrot.slane %v2627_v24, 5  ;;  %v2647_v56 = vrot.slane %v2645_v53, 5  ;;  %v5939_v24 = vld [vmem:[%s9104_s1 + $0xe] sm:$0x3]  ;;  %v9204_v22 = vld [vmem:[#allocation3_spill] sm:$0xff] }
  0xbf   : > { %v2651_v5 = vshll.u32 %v7678_v21, 16  ;;  %6376 = vmatmul.mubr.msk.bf16.gmra.mrb[76].mxu1 %vm355_vm2, %v5759_v25  ;;  %v2639_v63 = vrot.slane %v2637_v37, 5  ;;  %v2657_v60 = vrot.slane %v2655_v8, 4  ;;  %v2661_v19 = vshll.u32 %v7697_v12, 16 }
  0xc0   : > { %v2616_v16 = vsel %vm6940_vm7, %v2611_v39, %v2615_v35  ;;  %v2625_v54 = vrot.slane %v2624_v13, 4  ;;  %v2634_v43 = vor.u32 %v2633_v61, %v2629_v3  ;;  %v2648_v59 = vor.u32 %v2647_v56, %v2644_v27 }
  0xc1   : > { %v5790_v40 = vcombine.low %v2606_v62, %v2616_v16  ;;  %v2653_v53 = vrot.slane %v2651_v5, 5  ;;  %v2663_v28 = vrot.slane %v2661_v19, 5  ;;  %v5809_v39 = vrot.slane %v7344_v51, 9  ;;  %v7721_v51 = vld [vmem:[%s6739_s10 + $0x18] sm:$0xf] }
  0xc2   : > { %v3041_v25 = vrot.slane %v7351_v26, 5  ;;  %v2630_v37 = vsel %vm6940_vm7, %v2625_v54, %v2629_v3  ;;  %v2635_v62 = vrot.slane %v2634_v43, 4  ;;  %v2649_v35 = vrot.slane %v2648_v59, 4  ;;  %v7724_v26 = vld [vmem:[%s6739_s10 + $0x1c] sm:$0xf] }
  0xc3   : > { %6406 = vmatmul.mubr.msk.bf16.gmra.mrb[72].mxu0 %vm355_vm2, %v5790_v40  ;;  %v3044_v27 = vrot.slane %v7379_v15, 5  ;;  %v2658_v8 = vor.u32 %v2657_v60, %v2653_v53  ;;  %v4434_v61 = vand.u32 %v5939_v24, %v9204_v22  ;;  %v5810_v15 = vrot.slane %v7360_v32, 9  ;;  %v7740_v59 = vld [vmem:[%s6739_s10 + $0x24] sm:$0xf]  ;;  %v7743_v32 = vld [vmem:[%s6739_s10 + $0x28] sm:$0xf] }
  0xc4   : > { %v3042_v45 = vsel %vm6963_vm8, %v5809_v39, %v3041_v25  ;;  %v3043_v55 = vrot.slane %v3041_v25, 4  ;;  %v2640_v13 = vsel %vm6940_vm7, %v2635_v62, %v2639_v63  ;;  %v2654_v3 = vsel %vm6940_vm7, %v2649_v35, %v2653_v53 }
  0xc5   : > { %v3048_v56 = vrot.slane %v7367_v46, 5  ;;  %v5791_v5 = vcombine.low %v2630_v37, %v2640_v13  ;;  %v2659_v16 = vrot.slane %v2658_v8, 4  ;;  %6481 = vmatprep.subr.bf16.mxu1 %v4434_v61  ;;  %v3051_v19 = vrot.slane %v7399_v44, 5  ;;  %v7767_v13 = vld [vmem:[%s6739_s10 + $0x34] sm:$0xf] }
  0xc6   : > { %v3045_v60 = vsel %vm6963_vm8, %v3043_v55, %v3044_v27  ;;  %v5907_v43 = vcombine.low %v7721_v51, %v7724_v26  ;;  %v3952_v44 = vshrl.u32 %v7721_v51, 16  ;;  %v3955_v24 = vshll.u32 %v7721_v51, 16  ;;  %v7764_v55 = vld [vmem:[%s6739_s10 + $0x30] sm:$0xf] }
  0xc7   : > { %v5826_v40 = vcombine.low %v3042_v45, %v3045_v60  ;;  %v3049_v54 = vsel %vm6963_vm8, %v5810_v15, %v3048_v56  ;;  %v3050_v63 = vrot.slane %v3048_v56, 4  ;;  %6409 = vmatprep.mubr.msk.bf16.mxu0 %vm355_vm2, %v5791_v5  ;;  %v2664_v46 = vsel %vm6940_vm7, %v2659_v16, %v2663_v28  ;;  %v5988_v28 = vld [vmem:[%s9104_s1 + $0x10] sm:$0x3]  ;;  %v7775_v15 = vld [vmem:[%s6739_s10 + $0x3c] sm:$0xf] }
  0xc8   : > { %v3965_v53 = vshrl.u32 %v7724_v26, 16  ;;  %v5792_v39 = vcombine.low %v2654_v3, %v2664_v46  ;;  %v5811_v37 = vrot.slane %v7382_v9, 9  ;;  %v3055_v62 = vrot.slane %v7389_v29, 5 }
  0xc9   : > { %6415 = vmatprep.mubr.msk.bf16.mxu1 %vm355_vm2, %v5826_v40  ;;  %v3052_v25 = vsel %vm6963_vm8, %v3050_v63, %v3051_v19  ;;  %v3058_v27 = vrot.slane %v7417_v10, 5  ;;  %v5908_v8 = vcombine.low %v7740_v59, %v7743_v32  ;;  %v3976_v45 = vshrl.u32 %v7740_v59, 16  ;;  %v7784_v19 = vld [vmem:[%s6739_s10 + $0x40] sm:$0xf] }
  0xca   : > { %v5827_v35 = vcombine.low %v3049_v54, %v3052_v25  ;;  %v3056_v9 = vsel %vm6963_vm8, %v5811_v37, %v3055_v62  ;;  %v3057_v29 = vrot.slane %v3055_v62, 4  ;;  %v3979_v3 = vshll.u32 %v7740_v59, 16  ;;  %v7804_v62 = vld [vmem:[%s6739_s10 + $0x4c] sm:$0xf]  ;;  %v8013_v10 = vld [vmem:[%s6739_s10 + $0xc0] sm:$0xf] }
  0xcb   : > { %6410 = vmatmul.mubr.msk.bf16.gmra.mrb[76].mxu0 %vm355_vm2, %v5792_v39  ;;  %v5812_v56 = vrot.slane %v7405_v0, 9  ;;  %v3062_v5 = vrot.slane %v7409_v7, 5  ;;  %v3065_v16 = vrot.slane %v7441_v58, 5  ;;  %v4920_v60 = vand.u32 %v5988_v28, %v9204_v22  ;;  %v9215_v0 = vld [vmem:[#allocation13_spill] sm:$0xff]  ;;  %v8025_v22 = vld [vmem:[%s6739_s10 + $0xc4] sm:$0xf] }
  0xcc   : > { %6416 = vmatmul.mubr.msk.bf16.vlgmr.msra.gmra.mrb[80].mxu1 %vm355_vm2, %v5827_v35  ;;  %6449 = vmatprep.mubr.msk.bf16.mxu0 %vm355_vm2, %v5907_v43  ;;  %v3059_v40 = vsel %vm6963_vm8, %v3057_v29, %v3058_v27  ;;  %v5909_v54 = vcombine.low %v7764_v55, %v7767_v13  ;;  %v5813_v46 = vrot.slane %v7423_v52, 9  ;;  %v3069_v39 = vrot.slane %v7430_v34, 5  ;;  %v7942_v27 = vld [vmem:[%s6739_s10 + $0xa0] sm:$0xf]  ;;  %v7989_v35 = vld [vmem:[%s6739_s10 + $0xb4] sm:$0xf] }
  0xcd   : > { %6482 = vmatpush3.bf16.msra.mxu1 %v4434_v61  ;;  %v5828_v43 = vcombine.low %v3056_v9, %v3059_v40  ;;  %v3063_v7 = vsel %vm6963_vm8, %v5812_v56, %v3062_v5  ;;  %v3064_v58 = vrot.slane %v3062_v5, 4  ;;  %6515 = vmatprep.subr.bf16.mxu0 %v4920_v60  ;;  %v7796_v61 = vld [vmem:[%s6739_s10 + $0x48] sm:$0xf]  ;;  %v3072_v25 = vrot.slane %v7466_v50, 5  ;;  %v7816_v56 = vld [vmem:[%s6739_s10 + $0x54] sm:$0xf] }
  0xce   : > { %v5910_v37 = vcombine.low %v7775_v15, %v7784_v19  ;;  %v3070_v50 = vsel %vm6963_vm8, %v5813_v46, %v3069_v39  ;;  %v3071_v9 = vrot.slane %v3069_v39, 4  ;;  %v5814_v29 = vrot.slane %v7449_v57, 9  ;;  %v9208_v57 = vld [vmem:[#allocation9_spill] sm:$0xff] }
  0xcf   : > { %6419 = vmatprep.mubr.msk.bf16.mxu1 %vm355_vm2, %v5828_v43  ;;  %v3066_v28 = vsel %vm6963_vm8, %v3064_v58, %v3065_v16  ;;  %v3076_v5 = vrot.slane %v7452_v47, 5  ;;  %v3079_v16 = vrot.slane %v7491_v30, 5  ;;  %v5911_v40 = vcombine.low %v7796_v61, %v7804_v62  ;;  %v7824_v58 = vld [vmem:[%s6739_s10 + $0x58] sm:$0xf]  ;;  %v7837_v43 = vld [vmem:[%s6739_s10 + $0x60] sm:$0xf] }
  0xd0   : > { %v5829_v34 = vcombine.low %v3063_v7, %v3066_v28  ;;  %v3073_v7 = vsel %vm6963_vm8, %v3071_v9, %v3072_v25  ;;  %v5815_v46 = vrot.slane %v7471_v6, 9  ;;  %v3086_v25 = vrot.slane %v7513_v4, 5 }
  0xd1   : > { %v5830_v30 = vcombine.low %v3070_v50, %v3073_v7  ;;  %v3077_v39 = vsel %vm6963_vm8, %v5814_v29, %v3076_v5  ;;  %v3078_v28 = vrot.slane %v3076_v5, 4  ;;  %v5912_v6 = vcombine.low %v7816_v56, %v7824_v58  ;;  %v7846_v50 = vld [vmem:[%s6739_s10 + $0x64] sm:$0xf]  ;;  %v7855_v29 = vld [vmem:[%s6739_s10 + $0x6c] sm:$0xf] }
  0xd2   : > { %v5816_v7 = vrot.slane %v7498_v18, 9  ;;  %v5817_v4 = vrot.slane %v7519_v1, 9  ;;  %v7917_v1 = vld [vmem:[%s6739_s10 + $0x90] sm:$0xf]  ;;  %v3121_v52 = vrot.slane %v9208_v57, 5  ;;  %v5823_v63 = vrot.slane %v9215_v0, 9 }
  0xd3   : > { %6450 = vmatmul.mubr.msk.bf16.vlgmr.msra.gmra.mrb[80].mxu0 %vm355_vm2, %v5908_v8  ;;  %v3083_v8 = vrot.slane %v7479_v17, 5  ;;  %v3080_v17 = vsel %vm6963_vm8, %v3078_v28, %v3079_v16  ;;  %v3149_v0 = vrot.slane %v7697_v12, 5  ;;  %vm5449_vm10 = vcmask 125952  }
  0xd4   : > { %6420 = vmatmul.mubr.msk.bf16.gmra.mrb[84].mxu1 %vm355_vm2, %v5829_v34  ;;  %6516 = vmatpush3.bf16.msra.mxu0 %v4920_v60  ;;  %v5831_v5 = vcombine.low %v3077_v39, %v3080_v17  ;;  %v3090_v34 = vrot.slane %v7501_v48, 5  ;;  %v7861_v60 = vld [vmem:[%s6739_s10 + $0x70] sm:$0xf]  ;;  %v9206_v17 = vld [vmem:[#allocation4_spill] sm:$0xff] }
  0xd5   : > { %6453 = vmatprep.mubr.msk.bf16.mxu0 %vm355_vm2, %v5909_v54  ;;  %6423 = vmatprep.mubr.msk.bf16.mxu1 %vm355_vm2, %v5830_v30  ;;  %v3084_v54 = vsel %vm6963_vm8, %v5815_v46, %v3083_v8  ;;  %v3085_v9 = vrot.slane %v3083_v8, 4  ;;  %v3093_v30 = vrot.slane %v7535_v41, 5  ;;  %v5913_v46 = vcombine.low %v7837_v43, %v7846_v50  ;;  %v7873_v41 = vld [vmem:[%s6739_s10 + $0x78] sm:$0xf]  ;;  %v7881_v8 = vld [vmem:[%s6739_s10 + $0x7c] sm:$0xf] }
  0xd6   : > { %v3091_v18 = vsel %vm6963_vm8, %v5816_v7, %v3090_v34  ;;  %v3092_v48 = vrot.slane %v3090_v34, 4  ;;  %v5914_v28 = vcombine.low %v7855_v29, %v7861_v60  ;;  %v3107_v7 = vrot.slane %v7579_v2, 5 }
  0xd7   : > { %v3087_v16 = vsel %vm6963_vm8, %v3085_v9, %v3086_v25  ;;  %v3097_v25 = vrot.slane %v7524_v23, 5  ;;  %v3100_v9 = vrot.slane %v7558_v33, 5 }
  0xd8   : > { %v5832_v39 = vcombine.low %v3084_v54, %v3087_v16  ;;  %v3094_v34 = vsel %vm6963_vm8, %v3092_v48, %v3093_v30  ;;  %v7895_v30 = vld [vmem:[%s6739_s10 + $0x84] sm:$0xf]  ;;  %v3104_v48 = vrot.slane %v7544_v20, 5  ;;  %v5819_v20 = vrot.slane %v7564_v36, 9  ;;  %v9205_v54 = vld [vmem:[#allocation6_spill] sm:$0xff]  ;;  %v9207_v36 = vld [vmem:[#allocation5_spill] sm:$0xff] }
  0xd9   : > { %v5833_v23 = vcombine.low %v3091_v18, %v3094_v34  ;;  %v3098_v33 = vsel %vm6963_vm8, %v5817_v4, %v3097_v25  ;;  %v3099_v16 = vrot.slane %v3097_v25, 4  ;;  %v7904_v18 = vld [vmem:[%s6739_s10 + $0x88] sm:$0xf]  ;;  %v5820_v25 = vrot.slane %v9206_v17, 9  ;;  %v9212_v17 = vld [vmem:[#allocation10_spill] sm:$0xff] }
  0xda   : > { %v3106_v34 = vrot.slane %v3104_v48, 4  ;;  %v3118_v47 = vrot.slane %v9207_v36, 5  ;;  %v9209_v36 = vld [vmem:[#allocation7_spill] sm:$0xff] }
  0xdb   : > { %6454 = vmatmul.mubr.msk.bf16.gmra.mrb[84].mxu0 %vm355_vm2, %v5910_v37  ;;  %v5818_v37 = vrot.slane %v7541_v14, 9  ;;  %v3101_v14 = vsel %vm6963_vm8, %v3099_v16, %v3100_v9  ;;  %v3114_v9 = vrot.slane %v9205_v54, 5  ;;  %v5916_v16 = vcombine.low %v7895_v30, %v7904_v18  ;;  %v7935_v54 = vld [vmem:[%s6739_s10 + $0x9c] sm:$0xf] }
  0xdc   : > { %6424 = vmatmul.mubr.msk.bf16.gmra.mrb[88].mxu1 %vm355_vm2, %v5831_v5  ;;  %6457 = vmatprep.mubr.msk.bf16.mxu0 %vm355_vm2, %v5911_v40  ;;  %v5915_v5 = vcombine.low %v7873_v41, %v7881_v8  ;;  %v3111_v40 = vrot.slane %v7568_v49, 5 }
  0xdd   : > { %6427 = vmatprep.mubr.msk.bf16.mxu1 %vm355_vm2, %v5832_v39  ;;  %v5834_v39 = vcombine.low %v3098_v33, %v3101_v14  ;;  %v7913_v2 = vsel %vm6963_vm8, %v5818_v37, %v3104_v48  ;;  %v7925_v33 = vld [vmem:[%s6739_s10 + $0x94] sm:$0xf]  ;;  %v3108_v37 = vsel %vm6963_vm8, %v3106_v34, %v3107_v7  ;;  %v5822_v14 = vrot.slane %v9212_v17, 9 }
  0xde   : > { %v7931_v49 = vsel %vm6963_vm8, %v5819_v20, %v3111_v40  ;;  %v3113_v48 = vrot.slane %v3111_v40, 4  ;;  %v5835_v4 = vcombine.low %v7913_v2, %v3108_v37  ;;  %v5917_v40 = vcombine.low %v7917_v1, %v7925_v33  ;;  %v9211_v20 = vld [vmem:[#allocation12_spill] sm:$0xff] }
  0xdf   : > { %v3120_v2 = vrot.slane %v3118_v47, 4  ;;  %v5821_v37 = vrot.slane %v9209_v36, 9 }
  0xe0   : > { %v3115_v7 = vsel %vm6963_vm8, %v3113_v48, %v3114_v9  ;;  %v7963_v9 = vld [vmem:[%s6739_s10 + $0xa8] sm:$0xf] }
  0xe1   : > { %v5836_v57 = vcombine.low %v7931_v49, %v3115_v7  ;;  %v9210_v48 = vld [vmem:[#allocation8_spill] sm:$0xff]  ;;  %v9214_v7 = vld [vmem:[#allocation14_spill] sm:$0xff] }
  0xe2   : > { %v3135_v49 = vrot.slane %v9214_v7, 5 }
  0xe3   : > { %6458 = vmatmul.mubr.msk.bf16.gmra.mrb[88].mxu0 %vm355_vm2, %v5912_v6  ;;  %v7959_v6 = vsel %vm6963_vm8, %v5820_v25, %v3118_v47  ;;  %v7972_v25 = vld [vmem:[%s6739_s10 + $0xac] sm:$0xf]  ;;  %v7976_v47 = vsel %vm6963_vm8, %v3120_v2, %v3121_v52  ;;  %v9213_v52 = vld [vmem:[#allocation11_spill] sm:$0xff] }
  0xe4   : > { %6428 = vmatmul.mubr.msk.bf16.gmra.mrb[92].mxu1 %vm355_vm2, %v5833_v23  ;;  %6461 = vmatprep.mubr.msk.bf16.mxu0 %vm355_vm2, %v5913_v46  ;;  %v3125_v23 = vrot.slane %v9210_v48, 5  ;;  %v3128_v46 = vrot.slane %v9211_v20, 5  ;;  %v5837_v48 = vcombine.low %v7959_v6, %v7976_v47  ;;  %v3132_v2 = vrot.slane %v9213_v52, 5 }
  0xe5   : > { %6431 = vmatprep.mubr.msk.bf16.mxu1 %vm355_vm2, %v5834_v39  ;;  %v7996_v39 = vld [vmem:[%s6739_s10 + $0xb8] sm:$0xf] }
  0xe6   : > { %v7985_v20 = vsel %vm6963_vm8, %v5821_v37, %v3125_v23  ;;  %v3127_v34 = vrot.slane %v3125_v23, 4  ;;  %v8009_v52 = vsel %vm6963_vm8, %v5822_v14, %v3132_v2  ;;  %v3134_v36 = vrot.slane %v3132_v2, 4 }
  0xe7   : > { %v3957_v23 = vrot.slane %v3955_v24, 5  ;;  %v3978_v24 = vrot.slane %v3976_v45, 4 }
  0xe8   : > { %v8000_v37 = vsel %vm6963_vm8, %v3127_v34, %v3128_v46  ;;  %v3139_v34 = vrot.slane %v7656_v42, 5  ;;  %v3142_v46 = vrot.slane %v7691_v11, 5  ;;  %v8034_v42 = vsel %vm6963_vm8, %v3134_v36, %v3135_v49  ;;  %v8048_v36 = vld [vmem:[%s6739_s10 + $0xcc] sm:$0xf]  ;;  %v8051_v11 = vld [vmem:[%s6739_s10 + $0xd0] sm:$0xf] }
  0xe9   : > { %v5838_v7 = vcombine.low %v7985_v20, %v8000_v37  ;;  %v3146_v49 = vrot.slane %v7678_v21, 5 }
  0xea   : > { %v8044_v2 = vsel %vm6963_vm8, %v5823_v63, %v3139_v34 }
  0xeb   : > { %6462 = vmatmul.mubr.msk.bf16.gmra.mrb[92].mxu0 %vm355_vm2, %v5914_v28  ;;  %v9216_v28 = vld [vmem:[#allocation15_spill] sm:$0xff]  ;;  %v6263_v14 = vpop.f32.mrb[0].mxu1 }
  0xec   : > { %6432 = vmatmul.mubr.msk.bf16.gmra.mrb[96].mxu1 %vm355_vm2, %v5835_v4  ;;  %6465 = vmatprep.mubr.msk.bf16.mxu0 %vm355_vm2, %v5915_v5  ;;  %v5824_v17 = vrot.slane %v9216_v28, 9  ;;  %v3141_v5 = vrot.slane %v3139_v34, 4  ;;  %v3148_v34 = vrot.slane %v3146_v49, 4  ;;  %v8068_v4 = vld [vmem:[%s6739_s10 + $0x20] sm:$0x1]  ;;  %591 = vst.msk [vmem:[#allocation2 + $0x90] sm:$0xff] %vm572_vm9, %v6263_v14 }
  0xed   : > { %6435 = vmatprep.mubr.msk.bf16.mxu1 %vm355_vm2, %v5836_v57  ;;  %v509_v28 = vpop.f32.mrb[1].mxu1  ;;  %v3954_v57 = vrot.slane %v3952_v44, 4  ;;  %v3985_v14 = vshll.u32 %v7743_v32, 16 }
  0xee   : > { %v8060_v63 = vsel %vm6963_vm8, %v3141_v5, %v3142_v46  ;;  %v8064_v21 = vsel %vm6963_vm8, %v5824_v17, %v3146_v49  ;;  %589 = vst.msk [vmem:[#allocation2 + $0x80] sm:$0xff] %vm572_vm9, %v509_v28  ;;  %v6264_v49 = vpop.f32.mrb[2].mxu1  ;;  %v8080_v12 = vsel %vm6963_vm8, %v3148_v34, %v3149_v0  ;;  %v8088_v46 = vld [vmem:[%s6739_s10 + $0x2c] sm:$0x1]  ;;  %v3961_v5 = vshll.u32 %v7724_v26, 16 }
  0xef   : > { %592 = vst.msk [vmem:[#allocation2 + $0x98] sm:$0xff] %vm572_vm9, %v6264_v49  ;;  %v512_v17 = vpop.f32.mrb[3].mxu1  ;;  %v3967_v0 = vrot.slane %v3965_v53, 4  ;;  %v3971_v34 = vshll.u32 %v8068_v4, 16  ;;  %v3958_v44 = vor.u32 %v3957_v23, %v3954_v57  ;;  %v3981_v49 = vrot.slane %v3979_v3, 5 }
  0xf0   : > { %590 = vst.msk [vmem:[#allocation2 + $0x88] sm:$0xff] %vm572_vm9, %v512_v17  ;;  %v3963_v53 = vrot.slane %v3961_v5, 5  ;;  %v9217_v23 = vshrl.u32 %v7743_v32, 16  ;;  %v3995_v57 = vshll.u32 %v8088_v46, 16  ;;  %v6247_v3 = vpop.f32.mrb[0].mxu0  ;;  %v5972_v17 = vrot.slane %v7721_v51, 9 }
  0xf1   : > { %v3959_v6 = vrot.slane %v3958_v44, 4  ;;  %v3982_v47 = vor.u32 %v3981_v49, %v3978_v24  ;;  %575 = vst.msk [vmem:[#allocation2 + $0x10] sm:$0xff] %vm572_vm9, %v6247_v3  ;;  %v4714_v28 = vrot.slane %v8068_v4, 5  ;;  %v9218_v51 = vshrl.u32 %v7764_v55, 16 }
  0xf2   : > { %v3991_v45 = vrot.slane %v9217_v23, 4  ;;  %v3968_v5 = vor.u32 %v3967_v0, %v3963_v53  ;;  %v4711_v23 = vrot.slane %v7724_v26, 5 }
  0xf3   : > { %6466 = vmatmul.mubr.msk.bf16.gmra.mrb[96].mxu0 %vm355_vm2, %v5916_v16  ;;  %v3973_v16 = vrot.slane %v3971_v34, 5  ;;  %v3997_v34 = vrot.slane %v3995_v57, 5  ;;  %v3964_v37 = vsel %vm6940_vm7, %v3959_v6, %v3963_v53  ;;  %v4002_v24 = vrot.slane %v9218_v51, 4 }
  0xf4   : > { %6436 = vmatmul.mubr.msk.bf16.gmra.mrb[100].mxu1 %vm355_vm2, %v5837_v48  ;;  %6469 = vmatprep.mubr.msk.bf16.mxu0 %vm355_vm2, %v5917_v40  ;;  %v3987_v48 = vrot.slane %v3985_v14, 5  ;;  %v445_v40 = vpop.f32.mrb[1].mxu0  ;;  %v8130_v14 = vld [vmem:[%s6739_s10 + $0x38] sm:$0x1]  ;;  %v3969_v49 = vrot.slane %v3968_v5, 4  ;;  %v8137_v26 = vsel %vm6963_vm8, %v5972_v17, %v4711_v23  ;;  %v4713_v4 = vrot.slane %v4711_v23, 4 }
  0xf5   : > { %6439 = vmatprep.mubr.msk.bf16.mxu1 %vm355_vm2, %v5838_v7  ;;  %573 = vst.msk [vmem:[#allocation2] sm:$0xff] %vm572_vm9, %v445_v40  ;;  %v6248_v20 = vpop.f32.mrb[2].mxu0  ;;  %v3983_v7 = vrot.slane %v3982_v47, 4  ;;  %v9219_v57 = vshll.u32 %v7764_v55, 16  ;;  %v4009_v6 = vshll.u32 %v7767_v13, 16  ;;  %v9220_v47 = vshrl.u32 %v7767_v13, 16 }
  0xf6   : > { %v3992_v44 = vor.u32 %v3991_v45, %v3987_v48  ;;  %576 = vst.msk [vmem:[#allocation2 + $0x18] sm:$0xff] %vm572_vm9, %v6248_v20  ;;  %v448_v0 = vpop.f32.mrb[3].mxu0  ;;  %v3974_v5 = vsel %vm6940_vm7, %v3969_v49, %v3973_v16  ;;  %v8151_v17 = vsel %vm6963_vm8, %v4713_v4, %v4714_v28  ;;  %v4019_v20 = vshll.u32 %v8130_v14, 16 }
  0xf7   : > { %v4005_v3 = vrot.slane %v9219_v57, 5  ;;  %574 = vst.msk [vmem:[#allocation2 + $0x8] sm:$0xff] %vm572_vm9, %v448_v0  ;;  %v3988_v53 = vsel %vm6940_vm7, %v3983_v7, %v3987_v48  ;;  %v4015_v40 = vrot.slane %v9220_v47, 4  ;;  %v9221_v48 = vcombine.low %v7935_v54, %v7942_v27  ;;  %v6267_v7 = vpop.f32.mrb[4].mxu1 }
  0xf8   : > { %v3993_v45 = vrot.slane %v3992_v44, 4  ;;  %v8158_v44 = vcombine.low %v3964_v37, %v3974_v5  ;;  %v5989_v16 = vcombine.low %v8137_v26, %v8151_v17  ;;  %v4011_v28 = vrot.slane %v4009_v6, 5  ;;  %595 = vst.msk [vmem:[#allocation2 + $0xb0] sm:$0xff] %vm572_vm9, %v6267_v7  ;;  %v525_v37 = vpop.f32.mrb[5].mxu1 }
  0xf9   : > { %v4006_v23 = vor.u32 %v4005_v3, %v4002_v24  ;;  %v9222_v24 = vcombine.low %v8009_v52, %v8034_v42  ;;  %v9223_v0 = vcombine.low %v7963_v9, %v7972_v25  ;;  %v4021_v4 = vrot.slane %v4019_v20, 5  ;;  %v8177_v3 = vld [vmem:[%s6739_s10 + $0x44] sm:$0x1]  ;;  %593 = vst.msk [vmem:[#allocation2 + $0xa0] sm:$0xff] %vm572_vm9, %v525_v37  ;;  %v6268_v42 = vpop.f32.mrb[6].mxu1 }
  0xfa   : > { %v3998_v51 = vsel %vm6940_vm7, %v3993_v45, %v3997_v34  ;;  %v5973_v57 = vrot.slane %v7740_v59, 9  ;;  %v9224_v52 = vcombine.low %v8044_v2, %v8060_v63  ;;  %v4016_v45 = vor.u32 %v4015_v40, %v4011_v28  ;;  %596 = vst.msk [vmem:[#allocation2 + $0xb8] sm:$0xff] %vm572_vm9, %v6268_v42  ;;  %v528_v59 = vpop.f32.mrb[7].mxu1 }
  0xfb   : > { %6470 = vmatmul.mubr.msk.bf16.gmra.mrb[100].mxu0 %vm355_vm2, %v9221_v48  ;;  %v8173_v49 = vcombine.low %v3988_v53, %v3998_v51  ;;  %v4007_v34 = vrot.slane %v4006_v23, 4  ;;  %v4718_v6 = vrot.slane %v7743_v32, 5  ;;  %v4721_v53 = vrot.slane %v8088_v46, 5  ;;  %v6251_v23 = vpop.f32.mrb[4].mxu0  ;;  %594 = vst.msk [vmem:[#allocation2 + $0xa8] sm:$0xff] %vm572_vm9, %v528_v59 }
  0xfc   : > { %6440 = vmatmul.mubr.msk.bf16.gmra.mrb[104].mxu1 %vm355_vm2, %v9222_v24  ;;  %6473 = vmatprep.mubr.msk.bf16.mxu0 %vm355_vm2, %v9223_v0  ;;  %v9225_v47 = vshrl.u32 %v7775_v15, 16  ;;  %v9226_v63 = vshll.u32 %v7775_v15, 16  ;;  %v4033_v48 = vshll.u32 %v7784_v19, 16  ;;  %v9227_v40 = vshrl.u32 %v7784_v19, 16  ;;  %579 = vst.msk [vmem:[#allocation2 + $0x30] sm:$0xff] %vm572_vm9, %v6251_v23  ;;  %v461_v46 = vpop.f32.mrb[5].mxu0 }
  0xfd   : > { %6443 = vmatprep.mubr.msk.bf16.mxu1 %vm355_vm2, %v9224_v52  ;;  %v4012_v2 = vsel %vm6940_vm7, %v4007_v34, %v4011_v28  ;;  %v4017_v7 = vrot.slane %v4016_v45, 4  ;;  %v8200_v51 = vsel %vm6963_vm8, %v5973_v57, %v4718_v6  ;;  %v4720_v24 = vrot.slane %v4718_v6, 4  ;;  %577 = vst.msk [vmem:[#allocation2 + $0x20] sm:$0xff] %vm572_vm9, %v461_v46  ;;  %v6252_v0 = vpop.f32.mrb[6].mxu0 }
  0xfe   : > { %v4026_v5 = vrot.slane %v9225_v47, 4  ;;  %v4029_v20 = vrot.slane %v9226_v63, 5  ;;  %v4039_v32 = vrot.slane %v9227_v40, 4  ;;  %v4043_v28 = vshll.u32 %v8177_v3, 16  ;;  %580 = vst.msk [vmem:[#allocation2 + $0x38] sm:$0xff] %vm572_vm9, %v6252_v0  ;;  %v464_v45 = vpop.f32.mrb[7].mxu0 }
  0xff   : > { %v4035_v34 = vrot.slane %v4033_v48, 5  ;;  %v5974_v52 = vrot.slane %v7764_v55, 9  ;;  %v4725_v42 = vrot.slane %v7767_v13, 5  ;;  %v4022_v57 = vsel %vm6940_vm7, %v4017_v7, %v4021_v4  ;;  %578 = vst.msk [vmem:[#allocation2 + $0x28] sm:$0xff] %vm572_vm9, %v464_v45  ;;  %v8220_v63 = vld [vmem:[%s6739_s10 + $0x50] sm:$0x1] }
 0x100   : > { %v4030_v37 = vor.u32 %v4029_v20, %v4026_v5  ;;  %v8211_v6 = vsel %vm6963_vm8, %v4720_v24, %v4721_v53  ;;  %v4045_v47 = vrot.slane %v4043_v28, 5  ;;  %v4728_v59 = vrot.slane %v8130_v14, 5  ;;  %v6271_v53 = vpop.f32.mrb[8].mxu1 }
 0x101   : > { %v8215_v5 = vcombine.low %v4012_v2, %v4022_v57  ;;  %v5990_v55 = vcombine.low %v8200_v51, %v8211_v6  ;;  %v4040_v23 = vor.u32 %v4039_v32, %v4035_v34  ;;  %v9228_v4 = vcombine.low %v7989_v35, %v7996_v39  ;;  %599 = vst.msk [vmem:[#allocation2 + $0xd0] sm:$0xff] %vm572_vm9, %v6271_v53  ;;  %v541_v24 = vpop.f32.mrb[9].mxu1 }
 0x102   : > { %v4031_v13 = vrot.slane %v4030_v37, 4  ;;  %v8228_v14 = vsel %vm6963_vm8, %v5974_v52, %v4725_v42  ;;  %v4727_v20 = vrot.slane %v4725_v42, 4  ;;  %v9229_v2 = vshrl.u32 %v7796_v61, 16  ;;  %597 = vst.msk [vmem:[#allocation2 + $0xc0] sm:$0xff] %vm572_vm9, %v541_v24 }
 0x103   : > { %6474 = vmatmul.mubr.msk.bf16.gmra.mrb[104].mxu0 %vm355_vm2, %v9228_v4  ;;  %v9230_v40 = vshll.u32 %v7796_v61, 16  ;;  %v9231_v32 = vcombine.low %v8064_v21, %v8080_v12  ;;  %v9232_v7 = vcombine.low %v8013_v10, %v8025_v22  ;;  %v4041_v0 = vrot.slane %v4040_v23, 4  ;;  %v6272_v21 = vpop.f32.mrb[10].mxu1 }
 0x104   : > { %v4050_v48 = vrot.slane %v9229_v2, 4  ;;  %v4036_v28 = vsel %vm6940_vm7, %v4031_v13, %v4035_v34  ;;  %v4057_v37 = vshll.u32 %v7804_v62, 16  ;;  %v9233_v52 = vshrl.u32 %v7804_v62, 16  ;;  %600 = vst.msk [vmem:[#allocation2 + $0xd8] sm:$0xff] %vm572_vm9, %v6272_v21  ;;  %v544_v13 = vpop.f32.mrb[11].mxu1 }
 0x105   : > { %v4053_v46 = vrot.slane %v9230_v40, 5  ;;  %6444 = vmatmul.mubr.msk.bf16.gmra.mrb[108].mxu1 %vm355_vm2, %v9231_v32  ;;  %6477 = vmatprep.mubr.msk.bf16.mxu0 %vm355_vm2, %v9232_v7  ;;  %v8253_v12 = vsel %vm6963_vm8, %v4727_v20, %v4728_v59  ;;  %v4067_v57 = vshll.u32 %v8220_v63, 16  ;;  %v5975_v34 = vrot.slane %v7775_v15, 9  ;;  %598 = vst.msk [vmem:[#allocation2 + $0xc8] sm:$0xff] %vm572_vm9, %v544_v13 }
 0x106   : > { %v4063_v42 = vrot.slane %v9233_v52, 4  ;;  %6483 = vmatprep.mubr.msk.bf16.mxu1 %vm355_vm2, %v8158_v44  ;;  %v4046_v23 = vsel %vm6940_vm7, %v4041_v0, %v4045_v47  ;;  %v6255_v44 = vpop.f32.mrb[8].mxu0  ;;  %v5991_v4 = vcombine.low %v8228_v14, %v8253_v12  ;;  %v4059_v53 = vrot.slane %v4057_v37, 5 }
 0x107   : > { %v4054_v45 = vor.u32 %v4053_v46, %v4050_v48  ;;  %v4732_v59 = vrot.slane %v7784_v19, 5  ;;  %v8264_v20 = vcombine.low %v4036_v28, %v4046_v23  ;;  %583 = vst.msk [vmem:[#allocation2 + $0x50] sm:$0xff] %vm572_vm9, %v6255_v44  ;;  %v477_v15 = vpop.f32.mrb[9].mxu0  ;;  %v4069_v48 = vrot.slane %v4067_v57, 5  ;;  %v8269_v46 = vld [vmem:[%s6739_s10 + $0x5c] sm:$0x1] }
 0x108   : > { %v4735_v40 = vrot.slane %v8177_v3, 5  ;;  %581 = vst.msk [vmem:[#allocation2 + $0x40] sm:$0xff] %vm572_vm9, %v477_v15  ;;  %v6256_v47 = vpop.f32.mrb[10].mxu0  ;;  %v4064_v32 = vor.u32 %v4063_v42, %v4059_v53  ;;  %v9234_v24 = vshrl.u32 %v7816_v56, 16  ;;  %v9235_v37 = vshll.u32 %v7816_v56, 16 }
 0x109   : > { %v4055_v2 = vrot.slane %v4054_v45, 4  ;;  %v8274_v19 = vsel %vm6963_vm8, %v5975_v34, %v4732_v59  ;;  %v4734_v7 = vrot.slane %v4732_v59, 4  ;;  %584 = vst.msk [vmem:[#allocation2 + $0x58] sm:$0xff] %vm572_vm9, %v6256_v47  ;;  %v480_v0 = vpop.f32.mrb[11].mxu0  ;;  %v4081_v21 = vshll.u32 %v7824_v58, 16 }
 0x10a   : > { %v4074_v28 = vrot.slane %v9234_v24, 4  ;;  %v4077_v52 = vrot.slane %v9235_v37, 5  ;;  %v9236_v42 = vshrl.u32 %v7824_v58, 16  ;;  %582 = vst.msk [vmem:[#allocation2 + $0x48] sm:$0xff] %vm572_vm9, %v480_v0  ;;  %v4065_v57 = vrot.slane %v4064_v32, 4  ;;  %v6259_v0 = vpop.f32.mrb[12].mxu0 }
 0x10b   : > { %v4060_v3 = vsel %vm6940_vm7, %v4055_v2, %v4059_v53  ;;  %v8289_v34 = vsel %vm6963_vm8, %v4734_v7, %v4735_v40  ;;  %v4091_v13 = vshll.u32 %v8269_v46, 16  ;;  %v5976_v23 = vrot.slane %v7796_v61, 9  ;;  %v6275_v53 = vpop.f32.mrb[12].mxu1  ;;  %v8311_v24 = vld [vmem:[%s6739_s10 + $0x68] sm:$0x1]  ;;  %587 = vst.msk [vmem:[#allocation2 + $0x70] sm:$0xff] %vm572_vm9, %v6259_v0 }
 0x10c   : > { %v4087_v45 = vrot.slane %v9236_v42, 4  ;;  %v9237_v44 = vcombine.low %v8048_v36, %v8051_v11  ;;  %v5992_v59 = vcombine.low %v8274_v19, %v8289_v34  ;;  %v4078_v15 = vor.u32 %v4077_v52, %v4074_v28  ;;  %603 = vst.msk [vmem:[#allocation2 + $0xf0] sm:$0xff] %vm572_vm9, %v6275_v53  ;;  %v557_v61 = vpop.f32.mrb[13].mxu1  ;;  %v1256_v0 = vld [vmem:[#allocation2 + $0x10] sm:$0xff] }
 0x10d   : > { %v4083_v2 = vrot.slane %v4081_v21, 5  ;;  %v4739_v47 = vrot.slane %v7804_v62, 5  ;;  %6484 = vmatmul.mubr.msk.bf16.vlgmr.msra.gmra.mrb[112].mxu1 %vm355_vm2, %v8173_v49  ;;  %v4070_v40 = vsel %vm6940_vm7, %v4065_v57, %v4069_v48  ;;  %v4093_v32 = vrot.slane %v4091_v13, 5  ;;  %601 = vst.msk [vmem:[#allocation2 + $0xe0] sm:$0xff] %vm572_vm9, %v557_v61  ;;  %v6276_v26 = vpop.f32.mrb[14].mxu1  ;;  %v493_v13 = vpop.f32.mrb[13].mxu0 }
 0x10e   : > { %6478 = vmatmul.mubr.msk.bf16.gmra.mrb[108].mxu0 %vm355_vm2, %v9237_v44  ;;  %v4742_v7 = vrot.slane %v8220_v63, 5  ;;  %v9238_v62 = vshrl.u32 %v7837_v43, 16  ;;  %6487 = vmatprep.mubr.msk.bf16.mxu1 %vm355_vm2, %v8215_v5  ;;  %v5944_v17 = vcombine.low %v4060_v3, %v4070_v40  ;;  %604 = vst.msk [vmem:[#allocation2 + $0xf8] sm:$0xff] %vm572_vm9, %v6276_v26  ;;  %v560_v63 = vpop.f32.mrb[15].mxu1  ;;  %v9239_v52 = vshll.u32 %v7837_v43, 16  ;;  %585 = vst.msk [vmem:[#allocation2 + $0x60] sm:$0xff] %vm572_vm9, %v493_v13 }
 0x10f   : > { %6517 = vmatprep.mubr.msk.bf16.mxu0 %vm355_vm2, %v5989_v16  ;;  %v4079_v16 = vrot.slane %v4078_v15, 4  ;;  %v4088_v49 = vor.u32 %v4087_v45, %v4083_v2  ;;  %v8320_v48 = vsel %vm6963_vm8, %v5976_v23, %v4739_v47  ;;  %v4741_v37 = vrot.slane %v4739_v47, 4  ;;  %602 = vst.msk [vmem:[#allocation2 + $0xe8] sm:$0xff] %vm572_vm9, %v560_v63  ;;  %v6260_v53 = vpop.f32.mrb[14].mxu0  ;;  %v6281_v63 = vpop.f32.mrb[16].mxu1 }
 0x110   : > { %v4098_v28 = vrot.slane %v9238_v62, 4  ;;  %v4101_v21 = vrot.slane %v9239_v52, 5  ;;  %v4105_v5 = vshll.u32 %v7846_v50, 16  ;;  %v9240_v42 = vshrl.u32 %v7846_v50, 16  ;;  %588 = vst.msk [vmem:[#allocation2 + $0x78] sm:$0xff] %vm572_vm9, %v6260_v53  ;;  %v496_v62 = vpop.f32.mrb[15].mxu0 }
 0x111   : > { %v4084_v3 = vsel %vm6940_vm7, %v4079_v16, %v4083_v2  ;;  %v4089_v45 = vrot.slane %v4088_v49, 4  ;;  %v4115_v23 = vshll.u32 %v8311_v24, 16  ;;  %v5977_v44 = vrot.slane %v7816_v56, 9  ;;  %586 = vst.msk [vmem:[#allocation2 + $0x68] sm:$0xff] %vm572_vm9, %v496_v62  ;;  %v1127_v6 = vpop.f32.mrb[17].mxu1  ;;  %v6315_v62 = vpop.f32.mrb[16].mxu0 }
 0x112   : > { %v4111_v57 = vrot.slane %v9240_v42, 4  ;;  %v8337_v15 = vsel %vm6963_vm8, %v4741_v37, %v4742_v7  ;;  %v4102_v47 = vor.u32 %v4101_v21, %v4098_v28  ;;  %v4107_v61 = vrot.slane %v4105_v5, 5 }
 0x113   : > { %v4746_v2 = vrot.slane %v7824_v58, 5  ;;  %v4094_v40 = vsel %vm6940_vm7, %v4089_v45, %v4093_v32  ;;  %v5993_v56 = vcombine.low %v8320_v48, %v8337_v15  ;;  %v4117_v26 = vrot.slane %v4115_v23, 5  ;;  %v8354_v32 = vld [vmem:[%s6739_s10 + $0x74] sm:$0x1] }
 0x114   : > { %v4749_v16 = vrot.slane %v8269_v46, 5  ;;  %v8346_v49 = vcombine.low %v4084_v3, %v4094_v40  ;;  %v4103_v7 = vrot.slane %v4102_v47, 4  ;;  %v4112_v28 = vor.u32 %v4111_v57, %v4107_v61 }
 0x115   : > { %v8351_v58 = vsel %vm6963_vm8, %v5977_v44, %v4746_v2  ;;  %v4748_v46 = vrot.slane %v4746_v2, 4  ;;  %v9241_v37 = vshrl.u32 %v7855_v29, 16  ;;  %v9242_v21 = vshll.u32 %v7855_v29, 16  ;;  %6488 = vmatmul.mubr.msk.bf16.gmra.mrb[116].mxu1 %vm355_vm2, %v8264_v20  ;;  %v6282_v44 = vpop.f32.mrb[18].mxu1  ;;  %v1257_v20 = vld [vmem:[#allocation2 + $0x18] sm:$0xff] }
 0x116   : > { %6518 = vmatmul.mubr.msk.bf16.vlgmr.msra.gmra.mrb[112].mxu0 %vm355_vm2, %v5990_v55  ;;  %v4129_v42 = vshll.u32 %v7861_v60, 16  ;;  %v1288_v51 = vadd.f32 %v6281_v63, %v1256_v0  ;;  %v1254_v55 = vld [vmem:[#allocation2] sm:$0xff]  ;;  %v4108_v57 = vsel %vm6940_vm7, %v4103_v7, %v4107_v61  ;;  %v4113_v3 = vrot.slane %v4112_v28, 4  ;;  %6491 = vmatprep.mubr.msk.bf16.mxu1 %vm355_vm2, %v5944_v17  ;;  %v1130_v47 = vpop.f32.mrb[19].mxu1  ;;  %v1255_v61 = vld [vmem:[#allocation2 + $0x8] sm:$0xff]  ;;  %v1616_v0 = vpop.f32.mrb[17].mxu0 }
 0x117   : > { %v4122_v52 = vrot.slane %v9241_v37, 4  ;;  %v4125_v5 = vrot.slane %v9242_v21, 5  ;;  %6521 = vmatprep.mubr.msk.bf16.mxu0 %vm355_vm2, %v5991_v4  ;;  %v9243_v45 = vshrl.u32 %v7861_v60, 16  ;;  %v1286_v23 = vadd.f32 %v1254_v55, %v1127_v6 }
 0x118   : > { %v8378_v14 = vsel %vm6963_vm8, %v4748_v46, %v4749_v16  ;;  %v4131_v4 = vrot.slane %v4129_v42, 5  ;;  %1320 = vst.msk [vmem:[#allocation2 + $0x10] sm:$0xff] %vm572_vm9, %v1288_v51  ;;  %v1289_v53 = vadd.f32 %v6282_v44, %v1257_v20  ;;  %v4118_v2 = vsel %vm6940_vm7, %v4113_v3, %v4117_v26  ;;  %v8388_v46 = vld [vmem:[%s6739_s10 + $0x80] sm:$0x1]  ;;  %v6285_v20 = vpop.f32.mrb[20].mxu1 }
 0x119   : > { %v4135_v13 = vrot.slane %v9243_v45, 4  ;;  %v4126_v12 = vor.u32 %v4125_v5, %v4122_v52  ;;  %v5994_v17 = vcombine.low %v8351_v58, %v8378_v14  ;;  %v4139_v40 = vshll.u32 %v8354_v32, 16  ;;  %1318 = vst.msk [vmem:[#allocation2] sm:$0xff] %vm572_vm9, %v1286_v23  ;;  %v6316_v52 = vpop.f32.mrb[18].mxu0  ;;  %v1262_v58 = vld [vmem:[#allocation2 + $0x40] sm:$0xff] }
 0x11a   : > { %v1287_v16 = vadd.f32 %v1255_v61, %v1130_v47  ;;  %v5946_v7 = vcombine.low %v4108_v57, %v4118_v2  ;;  %1321 = vst.msk [vmem:[#allocation2 + $0x18] sm:$0xff] %vm572_vm9, %v1289_v53  ;;  %v5978_v26 = vrot.slane %v7837_v43, 9  ;;  %v4753_v21 = vrot.slane %v7846_v50, 5  ;;  %v1619_v6 = vpop.f32.mrb[19].mxu0  ;;  %v1258_v61 = vld [vmem:[#allocation2 + $0x20] sm:$0xff] }
 0x11b   : > { %v4127_v28 = vrot.slane %v4126_v12, 4  ;;  %v4136_v63 = vor.u32 %v4135_v13, %v4131_v4  ;;  %v4141_v37 = vrot.slane %v4139_v40, 5  ;;  %v4756_v5 = vrot.slane %v8311_v24, 5  ;;  %v1260_v12 = vld [vmem:[#allocation2 + $0x30] sm:$0xff] }
 0x11c   : > { %1319 = vst.msk [vmem:[#allocation2 + $0x8] sm:$0xff] %vm572_vm9, %v1287_v16  ;;  %v9244_v55 = vshrl.u32 %v7873_v41, 16  ;;  %v9245_v3 = vshll.u32 %v7873_v41, 16  ;;  %v8403_v43 = vsel %vm6963_vm8, %v5978_v26, %v4753_v21  ;;  %v4755_v50 = vrot.slane %v4753_v21, 4 }
 0x11d   : > { %v4132_v42 = vsel %vm6940_vm7, %v4127_v28, %v4131_v4  ;;  %v4137_v51 = vrot.slane %v4136_v63, 4  ;;  %v4153_v24 = vshll.u32 %v7881_v8, 16  ;;  %v9246_v13 = vshrl.u32 %v7881_v8, 16  ;;  %6492 = vmatmul.mubr.msk.bf16.gmra.mrb[120].mxu1 %vm355_vm2, %v8346_v49  ;;  %v1261_v63 = vld [vmem:[#allocation2 + $0x38] sm:$0xff] }
 0x11e   : > { %v4146_v57 = vrot.slane %v9244_v55, 4  ;;  %v4149_v45 = vrot.slane %v9245_v3, 5  ;;  %6522 = vmatmul.mubr.msk.bf16.gmra.mrb[116].mxu0 %vm355_vm2, %v5992_v59  ;;  %v4163_v53 = vshll.u32 %v8388_v46, 16  ;;  %v5979_v47 = vrot.slane %v7855_v29, 9  ;;  %v1143_v59 = vpop.f32.mrb[21].mxu1  ;;  %6495 = vmatprep.mubr.msk.bf16.mxu1 %vm355_vm2, %v5946_v7  ;;  %v6319_v7 = vpop.f32.mrb[20].mxu0 }
 0x11f   : > { %v4159_v23 = vrot.slane %v9246_v13, 4  ;;  %v4142_v44 = vsel %vm6940_vm7, %v4137_v51, %v4141_v37  ;;  %6525 = vmatprep.mubr.msk.bf16.mxu0 %vm355_vm2, %v5993_v56  ;;  %v1292_v34 = vadd.f32 %v6285_v20, %v1260_v12  ;;  %v4757_v2 = vsel %vm6963_vm8, %v4755_v50, %v4756_v5  ;;  %v1745_v16 = vld [vmem:[#allocation2 + $0x10] sm:$0xff]  ;;  %v6286_v28 = vpop.f32.mrb[22].mxu1  ;;  %v1632_v50 = vpop.f32.mrb[21].mxu0 }
 0x120   : > { %v4150_v4 = vor.u32 %v4149_v45, %v4146_v57  ;;  %v5947_v19 = vcombine.low %v4132_v42, %v4142_v44  ;;  %v4155_v40 = vrot.slane %v4153_v24, 5  ;;  %v1290_v29 = vadd.f32 %v1258_v61, %v1143_v59  ;;  %v1743_v56 = vld [vmem:[#allocation2] sm:$0xff]  ;;  %v1146_v21 = vpop.f32.mrb[23].mxu1  ;;  %v1259_v42 = vld [vmem:[#allocation2 + $0x28] sm:$0xff]  ;;  %v6320_v44 = vpop.f32.mrb[22].mxu0 }
 0x121   : > { %v5995_v49 = vcombine.low %v8403_v43, %v4757_v2  ;;  %v4165_v48 = vrot.slane %v4163_v53, 5  ;;  %v1777_v15 = vadd.f32 %v6315_v62, %v1745_v16  ;;  %1324 = vst.msk [vmem:[#allocation2 + $0x30] sm:$0xff] %vm572_vm9, %v1292_v34  ;;  %v1293_v26 = vadd.f32 %v6286_v28, %v1261_v63  ;;  %v1746_v57 = vld [vmem:[#allocation2 + $0x18] sm:$0xff]  ;;  %v8433_v43 = vld [vmem:[%s6739_s10 + $0x8c] sm:$0x1]  ;;  %v1635_v34 = vpop.f32.mrb[23].mxu0 }
 0x122   : > { %v4151_v37 = vrot.slane %v4150_v4, 4  ;;  %v4160_v5 = vor.u32 %v4159_v23, %v4155_v40  ;;  %v4760_v51 = vrot.slane %v7861_v60, 5  ;;  %v1775_v55 = vadd.f32 %v1743_v56, %v1616_v0  ;;  %1322 = vst.msk [vmem:[#allocation2 + $0x20] sm:$0xff] %vm572_vm9, %v1290_v29  ;;  %v6289_v63 = vpop.f32.mrb[24].mxu1 }
 0x123   : > { %v1291_v3 = vadd.f32 %v1259_v42, %v1146_v21  ;;  %v4763_v62 = vrot.slane %v8354_v32, 5  ;;  %1809 = vst.msk [vmem:[#allocation2 + $0x10] sm:$0xff] %vm572_vm9, %v1777_v15  ;;  %v1778_v24 = vadd.f32 %v6316_v52, %v1746_v57  ;;  %1325 = vst.msk [vmem:[#allocation2 + $0x38] sm:$0xff] %vm572_vm9, %v1293_v26  ;;  %v1744_v60 = vld [vmem:[#allocation2 + $0x8] sm:$0xff]  ;;  %v9247_v32 = vshrl.u32 %v7895_v30, 16  ;;  %v1159_v56 = vpop.f32.mrb[25].mxu1 }
 0x124   : > { %v4156_v45 = vsel %vm6940_vm7, %v4151_v37, %v4155_v40  ;;  %v4161_v13 = vrot.slane %v4160_v5, 4  ;;  %v8439_v0 = vsel %vm6963_vm8, %v5979_v47, %v4760_v51  ;;  %v4762_v23 = vrot.slane %v4760_v51, 4  ;;  %1807 = vst.msk [vmem:[#allocation2] sm:$0xff] %vm572_vm9, %v1775_v55  ;;  %v1264_v37 = vld [vmem:[#allocation2 + $0x50] sm:$0xff]  ;;  %v6290_v51 = vpop.f32.mrb[26].mxu1  ;;  %v1265_v55 = vld [vmem:[#allocation2 + $0x58] sm:$0xff] }
 0x125   : > { %v1776_v20 = vadd.f32 %v1744_v60, %v1619_v6  ;;  %1323 = vst.msk [vmem:[#allocation2 + $0x28] sm:$0xff] %vm572_vm9, %v1291_v3  ;;  %v4170_v12 = vrot.slane %v9247_v32, 4  ;;  %v9248_v52 = vshll.u32 %v7895_v30, 16  ;;  %v4177_v53 = vshll.u32 %v7904_v18, 16  ;;  %1810 = vst.msk [vmem:[#allocation2 + $0x18] sm:$0xff] %vm572_vm9, %v1778_v24  ;;  %6496 = vmatmul.mubr.msk.bf16.gmra.mrb[124].mxu1 %vm355_vm2, %v5947_v19  ;;  %v6323_v24 = vpop.f32.mrb[24].mxu0 }
 0x126   : > { %v4166_v47 = vsel %vm6940_vm7, %v4161_v13, %v4165_v48  ;;  %v8453_v59 = vsel %vm6963_vm8, %v4762_v23, %v4763_v62  ;;  %v9249_v6 = vshrl.u32 %v7904_v18, 16  ;;  %v4187_v2 = vshll.u32 %v8433_v43, 16  ;;  %6526 = vmatmul.mubr.msk.bf16.gmra.mrb[120].mxu0 %vm355_vm2, %v5994_v17  ;;  %v8478_v23 = vld [vmem:[%s6739_s10 + $0x98] sm:$0x1] }
 0x127   : > { %v4173_v4 = vrot.slane %v9248_v52, 5  ;;  %1808 = vst.msk [vmem:[#allocation2 + $0x8] sm:$0xff] %vm572_vm9, %v1776_v20  ;;  %v5948_v40 = vcombine.low %v4156_v45, %v4166_v47  ;;  %v5996_v16 = vcombine.low %v8439_v0, %v8453_v59  ;;  %v4179_v28 = vrot.slane %v4177_v53, 5  ;;  %6529 = vmatprep.mubr.msk.bf16.mxu0 %vm355_vm2, %v5995_v49  ;;  %v1162_v45 = vpop.f32.mrb[27].mxu1  ;;  %v8480_v20 = vpop.f32.mrb[25].mxu0 }
 0x128   : > { %v4183_v61 = vrot.slane %v9249_v6, 4  ;;  %v4189_v48 = vrot.slane %v4187_v2, 5  ;;  %v1296_v15 = vadd.f32 %v6289_v63, %v1264_v37  ;;  %v5980_v14 = vrot.slane %v7873_v41, 9  ;;  %v1749_v42 = vld [vmem:[#allocation2 + $0x30] sm:$0xff]  ;;  %v1263_v41 = vld [vmem:[#allocation2 + $0x48] sm:$0xff]  ;;  %v8490_v59 = vpop.f32.mrb[26].mxu0 }
 0x129   : > { %v4174_v29 = vor.u32 %v4173_v4, %v4170_v12  ;;  %v4767_v17 = vrot.slane %v7881_v8, 5  ;;  %6499 = vmatprep.mubr.msk.bf16.mxu1 %vm355_vm2, %v5948_v40  ;;  %v1294_v5 = vadd.f32 %v1262_v58, %v1159_v56  ;;  %v4770_v19 = vrot.slane %v8388_v46, 5  ;;  %v1747_v57 = vld [vmem:[#allocation2 + $0x20] sm:$0xff]  ;;  %v8497_v40 = vpop.f32.mrb[27].mxu0 }
 0x12a   : > { %v4184_v21 = vor.u32 %v4183_v61, %v4179_v28  ;;  %v1781_v49 = vadd.f32 %v6319_v7, %v1749_v42  ;;  %1328 = vst.msk [vmem:[#allocation2 + $0x50] sm:$0xff] %vm572_vm9, %v1296_v15  ;;  %v1297_v3 = vadd.f32 %v6290_v51, %v1265_v55  ;;  %v1779_v0 = vadd.f32 %v1747_v57, %v1632_v50  ;;  %v1750_v46 = vld [vmem:[#allocation2 + $0x38] sm:$0xff]  ;;  %v8509_v58 = vld [vmem:[%s6739_s10 + $0xa4] sm:$0x1]  ;;  %v6293_v42 = vpop.f32.mrb[28].mxu1 }
 0x12b   : > { %v4175_v26 = vrot.slane %v4174_v29, 4  ;;  %v4768_v8 = vsel %vm6963_vm8, %v5980_v14, %v4767_v17  ;;  %v4769_v62 = vrot.slane %v4767_v17, 4  ;;  %1326 = vst.msk [vmem:[#allocation2 + $0x40] sm:$0xff] %vm572_vm9, %v1294_v5  ;;  %v1295_v7 = vadd.f32 %v1263_v41, %v1162_v45  ;;  %v1175_v55 = vpop.f32.mrb[29].mxu1 }
 0x12c   : > { %v4185_v13 = vrot.slane %v4184_v21, 4  ;;  %1813 = vst.msk [vmem:[#allocation2 + $0x30] sm:$0xff] %vm572_vm9, %v1781_v49  ;;  %v1782_v32 = vadd.f32 %v6320_v44, %v1750_v46  ;;  %1329 = vst.msk [vmem:[#allocation2 + $0x58] sm:$0xff] %vm572_vm9, %v1297_v3  ;;  %v1748_v12 = vld [vmem:[#allocation2 + $0x28] sm:$0xff]  ;;  %v9250_v4 = vshrl.u32 %v7917_v1, 16  ;;  %v9251_v53 = vshll.u32 %v7917_v1, 16 }
 0x12d   : > { %v4180_v60 = vsel %vm6940_vm7, %v4175_v26, %v4179_v28  ;;  %v4771_v52 = vsel %vm6963_vm8, %v4769_v62, %v4770_v19  ;;  %1811 = vst.msk [vmem:[#allocation2 + $0x20] sm:$0xff] %vm572_vm9, %v1779_v0  ;;  %v1780_v44 = vadd.f32 %v1748_v12, %v1635_v34  ;;  %1327 = vst.msk [vmem:[#allocation2 + $0x48] sm:$0xff] %vm572_vm9, %v1295_v7  ;;  %v4201_v2 = vshll.u32 %v7925_v33, 16  ;;  %v6294_v41 = vpop.f32.mrb[30].mxu1  ;;  %v1268_v46 = vld [vmem:[#allocation2 + $0x70] sm:$0xff] }
 0x12e   : > { %v4194_v50 = vrot.slane %v9250_v4, 4  ;;  %v4197_v47 = vrot.slane %v9251_v53, 5  ;;  %v4190_v6 = vsel %vm6940_vm7, %v4185_v13, %v4189_v48  ;;  %v5997_v61 = vcombine.low %v4768_v8, %v4771_v52  ;;  %1814 = vst.msk [vmem:[#allocation2 + $0x38] sm:$0xff] %vm572_vm9, %v1782_v32  ;;  %6530 = vmatmul.mubr.msk.bf16.gmra.mrb[124].mxu0 %vm355_vm2, %v5996_v16  ;;  %v8525_v8 = vpop.f32.mrb[28].mxu0  ;;  %v1178_v32 = vpop.f32.mrb[31].mxu1  ;;  %v1266_v53 = vld [vmem:[#allocation2 + $0x60] sm:$0xff] }
 0x12f   : > { %v5949_v29 = vcombine.low %v4180_v60, %v4190_v6  ;;  %v9252_v28 = vshrl.u32 %v7925_v33, 16  ;;  %v4211_v37 = vshll.u32 %v8478_v23, 16  ;;  %1812 = vst.msk [vmem:[#allocation2 + $0x28] sm:$0xff] %vm572_vm9, %v1780_v44  ;;  %v4203_v34 = vrot.slane %v4201_v2, 5  ;;  %v8529_v12 = vpop.f32.mrb[29].mxu0 }
 0x130   : > { %v4198_v1 = vor.u32 %v4197_v47, %v4194_v50  ;;  %v5981_v48 = vrot.slane %v7895_v30, 9  ;;  %v4774_v15 = vrot.slane %v7904_v18, 5  ;;  %v4777_v56 = vrot.slane %v8433_v43, 5  ;;  %6533 = vmatprep.mubr.msk.bf16.mxu0 %vm355_vm2, %v5997_v61  ;;  %v8531_v6 = vpop.f32.mrb[30].mxu0 }
 0x131   : > { %v4207_v63 = vrot.slane %v9252_v28, 4  ;;  %6500 = vmatmul.mubr.msk.bf16.gmra.mrb[128].mxu1 %vm355_vm2, %v5949_v29  ;;  %v4213_v14 = vrot.slane %v4211_v37, 5  ;;  %v9253_v17 = vshrl.u32 %v7935_v54, 16  ;;  %v9254_v26 = vshll.u32 %v7935_v54, 16  ;;  %v1753_v51 = vld [vmem:[#allocation2 + $0x50] sm:$0xff]  ;;  %v1269_v29 = vld [vmem:[#allocation2 + $0x78] sm:$0xff] }
 0x132   : > { %v4199_v33 = vrot.slane %v4198_v1, 4  ;;  %v4775_v18 = vsel %vm6963_vm8, %v5981_v48, %v4774_v15  ;;  %v4776_v43 = vrot.slane %v4774_v15, 4  ;;  %v4225_v5 = vshll.u32 %v7942_v27, 16  ;;  %v1751_v45 = vld [vmem:[#allocation2 + $0x40] sm:$0xff]  ;;  %v8537_v1 = vpop.f32.mrb[31].mxu0  ;;  %v1267_v48 = vld [vmem:[#allocation2 + $0x68] sm:$0xff] }
 0x133   : > { %v4218_v16 = vrot.slane %v9253_v17, 4  ;;  %v4221_v21 = vrot.slane %v9254_v26, 5  ;;  %v4208_v30 = vor.u32 %v4207_v63, %v4203_v34  ;;  %v9255_v57 = vshrl.u32 %v7942_v27, 16  ;;  %v1754_v7 = vld [vmem:[#allocation2 + $0x58] sm:$0xff]  ;;  %v8544_v15 = vld [vmem:[%s6739_s10 + $0xb0] sm:$0x1] }
 0x134   : > { %v4204_v19 = vsel %vm6940_vm7, %v4199_v33, %v4203_v34  ;;  %v4235_v54 = vshll.u32 %v8509_v58, 16  ;;  %v4778_v60 = vsel %vm6963_vm8, %v4776_v43, %v4777_v56  ;;  %v4227_v13 = vrot.slane %v4225_v5, 5  ;;  %v1752_v47 = vld [vmem:[#allocation2 + $0x48] sm:$0xff] }
 0x135   : > { %v4222_v49 = vor.u32 %v4221_v21, %v4218_v16  ;;  %v4231_v3 = vrot.slane %v9255_v57, 4  ;;  %v4209_v62 = vrot.slane %v4208_v30, 4  ;;  %v1785_v0 = vadd.f32 %v6323_v24, %v1753_v51  ;;  %v8565_v43 = vld [vmem:[%s6739_s10 + $0xac] sm:$0xf] }
 0x136   : > { %v5998_v52 = vcombine.low %v4775_v18, %v4778_v60  ;;  %v4237_v4 = vrot.slane %v4235_v54, 5  ;;  %v1300_v50 = vadd.f32 %v6293_v42, %v1268_v46  ;;  %v1783_v24 = vadd.f32 %v1751_v45, %v8480_v20  ;;  %v8574_v54 = vld [vmem:[%s6739_s10 + $0xbc] sm:$0x1] }
 0x137   : > { %v4223_v27 = vrot.slane %v4222_v49, 4  ;;  %v4214_v44 = vsel %vm6940_vm7, %v4209_v62, %v4213_v14  ;;  %v4232_v61 = vor.u32 %v4231_v3, %v4227_v13  ;;  %1817 = vst.msk [vmem:[#allocation2 + $0x50] sm:$0xff] %vm572_vm9, %v1785_v0  ;;  %v1298_v2 = vadd.f32 %v1266_v53, %v1175_v55  ;;  %v6625_v14 = vld [vmem:[%s6739_s10 + $0x90] sm:$0xf]  ;;  %v6628_v60 = vld [vmem:[%s6739_s10 + $0x9c] sm:$0xf] }
 0x138   : > { %v5950_v28 = vcombine.low %v4204_v19, %v4214_v44  ;;  %1332 = vst.msk [vmem:[#allocation2 + $0x70] sm:$0xff] %vm572_vm9, %v1300_v50  ;;  %v1786_v37 = vadd.f32 %v8490_v59, %v1754_v7  ;;  %v1301_v34 = vadd.f32 %v6294_v41, %v1269_v29  ;;  %6534 = vmatmul.mubr.msk.bf16.gmra.mrb[128].mxu0 %vm355_vm2, %v5998_v52  ;;  %1815 = vst.msk [vmem:[#allocation2 + $0x40] sm:$0xff] %vm572_vm9, %v1783_v24  ;;  %v6626_v59 = vld [vmem:[%s6739_s10 + $0x94] sm:$0xf]  ;;  %v6629_v0 = vld [vmem:[%s6739_s10 + $0xa0] sm:$0xf] }
 0x139   : > { %v4228_v63 = vsel %vm6940_vm7, %v4223_v27, %v4227_v13  ;;  %v4233_v20 = vrot.slane %v4232_v61, 4  ;;  %1330 = vst.msk [vmem:[#allocation2 + $0x60] sm:$0xff] %vm572_vm9, %v1298_v2  ;;  %v1784_v56 = vadd.f32 %v1752_v47, %v8497_v40  ;;  %v1299_v33 = vadd.f32 %v1267_v48, %v1178_v32  ;;  %v8578_v7 = vpop.f32.mrb[32].mxu0 }
 0x13a   : > { %v5982_v17 = vrot.slane %v6625_v14, 9  ;;  %6503 = vmatprep.mubr.msk.bf16.mxu1 %vm355_vm2, %v5950_v28  ;;  %1818 = vst.msk [vmem:[#allocation2 + $0x58] sm:$0xff] %vm572_vm9, %v1786_v37  ;;  %1333 = vst.msk [vmem:[#allocation2 + $0x78] sm:$0xff] %vm572_vm9, %v1301_v34  ;;  %v4781_v16 = vrot.slane %v6626_v59, 5  ;;  %v4784_v26 = vrot.slane %v8478_v23, 5  ;;  %v9256_v21 = vshrl.u32 %v7963_v9, 16 }
 0x13b   : > { %v9257_v30 = vshll.u32 %v7963_v9, 16  ;;  %v4238_v18 = vsel %vm6940_vm7, %v4233_v20, %v4237_v4  ;;  %1816 = vst.msk [vmem:[#allocation2 + $0x48] sm:$0xff] %vm572_vm9, %v1784_v56  ;;  %1331 = vst.msk [vmem:[#allocation2 + $0x68] sm:$0xff] %vm572_vm9, %v1299_v33  ;;  %v4249_v5 = vshll.u32 %v8565_v43, 16  ;;  %v9258_v23 = vshrl.u32 %v7972_v25, 16  ;;  %v6297_v9 = vpop.f32.mrb[32].mxu1 }
 0x13c   : > { %v4242_v42 = vrot.slane %v9256_v21, 4  ;;  %v4259_v55 = vshll.u32 %v8544_v15, 16  ;;  %v5951_v19 = vcombine.low %v4228_v63, %v4238_v18  ;;  %v4782_v49 = vsel %vm6963_vm8, %v5982_v17, %v4781_v16  ;;  %v1191_v45 = vpop.f32.mrb[33].mxu1  ;;  %v8586_v47 = vpop.f32.mrb[33].mxu0  ;;  %v8597_v34 = vld [vmem:[%s6739_s10 + $0xb8] sm:$0xf] }
 0x13d   : > { %v4245_v40 = vrot.slane %v9257_v30, 5  ;;  %v4255_v51 = vrot.slane %v9258_v23, 4  ;;  %v4783_v57 = vrot.slane %v4781_v16, 4  ;;  %v4251_v41 = vrot.slane %v4249_v5, 5  ;;  %v6298_v25 = vpop.f32.mrb[34].mxu1  ;;  %v8590_v28 = vpop.f32.mrb[34].mxu0 }
 0x13e   : > { %v4261_v62 = vrot.slane %v4259_v55, 5  ;;  %v5983_v13 = vrot.slane %v6628_v60, 9  ;;  %v4788_v46 = vrot.slane %v6629_v0, 5  ;;  %6504 = vmatmul.mubr.msk.bf16.gmra.mrb[132].mxu1 %vm355_vm2, %v5951_v19  ;;  %v4791_v27 = vrot.slane %v8509_v58, 5  ;;  %v1194_v53 = vpop.f32.mrb[35].mxu1  ;;  %v8602_v14 = vpop.f32.mrb[35].mxu0 }
 0x13f   : > { %v4246_v3 = vor.u32 %v4245_v40, %v4242_v42  ;;  %v4785_v32 = vsel %vm6963_vm8, %v4783_v57, %v4784_v26  ;;  %v9259_v4 = vshrl.u32 %v7989_v35, 16  ;;  %v4256_v61 = vor.u32 %v4255_v51, %v4251_v41  ;;  %v1757_v29 = vld [vmem:[#allocation2 + $0x70] sm:$0xff]  ;;  %v1270_v18 = vld [vmem:[#allocation2 + $0x80] sm:$0xff] }
 0x140   : > { %v5999_v44 = vcombine.low %v4782_v49, %v4785_v32  ;;  %v4789_v24 = vsel %vm6963_vm8, %v5983_v13, %v4788_v46  ;;  %v4790_v2 = vrot.slane %v4788_v46, 4  ;;  %v9260_v58 = vshll.u32 %v7989_v35, 16  ;;  %v1755_v33 = vld [vmem:[#allocation2 + $0x60] sm:$0xff]  ;;  %v1272_v26 = vld [vmem:[#allocation2 + $0x90] sm:$0xff]  ;;  %v6631_v13 = vld [vmem:[%s6739_s10 + $0xa8] sm:$0xf] }
 0x141   : > { %v4247_v52 = vrot.slane %v4246_v3, 4  ;;  %v4266_v50 = vrot.slane %v9259_v4, 4  ;;  %v4273_v48 = vshll.u32 %v8597_v34, 16  ;;  %v9261_v20 = vshrl.u32 %v7996_v39, 16  ;;  %v1758_v21 = vld [vmem:[#allocation2 + $0x78] sm:$0xff] }
 0x142   : > { %v4269_v37 = vrot.slane %v9260_v58, 5  ;;  %6537 = vmatprep.mubr.msk.bf16.mxu0 %vm355_vm2, %v5999_v44  ;;  %v4257_v17 = vrot.slane %v4256_v61, 4  ;;  %v4792_v59 = vsel %vm6963_vm8, %v4790_v2, %v4791_v27  ;;  %v4283_v16 = vshll.u32 %v8574_v54, 16  ;;  %v1756_v5 = vld [vmem:[#allocation2 + $0x68] sm:$0xff]  ;;  %v1273_v3 = vld [vmem:[#allocation2 + $0x98] sm:$0xff] }
 0x143   : > { %v4252_v63 = vsel %vm6940_vm7, %v4247_v52, %v4251_v41  ;;  %v4279_v56 = vrot.slane %v9261_v20, 4  ;;  %v1789_v35 = vadd.f32 %v8525_v8, %v1757_v29  ;;  %v6000_v42 = vcombine.low %v4789_v24, %v4792_v59  ;;  %v1271_v41 = vld [vmem:[#allocation2 + $0x88] sm:$0xff]  ;;  %v8643_v61 = vld [vmem:[%s6739_s10 + $0xc4] sm:$0xf]  ;;  %v8650_v29 = vpop.f32.mrb[36].mxu0 }
 0x144   : > { %v4270_v30 = vor.u32 %v4269_v37, %v4266_v50  ;;  %v4275_v40 = vrot.slane %v4273_v48, 5  ;;  %v1304_v39 = vadd.f32 %v6297_v9, %v1272_v26  ;;  %v4262_v23 = vsel %vm6940_vm7, %v4257_v17, %v4261_v62  ;;  %v8616_v62 = vpop.f32.mrb[36].mxu1  ;;  %v8623_v46 = vld [vmem:[%s6739_s10 + $0xc8] sm:$0x1]  ;;  %v8657_v48 = vpop.f32.mrb[37].mxu0 }
 0x145   : > { %v4285_v51 = vrot.slane %v4283_v16, 5  ;;  %1821 = vst.msk [vmem:[#allocation2 + $0x70] sm:$0xff] %vm572_vm9, %v1789_v35  ;;  %v1787_v55 = vadd.f32 %v1755_v33, %v8529_v12  ;;  %v1302_v19 = vadd.f32 %v1270_v18, %v1191_v45  ;;  %v5952_v49 = vcombine.low %v4252_v63, %v4262_v23  ;;  %6538 = vmatmul.mubr.msk.bf16.gmra.mrb[132].mxu0 %vm355_vm2, %v6000_v42  ;;  %v8625_v32 = vpop.f32.mrb[37].mxu1  ;;  %v6633_v33 = vld [vmem:[%s6739_s10 + $0xb4] sm:$0xf]  ;;  %v8660_v59 = vpop.f32.mrb[38].mxu0 }
 0x146   : > { %v4271_v8 = vrot.slane %v4270_v30, 4  ;;  %v4280_v57 = vor.u32 %v4279_v56, %v4275_v40  ;;  %1336 = vst.msk [vmem:[#allocation2 + $0x90] sm:$0xff] %vm572_vm9, %v1304_v39  ;;  %v1790_v9 = vadd.f32 %v8531_v6, %v1758_v21  ;;  %v1305_v12 = vadd.f32 %v6298_v25, %v1273_v3  ;;  %v8633_v27 = vpop.f32.mrb[38].mxu1  ;;  %v8667_v42 = vld [vmem:[%s6739_s10 + $0xd4] sm:$0x1]  ;;  %v8669_v30 = vpop.f32.mrb[39].mxu0 }
 0x147   : > { %1819 = vst.msk [vmem:[#allocation2 + $0x60] sm:$0xff] %vm572_vm9, %v1787_v55  ;;  %1334 = vst.msk [vmem:[#allocation2 + $0x80] sm:$0xff] %vm572_vm9, %v1302_v19  ;;  %v1788_v45 = vadd.f32 %v1756_v5, %v8537_v1  ;;  %v1303_v60 = vadd.f32 %v1271_v41, %v1194_v53  ;;  %v5984_v0 = vrot.slane %v6631_v13, 9  ;;  %6507 = vmatprep.mubr.msk.bf16.mxu1 %vm355_vm2, %v5952_v49  ;;  %v4795_v25 = vrot.slane %v8565_v43, 5  ;;  %v8648_v2 = vpop.f32.mrb[39].mxu1 }
 0x148   : > { %v4276_v6 = vsel %vm6940_vm7, %v4271_v8, %v4275_v40  ;;  %v4281_v52 = vrot.slane %v4280_v57, 4  ;;  %1822 = vst.msk [vmem:[#allocation2 + $0x78] sm:$0xff] %vm572_vm9, %v1790_v9  ;;  %v4798_v1 = vrot.slane %v8544_v15, 5  ;;  %1337 = vst.msk [vmem:[#allocation2 + $0x98] sm:$0xff] %vm572_vm9, %v1305_v12  ;;  %v9262_v4 = vshrl.u32 %v8013_v10, 16 }
 0x149   : > { %1820 = vst.msk [vmem:[#allocation2 + $0x68] sm:$0xff] %vm572_vm9, %v1788_v45  ;;  %1335 = vst.msk [vmem:[#allocation2 + $0x88] sm:$0xff] %vm572_vm9, %v1303_v60  ;;  %v9263_v53 = vshll.u32 %v8013_v10, 16  ;;  %v4297_v43 = vshll.u32 %v8643_v61, 16  ;;  %v9264_v15 = vshrl.u32 %v8025_v22, 16  ;;  %v4796_v58 = vsel %vm6963_vm8, %v5984_v0, %v4795_v25 }
 0x14a   : > { %v4290_v50 = vrot.slane %v9262_v4, 4  ;;  %v4286_v63 = vsel %vm6940_vm7, %v4281_v52, %v4285_v51  ;;  %v4797_v10 = vrot.slane %v4795_v25, 4  ;;  %v4307_v37 = vshll.u32 %v8623_v46, 16  ;;  %v8679_v49 = vld [vmem:[%s6739_s10 + $0xd0] sm:$0xf] }
 0x14b   : > { %v4293_v44 = vrot.slane %v9263_v53, 5  ;;  %v4303_v24 = vrot.slane %v9264_v15, 4  ;;  %v5953_v20 = vcombine.low %v4276_v6, %v4286_v63  ;;  %v4299_v22 = vrot.slane %v4297_v43, 5  ;;  %v1276_v6 = vld [vmem:[#allocation2 + $0xb0] sm:$0xff] }
 0x14c   : > { %v5985_v17 = vrot.slane %v6633_v33, 9  ;;  %v4799_v16 = vsel %vm6963_vm8, %v4797_v10, %v4798_v1  ;;  %v4309_v35 = vrot.slane %v4307_v37, 5  ;;  %v4802_v26 = vrot.slane %v8597_v34, 5  ;;  %v6305_v1 = vpop.f32.mrb[40].mxu1 }
 0x14d   : > { %v4294_v56 = vor.u32 %v4293_v44, %v4290_v50  ;;  %v4805_v21 = vrot.slane %v8574_v54, 5  ;;  %6508 = vmatmul.mubr.msk.bf16.gmra.mrb[136].mxu1 %vm355_vm2, %v5953_v20  ;;  %v6001_v40 = vcombine.low %v4796_v58, %v4799_v16  ;;  %v4304_v18 = vor.u32 %v4303_v24, %v4299_v22  ;;  %v1761_v51 = vld [vmem:[#allocation2 + $0x90] sm:$0xff]  ;;  %v1223_v44 = vpop.f32.mrb[41].mxu1  ;;  %v1277_v58 = vld [vmem:[#allocation2 + $0xb8] sm:$0xff] }
 0x14e   : > { %v9265_v5 = vshrl.u32 %v8048_v36, 16  ;;  %v4803_v55 = vsel %vm6963_vm8, %v5985_v17, %v4802_v26  ;;  %v4804_v19 = vrot.slane %v4802_v26, 4  ;;  %v9266_v34 = vshll.u32 %v8048_v36, 16  ;;  %v1759_v45 = vld [vmem:[#allocation2 + $0x80] sm:$0xff]  ;;  %v6306_v10 = vpop.f32.mrb[42].mxu1  ;;  %v8708_v26 = vpop.f32.mrb[40].mxu0 }
 0x14f   : > { %v4295_v39 = vrot.slane %v4294_v56, 4  ;;  %v4321_v8 = vshll.u32 %v8679_v49, 16  ;;  %6541 = vmatprep.mubr.msk.bf16.mxu0 %vm355_vm2, %v6001_v40  ;;  %v4305_v9 = vrot.slane %v4304_v18, 4  ;;  %v9267_v3 = vshrl.u32 %v8051_v11, 16  ;;  %v1762_v52 = vld [vmem:[#allocation2 + $0x98] sm:$0xff]  ;;  %v1226_v33 = vpop.f32.mrb[43].mxu1 }
 0x150   : > { %v4314_v23 = vrot.slane %v9265_v5, 4  ;;  %v4317_v54 = vrot.slane %v9266_v34, 5  ;;  %v4331_v12 = vshll.u32 %v8667_v42, 16  ;;  %v4806_v36 = vsel %vm6963_vm8, %v4804_v19, %v4805_v21  ;;  %v1760_v25 = vld [vmem:[#allocation2 + $0x88] sm:$0xff]  ;;  %v1712_v18 = vpop.f32.mrb[41].mxu0 }
 0x151   : > { %v4300_v57 = vsel %vm6940_vm7, %v4295_v39, %v4299_v22  ;;  %v4327_v41 = vrot.slane %v9267_v3, 4  ;;  %v4323_v13 = vrot.slane %v4321_v8, 5  ;;  %v1793_v0 = vadd.f32 %v8578_v7, %v1761_v51  ;;  %v1274_v7 = vld [vmem:[#allocation2 + $0xa0] sm:$0xff]  ;;  %v1275_v22 = vld [vmem:[#allocation2 + $0xa8] sm:$0xff]  ;;  %v6340_v19 = vpop.f32.mrb[42].mxu0 }
 0x152   : > { %v4318_v60 = vor.u32 %v4317_v54, %v4314_v23  ;;  %v4310_v4 = vsel %vm6940_vm7, %v4305_v9, %v4309_v35  ;;  %v6002_v50 = vcombine.low %v4803_v55, %v4806_v36  ;;  %v4333_v11 = vrot.slane %v4331_v12, 5  ;;  %v6636_v21 = vld [vmem:[%s6739_s10 + $0xcc] sm:$0xf]  ;;  %v1278_v39 = vld [vmem:[#allocation2 + $0xc0] sm:$0xff]  ;;  %v1281_v54 = vld [vmem:[#allocation2 + $0xd8] sm:$0xff] }
 0x153   : > { %v1308_v53 = vadd.f32 %v8616_v62, %v1276_v6  ;;  %v5954_v43 = vcombine.low %v4300_v57, %v4310_v4  ;;  %v4328_v24 = vor.u32 %v4327_v41, %v4323_v13  ;;  %1825 = vst.msk [vmem:[#allocation2 + $0x90] sm:$0xff] %vm572_vm9, %v1793_v0  ;;  %v1791_v63 = vadd.f32 %v1759_v45, %v8586_v47  ;;  %v1279_v8 = vld [vmem:[#allocation2 + $0xc8] sm:$0xff]  ;;  %v1284_v0 = vld [vmem:[#allocation2 + $0xf0] sm:$0xff]  ;;  %v1282_v4 = vld [vmem:[#allocation2 + $0xe0] sm:$0xff] }
 0x154   : > { %v4319_v15 = vrot.slane %v4318_v60, 4  ;;  %6542 = vmatmul.mubr.msk.bf16.gmra.mrb[136].mxu0 %vm355_vm2, %v6002_v50  ;;  %v1306_v37 = vadd.f32 %v1274_v7, %v8625_v32  ;;  %v1794_v62 = vadd.f32 %v8590_v28, %v1762_v52  ;;  %v1309_v20 = vadd.f32 %v8633_v27, %v1277_v58  ;;  %v6635_v32 = vld [vmem:[%s6739_s10 + $0xc0] sm:$0xf]  ;;  %v1280_v28 = vld [vmem:[#allocation2 + $0xd0] sm:$0xff]  ;;  %v1283_v58 = vld [vmem:[#allocation2 + $0xe8] sm:$0xff] }
 0x155   : > { %1340 = vst.msk [vmem:[#allocation2 + $0xb0] sm:$0xff] %vm572_vm9, %v1308_v53  ;;  %v1792_v56 = vadd.f32 %v1760_v25, %v8602_v14  ;;  %6511 = vmatprep.mubr.msk.bf16.mxu1 %vm355_vm2, %v5954_v43  ;;  %v4329_v17 = vrot.slane %v4328_v24, 4  ;;  %1823 = vst.msk [vmem:[#allocation2 + $0x80] sm:$0xff] %vm572_vm9, %v1791_v63  ;;  %v1307_v16 = vadd.f32 %v1275_v22, %v8648_v2  ;;  %v5986_v35 = vrot.slane %v6635_v32, 9  ;;  %v1285_v43 = vld [vmem:[#allocation2 + $0xf8] sm:$0xff] }
 0x156   : > { %v4324_v47 = vsel %vm6940_vm7, %v4319_v15, %v4323_v13  ;;  %1338 = vst.msk [vmem:[#allocation2 + $0xa0] sm:$0xff] %vm572_vm9, %v1306_v37  ;;  %1826 = vst.msk [vmem:[#allocation2 + $0x98] sm:$0xff] %vm572_vm9, %v1794_v62  ;;  %v4809_v14 = vrot.slane %v8643_v61, 5  ;;  %v4812_v27 = vrot.slane %v8623_v46, 5  ;;  %v5987_v40 = vrot.slane %v6636_v21, 9  ;;  %v6309_v13 = vpop.f32.mrb[44].mxu1 }
 0x157   : > { %1341 = vst.msk [vmem:[#allocation2 + $0xb8] sm:$0xff] %vm572_vm9, %v1309_v20  ;;  %1824 = vst.msk [vmem:[#allocation2 + $0x88] sm:$0xff] %vm572_vm9, %v1792_v56  ;;  %v4816_v2 = vrot.slane %v8679_v49, 5  ;;  %v4334_v5 = vsel %vm6940_vm7, %v4329_v17, %v4333_v11  ;;  %v4819_v23 = vrot.slane %v8667_v42, 5  ;;  %v1312_v51 = vadd.f32 %v6305_v1, %v1280_v28  ;;  %v1715_v49 = vpop.f32.mrb[43].mxu0  ;;  %v1239_v1 = vpop.f32.mrb[45].mxu1 }
 0x158   : > { %1339 = vst.msk [vmem:[#allocation2 + $0xa8] sm:$0xff] %vm572_vm9, %v1307_v16  ;;  %v1310_v55 = vadd.f32 %v1278_v39, %v1223_v44  ;;  %v5955_v34 = vcombine.low %v4324_v47, %v4334_v5  ;;  %v4810_v46 = vsel %vm6963_vm8, %v5986_v35, %v4809_v14  ;;  %v4811_v61 = vrot.slane %v4809_v14, 4  ;;  %v6343_v50 = vpop.f32.mrb[44].mxu0  ;;  %v6310_v44 = vpop.f32.mrb[46].mxu1  ;;  %v2187_v16 = vld [vmem:[#allocation2 + $0x10] sm:$0xff]  ;;  %v2185_v28 = vld [vmem:[#allocation2] sm:$0xff] }
 0x159   : > { %v4817_v57 = vsel %vm6963_vm8, %v5987_v40, %v4816_v2  ;;  %v4818_v31 = vrot.slane %v4816_v2, 4  ;;  %1344 = vst.msk [vmem:[#allocation2 + $0xd0] sm:$0xff] %vm572_vm9, %v1312_v51  ;;  %v1313_v42 = vadd.f32 %v6306_v10, %v1281_v54  ;;  %v1311_v9 = vadd.f32 %v1279_v8, %v1226_v33  ;;  %v1728_v15 = vpop.f32.mrb[45].mxu0  ;;  %v1242_v7 = vpop.f32.mrb[47].mxu1  ;;  %v2188_v21 = vld [vmem:[#allocation2 + $0x18] sm:$0xff]  ;;  %v2186_v5 = vld [vmem:[#allocation2 + $0x8] sm:$0xff] }
 0x15a   : > { %1342 = vst.msk [vmem:[#allocation2 + $0xc0] sm:$0xff] %vm572_vm9, %v1310_v55  ;;  %6512 = vmatmul.mubr.msk.bf16.gmra.mrb[140].mxu1 %vm355_vm2, %v5955_v34  ;;  %v4813_v3 = vsel %vm6963_vm8, %v4811_v61, %v4812_v27  ;;  %v1316_v25 = vadd.f32 %v6309_v13, %v1284_v0  ;;  %v1317_v63 = vadd.f32 %v6310_v44, %v1285_v43  ;;  %v6344_v10 = vpop.f32.mrb[46].mxu0  ;;  %v6349_v17 = vpop.f32.mrb[48].mxu1  ;;  %v2195_v44 = vld [vmem:[#allocation2 + $0x50] sm:$0xff] }
 0x15b   : > { %v6003_v41 = vcombine.low %v4810_v46, %v4813_v3  ;;  %v4820_v12 = vsel %vm6963_vm8, %v4818_v31, %v4819_v23  ;;  %1345 = vst.msk [vmem:[#allocation2 + $0xd8] sm:$0xff] %vm572_vm9, %v1313_v42  ;;  %1343 = vst.msk [vmem:[#allocation2 + $0xc8] sm:$0xff] %vm572_vm9, %v1311_v9  ;;  %v1731_v62 = vpop.f32.mrb[47].mxu0  ;;  %v2219_v32 = vadd.f32 %v6349_v17, %v2187_v16  ;;  %v2058_v35 = vpop.f32.mrb[49].mxu1  ;;  %v2189_v3 = vld [vmem:[#allocation2 + $0x20] sm:$0xff] }
 0x15c   : > { %v1765_v45 = vld [vmem:[#allocation2 + $0xb0] sm:$0xff]  ;;  %v6004_v36 = vcombine.low %v4817_v57, %v4820_v12  ;;  %1348 = vst.msk [vmem:[#allocation2 + $0xf0] sm:$0xff] %vm572_vm9, %v1316_v25  ;;  %1349 = vst.msk [vmem:[#allocation2 + $0xf8] sm:$0xff] %vm572_vm9, %v1317_v63  ;;  %v2217_v14 = vadd.f32 %v2185_v28, %v2058_v35  ;;  %v6350_v27 = vpop.f32.mrb[50].mxu1  ;;  %v2193_v63 = vld [vmem:[#allocation2 + $0x40] sm:$0xff] }
 0x15d   : > { %v1797_v60 = vadd.f32 %v8650_v29, %v1765_v45  ;;  %6545 = vmatprep.mubr.msk.bf16.mxu0 %vm355_vm2, %v6003_v41  ;;  %v1763_v6 = vld [vmem:[#allocation2 + $0xa0] sm:$0xff]  ;;  %v1314_v29 = vadd.f32 %v1282_v4, %v1239_v1  ;;  %2251 = vst.msk [vmem:[#allocation2 + $0x10] sm:$0xff] %vm572_vm9, %v2219_v32  ;;  %v2220_v39 = vadd.f32 %v6350_v27, %v2188_v21  ;;  %v2191_v57 = vld [vmem:[#allocation2 + $0x30] sm:$0xff] }
 0x15e   : > { %v1766_v52 = vld [vmem:[#allocation2 + $0xb8] sm:$0xff]  ;;  %6546 = vmatmul.mubr.msk.bf16.gmra.mrb[140].mxu0 %vm355_vm2, %v6004_v36  ;;  %v1795_v38 = vadd.f32 %v1763_v6, %v8657_v48  ;;  %2249 = vst.msk [vmem:[#allocation2] sm:$0xff] %vm572_vm9, %v2217_v14  ;;  %v2199_v14 = vld [vmem:[#allocation2 + $0x70] sm:$0xff] }
 0x15f   : > { %1829 = vst.msk [vmem:[#allocation2 + $0xb0] sm:$0xff] %vm572_vm9, %v1797_v60  ;;  %v1798_v11 = vadd.f32 %v8660_v59, %v1766_v52  ;;  %v1764_v53 = vld [vmem:[#allocation2 + $0xa8] sm:$0xff]  ;;  %1346 = vst.msk [vmem:[#allocation2 + $0xe0] sm:$0xff] %vm572_vm9, %v1314_v29  ;;  %v1315_v59 = vadd.f32 %v1283_v58, %v1242_v7  ;;  %v6383_v46 = vpop.f32.mrb[48].mxu0  ;;  %v2192_v36 = vld [vmem:[#allocation2 + $0x38] sm:$0xff] }
 0x160   : > { %v1796_v24 = vadd.f32 %v1764_v53, %v8669_v30  ;;  %1827 = vst.msk [vmem:[#allocation2 + $0xa0] sm:$0xff] %vm572_vm9, %v1795_v38  ;;  %v1769_v48 = vld [vmem:[#allocation2 + $0xd0] sm:$0xff]  ;;  %2252 = vst.msk [vmem:[#allocation2 + $0x18] sm:$0xff] %vm572_vm9, %v2220_v39  ;;  %v2800_v54 = vpop.f32.mrb[49].mxu0  ;;  %v2190_v52 = vld [vmem:[#allocation2 + $0x28] sm:$0xff] }
 0x161   : > { %1830 = vst.msk [vmem:[#allocation2 + $0xb8] sm:$0xff] %vm572_vm9, %v1798_v11  ;;  %v1767_v37 = vld [vmem:[#allocation2 + $0xc0] sm:$0xff]  ;;  %v1801_v30 = vadd.f32 %v8708_v26, %v1769_v48  ;;  %1347 = vst.msk [vmem:[#allocation2 + $0xe8] sm:$0xff] %vm572_vm9, %v1315_v59  ;;  %v6384_v8 = vpop.f32.mrb[50].mxu0 }
 0x162   : > { %1828 = vst.msk [vmem:[#allocation2 + $0xa8] sm:$0xff] %vm572_vm9, %v1796_v24  ;;  %v1799_v20 = vadd.f32 %v1767_v37, %v1712_v18  ;;  %v1770_v56 = vld [vmem:[#allocation2 + $0xd8] sm:$0xff]  ;;  %v1768_v22 = vld [vmem:[#allocation2 + $0xc8] sm:$0xff]  ;;  %v2061_v18 = vpop.f32.mrb[51].mxu1  ;;  %v2803_v31 = vpop.f32.mrb[51].mxu0 }
 0x163   : > { %1833 = vst.msk [vmem:[#allocation2 + $0xd0] sm:$0xff] %vm572_vm9, %v1801_v30  ;;  %v1802_v33 = vadd.f32 %v6340_v19, %v1770_v56  ;;  %v1800_v47 = vadd.f32 %v1768_v22, %v1715_v49  ;;  %v1773_v26 = vld [vmem:[#allocation2 + $0xf0] sm:$0xff]  ;;  %v1774_v51 = vld [vmem:[#allocation2 + $0xf8] sm:$0xff]  ;;  %v2218_v55 = vadd.f32 %v2186_v5, %v2061_v18  ;;  %v6353_v49 = vpop.f32.mrb[52].mxu1  ;;  %v2194_v22 = vld [vmem:[#allocation2 + $0x48] sm:$0xff] }
 0x164   : > { %1831 = vst.msk [vmem:[#allocation2 + $0xc0] sm:$0xff] %vm572_vm9, %v1799_v20  ;;  %v1805_v40 = vadd.f32 %v6343_v50, %v1773_v26  ;;  %v1806_v19 = vadd.f32 %v6344_v10, %v1774_v51  ;;  %v2223_v42 = vadd.f32 %v6353_v49, %v2191_v57  ;;  %v2074_v9 = vpop.f32.mrb[53].mxu1  ;;  %v2929_v41 = vld [vmem:[#allocation2 + $0x10] sm:$0xff]  ;;  %v2196_v37 = vld [vmem:[#allocation2 + $0x58] sm:$0xff] }
 0x165   : > { %1834 = vst.msk [vmem:[#allocation2 + $0xd8] sm:$0xff] %vm572_vm9, %v1802_v33  ;;  %1832 = vst.msk [vmem:[#allocation2 + $0xc8] sm:$0xff] %vm572_vm9, %v1800_v47  ;;  %v2221_v12 = vadd.f32 %v2189_v3, %v2074_v9  ;;  %v6354_v45 = vpop.f32.mrb[54].mxu1  ;;  %v2961_v60 = vadd.f32 %v6383_v46, %v2929_v41  ;;  %v2927_v13 = vld [vmem:[#allocation2] sm:$0xff]  ;;  %v2200_v51 = vld [vmem:[#allocation2 + $0x78] sm:$0xff] }
 0x166   : > { %v1771_v2 = vld [vmem:[#allocation2 + $0xe0] sm:$0xff]  ;;  %1837 = vst.msk [vmem:[#allocation2 + $0xf0] sm:$0xff] %vm572_vm9, %v1805_v40  ;;  %2250 = vst.msk [vmem:[#allocation2 + $0x8] sm:$0xff] %vm572_vm9, %v2218_v55  ;;  %v2224_v0 = vadd.f32 %v6354_v45, %v2192_v36  ;;  %v2077_v6 = vpop.f32.mrb[55].mxu1  ;;  %v2959_v25 = vadd.f32 %v2927_v13, %v2800_v54  ;;  %v2198_v54 = vld [vmem:[#allocation2 + $0x68] sm:$0xff] }
 0x167   : > { %v1803_v23 = vadd.f32 %v1771_v2, %v1728_v15  ;;  %1838 = vst.msk [vmem:[#allocation2 + $0xf8] sm:$0xff] %vm572_vm9, %v1806_v19  ;;  %2255 = vst.msk [vmem:[#allocation2 + $0x30] sm:$0xff] %vm572_vm9, %v2223_v42  ;;  %v2930_v1 = vld [vmem:[#allocation2 + $0x18] sm:$0xff]  ;;  %v2222_v4 = vadd.f32 %v2190_v52, %v2077_v6  ;;  %v2197_v2 = vld [vmem:[#allocation2 + $0x60] sm:$0xff] }
 0x168   : > { %v1772_v34 = vld [vmem:[#allocation2 + $0xe8] sm:$0xff]  ;;  %2253 = vst.msk [vmem:[#allocation2 + $0x20] sm:$0xff] %vm572_vm9, %v2221_v12  ;;  %2993 = vst.msk [vmem:[#allocation2 + $0x10] sm:$0xff] %vm572_vm9, %v2961_v60  ;;  %v2962_v50 = vadd.f32 %v6384_v8, %v2930_v1  ;;  %v2203_v41 = vld [vmem:[#allocation2 + $0x90] sm:$0xff] }
 0x169   : > { %1835 = vst.msk [vmem:[#allocation2 + $0xe0] sm:$0xff] %vm572_vm9, %v1803_v23  ;;  %v1804_v61 = vadd.f32 %v1772_v34, %v1731_v62  ;;  %2256 = vst.msk [vmem:[#allocation2 + $0x38] sm:$0xff] %vm572_vm9, %v2224_v0  ;;  %v6387_v53 = vpop.f32.mrb[52].mxu0  ;;  %v2201_v60 = vld [vmem:[#allocation2 + $0x80] sm:$0xff] }
 0x16a   : > { %2991 = vst.msk [vmem:[#allocation2] sm:$0xff] %vm572_vm9, %v2959_v25  ;;  %2254 = vst.msk [vmem:[#allocation2 + $0x28] sm:$0xff] %vm572_vm9, %v2222_v4  ;;  %v6357_v29 = vpop.f32.mrb[56].mxu1  ;;  %v2816_v43 = vpop.f32.mrb[53].mxu0  ;;  %v2204_v25 = vld [vmem:[#allocation2 + $0x98] sm:$0xff] }
 0x16b   : > { %1836 = vst.msk [vmem:[#allocation2 + $0xe8] sm:$0xff] %vm572_vm9, %v1804_v61  ;;  %2994 = vst.msk [vmem:[#allocation2 + $0x18] sm:$0xff] %vm572_vm9, %v2962_v50  ;;  %v2227_v15 = vadd.f32 %v6357_v29, %v2195_v44  ;;  %v2090_v24 = vpop.f32.mrb[57].mxu1  ;;  %v6388_v7 = vpop.f32.mrb[54].mxu0 }
 0x16c   : > { %v2225_v10 = vadd.f32 %v2193_v63, %v2090_v24  ;;  %v6358_v48 = vpop.f32.mrb[58].mxu1  ;;  %v2819_v59 = vpop.f32.mrb[55].mxu0 }
 0x16d   : > { %v2928_v38 = vld [vmem:[#allocation2 + $0x8] sm:$0xff]  ;;  %2259 = vst.msk [vmem:[#allocation2 + $0x50] sm:$0xff] %vm572_vm9, %v2227_v15  ;;  %v2228_v20 = vadd.f32 %v6358_v48, %v2196_v37  ;;  %v2093_v56 = vpop.f32.mrb[59].mxu1 }
 0x16e   : > { %v2960_v11 = vadd.f32 %v2928_v38, %v2803_v31  ;;  %v2933_v58 = vld [vmem:[#allocation2 + $0x30] sm:$0xff]  ;;  %2257 = vst.msk [vmem:[#allocation2 + $0x40] sm:$0xff] %vm572_vm9, %v2225_v10  ;;  %v2226_v17 = vadd.f32 %v2194_v22, %v2093_v56 }
 0x16f   : > { %v2965_v62 = vadd.f32 %v6387_v53, %v2933_v58  ;;  %v2931_v30 = vld [vmem:[#allocation2 + $0x20] sm:$0xff]  ;;  %2260 = vst.msk [vmem:[#allocation2 + $0x58] sm:$0xff] %vm572_vm9, %v2228_v20  ;;  %v2202_v53 = vld [vmem:[#allocation2 + $0x88] sm:$0xff]  ;;  %v2207_v10 = vld [vmem:[#allocation2 + $0xb0] sm:$0xff] }
 0x170   : > { %2992 = vst.msk [vmem:[#allocation2 + $0x8] sm:$0xff] %vm572_vm9, %v2960_v11  ;;  %v2963_v33 = vadd.f32 %v2931_v30, %v2816_v43  ;;  %v2934_v47 = vld [vmem:[#allocation2 + $0x38] sm:$0xff]  ;;  %2258 = vst.msk [vmem:[#allocation2 + $0x48] sm:$0xff] %vm572_vm9, %v2226_v17 }
 0x171   : > { %2997 = vst.msk [vmem:[#allocation2 + $0x30] sm:$0xff] %vm572_vm9, %v2965_v62  ;;  %v2966_v16 = vadd.f32 %v6388_v7, %v2934_v47  ;;  %v2932_v32 = vld [vmem:[#allocation2 + $0x28] sm:$0xff]  ;;  %v2205_v62 = vld [vmem:[#allocation2 + $0xa0] sm:$0xff] }
 0x172   : > { %2995 = vst.msk [vmem:[#allocation2 + $0x20] sm:$0xff] %vm572_vm9, %v2963_v33  ;;  %v2964_v35 = vadd.f32 %v2932_v32, %v2819_v59  ;;  %v6391_v28 = vpop.f32.mrb[56].mxu0  ;;  %v6361_v26 = vpop.f32.mrb[60].mxu1  ;;  %v2208_v33 = vld [vmem:[#allocation2 + $0xb8] sm:$0xff] }
 0x173   : > { %2998 = vst.msk [vmem:[#allocation2 + $0x38] sm:$0xff] %vm572_vm9, %v2966_v16  ;;  %v2832_v27 = vpop.f32.mrb[57].mxu0  ;;  %v2231_v21 = vadd.f32 %v6361_v26, %v2199_v14  ;;  %v2106_v40 = vpop.f32.mrb[61].mxu1 }
 0x174   : > { %2996 = vst.msk [vmem:[#allocation2 + $0x28] sm:$0xff] %vm572_vm9, %v2964_v35  ;;  %v6392_v39 = vpop.f32.mrb[58].mxu0  ;;  %v2937_v18 = vld [vmem:[#allocation2 + $0x50] sm:$0xff]  ;;  %v2229_v5 = vadd.f32 %v2197_v2, %v2106_v40  ;;  %v6362_v23 = vpop.f32.mrb[62].mxu1 }
 0x175   : > { %v2835_v55 = vpop.f32.mrb[59].mxu0  ;;  %v2969_v19 = vadd.f32 %v6391_v28, %v2937_v18  ;;  %2263 = vst.msk [vmem:[#allocation2 + $0x70] sm:$0xff] %vm572_vm9, %v2231_v21  ;;  %v2935_v34 = vld [vmem:[#allocation2 + $0x40] sm:$0xff]  ;;  %v2232_v46 = vadd.f32 %v6362_v23, %v2200_v51  ;;  %v2109_v61 = vpop.f32.mrb[63].mxu1  ;;  %v2206_v28 = vld [vmem:[#allocation2 + $0xa8] sm:$0xff] }
 0x176   : > { %v2967_v8 = vadd.f32 %v2935_v34, %v2832_v27  ;;  %2261 = vst.msk [vmem:[#allocation2 + $0x60] sm:$0xff] %vm572_vm9, %v2229_v5  ;;  %v2938_v49 = vld [vmem:[#allocation2 + $0x58] sm:$0xff]  ;;  %v2230_v57 = vadd.f32 %v2198_v54, %v2109_v61  ;;  %v2211_v5 = vld [vmem:[#allocation2 + $0xd0] sm:$0xff] }
 0x177   : > { %3001 = vst.msk [vmem:[#allocation2 + $0x50] sm:$0xff] %vm572_vm9, %v2969_v19  ;;  %v2970_v31 = vadd.f32 %v6392_v39, %v2938_v49  ;;  %2264 = vst.msk [vmem:[#allocation2 + $0x78] sm:$0xff] %vm572_vm9, %v2232_v46  ;;  %v2936_v42 = vld [vmem:[#allocation2 + $0x48] sm:$0xff]  ;;  %v2212_v61 = vld [vmem:[#allocation2 + $0xd8] sm:$0xff] }
 0x178   : > { %2999 = vst.msk [vmem:[#allocation2 + $0x40] sm:$0xff] %vm572_vm9, %v2967_v8  ;;  %v2968_v9 = vadd.f32 %v2936_v42, %v2835_v55  ;;  %2262 = vst.msk [vmem:[#allocation2 + $0x68] sm:$0xff] %vm572_vm9, %v2230_v57  ;;  %v2209_v55 = vld [vmem:[#allocation2 + $0xc0] sm:$0xff] }
 0x179   : > { %3002 = vst.msk [vmem:[#allocation2 + $0x58] sm:$0xff] %vm572_vm9, %v2970_v31  ;;  %v2210_v31 = vld [vmem:[#allocation2 + $0xc8] sm:$0xff] }
 0x17a   : > { %3000 = vst.msk [vmem:[#allocation2 + $0x48] sm:$0xff] %vm572_vm9, %v2968_v9  ;;  %v6365_v3 = vpop.f32.mrb[64].mxu1 }
 0x17b   : > { %v6395_v12 = vpop.f32.mrb[60].mxu0  ;;  %v2235_v45 = vadd.f32 %v6365_v3, %v2203_v41  ;;  %v2122_v36 = vpop.f32.mrb[65].mxu1 }
 0x17c   : > { %v2941_v13 = vld [vmem:[#allocation2 + $0x70] sm:$0xff]  ;;  %v2848_v0 = vpop.f32.mrb[61].mxu0  ;;  %v2233_v6 = vadd.f32 %v2201_v60, %v2122_v36  ;;  %v6366_v52 = vpop.f32.mrb[66].mxu1 }
 0x17d   : > { %v2973_v1 = vadd.f32 %v6395_v12, %v2941_v13  ;;  %2267 = vst.msk [vmem:[#allocation2 + $0x90] sm:$0xff] %vm572_vm9, %v2235_v45  ;;  %v2939_v4 = vld [vmem:[#allocation2 + $0x60] sm:$0xff]  ;;  %v6396_v50 = vpop.f32.mrb[62].mxu0  ;;  %v2236_v38 = vadd.f32 %v6366_v52, %v2204_v25  ;;  %v2125_v11 = vpop.f32.mrb[67].mxu1  ;;  %v2215_v52 = vld [vmem:[#allocation2 + $0xf0] sm:$0xff] }
 0x17e   : > { %v2971_v29 = vadd.f32 %v2939_v4, %v2848_v0  ;;  %2265 = vst.msk [vmem:[#allocation2 + $0x80] sm:$0xff] %vm572_vm9, %v2233_v6  ;;  %v2942_v44 = vld [vmem:[#allocation2 + $0x78] sm:$0xff]  ;;  %v2851_v43 = vpop.f32.mrb[63].mxu0  ;;  %v2234_v15 = vadd.f32 %v2202_v53, %v2125_v11  ;;  %v2213_v4 = vld [vmem:[#allocation2 + $0xe0] sm:$0xff] }
 0x17f   : > { %3005 = vst.msk [vmem:[#allocation2 + $0x70] sm:$0xff] %vm572_vm9, %v2973_v1  ;;  %v2974_v24 = vadd.f32 %v6396_v50, %v2942_v44  ;;  %2268 = vst.msk [vmem:[#allocation2 + $0x98] sm:$0xff] %vm572_vm9, %v2236_v38  ;;  %v2940_v63 = vld [vmem:[#allocation2 + $0x68] sm:$0xff]  ;;  %v2216_v53 = vld [vmem:[#allocation2 + $0xf8] sm:$0xff] }
 0x180   : > { %3003 = vst.msk [vmem:[#allocation2 + $0x60] sm:$0xff] %vm572_vm9, %v2971_v29  ;;  %v2972_v7 = vadd.f32 %v2940_v63, %v2851_v43  ;;  %2266 = vst.msk [vmem:[#allocation2 + $0x88] sm:$0xff] %vm572_vm9, %v2234_v15 }
 0x181   : > { %3006 = vst.msk [vmem:[#allocation2 + $0x78] sm:$0xff] %vm572_vm9, %v2974_v24  ;;  %v2214_v24 = vld [vmem:[#allocation2 + $0xe8] sm:$0xff] }
 0x182   : > { %3004 = vst.msk [vmem:[#allocation2 + $0x68] sm:$0xff] %vm572_vm9, %v2972_v7  ;;  %v6369_v58 = vpop.f32.mrb[68].mxu1 }
 0x183   : > { %v2239_v37 = vadd.f32 %v6369_v58, %v2207_v10  ;;  %v2138_v59 = vpop.f32.mrb[69].mxu1 }
 0x184   : > { %v6399_v48 = vpop.f32.mrb[64].mxu0  ;;  %v2945_v30 = vld [vmem:[#allocation2 + $0x90] sm:$0xff]  ;;  %v2237_v56 = vadd.f32 %v2205_v62, %v2138_v59  ;;  %v6370_v22 = vpop.f32.mrb[70].mxu1 }
 0x185   : > { %v2864_v20 = vpop.f32.mrb[65].mxu0  ;;  %v2977_v47 = vadd.f32 %v6399_v48, %v2945_v30  ;;  %2271 = vst.msk [vmem:[#allocation2 + $0xb0] sm:$0xff] %vm572_vm9, %v2239_v37  ;;  %v2943_v17 = vld [vmem:[#allocation2 + $0x80] sm:$0xff]  ;;  %v2240_v32 = vadd.f32 %v6370_v22, %v2208_v33  ;;  %v2141_v35 = vpop.f32.mrb[71].mxu1 }
 0x186   : > { %v6400_v16 = vpop.f32.mrb[66].mxu0  ;;  %v2975_v26 = vadd.f32 %v2943_v17, %v2864_v20  ;;  %2269 = vst.msk [vmem:[#allocation2 + $0xa0] sm:$0xff] %vm572_vm9, %v2237_v56  ;;  %v2946_v14 = vld [vmem:[#allocation2 + $0x98] sm:$0xff]  ;;  %v2238_v21 = vadd.f32 %v2206_v28, %v2141_v35 }
 0x187   : > { %v2867_v27 = vpop.f32.mrb[67].mxu0  ;;  %3009 = vst.msk [vmem:[#allocation2 + $0x90] sm:$0xff] %vm572_vm9, %v2977_v47  ;;  %v2978_v40 = vadd.f32 %v6400_v16, %v2946_v14  ;;  %2272 = vst.msk [vmem:[#allocation2 + $0xb8] sm:$0xff] %vm572_vm9, %v2240_v32  ;;  %v2944_v2 = vld [vmem:[#allocation2 + $0x88] sm:$0xff]  ;;  %v3415_v32 = vld [vmem:[#allocation2 + $0x10] sm:$0xff] }
 0x188   : > { %3007 = vst.msk [vmem:[#allocation2 + $0x80] sm:$0xff] %vm572_vm9, %v2975_v26  ;;  %v2976_v39 = vadd.f32 %v2944_v2, %v2867_v27  ;;  %2270 = vst.msk [vmem:[#allocation2 + $0xa8] sm:$0xff] %vm572_vm9, %v2238_v21  ;;  %v3413_v21 = vld [vmem:[#allocation2] sm:$0xff] }
 0x189   : > { %3010 = vst.msk [vmem:[#allocation2 + $0x98] sm:$0xff] %vm572_vm9, %v2978_v40 }
 0x18a   : > { %3008 = vst.msk [vmem:[#allocation2 + $0x88] sm:$0xff] %vm572_vm9, %v2976_v39  ;;  %v6373_v18 = vpop.f32.mrb[72].mxu1 }
 0x18b   : > { %v2243_v23 = vadd.f32 %v6373_v18, %v2211_v5  ;;  %v2154_v51 = vpop.f32.mrb[73].mxu1 }
 0x18c   : > { %v2949_v19 = vld [vmem:[#allocation2 + $0xb0] sm:$0xff]  ;;  %v2241_v34 = vadd.f32 %v2209_v55, %v2154_v51  ;;  %v6374_v46 = vpop.f32.mrb[74].mxu1 }
 0x18d   : > { %v6403_v54 = vpop.f32.mrb[68].mxu0  ;;  %2275 = vst.msk [vmem:[#allocation2 + $0xd0] sm:$0xff] %vm572_vm9, %v2243_v23  ;;  %v2947_v8 = vld [vmem:[#allocation2 + $0xa0] sm:$0xff]  ;;  %v2244_v49 = vadd.f32 %v6374_v46, %v2212_v61  ;;  %v2157_v57 = vpop.f32.mrb[75].mxu1  ;;  %v3416_v23 = vld [vmem:[#allocation2 + $0x18] sm:$0xff] }
 0x18e   : > { %v2981_v42 = vadd.f32 %v6403_v54, %v2949_v19  ;;  %v2880_v9 = vpop.f32.mrb[69].mxu0  ;;  %2273 = vst.msk [vmem:[#allocation2 + $0xc0] sm:$0xff] %vm572_vm9, %v2241_v34  ;;  %v2950_v3 = vld [vmem:[#allocation2 + $0xb8] sm:$0xff]  ;;  %v2242_v41 = vadd.f32 %v2210_v31, %v2157_v57  ;;  %v3414_v34 = vld [vmem:[#allocation2 + $0x8] sm:$0xff] }
 0x18f   : > { %v2979_v12 = vadd.f32 %v2947_v8, %v2880_v9  ;;  %v6404_v45 = vpop.f32.mrb[70].mxu0  ;;  %2276 = vst.msk [vmem:[#allocation2 + $0xd8] sm:$0xff] %vm572_vm9, %v2244_v49  ;;  %v2948_v36 = vld [vmem:[#allocation2 + $0xa8] sm:$0xff]  ;;  %v3419_v8 = vld [vmem:[#allocation2 + $0x30] sm:$0xff] }
 0x190   : > { %3013 = vst.msk [vmem:[#allocation2 + $0xb0] sm:$0xff] %vm572_vm9, %v2981_v42  ;;  %v2982_v60 = vadd.f32 %v6404_v45, %v2950_v3  ;;  %v2883_v13 = vpop.f32.mrb[71].mxu0  ;;  %2274 = vst.msk [vmem:[#allocation2 + $0xc8] sm:$0xff] %vm572_vm9, %v2242_v41  ;;  %v3417_v42 = vld [vmem:[#allocation2 + $0x20] sm:$0xff]  ;;  %v3420_v45 = vld [vmem:[#allocation2 + $0x38] sm:$0xff] }
 0x191   : > { %3011 = vst.msk [vmem:[#allocation2 + $0xa0] sm:$0xff] %vm572_vm9, %v2979_v12  ;;  %v2980_v0 = vadd.f32 %v2948_v36, %v2883_v13 }
 0x192   : > { %3014 = vst.msk [vmem:[#allocation2 + $0xb8] sm:$0xff] %vm572_vm9, %v2982_v60  ;;  %v6377_v6 = vpop.f32.mrb[76].mxu1 }
 0x193   : > { %3012 = vst.msk [vmem:[#allocation2 + $0xa8] sm:$0xff] %vm572_vm9, %v2980_v0  ;;  %v2247_v25 = vadd.f32 %v6377_v6, %v2215_v52  ;;  %v2170_v1 = vpop.f32.mrb[77].mxu1  ;;  %v3418_v52 = vld [vmem:[#allocation2 + $0x28] sm:$0xff] }
 0x194   : > { %v2953_v50 = vld [vmem:[#allocation2 + $0xd0] sm:$0xff]  ;;  %v2245_v38 = vadd.f32 %v2213_v4, %v2170_v1  ;;  %v6378_v11 = vpop.f32.mrb[78].mxu1 }
 0x195   : > { %2279 = vst.msk [vmem:[#allocation2 + $0xf0] sm:$0xff] %vm572_vm9, %v2247_v25  ;;  %v2951_v44 = vld [vmem:[#allocation2 + $0xc0] sm:$0xff]  ;;  %v2248_v43 = vadd.f32 %v6378_v11, %v2216_v53  ;;  %v2173_v15 = vpop.f32.mrb[79].mxu1 }
 0x196   : > { %v6407_v29 = vpop.f32.mrb[72].mxu0  ;;  %2277 = vst.msk [vmem:[#allocation2 + $0xe0] sm:$0xff] %vm572_vm9, %v2245_v38  ;;  %v2954_v58 = vld [vmem:[#allocation2 + $0xd8] sm:$0xff]  ;;  %v2246_v10 = vadd.f32 %v2214_v24, %v2173_v15 }
 0x197   : > { %v2985_v63 = vadd.f32 %v6407_v29, %v2953_v50  ;;  %v2896_v7 = vpop.f32.mrb[73].mxu0  ;;  %2280 = vst.msk [vmem:[#allocation2 + $0xf8] sm:$0xff] %vm572_vm9, %v2248_v43  ;;  %v2952_v59 = vld [vmem:[#allocation2 + $0xc8] sm:$0xff] }
 0x198   : > { %v2983_v48 = vadd.f32 %v2951_v44, %v2896_v7  ;;  %v6408_v37 = vpop.f32.mrb[74].mxu0  ;;  %2278 = vst.msk [vmem:[#allocation2 + $0xe8] sm:$0xff] %vm572_vm9, %v2246_v10  ;;  %v3423_v44 = vld [vmem:[#allocation2 + $0x50] sm:$0xff] }
 0x199   : > { %3017 = vst.msk [vmem:[#allocation2 + $0xd0] sm:$0xff] %vm572_vm9, %v2985_v63  ;;  %v2986_v62 = vadd.f32 %v6408_v37, %v2954_v58  ;;  %v2899_v30 = vpop.f32.mrb[75].mxu0  ;;  %v3421_v63 = vld [vmem:[#allocation2 + $0x40] sm:$0xff]  ;;  %v3424_v37 = vld [vmem:[#allocation2 + $0x58] sm:$0xff] }
 0x19a   : > { %3015 = vst.msk [vmem:[#allocation2 + $0xc0] sm:$0xff] %vm572_vm9, %v2983_v48  ;;  %v2984_v20 = vadd.f32 %v2952_v59, %v2899_v30 }
 0x19b   : > { %3018 = vst.msk [vmem:[#allocation2 + $0xd8] sm:$0xff] %vm572_vm9, %v2986_v62 }
 0x19c   : > { %3016 = vst.msk [vmem:[#allocation2 + $0xc8] sm:$0xff] %vm572_vm9, %v2984_v20  ;;  %v2957_v56 = vld [vmem:[#allocation2 + $0xf0] sm:$0xff] }
 0x19d   : > { %v2955_v33 = vld [vmem:[#allocation2 + $0xe0] sm:$0xff] }
 0x19e   : > { %v6411_v22 = vpop.f32.mrb[76].mxu0  ;;  %v2958_v35 = vld [vmem:[#allocation2 + $0xf8] sm:$0xff] }
 0x19f   : > { %v2989_v47 = vadd.f32 %v6411_v22, %v2957_v56  ;;  %v2912_v17 = vpop.f32.mrb[77].mxu0  ;;  %v6417_v16 = vpop.f32.mrb[80].mxu1  ;;  %v2956_v40 = vld [vmem:[#allocation2 + $0xe8] sm:$0xff] }
 0x1a0   : > { %v2987_v28 = vadd.f32 %v2955_v33, %v2912_v17  ;;  %v3447_v26 = vadd.f32 %v6417_v16, %v3415_v32  ;;  %v6412_v14 = vpop.f32.mrb[78].mxu0  ;;  %v3286_v27 = vpop.f32.mrb[81].mxu1  ;;  %v3422_v22 = vld [vmem:[#allocation2 + $0x48] sm:$0xff] }
 0x1a1   : > { %3021 = vst.msk [vmem:[#allocation2 + $0xf0] sm:$0xff] %vm572_vm9, %v2989_v47  ;;  %v2990_v2 = vadd.f32 %v6412_v14, %v2958_v35  ;;  %v3445_v39 = vadd.f32 %v3413_v21, %v3286_v27  ;;  %v2915_v18 = vpop.f32.mrb[79].mxu0  ;;  %v6418_v5 = vpop.f32.mrb[82].mxu1  ;;  %v3427_v14 = vld [vmem:[#allocation2 + $0x70] sm:$0xff] }
 0x1a2   : > { %3019 = vst.msk [vmem:[#allocation2 + $0xe0] sm:$0xff] %vm572_vm9, %v2987_v28  ;;  %3479 = vst.msk [vmem:[#allocation2 + $0x10] sm:$0xff] %vm572_vm9, %v3447_v26  ;;  %v2988_v51 = vadd.f32 %v2956_v40, %v2915_v18  ;;  %v3448_v55 = vadd.f32 %v6418_v5, %v3416_v23  ;;  %v3289_v19 = vpop.f32.mrb[83].mxu1 }
 0x1a3   : > { %3022 = vst.msk [vmem:[#allocation2 + $0xf8] sm:$0xff] %vm572_vm9, %v2990_v2  ;;  %3477 = vst.msk [vmem:[#allocation2] sm:$0xff] %vm572_vm9, %v3445_v39  ;;  %v3446_v46 = vadd.f32 %v3414_v34, %v3289_v19  ;;  %v3425_v2 = vld [vmem:[#allocation2 + $0x60] sm:$0xff] }
 0x1a4   : > { %3020 = vst.msk [vmem:[#allocation2 + $0xe8] sm:$0xff] %vm572_vm9, %v2988_v51  ;;  %3480 = vst.msk [vmem:[#allocation2 + $0x18] sm:$0xff] %vm572_vm9, %v3448_v55  ;;  %v3428_v51 = vld [vmem:[#allocation2 + $0x78] sm:$0xff] }
 0x1a5   : > { %3478 = vst.msk [vmem:[#allocation2 + $0x8] sm:$0xff] %vm572_vm9, %v3446_v46 }
 0x1a6   : > { %v6451_v61 = vpop.f32.mrb[80].mxu0 }
 0x1a7   : > { %v6421_v54 = vpop.f32.mrb[84].mxu1  ;;  %v3728_v49 = vpop.f32.mrb[81].mxu0 }
 0x1a8   : > { %v3451_v57 = vadd.f32 %v6421_v54, %v3419_v8  ;;  %v3302_v31 = vpop.f32.mrb[85].mxu1  ;;  %v6452_v9 = vpop.f32.mrb[82].mxu0  ;;  %v3426_v54 = vld [vmem:[#allocation2 + $0x68] sm:$0xff] }
 0x1a9   : > { %v3857_v3 = vld [vmem:[#allocation2 + $0x10] sm:$0xff]  ;;  %v3449_v41 = vadd.f32 %v3417_v42, %v3302_v31  ;;  %v6422_v12 = vpop.f32.mrb[86].mxu1  ;;  %v3731_v36 = vpop.f32.mrb[83].mxu0 }
 0x1aa   : > { %v3889_v60 = vadd.f32 %v6451_v61, %v3857_v3  ;;  %3483 = vst.msk [vmem:[#allocation2 + $0x30] sm:$0xff] %vm572_vm9, %v3451_v57  ;;  %v3855_v13 = vld [vmem:[#allocation2] sm:$0xff]  ;;  %v3452_v0 = vadd.f32 %v6422_v12, %v3420_v45  ;;  %v3305_v6 = vpop.f32.mrb[87].mxu1  ;;  %v3431_v12 = vld [vmem:[#allocation2 + $0x90] sm:$0xff] }
 0x1ab   : > { %v3887_v25 = vadd.f32 %v3855_v13, %v3728_v49  ;;  %3481 = vst.msk [vmem:[#allocation2 + $0x20] sm:$0xff] %vm572_vm9, %v3449_v41  ;;  %v3858_v1 = vld [vmem:[#allocation2 + $0x18] sm:$0xff]  ;;  %v3450_v4 = vadd.f32 %v3418_v52, %v3305_v6  ;;  %v3429_v13 = vld [vmem:[#allocation2 + $0x80] sm:$0xff] }
 0x1ac   : > { %3921 = vst.msk [vmem:[#allocation2 + $0x10] sm:$0xff] %vm572_vm9, %v3889_v60  ;;  %v3890_v50 = vadd.f32 %v6452_v9, %v3858_v1  ;;  %3484 = vst.msk [vmem:[#allocation2 + $0x38] sm:$0xff] %vm572_vm9, %v3452_v0  ;;  %v3856_v38 = vld [vmem:[#allocation2 + $0x8] sm:$0xff]  ;;  %v3432_v1 = vld [vmem:[#allocation2 + $0x98] sm:$0xff] }
 0x1ad   : > { %3919 = vst.msk [vmem:[#allocation2] sm:$0xff] %vm572_vm9, %v3887_v25  ;;  %v3888_v11 = vadd.f32 %v3856_v38, %v3731_v36  ;;  %3482 = vst.msk [vmem:[#allocation2 + $0x28] sm:$0xff] %vm572_vm9, %v3450_v4 }
 0x1ae   : > { %3922 = vst.msk [vmem:[#allocation2 + $0x18] sm:$0xff] %vm572_vm9, %v3890_v50  ;;  %v6455_v53 = vpop.f32.mrb[84].mxu0 }
 0x1af   : > { %3920 = vst.msk [vmem:[#allocation2 + $0x8] sm:$0xff] %vm572_vm9, %v3888_v11  ;;  %v6425_v29 = vpop.f32.mrb[88].mxu1  ;;  %v3744_v43 = vpop.f32.mrb[85].mxu0 }
 0x1b0   : > { %v3455_v15 = vadd.f32 %v6425_v29, %v3423_v44  ;;  %v3318_v24 = vpop.f32.mrb[89].mxu1  ;;  %v6456_v7 = vpop.f32.mrb[86].mxu0  ;;  %v3430_v29 = vld [vmem:[#allocation2 + $0x88] sm:$0xff] }
 0x1b1   : > { %v3861_v58 = vld [vmem:[#allocation2 + $0x30] sm:$0xff]  ;;  %v3453_v10 = vadd.f32 %v3421_v63, %v3318_v24  ;;  %v6426_v48 = vpop.f32.mrb[90].mxu1  ;;  %v3747_v59 = vpop.f32.mrb[87].mxu0 }
 0x1b2   : > { %v3893_v62 = vadd.f32 %v6455_v53, %v3861_v58  ;;  %3487 = vst.msk [vmem:[#allocation2 + $0x50] sm:$0xff] %vm572_vm9, %v3455_v15  ;;  %v3859_v30 = vld [vmem:[#allocation2 + $0x20] sm:$0xff]  ;;  %v3456_v20 = vadd.f32 %v6426_v48, %v3424_v37  ;;  %v3321_v56 = vpop.f32.mrb[91].mxu1  ;;  %v3435_v48 = vld [vmem:[#allocation2 + $0xb0] sm:$0xff] }
 0x1b3   : > { %v3891_v33 = vadd.f32 %v3859_v30, %v3744_v43  ;;  %3485 = vst.msk [vmem:[#allocation2 + $0x40] sm:$0xff] %vm572_vm9, %v3453_v10  ;;  %v3862_v47 = vld [vmem:[#allocation2 + $0x38] sm:$0xff]  ;;  %v3454_v17 = vadd.f32 %v3422_v22, %v3321_v56  ;;  %v3433_v30 = vld [vmem:[#allocation2 + $0xa0] sm:$0xff] }
 0x1b4   : > { %3925 = vst.msk [vmem:[#allocation2 + $0x30] sm:$0xff] %vm572_vm9, %v3893_v62  ;;  %v3894_v16 = vadd.f32 %v6456_v7, %v3862_v47  ;;  %3488 = vst.msk [vmem:[#allocation2 + $0x58] sm:$0xff] %vm572_vm9, %v3456_v20  ;;  %v3860_v32 = vld [vmem:[#allocation2 + $0x28] sm:$0xff]  ;;  %v3436_v47 = vld [vmem:[#allocation2 + $0xb8] sm:$0xff] }
 0x1b5   : > { %3923 = vst.msk [vmem:[#allocation2 + $0x20] sm:$0xff] %vm572_vm9, %v3891_v33  ;;  %v3892_v35 = vadd.f32 %v3860_v32, %v3747_v59  ;;  %3486 = vst.msk [vmem:[#allocation2 + $0x48] sm:$0xff] %vm572_vm9, %v3454_v17 }
 0x1b6   : > { %3926 = vst.msk [vmem:[#allocation2 + $0x38] sm:$0xff] %vm572_vm9, %v3894_v16  ;;  %v6459_v28 = vpop.f32.mrb[88].mxu0 }
 0x1b7   : > { %3924 = vst.msk [vmem:[#allocation2 + $0x28] sm:$0xff] %vm572_vm9, %v3892_v35  ;;  %v6429_v26 = vpop.f32.mrb[92].mxu1  ;;  %v3760_v27 = vpop.f32.mrb[89].mxu0 }
 0x1b8   : > { %v3459_v21 = vadd.f32 %v6429_v26, %v3427_v14  ;;  %v3334_v40 = vpop.f32.mrb[93].mxu1  ;;  %v6460_v39 = vpop.f32.mrb[90].mxu0  ;;  %v3434_v26 = vld [vmem:[#allocation2 + $0xa8] sm:$0xff] }
 0x1b9   : > { %v3865_v18 = vld [vmem:[#allocation2 + $0x50] sm:$0xff]  ;;  %v3457_v5 = vadd.f32 %v3425_v2, %v3334_v40  ;;  %v6430_v23 = vpop.f32.mrb[94].mxu1  ;;  %v3763_v55 = vpop.f32.mrb[91].mxu0 }
 0x1ba   : > { %v3897_v19 = vadd.f32 %v6459_v28, %v3865_v18  ;;  %3491 = vst.msk [vmem:[#allocation2 + $0x70] sm:$0xff] %vm572_vm9, %v3459_v21  ;;  %v3863_v34 = vld [vmem:[#allocation2 + $0x40] sm:$0xff]  ;;  %v3460_v46 = vadd.f32 %v6430_v23, %v3428_v51  ;;  %v3337_v61 = vpop.f32.mrb[95].mxu1  ;;  %v3439_v23 = vld [vmem:[#allocation2 + $0xd0] sm:$0xff] }
 0x1bb   : > { %v3895_v8 = vadd.f32 %v3863_v34, %v3760_v27  ;;  %3489 = vst.msk [vmem:[#allocation2 + $0x60] sm:$0xff] %vm572_vm9, %v3457_v5  ;;  %v3866_v49 = vld [vmem:[#allocation2 + $0x58] sm:$0xff]  ;;  %v3458_v57 = vadd.f32 %v3426_v54, %v3337_v61  ;;  %v3437_v34 = vld [vmem:[#allocation2 + $0xc0] sm:$0xff] }
 0x1bc   : > { %3929 = vst.msk [vmem:[#allocation2 + $0x50] sm:$0xff] %vm572_vm9, %v3897_v19  ;;  %v3898_v31 = vadd.f32 %v6460_v39, %v3866_v49  ;;  %3492 = vst.msk [vmem:[#allocation2 + $0x78] sm:$0xff] %vm572_vm9, %v3460_v46  ;;  %v3864_v42 = vld [vmem:[#allocation2 + $0x48] sm:$0xff]  ;;  %v3440_v49 = vld [vmem:[#allocation2 + $0xd8] sm:$0xff] }
 0x1bd   : > { %3927 = vst.msk [vmem:[#allocation2 + $0x40] sm:$0xff] %vm572_vm9, %v3895_v8  ;;  %v3896_v9 = vadd.f32 %v3864_v42, %v3763_v55  ;;  %3490 = vst.msk [vmem:[#allocation2 + $0x68] sm:$0xff] %vm572_vm9, %v3458_v57 }
 0x1be   : > { %3930 = vst.msk [vmem:[#allocation2 + $0x58] sm:$0xff] %vm572_vm9, %v3898_v31  ;;  %v6463_v3 = vpop.f32.mrb[92].mxu0 }
 0x1bf   : > { %3928 = vst.msk [vmem:[#allocation2 + $0x48] sm:$0xff] %vm572_vm9, %v3896_v9  ;;  %v6433_v41 = vpop.f32.mrb[96].mxu1  ;;  %v3776_v45 = vpop.f32.mrb[93].mxu0 }
 0x1c0   : > { %v3463_v36 = vadd.f32 %v6433_v41, %v3431_v12  ;;  %v3350_v60 = vpop.f32.mrb[97].mxu1  ;;  %v6464_v0 = vpop.f32.mrb[94].mxu0  ;;  %v3438_v41 = vld [vmem:[#allocation2 + $0xc8] sm:$0xff] }
 0x1c1   : > { %v3869_v6 = vld [vmem:[#allocation2 + $0x70] sm:$0xff]  ;;  %v3461_v52 = vadd.f32 %v3429_v13, %v3350_v60  ;;  %v6434_v25 = vpop.f32.mrb[98].mxu1  ;;  %v3779_v4 = vpop.f32.mrb[95].mxu0 }
 0x1c2   : > { %v3901_v50 = vadd.f32 %v6463_v3, %v3869_v6  ;;  %3495 = vst.msk [vmem:[#allocation2 + $0x90] sm:$0xff] %vm572_vm9, %v3463_v36  ;;  %v3867_v38 = vld [vmem:[#allocation2 + $0x60] sm:$0xff]  ;;  %v3464_v11 = vadd.f32 %v6434_v25, %v3432_v1  ;;  %v3353_v53 = vpop.f32.mrb[99].mxu1  ;;  %v3443_v25 = vld [vmem:[#allocation2 + $0xf0] sm:$0xff] }
 0x1c3   : > { %v3899_v44 = vadd.f32 %v3867_v38, %v3776_v45  ;;  %3493 = vst.msk [vmem:[#allocation2 + $0x80] sm:$0xff] %vm572_vm9, %v3461_v52  ;;  %v3870_v43 = vld [vmem:[#allocation2 + $0x78] sm:$0xff]  ;;  %v3462_v15 = vadd.f32 %v3430_v29, %v3353_v53  ;;  %v3441_v38 = vld [vmem:[#allocation2 + $0xe0] sm:$0xff] }
 0x1c4   : > { %3933 = vst.msk [vmem:[#allocation2 + $0x70] sm:$0xff] %vm572_vm9, %v3901_v50  ;;  %v3902_v24 = vadd.f32 %v6464_v0, %v3870_v43  ;;  %3496 = vst.msk [vmem:[#allocation2 + $0x98] sm:$0xff] %vm572_vm9, %v3464_v11  ;;  %v3868_v63 = vld [vmem:[#allocation2 + $0x68] sm:$0xff]  ;;  %v3444_v43 = vld [vmem:[#allocation2 + $0xf8] sm:$0xff] }
 0x1c5   : > { %3931 = vst.msk [vmem:[#allocation2 + $0x60] sm:$0xff] %vm572_vm9, %v3899_v44  ;;  %v3900_v7 = vadd.f32 %v3868_v63, %v3779_v4  ;;  %3494 = vst.msk [vmem:[#allocation2 + $0x88] sm:$0xff] %vm572_vm9, %v3462_v15 }
 0x1c6   : > { %3934 = vst.msk [vmem:[#allocation2 + $0x78] sm:$0xff] %vm572_vm9, %v3902_v24  ;;  %v6467_v58 = vpop.f32.mrb[96].mxu0 }
 0x1c7   : > { %3932 = vst.msk [vmem:[#allocation2 + $0x68] sm:$0xff] %vm572_vm9, %v3900_v7  ;;  %v6437_v10 = vpop.f32.mrb[100].mxu1  ;;  %v3792_v37 = vpop.f32.mrb[97].mxu0 }
 0x1c8   : > { %v3467_v59 = vadd.f32 %v6437_v10, %v3435_v48  ;;  %v3366_v62 = vpop.f32.mrb[101].mxu1  ;;  %v6468_v20 = vpop.f32.mrb[98].mxu0  ;;  %v3442_v10 = vld [vmem:[#allocation2 + $0xe8] sm:$0xff] }
 0x1c9   : > { %v3873_v56 = vld [vmem:[#allocation2 + $0x90] sm:$0xff]  ;;  %v3465_v22 = vadd.f32 %v3433_v30, %v3366_v62  ;;  %v6438_v33 = vpop.f32.mrb[102].mxu1  ;;  %v3795_v17 = vpop.f32.mrb[99].mxu0 }
 0x1ca   : > { %v3905_v16 = vadd.f32 %v6467_v58, %v3873_v56  ;;  %3499 = vst.msk [vmem:[#allocation2 + $0xb0] sm:$0xff] %vm572_vm9, %v3467_v59  ;;  %v3871_v32 = vld [vmem:[#allocation2 + $0x80] sm:$0xff]  ;;  %v3468_v35 = vadd.f32 %v6438_v33, %v3436_v47  ;;  %v3369_v28 = vpop.f32.mrb[103].mxu1  ;;  %v4599_v47 = vld [vmem:[#allocation2 + $0x10] sm:$0xff] }
 0x1cb   : > { %v3903_v14 = vadd.f32 %v3871_v32, %v3792_v37  ;;  %3497 = vst.msk [vmem:[#allocation2 + $0xa0] sm:$0xff] %vm572_vm9, %v3465_v22  ;;  %v3874_v27 = vld [vmem:[#allocation2 + $0x98] sm:$0xff]  ;;  %v3466_v21 = vadd.f32 %v3434_v26, %v3369_v28 }
 0x1cc   : > { %3937 = vst.msk [vmem:[#allocation2 + $0x90] sm:$0xff] %vm572_vm9, %v3905_v16  ;;  %v3906_v40 = vadd.f32 %v6468_v20, %v3874_v27  ;;  %3500 = vst.msk [vmem:[#allocation2 + $0xb8] sm:$0xff] %vm572_vm9, %v3468_v35  ;;  %v3872_v2 = vld [vmem:[#allocation2 + $0x88] sm:$0xff]  ;;  %v4597_v35 = vld [vmem:[#allocation2] sm:$0xff] }
 0x1cd   : > { %3935 = vst.msk [vmem:[#allocation2 + $0x80] sm:$0xff] %vm572_vm9, %v3903_v14  ;;  %v3904_v39 = vadd.f32 %v3872_v2, %v3795_v17  ;;  %3498 = vst.msk [vmem:[#allocation2 + $0xa8] sm:$0xff] %vm572_vm9, %v3466_v21  ;;  %v4600_v21 = vld [vmem:[#allocation2 + $0x18] sm:$0xff] }
 0x1ce   : > { %3938 = vst.msk [vmem:[#allocation2 + $0x98] sm:$0xff] %vm572_vm9, %v3906_v40  ;;  %v6471_v18 = vpop.f32.mrb[100].mxu0 }
 0x1cf   : > { %3936 = vst.msk [vmem:[#allocation2 + $0x88] sm:$0xff] %vm572_vm9, %v3904_v39  ;;  %v6441_v5 = vpop.f32.mrb[104].mxu1  ;;  %v3808_v51 = vpop.f32.mrb[101].mxu0 }
 0x1d0   : > { %v3471_v55 = vadd.f32 %v6441_v5, %v3439_v23  ;;  %v3382_v19 = vpop.f32.mrb[105].mxu1  ;;  %v6472_v46 = vpop.f32.mrb[102].mxu0  ;;  %v4598_v5 = vld [vmem:[#allocation2 + $0x8] sm:$0xff] }
 0x1d1   : > { %v3877_v61 = vld [vmem:[#allocation2 + $0xb0] sm:$0xff]  ;;  %v3469_v54 = vadd.f32 %v3437_v34, %v3382_v19  ;;  %v6442_v8 = vpop.f32.mrb[106].mxu1  ;;  %v3811_v57 = vpop.f32.mrb[103].mxu0 }
 0x1d2   : > { %v3909_v31 = vadd.f32 %v6471_v18, %v3877_v61  ;;  %3503 = vst.msk [vmem:[#allocation2 + $0xd0] sm:$0xff] %vm572_vm9, %v3471_v55  ;;  %v3875_v42 = vld [vmem:[#allocation2 + $0xa0] sm:$0xff]  ;;  %v3472_v9 = vadd.f32 %v6442_v8, %v3440_v49  ;;  %v3385_v3 = vpop.f32.mrb[107].mxu1  ;;  %v4603_v8 = vld [vmem:[#allocation2 + $0x30] sm:$0xff] }
 0x1d3   : > { %v3907_v12 = vadd.f32 %v3875_v42, %v3808_v51  ;;  %3501 = vst.msk [vmem:[#allocation2 + $0xc0] sm:$0xff] %vm572_vm9, %v3469_v54  ;;  %v3878_v45 = vld [vmem:[#allocation2 + $0xb8] sm:$0xff]  ;;  %v3470_v36 = vadd.f32 %v3438_v41, %v3385_v3  ;;  %v4601_v42 = vld [vmem:[#allocation2 + $0x20] sm:$0xff] }
 0x1d4   : > { %3941 = vst.msk [vmem:[#allocation2 + $0xb0] sm:$0xff] %vm572_vm9, %v3909_v31  ;;  %v3910_v60 = vadd.f32 %v6472_v46, %v3878_v45  ;;  %3504 = vst.msk [vmem:[#allocation2 + $0xd8] sm:$0xff] %vm572_vm9, %v3472_v9  ;;  %v3876_v13 = vld [vmem:[#allocation2 + $0xa8] sm:$0xff]  ;;  %v4604_v45 = vld [vmem:[#allocation2 + $0x38] sm:$0xff] }
 0x1d5   : > { %3939 = vst.msk [vmem:[#allocation2 + $0xa0] sm:$0xff] %vm572_vm9, %v3907_v12  ;;  %v3908_v0 = vadd.f32 %v3876_v13, %v3811_v57  ;;  %3502 = vst.msk [vmem:[#allocation2 + $0xc8] sm:$0xff] %vm572_vm9, %v3470_v36 }
 0x1d6   : > { %3942 = vst.msk [vmem:[#allocation2 + $0xb8] sm:$0xff] %vm572_vm9, %v3910_v60  ;;  %v6475_v6 = vpop.f32.mrb[104].mxu0 }
 0x1d7   : > { %3940 = vst.msk [vmem:[#allocation2 + $0xa8] sm:$0xff] %vm572_vm9, %v3908_v0  ;;  %v3824_v1 = vpop.f32.mrb[105].mxu0 }
 0x1d8   : > { %v6445_v52 = vpop.f32.mrb[108].mxu1  ;;  %v6476_v11 = vpop.f32.mrb[106].mxu0 }
 0x1d9   : > { %v3475_v4 = vadd.f32 %v6445_v52, %v3443_v25  ;;  %v3398_v50 = vpop.f32.mrb[109].mxu1  ;;  %v3881_v53 = vld [vmem:[#allocation2 + $0xd0] sm:$0xff]  ;;  %v3827_v15 = vpop.f32.mrb[107].mxu0  ;;  %v4602_v52 = vld [vmem:[#allocation2 + $0x28] sm:$0xff] }
 0x1da   : > { %v3473_v29 = vadd.f32 %v3441_v38, %v3398_v50  ;;  %v6446_v44 = vpop.f32.mrb[110].mxu1  ;;  %v3913_v24 = vadd.f32 %v6475_v6, %v3881_v53  ;;  %v3879_v63 = vld [vmem:[#allocation2 + $0xc0] sm:$0xff] }
 0x1db   : > { %3507 = vst.msk [vmem:[#allocation2 + $0xf0] sm:$0xff] %vm572_vm9, %v3475_v4  ;;  %v3476_v7 = vadd.f32 %v6446_v44, %v3444_v43  ;;  %v3401_v58 = vpop.f32.mrb[111].mxu1  ;;  %v3911_v48 = vadd.f32 %v3879_v63, %v3824_v1  ;;  %v3882_v37 = vld [vmem:[#allocation2 + $0xd8] sm:$0xff]  ;;  %v4607_v44 = vld [vmem:[#allocation2 + $0x50] sm:$0xff]  ;;  %v4605_v63 = vld [vmem:[#allocation2 + $0x40] sm:$0xff] }
 0x1dc   : > { %3505 = vst.msk [vmem:[#allocation2 + $0xe0] sm:$0xff] %vm572_vm9, %v3473_v29  ;;  %v3474_v59 = vadd.f32 %v3442_v10, %v3401_v58  ;;  %3945 = vst.msk [vmem:[#allocation2 + $0xd0] sm:$0xff] %vm572_vm9, %v3913_v24  ;;  %v3914_v62 = vadd.f32 %v6476_v11, %v3882_v37  ;;  %v3880_v30 = vld [vmem:[#allocation2 + $0xc8] sm:$0xff]  ;;  %v8901_v58 = vld [vmem:[%s9105_s2] ss:$0 sm:$0xff] }
 0x1dd   : > { %3508 = vst.msk [vmem:[#allocation2 + $0xf8] sm:$0xff] %vm572_vm9, %v3476_v7  ;;  %3943 = vst.msk [vmem:[#allocation2 + $0xc0] sm:$0xff] %vm572_vm9, %v3911_v48  ;;  %v3912_v20 = vadd.f32 %v3880_v30, %v3827_v15 }
 0x1de   : > { %3506 = vst.msk [vmem:[#allocation2 + $0xe8] sm:$0xff] %vm572_vm9, %v3474_v59  ;;  %3946 = vst.msk [vmem:[#allocation2 + $0xd8] sm:$0xff] %vm572_vm9, %v3914_v62  ;;  %v4608_v59 = vld [vmem:[#allocation2 + $0x58] sm:$0xff] }
 0x1df   : > { %3944 = vst.msk [vmem:[#allocation2 + $0xc8] sm:$0xff] %vm572_vm9, %v3912_v20 }
 0x1e0   : > { %v6485_v33 = vpop.f32.mrb[112].mxu1 }
 0x1e1   : > { %v6479_v56 = vpop.f32.mrb[108].mxu0  ;;  %v4631_v17 = vadd.f32 %v6485_v33, %v4599_v47  ;;  %v4470_v32 = vpop.f32.mrb[113].mxu1  ;;  %v4606_v33 = vld [vmem:[#allocation2 + $0x48] sm:$0xff] }
 0x1e2   : > { %v3840_v22 = vpop.f32.mrb[109].mxu0  ;;  %v3885_v28 = vld [vmem:[#allocation2 + $0xf0] sm:$0xff]  ;;  %v4629_v26 = vadd.f32 %v4597_v35, %v4470_v32  ;;  %v6486_v27 = vpop.f32.mrb[114].mxu1 }
 0x1e3   : > { %v6480_v16 = vpop.f32.mrb[110].mxu0  ;;  %v3917_v40 = vadd.f32 %v6479_v56, %v3885_v28  ;;  %v3883_v2 = vld [vmem:[#allocation2 + $0xe0] sm:$0xff]  ;;  %4663 = vst.msk [vmem:[#allocation2 + $0x10] sm:$0xff] %vm572_vm9, %v4631_v17  ;;  %v4632_v39 = vadd.f32 %v6486_v27, %v4600_v21  ;;  %v4473_v18 = vpop.f32.mrb[115].mxu1 }
 0x1e4   : > { %v3843_v14 = vpop.f32.mrb[111].mxu0  ;;  %v3915_v23 = vadd.f32 %v3883_v2, %v3840_v22  ;;  %v3886_v51 = vld [vmem:[#allocation2 + $0xf8] sm:$0xff]  ;;  %4661 = vst.msk [vmem:[#allocation2] sm:$0xff] %vm572_vm9, %v4629_v26  ;;  %v4630_v55 = vadd.f32 %v4598_v5, %v4473_v18  ;;  %v8907_v17 = vld [vmem:[%s9106_s3] ss:$0 sm:$0xff] }
 0x1e5   : > { %3949 = vst.msk [vmem:[#allocation2 + $0xf0] sm:$0xff] %vm572_vm9, %v3917_v40  ;;  %v3918_v19 = vadd.f32 %v6480_v16, %v3886_v51  ;;  %v3884_v34 = vld [vmem:[#allocation2 + $0xe8] sm:$0xff]  ;;  %4664 = vst.msk [vmem:[#allocation2 + $0x18] sm:$0xff] %vm572_vm9, %v4632_v39 }
 0x1e6   : > { %3947 = vst.msk [vmem:[#allocation2 + $0xe0] sm:$0xff] %vm572_vm9, %v3915_v23  ;;  %v3916_v46 = vadd.f32 %v3884_v34, %v3843_v14  ;;  %4662 = vst.msk [vmem:[#allocation2 + $0x8] sm:$0xff] %vm572_vm9, %v4630_v55  ;;  %v4611_v34 = vld [vmem:[#allocation2 + $0x70] sm:$0xff] }
 0x1e7   : > { %3950 = vst.msk [vmem:[#allocation2 + $0xf8] sm:$0xff] %vm572_vm9, %v3918_v19 }
 0x1e8   : > { %3948 = vst.msk [vmem:[#allocation2 + $0xe8] sm:$0xff] %vm572_vm9, %v3916_v46  ;;  %v6489_v54 = vpop.f32.mrb[116].mxu1 }
 0x1e9   : > { %v6519_v61 = vpop.f32.mrb[112].mxu0  ;;  %v4635_v57 = vadd.f32 %v6489_v54, %v4603_v8  ;;  %v4486_v31 = vpop.f32.mrb[117].mxu1 }
 0x1ea   : > { %v4956_v49 = vpop.f32.mrb[113].mxu0  ;;  %v5085_v3 = vld [vmem:[#allocation2 + $0x10] sm:$0xff]  ;;  %v4633_v41 = vadd.f32 %v4601_v42, %v4486_v31  ;;  %v6490_v12 = vpop.f32.mrb[118].mxu1 }
 0x1eb   : > { %v6520_v9 = vpop.f32.mrb[114].mxu0  ;;  %v5117_v60 = vadd.f32 %v6519_v61, %v5085_v3  ;;  %4667 = vst.msk [vmem:[#allocation2 + $0x30] sm:$0xff] %vm572_vm9, %v4635_v57  ;;  %v5083_v13 = vld [vmem:[#allocation2] sm:$0xff]  ;;  %v4636_v0 = vadd.f32 %v6490_v12, %v4604_v45  ;;  %v4489_v6 = vpop.f32.mrb[119].mxu1  ;;  %v4612_v45 = vld [vmem:[#allocation2 + $0x78] sm:$0xff] }
 0x1ec   : > { %v4959_v36 = vpop.f32.mrb[115].mxu0  ;;  %v5115_v25 = vadd.f32 %v5083_v13, %v4956_v49  ;;  %4665 = vst.msk [vmem:[#allocation2 + $0x20] sm:$0xff] %vm572_vm9, %v4633_v41  ;;  %v5086_v1 = vld [vmem:[#allocation2 + $0x18] sm:$0xff]  ;;  %v4634_v4 = vadd.f32 %v4602_v52, %v4489_v6  ;;  %v4609_v57 = vld [vmem:[#allocation2 + $0x60] sm:$0xff] }
 0x1ed   : > { %5149 = vst.msk [vmem:[#allocation2 + $0x10] sm:$0xff] %vm572_vm9, %v5117_v60  ;;  %v5118_v50 = vadd.f32 %v6520_v9, %v5086_v1  ;;  %4668 = vst.msk [vmem:[#allocation2 + $0x38] sm:$0xff] %vm572_vm9, %v4636_v0  ;;  %v5084_v38 = vld [vmem:[#allocation2 + $0x8] sm:$0xff] }
 0x1ee   : > { %5147 = vst.msk [vmem:[#allocation2] sm:$0xff] %vm572_vm9, %v5115_v25  ;;  %v5116_v11 = vadd.f32 %v5084_v38, %v4959_v36  ;;  %4666 = vst.msk [vmem:[#allocation2 + $0x28] sm:$0xff] %vm572_vm9, %v4634_v4  ;;  %v4610_v1 = vld [vmem:[#allocation2 + $0x68] sm:$0xff] }
 0x1ef   : > { %5150 = vst.msk [vmem:[#allocation2 + $0x18] sm:$0xff] %vm572_vm9, %v5118_v50 }
 0x1f0   : > { %5148 = vst.msk [vmem:[#allocation2 + $0x8] sm:$0xff] %vm572_vm9, %v5116_v11  ;;  %v6493_v29 = vpop.f32.mrb[120].mxu1 }
 0x1f1   : > { %v6523_v53 = vpop.f32.mrb[116].mxu0  ;;  %v4639_v15 = vadd.f32 %v6493_v29, %v4607_v44  ;;  %v4502_v24 = vpop.f32.mrb[121].mxu1 }
 0x1f2   : > { %v4972_v43 = vpop.f32.mrb[117].mxu0  ;;  %v5089_v10 = vld [vmem:[#allocation2 + $0x30] sm:$0xff]  ;;  %v4637_v48 = vadd.f32 %v4605_v63, %v4502_v24  ;;  %v6494_v37 = vpop.f32.mrb[122].mxu1 }
 0x1f3   : > { %v6524_v7 = vpop.f32.mrb[118].mxu0  ;;  %v5121_v30 = vadd.f32 %v6523_v53, %v5089_v10  ;;  %4671 = vst.msk [vmem:[#allocation2 + $0x50] sm:$0xff] %vm572_vm9, %v4639_v15  ;;  %v5087_v20 = vld [vmem:[#allocation2 + $0x20] sm:$0xff]  ;;  %v4640_v56 = vadd.f32 %v6494_v37, %v4608_v59  ;;  %v4505_v22 = vpop.f32.mrb[123].mxu1 }
 0x1f4   : > { %v4975_v62 = vpop.f32.mrb[119].mxu0  ;;  %v5181_v47 = vld [vmem:[#allocation2 + $0x10] sm:$0xff]  ;;  %v5119_v16 = vadd.f32 %v5087_v20, %v4972_v43  ;;  %4669 = vst.msk [vmem:[#allocation2 + $0x40] sm:$0xff] %vm572_vm9, %v4637_v48  ;;  %v5090_v32 = vld [vmem:[#allocation2 + $0x38] sm:$0xff]  ;;  %v4638_v35 = vadd.f32 %v4606_v33, %v4505_v22 }
 0x1f5   : > { %v5220_v28 = vmul.f32 %v8901_v58, %v5181_v47  ;;  %v5179_v26 = vld [vmem:[#allocation2] sm:$0xff]  ;;  %5153 = vst.msk [vmem:[#allocation2 + $0x30] sm:$0xff] %vm572_vm9, %v5121_v30  ;;  %v5122_v14 = vadd.f32 %v6524_v7, %v5090_v32  ;;  %4672 = vst.msk [vmem:[#allocation2 + $0x58] sm:$0xff] %vm572_vm9, %v4640_v56  ;;  %v5088_v27 = vld [vmem:[#allocation2 + $0x28] sm:$0xff] }
 0x1f6   : > { %v5218_v21 = vmul.f32 %v8901_v58, %v5179_v26  ;;  %v5182_v40 = vld [vmem:[#allocation2 + $0x18] sm:$0xff]  ;;  %5151 = vst.msk [vmem:[#allocation2 + $0x20] sm:$0xff] %vm572_vm9, %v5119_v16  ;;  %v5120_v2 = vadd.f32 %v5088_v27, %v4975_v62  ;;  %4670 = vst.msk [vmem:[#allocation2 + $0x48] sm:$0xff] %vm572_vm9, %v4638_v35  ;;  %v4615_v47 = vld [vmem:[#allocation2 + $0x90] sm:$0xff] }
 0x1f7   : > { %v5259_v39 = vadd.f32 %v8907_v17, %v5220_v28  ;;  %v5221_v18 = vmul.f32 %v8901_v58, %v5182_v40  ;;  %v5180_v5 = vld [vmem:[#allocation2 + $0x8] sm:$0xff]  ;;  %5154 = vst.msk [vmem:[#allocation2 + $0x38] sm:$0xff] %vm572_vm9, %v5122_v14  ;;  %v4613_v14 = vld [vmem:[#allocation2 + $0x80] sm:$0xff] }
 0x1f8   : > { %v5257_v51 = vadd.f32 %v8907_v17, %v5218_v21  ;;  %v5219_v55 = vmul.f32 %v8901_v58, %v5180_v5  ;;  %5152 = vst.msk [vmem:[#allocation2 + $0x28] sm:$0xff] %vm572_vm9, %v5120_v2  ;;  %v6497_v19 = vpop.f32.mrb[124].mxu1  ;;  %v4616_v5 = vld [vmem:[#allocation2 + $0x98] sm:$0xff] }
 0x1f9   : > { %v6527_v23 = vpop.f32.mrb[120].mxu0  ;;  %v5291_v61 = vmax.f32 %v5259_v39, 0.0  ;;  %v5260_v54 = vadd.f32 %v8907_v17, %v5221_v18  ;;  %v4643_v8 = vadd.f32 %v6497_v19, %v4611_v34  ;;  %v4518_v49 = vpop.f32.mrb[125].mxu1 }
 0x1fa   : > { %v4988_v46 = vpop.f32.mrb[121].mxu0  ;;  %v5289_v42 = vmax.f32 %v5257_v51, 0.0  ;;  %v5258_v9 = vadd.f32 %v8907_v17, %v5219_v55  ;;  %v5093_v3 = vld [vmem:[#allocation2 + $0x50] sm:$0xff]  ;;  %v4641_v41 = vadd.f32 %v4609_v57, %v4518_v49  ;;  %v6498_v12 = vpop.f32.mrb[126].mxu1 }
 0x1fb   : > { %v6528_v31 = vpop.f32.mrb[122].mxu0  ;;  %v6060_v60 = vpack.c.bf16 %v5291_v61, %v5291_v61  ;;  %v5292_v13 = vmax.f32 %v5260_v54, 0.0  ;;  %v5125_v0 = vadd.f32 %v6527_v23, %v5093_v3  ;;  %4675 = vst.msk [vmem:[#allocation2 + $0x70] sm:$0xff] %vm572_vm9, %v4643_v8  ;;  %v5091_v6 = vld [vmem:[#allocation2 + $0x40] sm:$0xff]  ;;  %v4644_v52 = vadd.f32 %v6498_v12, %v4612_v45  ;;  %v4521_v25 = vpop.f32.mrb[127].mxu1  ;;  %v4614_v54 = vld [vmem:[#allocation2 + $0x88] sm:$0xff] }
 0x1fc   : > { %v4991_v36 = vpop.f32.mrb[123].mxu0  ;;  %v6058_v4 = vpack.c.bf16 %v5289_v42, %v5289_v42  ;;  %v5290_v50 = vmax.f32 %v5258_v9, 0.0  ;;  %v5185_v38 = vld [vmem:[#allocation2 + $0x30] sm:$0xff]  ;;  %v5123_v11 = vadd.f32 %v5091_v6, %v4988_v46  ;;  %4673 = vst.msk [vmem:[#allocation2 + $0x60] sm:$0xff] %vm572_vm9, %v4641_v41  ;;  %v5094_v53 = vld [vmem:[#allocation2 + $0x58] sm:$0xff]  ;;  %v4642_v29 = vadd.f32 %v4610_v1, %v4521_v25 }
 0x1fd   : > { %5452 = vst.msk [vmem:[%s8927_s25 + $0x8] sm:$0xf] %vm5449_vm10, %v6060_v60  ;;  %v6061_v44 = vpack.c.bf16 %v5292_v13, %v5292_v13  ;;  %v5224_v43 = vmul.f32 %v8901_v58, %v5185_v38  ;;  %v5183_v15 = vld [vmem:[#allocation2 + $0x20] sm:$0xff]  ;;  %v5126_v24 = vadd.f32 %v6528_v31, %v5094_v53  ;;  %v5092_v63 = vld [vmem:[#allocation2 + $0x48] sm:$0xff] }
 0x1fe   : > { %5157 = vst.msk [vmem:[#allocation2 + $0x50] sm:$0xff] %vm572_vm9, %v5125_v0  ;;  %4676 = vst.msk [vmem:[#allocation2 + $0x78] sm:$0xff] %vm572_vm9, %v4644_v52  ;;  %v6059_v7 = vpack.c.bf16 %v5290_v50, %v5290_v50  ;;  %v5222_v10 = vmul.f32 %v8901_v58, %v5183_v15  ;;  %v5186_v48 = vld [vmem:[#allocation2 + $0x38] sm:$0xff]  ;;  %v5124_v37 = vadd.f32 %v5092_v63, %v4991_v36 }
 0x1ff   : > { %5450 = vst.msk [vmem:[%s8927_s25] sm:$0xf] %vm5449_vm10, %v6058_v4  ;;  %5453 = vst.msk [vmem:[%s8927_s25 + $0xc] sm:$0xf] %vm5449_vm10, %v6061_v44  ;;  %v5263_v59 = vadd.f32 %v8907_v17, %v5224_v43  ;;  %v5225_v62 = vmul.f32 %v8901_v58, %v5186_v48  ;;  %v5184_v30 = vld [vmem:[#allocation2 + $0x28] sm:$0xff] }
 0x200   : > { %5155 = vst.msk [vmem:[#allocation2 + $0x40] sm:$0xff] %vm572_vm9, %v5123_v11  ;;  %4674 = vst.msk [vmem:[#allocation2 + $0x68] sm:$0xff] %vm572_vm9, %v4642_v29  ;;  %v5261_v56 = vadd.f32 %v8907_v17, %v5222_v10  ;;  %v5223_v22 = vmul.f32 %v8901_v58, %v5184_v30 }
 0x201   : > { %5158 = vst.msk [vmem:[#allocation2 + $0x58] sm:$0xff] %vm572_vm9, %v5126_v24  ;;  %v6531_v20 = vpop.f32.mrb[124].mxu0  ;;  %5156 = vst.msk [vmem:[#allocation2 + $0x48] sm:$0xff] %vm572_vm9, %v5124_v37  ;;  %v5295_v32 = vmax.f32 %v5263_v59, 0.0  ;;  %v5264_v35 = vadd.f32 %v8907_v17, %v5225_v62 }
 0x202   : > { %5451 = vst.msk [vmem:[%s8927_s25 + $0x4] sm:$0xf] %vm5449_vm10, %v6059_v7  ;;  %v5004_v16 = vpop.f32.mrb[125].mxu0  ;;  %v5293_v21 = vmax.f32 %v5261_v56, 0.0  ;;  %v5262_v40 = vadd.f32 %v8907_v17, %v5223_v22  ;;  %v5097_v2 = vld [vmem:[#allocation2 + $0x70] sm:$0xff] }
 0x203   : > { %v6532_v27 = vpop.f32.mrb[126].mxu0  ;;  %v6064_v51 = vpack.c.bf16 %v5295_v32, %v5295_v32  ;;  %v5296_v55 = vmax.f32 %v5264_v35, 0.0  ;;  %v5129_v19 = vadd.f32 %v6531_v20, %v5097_v2  ;;  %v5095_v34 = vld [vmem:[#allocation2 + $0x60] sm:$0xff]  ;;  %v4619_v56 = vld [vmem:[#allocation2 + $0xb0] sm:$0xff] }
 0x204   : > { %v6501_v33 = vpop.f32.mrb[128].mxu1  ;;  %v5007_v23 = vpop.f32.mrb[127].mxu0  ;;  %v6062_v8 = vpack.c.bf16 %v5293_v21, %v5293_v21  ;;  %v5294_v49 = vmax.f32 %v5262_v40, 0.0  ;;  %v5127_v31 = vadd.f32 %v5095_v34, %v5004_v16 }
 0x205   : > { %v4647_v28 = vadd.f32 %v6501_v33, %v4615_v47  ;;  %v4534_v26 = vpop.f32.mrb[129].mxu1  ;;  %v5189_v57 = vld [vmem:[#allocation2 + $0x50] sm:$0xff]  ;;  %v5098_v42 = vld [vmem:[#allocation2 + $0x78] sm:$0xff]  ;;  %5456 = vst.msk [vmem:[%s8927_s25 + $0x18] sm:$0xf] %vm5449_vm10, %v6064_v51  ;;  %v6065_v3 = vpack.c.bf16 %v5296_v55, %v5296_v55 }
 0x206   : > { %v4645_v39 = vadd.f32 %v4613_v14, %v4534_v26  ;;  %v6502_v18 = vpop.f32.mrb[130].mxu1  ;;  %v5228_v41 = vmul.f32 %v8901_v58, %v5189_v57  ;;  %5161 = vst.msk [vmem:[#allocation2 + $0x70] sm:$0xff] %vm572_vm9, %v5129_v19  ;;  %v5130_v45 = vadd.f32 %v6532_v27, %v5098_v42  ;;  %v6063_v60 = vpack.c.bf16 %v5294_v49, %v5294_v49  ;;  %v4617_v26 = vld [vmem:[#allocation2 + $0xa0] sm:$0xff] }
 0x207   : > { %4679 = vst.msk [vmem:[#allocation2 + $0x90] sm:$0xff] %vm572_vm9, %v4647_v28  ;;  %v4648_v46 = vadd.f32 %v6502_v18, %v4616_v5  ;;  %v4537_v61 = vpop.f32.mrb[131].mxu1  ;;  %v5187_v12 = vld [vmem:[#allocation2 + $0x40] sm:$0xff]  ;;  %v5096_v36 = vld [vmem:[#allocation2 + $0x68] sm:$0xff]  ;;  %5159 = vst.msk [vmem:[#allocation2 + $0x60] sm:$0xff] %vm572_vm9, %v5127_v31 }
 0x208   : > { %4677 = vst.msk [vmem:[#allocation2 + $0x80] sm:$0xff] %vm572_vm9, %v4645_v39  ;;  %v4646_v9 = vadd.f32 %v4614_v54, %v4537_v61  ;;  %v5226_v13 = vmul.f32 %v8901_v58, %v5187_v12  ;;  %v5190_v0 = vld [vmem:[#allocation2 + $0x58] sm:$0xff]  ;;  %v5128_v6 = vadd.f32 %v5096_v36, %v5007_v23  ;;  %v5267_v52 = vadd.f32 %v8907_v17, %v5228_v41  ;;  %v5188_v1 = vld [vmem:[#allocation2 + $0x48] sm:$0xff] }
 0x209   : > { %4680 = vst.msk [vmem:[#allocation2 + $0x98] sm:$0xff] %vm572_vm9, %v4648_v46  ;;  %v5229_v25 = vmul.f32 %v8901_v58, %v5190_v0  ;;  %5162 = vst.msk [vmem:[#allocation2 + $0x78] sm:$0xff] %vm572_vm9, %v5130_v45  ;;  %v5227_v38 = vmul.f32 %v8901_v58, %v5188_v1  ;;  %v4620_v5 = vld [vmem:[#allocation2 + $0xb8] sm:$0xff]  ;;  %v4618_v61 = vld [vmem:[#allocation2 + $0xa8] sm:$0xff] }
 0x20a   : > { %5454 = vst.msk [vmem:[%s8927_s25 + $0x10] sm:$0xf] %vm5449_vm10, %v6062_v8  ;;  %5457 = vst.msk [vmem:[%s8927_s25 + $0x1c] sm:$0xf] %vm5449_vm10, %v6065_v3  ;;  %v5265_v50 = vadd.f32 %v8907_v17, %v5226_v13  ;;  %v5299_v53 = vmax.f32 %v5267_v52, 0.0 }
 0x20b   : > { %4678 = vst.msk [vmem:[#allocation2 + $0x88] sm:$0xff] %vm572_vm9, %v4646_v9  ;;  %v6535_v4 = vpop.f32.mrb[128].mxu0  ;;  %5160 = vst.msk [vmem:[#allocation2 + $0x68] sm:$0xff] %vm572_vm9, %v5128_v6  ;;  %v5268_v29 = vadd.f32 %v8907_v17, %v5229_v25  ;;  %v5266_v15 = vadd.f32 %v8907_v17, %v5227_v38 }
 0x20c   : > { %5455 = vst.msk [vmem:[%s8927_s25 + $0x14] sm:$0xf] %vm5449_vm10, %v6063_v60  ;;  %v5020_v11 = vpop.f32.mrb[129].mxu0  ;;  %v5297_v43 = vmax.f32 %v5265_v50, 0.0  ;;  %v6068_v7 = vpack.c.bf16 %v5299_v53, %v5299_v53 }
 0x20d   : > { %v6536_v44 = vpop.f32.mrb[130].mxu0  ;;  %v5300_v10 = vmax.f32 %v5268_v29, 0.0  ;;  %v5298_v62 = vmax.f32 %v5266_v15, 0.0  ;;  %v5193_v30 = vld [vmem:[#allocation2 + $0x70] sm:$0xff] }
 0x20e   : > { %v5101_v24 = vld [vmem:[#allocation2 + $0x90] sm:$0xff]  ;;  %v5023_v63 = vpop.f32.mrb[131].mxu0  ;;  %v6066_v59 = vpack.c.bf16 %v5297_v43, %v5297_v43  ;;  %5460 = vst.msk [vmem:[%s8927_s25 + $0x28] sm:$0xf] %vm5449_vm10, %v6068_v7  ;;  %v5232_v16 = vmul.f32 %v8901_v58, %v5193_v30  ;;  %v5191_v32 = vld [vmem:[#allocation2 + $0x60] sm:$0xff] }
 0x20f   : > { %v5133_v48 = vadd.f32 %v6535_v4, %v5101_v24  ;;  %v5099_v37 = vld [vmem:[#allocation2 + $0x80] sm:$0xff]  ;;  %v6069_v47 = vpack.c.bf16 %v5300_v10, %v5300_v10  ;;  %v6067_v21 = vpack.c.bf16 %v5298_v62, %v5298_v62  ;;  %v5230_v40 = vmul.f32 %v8901_v58, %v5191_v32  ;;  %v4623_v62 = vld [vmem:[#allocation2 + $0xd0] sm:$0xff] }
 0x210   : > { %v5131_v22 = vadd.f32 %v5099_v37, %v5020_v11  ;;  %v5102_v33 = vld [vmem:[#allocation2 + $0x98] sm:$0xff]  ;;  %5458 = vst.msk [vmem:[%s8927_s25 + $0x20] sm:$0xf] %vm5449_vm10, %v6066_v59  ;;  %v5271_v51 = vadd.f32 %v8907_v17, %v5232_v16  ;;  %v4621_v16 = vld [vmem:[#allocation2 + $0xc0] sm:$0xff] }
 0x211   : > { %v6505_v20 = vpop.f32.mrb[132].mxu1  ;;  %5165 = vst.msk [vmem:[#allocation2 + $0x90] sm:$0xff] %vm572_vm9, %v5133_v48  ;;  %v5134_v14 = vadd.f32 %v6536_v44, %v5102_v33  ;;  %v5194_v2 = vld [vmem:[#allocation2 + $0x78] sm:$0xff]  ;;  %v5269_v54 = vadd.f32 %v8907_v17, %v5230_v40 }
 0x212   : > { %v4651_v35 = vadd.f32 %v6505_v20, %v4619_v56  ;;  %v4550_v28 = vpop.f32.mrb[133].mxu1  ;;  %v5100_v27 = vld [vmem:[#allocation2 + $0x88] sm:$0xff]  ;;  %5163 = vst.msk [vmem:[#allocation2 + $0x80] sm:$0xff] %vm572_vm9, %v5131_v22  ;;  %v5233_v55 = vmul.f32 %v8901_v58, %v5194_v2  ;;  %v5303_v57 = vmax.f32 %v5271_v51, 0.0 }
 0x213   : > { %v4649_v39 = vadd.f32 %v4617_v26, %v4550_v28  ;;  %v6506_v18 = vpop.f32.mrb[134].mxu1  ;;  %v5132_v23 = vadd.f32 %v5100_v27, %v5023_v63  ;;  %5461 = vst.msk [vmem:[%s8927_s25 + $0x2c] sm:$0xf] %vm5449_vm10, %v6069_v47  ;;  %v5192_v19 = vld [vmem:[#allocation2 + $0x68] sm:$0xff]  ;;  %5459 = vst.msk [vmem:[%s8927_s25 + $0x24] sm:$0xf] %vm5449_vm10, %v6067_v21 }
 0x214   : > { %4683 = vst.msk [vmem:[#allocation2 + $0xb0] sm:$0xff] %vm572_vm9, %v4651_v35  ;;  %5166 = vst.msk [vmem:[#allocation2 + $0x98] sm:$0xff] %vm572_vm9, %v5134_v14  ;;  %v4652_v34 = vadd.f32 %v6506_v18, %v4620_v5  ;;  %v4553_v46 = vpop.f32.mrb[135].mxu1  ;;  %v5231_v8 = vmul.f32 %v8901_v58, %v5192_v19  ;;  %v5272_v31 = vadd.f32 %v8907_v17, %v5233_v55  ;;  %v5301_v42 = vmax.f32 %v5269_v54, 0.0  ;;  %v4624_v27 = vld [vmem:[#allocation2 + $0xd8] sm:$0xff]  ;;  %v4622_v18 = vld [vmem:[#allocation2 + $0xc8] sm:$0xff] }
 0x215   : > { %4681 = vst.msk [vmem:[#allocation2 + $0xa0] sm:$0xff] %vm572_vm9, %v4649_v39  ;;  %5164 = vst.msk [vmem:[#allocation2 + $0x88] sm:$0xff] %vm572_vm9, %v5132_v23  ;;  %v4650_v49 = vadd.f32 %v4618_v61, %v4553_v46  ;;  %v6072_v41 = vpack.c.bf16 %v5303_v57, %v5303_v57 }
 0x216   : > { %4684 = vst.msk [vmem:[#allocation2 + $0xb8] sm:$0xff] %vm572_vm9, %v4652_v34  ;;  %v5270_v9 = vadd.f32 %v8907_v17, %v5231_v8  ;;  %v5304_v12 = vmax.f32 %v5272_v31, 0.0  ;;  %v6070_v36 = vpack.c.bf16 %v5301_v42, %v5301_v42 }
 0x217   : > { %4682 = vst.msk [vmem:[#allocation2 + $0xa8] sm:$0xff] %vm572_vm9, %v4650_v49 }
 0x218   : > { %v6539_v3 = vpop.f32.mrb[132].mxu0  ;;  %v5302_v60 = vmax.f32 %v5270_v9, 0.0  ;;  %v5197_v13 = vld [vmem:[#allocation2 + $0x90] sm:$0xff]  ;;  %5464 = vst.msk [vmem:[%s8927_s25 + $0x38] sm:$0xf] %vm5449_vm10, %v6072_v41  ;;  %v6073_v6 = vpack.c.bf16 %v5304_v12, %v5304_v12 }
 0x219   : > { %v5036_v45 = vpop.f32.mrb[133].mxu0  ;;  %v5236_v52 = vmul.f32 %v8901_v58, %v5197_v13  ;;  %v5195_v25 = vld [vmem:[#allocation2 + $0x80] sm:$0xff]  ;;  %5462 = vst.msk [vmem:[%s8927_s25 + $0x30] sm:$0xf] %vm5449_vm10, %v6070_v36 }
 0x21a   : > { %v6540_v0 = vpop.f32.mrb[134].mxu0  ;;  %v6071_v4 = vpack.c.bf16 %v5302_v60, %v5302_v60  ;;  %v5234_v50 = vmul.f32 %v8901_v58, %v5195_v25  ;;  %5465 = vst.msk [vmem:[%s8927_s25 + $0x3c] sm:$0xf] %vm5449_vm10, %v6073_v6  ;;  %v4627_v6 = vld [vmem:[#allocation2 + $0xf0] sm:$0xff] }
 0x21b   : > { %v5039_v1 = vpop.f32.mrb[135].mxu0  ;;  %v5198_v38 = vld [vmem:[#allocation2 + $0x98] sm:$0xff]  ;;  %v5105_v11 = vld [vmem:[#allocation2 + $0xb0] sm:$0xff]  ;;  %v5275_v53 = vadd.f32 %v8907_v17, %v5236_v52 }
 0x21c   : > { %v5237_v29 = vmul.f32 %v8901_v58, %v5198_v38  ;;  %v5196_v44 = vld [vmem:[#allocation2 + $0x88] sm:$0xff]  ;;  %v5137_v43 = vadd.f32 %v6539_v3, %v5105_v11  ;;  %v5103_v15 = vld [vmem:[#allocation2 + $0xa0] sm:$0xff]  ;;  %5463 = vst.msk [vmem:[%s8927_s25 + $0x34] sm:$0xf] %vm5449_vm10, %v6071_v4  ;;  %v5273_v24 = vadd.f32 %v8907_v17, %v5234_v50 }
 0x21d   : > { %v5235_v63 = vmul.f32 %v8901_v58, %v5196_v44  ;;  %v5135_v7 = vadd.f32 %v5103_v15, %v5036_v45  ;;  %v5106_v10 = vld [vmem:[#allocation2 + $0xb8] sm:$0xff]  ;;  %v5307_v48 = vmax.f32 %v5275_v53, 0.0  ;;  %v4625_v11 = vld [vmem:[#allocation2 + $0xe0] sm:$0xff] }
 0x21e   : > { %v5276_v37 = vadd.f32 %v8907_v17, %v5237_v29  ;;  %5169 = vst.msk [vmem:[#allocation2 + $0xb0] sm:$0xff] %vm572_vm9, %v5137_v43  ;;  %v5138_v30 = vadd.f32 %v6540_v0, %v5106_v10  ;;  %v5104_v20 = vld [vmem:[#allocation2 + $0xa8] sm:$0xff]  ;;  %v5305_v56 = vmax.f32 %v5273_v24, 0.0 }
 0x21f   : > { %v5274_v22 = vadd.f32 %v8907_v17, %v5235_v63  ;;  %5167 = vst.msk [vmem:[#allocation2 + $0xa0] sm:$0xff] %vm572_vm9, %v5135_v7  ;;  %v5136_v32 = vadd.f32 %v5104_v20, %v5039_v1  ;;  %v6076_v35 = vpack.c.bf16 %v5307_v48, %v5307_v48  ;;  %v4628_v63 = vld [vmem:[#allocation2 + $0xf8] sm:$0xff] }
 0x220   : > { %v6509_v59 = vpop.f32.mrb[136].mxu1  ;;  %v5308_v28 = vmax.f32 %v5276_v37, 0.0  ;;  %5170 = vst.msk [vmem:[#allocation2 + $0xb8] sm:$0xff] %vm572_vm9, %v5138_v30  ;;  %v6074_v21 = vpack.c.bf16 %v5305_v56, %v5305_v56 }
 0x221   : > { %v4655_v33 = vadd.f32 %v6509_v59, %v4623_v62  ;;  %v4566_v47 = vpop.f32.mrb[137].mxu1  ;;  %v5306_v40 = vmax.f32 %v5274_v22, 0.0  ;;  %5168 = vst.msk [vmem:[#allocation2 + $0xa8] sm:$0xff] %vm572_vm9, %v5136_v32  ;;  %v4626_v62 = vld [vmem:[#allocation2 + $0xe8] sm:$0xff] }
 0x222   : > { %v4653_v26 = vadd.f32 %v4621_v16, %v4566_v47  ;;  %v6510_v14 = vpop.f32.mrb[138].mxu1  ;;  %5468 = vst.msk [vmem:[%s8927_s25 + $0x48] sm:$0xf] %vm5449_vm10, %v6076_v35  ;;  %v6077_v5 = vpack.c.bf16 %v5308_v28, %v5308_v28  ;;  %5466 = vst.msk [vmem:[%s8927_s25 + $0x40] sm:$0xf] %vm5449_vm10, %v6074_v21 }
 0x223   : > { %4687 = vst.msk [vmem:[#allocation2 + $0xd0] sm:$0xff] %vm572_vm9, %v4655_v33  ;;  %v4656_v2 = vadd.f32 %v6510_v14, %v4624_v27  ;;  %v4569_v39 = vpop.f32.mrb[139].mxu1  ;;  %v6075_v51 = vpack.c.bf16 %v5306_v40, %v5306_v40 }
 0x224   : > { %4685 = vst.msk [vmem:[#allocation2 + $0xc0] sm:$0xff] %vm572_vm9, %v4653_v26  ;;  %v4654_v23 = vadd.f32 %v4622_v18, %v4569_v39 }
 0x225   : > { %4688 = vst.msk [vmem:[#allocation2 + $0xd8] sm:$0xff] %vm572_vm9, %v4656_v2  ;;  %v5201_v19 = vld [vmem:[#allocation2 + $0xb0] sm:$0xff] }
 0x226   : > { %5469 = vst.msk [vmem:[%s8927_s25 + $0x4c] sm:$0xf] %vm5449_vm10, %v6077_v5  ;;  %5467 = vst.msk [vmem:[%s8927_s25 + $0x44] sm:$0xf] %vm5449_vm10, %v6075_v51  ;;  %v5240_v46 = vmul.f32 %v8901_v58, %v5201_v19  ;;  %v5199_v61 = vld [vmem:[#allocation2 + $0xa0] sm:$0xff] }
 0x227   : > { %4686 = vst.msk [vmem:[#allocation2 + $0xc8] sm:$0xff] %vm572_vm9, %v4654_v23  ;;  %v6543_v55 = vpop.f32.mrb[136].mxu0  ;;  %v5238_v8 = vmul.f32 %v8901_v58, %v5199_v61  ;;  %v5202_v49 = vld [vmem:[#allocation2 + $0xb8] sm:$0xff] }
 0x228   : > { %v5052_v34 = vpop.f32.mrb[137].mxu0  ;;  %v5279_v31 = vadd.f32 %v8907_v17, %v5240_v46  ;;  %v5241_v42 = vmul.f32 %v8901_v58, %v5202_v49  ;;  %v5200_v9 = vld [vmem:[#allocation2 + $0xa8] sm:$0xff] }
 0x229   : > { %v6544_v54 = vpop.f32.mrb[138].mxu0  ;;  %v5277_v41 = vadd.f32 %v8907_v17, %v5238_v8  ;;  %v5239_v12 = vmul.f32 %v8901_v58, %v5200_v9 }
 0x22a   : > { %v5055_v57 = vpop.f32.mrb[139].mxu0  ;;  %v5109_v3 = vld [vmem:[#allocation2 + $0xd0] sm:$0xff]  ;;  %v5311_v60 = vmax.f32 %v5279_v31, 0.0  ;;  %v5280_v13 = vadd.f32 %v8907_v17, %v5241_v42 }
 0x22b   : > { %v5141_v45 = vadd.f32 %v6543_v55, %v5109_v3  ;;  %v5107_v36 = vld [vmem:[#allocation2 + $0xc0] sm:$0xff]  ;;  %v5309_v1 = vmax.f32 %v5277_v41, 0.0  ;;  %v5278_v4 = vadd.f32 %v8907_v17, %v5239_v12 }
 0x22c   : > { %v5139_v52 = vadd.f32 %v5107_v36, %v5052_v34  ;;  %v5110_v25 = vld [vmem:[#allocation2 + $0xd8] sm:$0xff]  ;;  %v6080_v44 = vpack.c.bf16 %v5311_v60, %v5311_v60  ;;  %v5312_v43 = vmax.f32 %v5280_v13, 0.0 }
 0x22d   : > { %v6513_v0 = vpop.f32.mrb[140].mxu1  ;;  %5173 = vst.msk [vmem:[#allocation2 + $0xd0] sm:$0xff] %vm572_vm9, %v5141_v45  ;;  %v5142_v53 = vadd.f32 %v6544_v54, %v5110_v25  ;;  %v6078_v10 = vpack.c.bf16 %v5309_v1, %v5309_v1  ;;  %v5310_v48 = vmax.f32 %v5278_v4, 0.0 }
 0x22e   : > { %v4659_v50 = vadd.f32 %v6513_v0, %v4627_v6  ;;  %v4582_v38 = vpop.f32.mrb[141].mxu1  ;;  %v5108_v29 = vld [vmem:[#allocation2 + $0xc8] sm:$0xff]  ;;  %5171 = vst.msk [vmem:[#allocation2 + $0xc0] sm:$0xff] %vm572_vm9, %v5139_v52  ;;  %v6081_v30 = vpack.c.bf16 %v5312_v43, %v5312_v43 }
 0x22f   : > { %v4657_v15 = vadd.f32 %v4625_v11, %v4582_v38  ;;  %v6514_v24 = vpop.f32.mrb[142].mxu1  ;;  %v5140_v7 = vadd.f32 %v5108_v29, %v5055_v57  ;;  %5174 = vst.msk [vmem:[#allocation2 + $0xd8] sm:$0xff] %vm572_vm9, %v5142_v53  ;;  %v6079_v22 = vpack.c.bf16 %v5310_v48, %v5310_v48 }
 0x230   : > { %4691 = vst.msk [vmem:[#allocation2 + $0xf0] sm:$0xff] %vm572_vm9, %v4659_v50  ;;  %v4660_v37 = vadd.f32 %v6514_v24, %v4628_v63  ;;  %v4585_v59 = vpop.f32.mrb[143].mxu1 }
 0x231   : > { %5472 = vst.msk [vmem:[%s8927_s25 + $0x58] sm:$0xf] %vm5449_vm10, %v6080_v44  ;;  %v4658_v20 = vadd.f32 %v4626_v62, %v4585_v59  ;;  %v6547_v56 = vpop.f32.mrb[140].mxu0  ;;  %5470 = vst.msk [vmem:[%s8927_s25 + $0x50] sm:$0xf] %vm5449_vm10, %v6078_v10 }
 0x232   : > { %4689 = vst.msk [vmem:[#allocation2 + $0xe0] sm:$0xff] %vm572_vm9, %v4657_v15  ;;  %5172 = vst.msk [vmem:[#allocation2 + $0xc8] sm:$0xff] %vm572_vm9, %v5140_v7  ;;  %v5068_v33 = vpop.f32.mrb[141].mxu0 }
 0x233   : > { %4692 = vst.msk [vmem:[#allocation2 + $0xf8] sm:$0xff] %vm572_vm9, %v4660_v37  ;;  %4690 = vst.msk [vmem:[#allocation2 + $0xe8] sm:$0xff] %vm572_vm9, %v4658_v20  ;;  %v6548_v47 = vpop.f32.mrb[142].mxu0 }
 0x234   : > { %5473 = vst.msk [vmem:[%s8927_s25 + $0x5c] sm:$0xf] %vm5449_vm10, %v6081_v30  ;;  %5471 = vst.msk [vmem:[%s8927_s25 + $0x54] sm:$0xf] %vm5449_vm10, %v6079_v22  ;;  %v5071_v16 = vpop.f32.mrb[143].mxu0  ;;  %v5205_v32 = vld [vmem:[#allocation2 + $0xd0] sm:$0xff] }
 0x235   : > { %v5244_v35 = vmul.f32 %v8901_v58, %v5205_v32  ;;  %v5203_v28 = vld [vmem:[#allocation2 + $0xc0] sm:$0xff] }
 0x236   : > { %v5242_v26 = vmul.f32 %v8901_v58, %v5203_v28  ;;  %v5206_v14 = vld [vmem:[#allocation2 + $0xd8] sm:$0xff] }
 0x237   : > { %v5113_v27 = vld [vmem:[#allocation2 + $0xf0] sm:$0xff]  ;;  %v5283_v21 = vadd.f32 %v8907_v17, %v5244_v35  ;;  %v5245_v40 = vmul.f32 %v8901_v58, %v5206_v14 }
 0x238   : > { %v5145_v39 = vadd.f32 %v6547_v56, %v5113_v27  ;;  %v5281_v5 = vadd.f32 %v8907_v17, %v5242_v26 }
 0x239   : > { %v5204_v2 = vld [vmem:[#allocation2 + $0xc8] sm:$0xff]  ;;  %v5111_v18 = vld [vmem:[#allocation2 + $0xe0] sm:$0xff]  ;;  %v5315_v19 = vmax.f32 %v5283_v21, 0.0  ;;  %v5284_v34 = vadd.f32 %v8907_v17, %v5245_v40 }
 0x23a   : > { %v5243_v23 = vmul.f32 %v8901_v58, %v5204_v2  ;;  %v5143_v51 = vadd.f32 %v5111_v18, %v5068_v33  ;;  %v5114_v55 = vld [vmem:[#allocation2 + $0xf8] sm:$0xff]  ;;  %5177 = vst.msk [vmem:[#allocation2 + $0xf0] sm:$0xff] %vm572_vm9, %v5145_v39  ;;  %v5112_v61 = vld [vmem:[#allocation2 + $0xe8] sm:$0xff]  ;;  %v5313_v54 = vmax.f32 %v5281_v5, 0.0 }
 0x23b   : > { %v5146_v46 = vadd.f32 %v6548_v47, %v5114_v55  ;;  %v5144_v49 = vadd.f32 %v5112_v61, %v5071_v16  ;;  %v6084_v57 = vpack.c.bf16 %v5315_v19, %v5315_v19  ;;  %v5316_v31 = vmax.f32 %v5284_v34, 0.0 }
 0x23c   : > { %v5282_v8 = vadd.f32 %v8907_v17, %v5243_v23  ;;  %5175 = vst.msk [vmem:[#allocation2 + $0xe0] sm:$0xff] %vm572_vm9, %v5143_v51  ;;  %v6082_v42 = vpack.c.bf16 %v5313_v54, %v5313_v54 }
 0x23d   : > { %5178 = vst.msk [vmem:[#allocation2 + $0xf8] sm:$0xff] %vm572_vm9, %v5146_v46  ;;  %5176 = vst.msk [vmem:[#allocation2 + $0xe8] sm:$0xff] %vm572_vm9, %v5144_v49  ;;  %v6085_v3 = vpack.c.bf16 %v5316_v31, %v5316_v31 }
 0x23e   : > { %v5314_v9 = vmax.f32 %v5282_v8, 0.0  ;;  %5476 = vst.msk [vmem:[%s8927_s25 + $0x68] sm:$0xf] %vm5449_vm10, %v6084_v57  ;;  %5474 = vst.msk [vmem:[%s8927_s25 + $0x60] sm:$0xf] %vm5449_vm10, %v6082_v42 }
 0x23f   : > { %5477 = vst.msk [vmem:[%s8927_s25 + $0x6c] sm:$0xf] %vm5449_vm10, %v6085_v3 }
 0x240   : > { %v6083_v41 = vpack.c.bf16 %v5314_v9, %v5314_v9 }
 0x241   : > { %v5209_v12 = vld [vmem:[#allocation2 + $0xf0] sm:$0xff] }
 0x242   : > { %5475 = vst.msk [vmem:[%s8927_s25 + $0x64] sm:$0xf] %vm5449_vm10, %v6083_v41  ;;  %v5248_v45 = vmul.f32 %v8901_v58, %v5209_v12 }
 0x243   : > { %v5207_v36 = vld [vmem:[#allocation2 + $0xe0] sm:$0xff] }
 0x244   : > { %v5246_v60 = vmul.f32 %v8901_v58, %v5207_v36  ;;  %v5210_v13 = vld [vmem:[#allocation2 + $0xf8] sm:$0xff]  ;;  %v5287_v0 = vadd.f32 %v8907_v17, %v5248_v45  ;;  %v5208_v52 = vld [vmem:[#allocation2 + $0xe8] sm:$0xff] }
 0x245   : > { %v5249_v6 = vmul.f32 %v8901_v58, %v5210_v13  ;;  %v5247_v1 = vmul.f32 %v8901_v58, %v5208_v52 }
 0x246   : > { %v5285_v25 = vadd.f32 %v8907_v17, %v5246_v60  ;;  %v5319_v4 = vmax.f32 %v5287_v0, 0.0 }
 0x247   : > { %v5288_v50 = vadd.f32 %v8907_v17, %v5249_v6  ;;  %v5286_v11 = vadd.f32 %v8907_v17, %v5247_v1 }
 0x248   : > { %v5317_v38 = vmax.f32 %v5285_v25, 0.0  ;;  %v6088_v53 = vpack.c.bf16 %v5319_v4, %v5319_v4 }
 0x249   : > { %v5320_v29 = vmax.f32 %v5288_v50, 0.0  ;;  %v5318_v43 = vmax.f32 %v5286_v11, 0.0 }
 0x24a   : > { %v6086_v44 = vpack.c.bf16 %v5317_v38, %v5317_v38  ;;  %5480 = vst.msk [vmem:[%s8927_s25 + $0x78] sm:$0xf] %vm5449_vm10, %v6088_v53 }
 0x24b   : > { %v6089_v15 = vpack.c.bf16 %v5320_v29, %v5320_v29  ;;  %v6087_v24 = vpack.c.bf16 %v5318_v43, %v5318_v43 }
 0x24c   : > { %5478 = vst.msk [vmem:[%s8927_s25 + $0x70] sm:$0xf] %vm5449_vm10, %v6086_v44 }
 0x24d   : > { %5481 = vst.msk [vmem:[%s8927_s25 + $0x7c] sm:$0xf] %vm5449_vm10, %v6089_v15  ;;  %5479 = vst.msk [vmem:[%s8927_s25 + $0x74] sm:$0xf] %vm5449_vm10, %v6087_v24 }
 0x24e PF: > { %s14_s17 = sadd.s32 1, %s6659_s17   ;;  %s9268_s15 = smov %s6655_s16 }
 0x24f   : > { %p11_p5 = scmp.ge.s32.totalorder %s14_s17, 4   ;;  %s9269_s16 = smov %s9271_s18 }
 0x251   :  { %13 = sbr.rel (!%p11_p5) target bundleno = 2 (0x2), region = 77 }

// kernel: deeplab_forward.13
= control target key start
LH: loop header
LB: loop body
LE: loop exit
PB: predicated region body
PF: predicated region fallthrough
CT: control target
= control target key end

     0   :  { %8 = vsyncpa [#allocation3], 0  ;;  %s841_s0 = inlined_call_operand.vmem [shape: f32[16,8], index: 0, kind: input, shape index: {}]   ;;  %s842_s1 = inlined_call_operand.vmem [shape: f32[8,16], index: 1, kind: input, shape index: {}]   ;;  %s843_s2 = inlined_call_operand.vmem [shape: f32[2,8,8,8], index: 2, kind: input, shape index: {}]   ;;  %s844_s3 = inlined_call_operand.hbm [shape: f32[2,8,16,16], index: 3, kind: output, shape index: {}]  }
   0x1   :  { %10 = vsyncpa [#allocation3 + $0x1], 0  ;;  %s688_s12 = smov 0   ;;  %s690_s13 = smov 0  }
   0x2   :  { %s692_s14 = smov 0   ;;  %s694_s15 = smov 0  }
   0x3   :  { %s696_s16 = smov 0   ;;  %s698_s17 = smov 0  }
   0x4   :  { %s700_s18 = smov 0   ;;  %s702_s19 = smov 0  }
   0x5 LB: > { %s462_s20 = sadd.s32 4294967295, %s663_s19   ;;  %s463_s21 = sadd.s32 4294967294, %s663_s19   ;;  %s663_s19 = sphi %s702_s19, %s16_s19   ;;  %s659_s18 = sphi %s700_s18, %s853_s18   ;;  %s655_s17 = sphi %s698_s17, %s852_s17   ;;  %s651_s16 = sphi %s696_s16, %s851_s16   ;;  %s647_s15 = sphi %s694_s15, %s850_s15   ;;  %s643_s14 = sphi %s692_s14, %s849_s14   ;;  %s639_s13 = sphi %s690_s13, %s848_s13   ;;  %s635_s12 = sphi %s688_s12, %s847_s12  }
   0x6   : > { %s25_s22 = sadd.s32 1, %s655_s17  ;;  %s28_s23 = sadd.s32 1, %s659_s18 }
   0x7   : > { %p26_p0 = scmp.ge.s32.totalorder %s25_s22, 8  ;;  %p117_p1 = scmp.ne.s32.totalorder %s643_s14, %s639_s13 }
   0x8   : > { %p118_p2 = scmp.eq.s32.totalorder %s462_s20, 15  ;;  %p123_p5 = scmp.ne.s32.totalorder %s639_s13, %s635_s12 }
   0x9   : > { %s855_s22 = smov (%p26_p0, %s25_s22), 0  ;;  %s857_s23 = smov (!%p26_p0, %s28_s23), %s659_s18 }
   0xa   : > { %s103_s24 = ssub.s32 %s655_s17, %s855_s22  ;;  %p739_p3 = por %p118_p2, %p117_p1 }
   0xb   : > { %p30_p4 = scmp.ge.s32.totalorder %s857_s23, 2  ;;  %p124_p6 = scmp.eq.s32.totalorder %s463_s21, 15 }
   0xc   : > { %p466_p7 = scmp.ge.s32.totalorder %s663_s19, 1  ;;  %p159_p9 = scmp.lt.s32.totalorder %s663_s19, 17 }
   0xd   : > { %s859_s23 = smov (%p30_p4, %s857_s23), 0  ;;  %p748_p8 = por %p124_p6, %p123_p5 }
   0xe   : > { %s102_s27 = ssub.s32 %s659_s18, %s859_s23  ;;  %s107_s28 = sadd.s32 1, %s643_s14 }
   0xf   : > { %s104_s29 = sor.u32 %s103_s24, %s102_s27  ;;  %p160_p10 = pnand %p466_p7, %p159_p9 }
  0x10   : > { %p105_p11 = scmp.eq.s32.totalorder %s104_s29, 0  ;;  %p186_p12 = scmp.lt.s32.totalorder (!%p160_p10), %s651_s16, 1  ;;  %v194_v0 = vld [vmem:[%s841_s0] sm:$0xff] (!%p160_p10)  ;;  %vm197_vm0 = vcmask (!%p160_p10), 64512   ;;  %v195_v2 = vld [vmem:[%s841_s0 + $0x8] sm:$0xff] (!%p160_p10)  ;;  %vm361_vm1 = vcmask (!%p160_p10), 130048  }
  0x11   : > { %163 = sbr.rel (%p160_p10) target bundleno = 475 (0x1db), region = 32  ;;  %p188_p13 = scmp.lt.s32.totalorder (!%p160_p10), %s647_s15, 7  ;;  %488 = vmatprep.mubr.msk.f32.mxu0 (!%p160_p10), %vm197_vm0, %v194_v0  ;;  %v279_v3 = vld [vmem:[%s842_s1] sm:$0xff] (!%p160_p10) }
  0x12   : > { %s757_s30 = scalar_select %p105_p11, %s643_s14, %s107_s28  }
  0x13   : > { %491 = vmatprep.subr.mxu1 (!%p160_p10), %v279_v3  ;;  %s183_s4 = sand.u32 (!%p160_p10), 1, %s639_s13   ;;  %s665_s27 = smov (!%p160_p10), [#allocation2]  }
  0x14   : > { %492 = vmatpush3.msra.mxu1 (!%p160_p10), %v279_v3  ;;  %s467_s5 = sshll.u32 (!%p160_p10), %s183_s4, 4  ;;  %s573_s28 = sshll.u32 (!%p160_p10), %s665_s27, 4  ;;  %s574_s28 = int_to_ptr.vmem [resolvable:$false] %s573_s28 }
  0x15   : > { %s575_s29 = scalar_lea.vmem (!%p160_p10), %s574_s28, 512 }
  0x18   : > { %s187_s6 = scalar_select %p186_p12, %s651_s16, 1 }
  0x19   : > { %s189_s7 = scalar_select %p188_p13, %s647_s15, 7 }
  0x1a   : > { %s468_s8 = sshll.u32 %s187_s6, 3  ;;  %s475_s6 = sshll.u32 %s647_s15, 1 }
  0x1b   : > { %s191_s9 = sadd.s32 %s468_s8, %s189_s7  ;;  %s476_s7 = sshll.u32 %s651_s16, 4 }
  0x1c   : > { %s469_s10 = sshll.u32 %s191_s9, 3  ;;  %s377_s8 = sadd.s32 %s476_s7, %s475_s6 }
  0x1d   : > { %s193_s21 = scalar_lea.vmem %s843_s2, %s469_s10  ;;  %s185_s9 = scalar_lea.vmem [#allocation2], %s467_s5 }
  0x1e   : > { %v196_v1 = vld [vmem:[%s193_s21] sm:$0xff]  ;;  %s380_s10 = sshll.u32 %s185_s9, 4  ;;  %s477_s11 = sshll.u32 %s377_s8, 7  ;;  %s782_s10 = int_to_ptr.vmem [resolvable:$true] %s380_s10 }
  0x1f   : > { %486 = vmatprep.subr.mxu0 %v196_v1  ;;  %s787_s24 = scalar_lea.hbm %s844_s3, %s477_s11  ;;  %s789_s15 = scalar_lea.sflag [#allocation3], %s183_s4 }
  0x20   : > { %487 = vmatpush3.msra.mxu0 %v196_v1  ;;  %s569_s16 = scalar_lea.vmem %s782_s10, 256  ;;  %p576_p4 = scmp.lt.s32.totalorder %s782_s10, %s574_s28 }
  0x21   : > { %489 = vmatmul.mubr.msk.f32.vlgmr.msra.gmra.mrb[0].mxu0 %vm197_vm0, %v195_v2  ;;  %p570_p0 = scmp.ne.s32.totalorder %s782_s10, %s569_s16  ;;  %p577_p5 = scmp.lt.s32.totalorder %s575_s29, %s569_s16 }
  0x23   : > { %p571_p1 = pnand %p570_p0, %p739_p3  ;;  %p578_p6 = por %p577_p5, %p576_p4 }
  0x25   : > { %p572_p2 = pneg %p571_p1 }
  0x27   : > { %p579_p7 = pnand %p578_p6, %p572_p2 }
  0xf4   : > { %v490_v4 = vpop.f32.mrb[0].mxu0 }
  0xf5   : > { %v270_v5 = vpop.f32.mrb[1].mxu0 }
  0xf6   : > { %493 = vmatprep.mubr.msk.f32.mxu1 %vm197_vm0, %v270_v5 }
  0xf7   : > { %494 = vmatmul.mubr.msk.f32.vlgmr.msra.gmra.mrb[0].mxu1 %vm197_vm0, %v490_v4 }
 0x1ca   : > { %v495_v6 = vpop.f32.mrb[0].mxu1 }
 0x1cb   : > { %363 = vst.msk [vmem:[%s185_s9 + $0x8] sm:$0xff] %vm361_vm1, %v495_v6  ;;  %v352_v7 = vpop.f32.mrb[1].mxu1 }
 0x1cc   : > { %362 = vst.msk [vmem:[%s185_s9] sm:$0xff] %vm361_vm1, %v352_v7 }
 0x1cd   : > { %582 = shalt.err (!%p579_p7)
}
 0x1ce   : > { %s583_s4 = scalar_lea.hbm %s787_s24, 256  ;;  %s587_s7 = scalar_lea.hbm %s844_s3, 4096 }
 0x1cf   : > { %p584_p9 = scmp.ne.s32.totalorder %s787_s24, %s583_s4  ;;  %p588_p12 = scmp.lt.u32.totalorder %s787_s24, %s844_s3 }
 0x1d0   : > { %p589_p13 = scmp.lt.u32.totalorder %s587_s7, %s583_s4  ;;  %p591_p1 = scmp.lt.u32.totalorder %s583_s4, %s787_s24 }
 0x1d1   : > { %p585_p10 = pnand %p584_p9, %p739_p3 }
 0x1d2   : > { %p590_p0 = por %p589_p13, %p588_p12 }
 0x1d3   : > { %p586_p11 = pneg %p585_p10 }
 0x1d4   : > { %p592_p2 = por %p591_p1, %p590_p0 }
 0x1d6   : > { %p593_p4 = pnand %p592_p2, %p586_p11 }
 0x1d8   : > { %596 = shalt.err (!%p593_p4)
}
 0x1d9   : > { %s666_s11 = smov 128   ;;  %s667_s20 = smov 8  }
 0x1da   : > { %496 = dma.vmem_to_hbm [thread:$0]  (%p739_p3), %s782_s10, 256, %s787_s24, %s789_s15, %s666_s11, %s666_s11, %s667_s20  }
 0x1db PF: > { %p502_p5 = scmp.ge.s32.totalorder %s663_s19, 2  ;;  %s395_s21 = sand.u32 1, %s635_s12  }
 0x1dc   : > { %s396_s16 = scalar_lea.sflag [#allocation3], %s395_s21 }
 0x1dd   : > { %p499_p6 = pnand %p502_p5, %p748_p8 }
 0x1df   : > { %630 = dma.done.wait (!%p499_p6), %s396_s16, 256  }
 0x1e0   : > { %632 = vsyncadd (!%p499_p6), %s396_s16, 4294967040  ;;  %s16_s19 = sadd.s32 1, %s663_s19   ;;  %s847_s12 = smov %s639_s13 }
 0x1e1   : > { %p13_p7 = scmp.ge.s32.totalorder %s16_s19, 18   ;;  %s848_s13 = smov %s643_s14 }
 0x1e2   : > { %s849_s14 = smov %s757_s30  ;;  %s850_s15 = smov %s655_s17 }
 0x1e3   : > { %s851_s16 = smov %s659_s18  ;;  %s852_s17 = smov %s855_s22 }
 0x1e4   : > { %s853_s18 = smov %s859_s23  ;;  %15 = sbr.rel (!%p13_p7) target bundleno = 5 (0x5), region = 67 }
 0x1eb   :  { %401 = vsyncpa [#allocation3], 1 }
 0x1ec   :  { %403 = vsyncpa [#allocation3 + $0x1], 1 }

// kernel: deeplab_forward.12
= control target key start
LH: loop header
LB: loop body
LE: loop exit
PB: predicated region body
PF: predicated region fallthrough
CT: control target
= control target key end

     0   :  { %s2896_s21 = smov 0   ;;  %s2898_s22 = smov 0   ;;  %s3608_s0 = inlined_call_operand.vmem [shape: bf16[2,10,10,36], index: 0, kind: input, shape index: {}]   ;;  %s3609_s1 = inlined_call_operand.vmem [shape: bf16[3,3,36,24], index: 1, kind: input, shape index: {}]   ;;  %s3610_s2 = inlined_call_operand.vmem [shape: f32[1,24], index: 2, kind: input, shape index: {}]   ;;  %s3611_s3 = inlined_call_operand.vmem [shape: f32[1,24], index: 3, kind: input, shape index: {}]   ;;  %s3612_s4 = inlined_call_operand.vmem [shape: f32[24,128], index: 4, kind: input, shape index: {}]   ;;  %s3613_s5 = inlined_call_operand.vmem [shape: f32[1,128], index: 5, kind: input, shape index: {}]   ;;  %s3614_s6 = inlined_call_operand.vmem [shape: f32[2,64,128], index: 6, kind: output, shape index: {}]  }
   0x1   :  { %s2900_s23 = smov 0  }
   0x2 LB: > { %s28_s24 = sadd.s32 1, %s2855_s22  ;;  %p2329_p0 = scmp.ge.s32.totalorder %s2859_s23, 1  ;;  %s2859_s23 = sphi %s2900_s23, %s16_s23   ;;  %s2855_s22 = sphi %s2898_s22, %s3620_s22   ;;  %s2851_s21 = sphi %s2896_s21, %s3619_s21  }
   0x3   : > { %p30_p1 = scmp.ge.s32.totalorder %s28_s24, 2  ;;  %p226_p2 = scmp.lt.s32.totalorder %s2859_s23, 3 }
   0x5   : > { %s3622_s24 = smov (%p30_p1, %s28_s24), 0  ;;  %p227_p3 = pnand %p2329_p0, %p226_p2 }
   0x6   : > { %v2798_v0 = vld [vmem:[%s3609_s1] sm:$0xff] (!%p227_p3)   ;;  %v2799_v1 = vld [vmem:[%s3609_s1 + $0x8] sm:$0xff] (!%p227_p3)   ;;  %p260_p4 = scmp.lt.s32.totalorder (!%p227_p3), %s2851_s21, 1  ;;  %v2800_v2 = vld [vmem:[%s3609_s1 + $0x14] sm:$0xff] (!%p227_p3)   ;;  %vm349_vm0 = vcmask (!%p227_p3), 1041408   ;;  %vm336_vm1 = vcmask (!%p227_p3), 293888  }
   0x7   : > { %230 = sbr.rel (%p227_p3) target bundleno = 567 (0x237), region = 44  ;;  %2616 = vmatprep.subr.bf16.mxu0 (!%p227_p3), %v2798_v0  ;;  %v2801_v3 = vld [vmem:[%s3609_s1 + $0x10] ss:$0 sps:$4 sm:$0x33] (!%p227_p3)   ;;  %v2802_v4 = vld [vmem:[%s3609_s1 + $0x1c] sm:$0xff] (!%p227_p3)   ;;  %2630 = vmatprep.subr.bf16.mxu1 (!%p227_p3), %v2800_v2  ;;  %v2806_v7 = vld [vmem:[%s3609_s1 + $0x28] sm:$0xff] (!%p227_p3)  }
   0x8   : > { %2617 = vmatpush3.bf16.msra.mxu0 (!%p227_p3), %v2798_v0  ;;  %2631 = vmatpush3.bf16.msra.mxu1 (!%p227_p3), %v2800_v2  ;;  %v2805_v5 = vld [vmem:[%s3609_s1 + $0x24] ss:$0 sps:$4 sm:$0x33] (!%p227_p3)   ;;  %v351_v6 = vsel (!%p227_p3), %vm349_vm0, %v2801_v3, 0  ;;  %vm427_vm2 = vsmask.f32 (!%p227_p3), 3328 }
   0x9   : > { %2618 = vmatprep.subr.bf16.mxu0 (!%p227_p3), %v2799_v1  ;;  %2632 = vmatprep.subr.bf16.mxu1 (!%p227_p3), %v2802_v4  ;;  %v588_v8 = vsel (!%p227_p3), %vm349_vm0, %v2805_v5, 0  ;;  %vm428_vm3 = vsmask.f32 (!%p227_p3), 7440  ;;  %v2967_v17 = vld [vmem:[%s3609_s1 + $0x3c] sm:$0xff] (!%p227_p3)   ;;  %v2808_v23 = vld [vmem:[%s3609_s1 + $0x30] sm:$0xff] (!%p227_p3)   ;;  %vm687_vm4 = vcmask (!%p227_p3), 1042432  }
   0xa   : > { %vm688_vm5 = vcmask (!%p227_p3), 1046532   ;;  %vm3004_vm6 = vmor (!%p227_p3), %vm427_vm2, %vm428_vm3  ;;  %vm418_vm8 = vcmask (!%p227_p3), 195584  }
   0xb   : > { %vm3072_vm7 = vmor (!%p227_p3), %vm687_vm4, %vm688_vm5 }
   0xc   : > { %2619 = vmatpush3.bf16.msra.mxu0 (!%p227_p3), %v2799_v1  ;;  %2633 = vmatpush3.bf16.msra.mxu1 (!%p227_p3), %v2802_v4 }
   0xd   : > { %2764 = vmatprep.subr.msk.bf16.mxu0 (!%p227_p3), %vm349_vm0, %v2801_v3  ;;  %2765 = vmatprep.subr.msk.bf16.mxu1 (!%p227_p3), %vm349_vm0, %v2805_v5 }
   0xe   : > { %s3624_s21 = smov (!%p260_p4, %s2851_s21), 1 }
   0xf   : > { %s2773_s13 = smul.u32 80, %s3624_s21  ;;  %s2541_s10 = sshll.u32 %s3624_s21, 6 }
  0x10   : > { %2621 = vmatpush3.bf16.msra.mxu0 %v351_v6  ;;  %2635 = vmatpush3.bf16.msra.mxu1 %v588_v8  ;;  %s273_s15 = scalar_lea.vmem %s3614_s6, %s2541_s10 }
  0x11   : > { %s2944_s18 = scalar_lea.vmem %s3608_s0, %s2773_s13  ;;  %2644 = vmatprep.subr.bf16.mxu0 %v2806_v7  ;;  %2658 = vmatprep.subr.bf16.mxu1 %v2967_v17 }
  0x12   : > { %v2947_v9 = vld [vmem:[%s2944_s18] sm:$0xf]  ;;  %v2950_v10 = vld [vmem:[%s2944_s18 + $0x8] sm:$0xf]  ;;  %v2953_v11 = vld [vmem:[%s2944_s18 + $0x10] sm:$0xf] }
  0x13   : > { %v2333_v12 = vcombine.low %v2947_v9, %v2950_v10  ;;  %v431_v13 = vshrl.u32 %v2947_v9, 16  ;;  %v434_v14 = vshll.u32 %v2947_v9, 16  ;;  %v445_v15 = vshrl.u32 %v2950_v10, 16  ;;  %v2961_v16 = vld [vmem:[%s2944_s18 + $0x18] sm:$0xf] }
  0x14   : > { %v448_v18 = vshll.u32 %v2950_v10, 16  ;;  %v2360_v19 = vrot.slane %v2947_v9, 9  ;;  %v2361_v20 = vrot.slane %v2950_v10, 9  ;;  %v2334_v21 = vcombine.low %v2953_v11, %v2961_v16  ;;  %v2975_v22 = vld [vmem:[%s2944_s18 + $0x4] sm:$0x1] }
  0x15   : > { %2622 = vmatprep.mubr.msk.bf16.mxu0 %vm336_vm1, %v2333_v12  ;;  %v459_v24 = vshrl.u32 %v2953_v11, 16  ;;  %v462_v25 = vshll.u32 %v2953_v11, 16  ;;  %v473_v26 = vshrl.u32 %v2961_v16, 16  ;;  %v476_v27 = vshll.u32 %v2961_v16, 16  ;;  %v2986_v28 = vld [vmem:[%s2944_s18 + $0xc] sm:$0x1] }
  0x16   : > { %v2362_v29 = vrot.slane %v2953_v11, 9  ;;  %v2363_v30 = vrot.slane %v2961_v16, 9  ;;  %v433_v31 = vrot.slane %v431_v13, 4  ;;  %v436_v32 = vrot.slane %v434_v14, 5  ;;  %2623 = vmatmul.mubr.msk.bf16.vlgmr.msra.gmra.mrb[0].mxu0 %vm336_vm1, %v2334_v21  ;;  %v2994_v37 = vld [vmem:[%s2944_s18 + $0x14] sm:$0x1] }
  0x17   : > { %v440_v33 = vshll.u32 %v2975_v22, 16  ;;  %v447_v34 = vrot.slane %v445_v15, 4  ;;  %v450_v35 = vrot.slane %v448_v18, 5  ;;  %v454_v36 = vshll.u32 %v2986_v28, 16  ;;  %2645 = vmatpush3.bf16.msra.mxu0 %v2806_v7  ;;  %v3000_v41 = vld [vmem:[%s2944_s18 + $0x1c] sm:$0x1] }
  0x18   : > { %v437_v38 = vor.u32 %v436_v32, %v433_v31  ;;  %v692_v39 = vrot.slane %v2975_v22, 5  ;;  %v696_v40 = vrot.slane %v2986_v28, 5  ;;  %v461_v42 = vrot.slane %v459_v24, 4  ;;  %v3009_v48 = vld [vmem:[%s2944_s18 + $0x20] sm:$0xf]  ;;  %2646 = vmatprep.subr.bf16.mxu0 %v2808_v23 }
  0x19   : > { %v442_v44 = vrot.slane %v440_v33, 5  ;;  %v451_v45 = vor.u32 %v450_v35, %v447_v34  ;;  %v456_v46 = vrot.slane %v454_v36, 5  ;;  %v464_v47 = vrot.slane %v462_v25, 5  ;;  %v3013_v53 = vld [vmem:[%s2944_s18 + $0x28] sm:$0xf] }
  0x1a   : > { %v438_v49 = vrot.slane %v437_v38, 4  ;;  %v468_v50 = vshll.u32 %v2994_v37, 16  ;;  %v475_v51 = vrot.slane %v473_v26, 4  ;;  %v478_v52 = vrot.slane %v476_v27, 5  ;;  %v3018_v58 = vld [vmem:[%s2944_s18 + $0x30] sm:$0xf] }
  0x1b   : > { %v452_v54 = vrot.slane %v451_v45, 4  ;;  %v465_v55 = vor.u32 %v464_v47, %v461_v42  ;;  %v482_v56 = vshll.u32 %v3000_v41, 16  ;;  %v700_v57 = vrot.slane %v2994_v37, 5  ;;  %v3021_v59 = vld [vmem:[%s2944_s18 + $0x38] sm:$0xf]  ;;  %2647 = vmatpush3.bf16.msra.mxu0 %v2808_v23  ;;  %v2812_v36 = vld [vmem:[%s3609_s1 + $0x44] sm:$0xff]  }
  0x1c   : > { %v443_v60 = vsel %vm3004_vm6, %v438_v49, %v442_v44  ;;  %v470_v61 = vrot.slane %v468_v50, 5  ;;  %v479_v62 = vor.u32 %v478_v52, %v475_v51  ;;  %v704_v63 = vrot.slane %v3000_v41, 5  ;;  %v3031_v4 = vld [vmem:[%s2944_s18 + $0x24] sm:$0x1]  ;;  %v3034_v5 = vld [vmem:[%s2944_s18 + $0x2c] sm:$0x1] }
  0x1d   : > { %v457_v0 = vsel %vm3004_vm6, %v452_v54, %v456_v46  ;;  %v466_v1 = vrot.slane %v465_v55, 4  ;;  %v484_v2 = vrot.slane %v482_v56, 5  ;;  %v2335_v3 = vcombine.low %v3009_v48, %v3013_v53  ;;  %v2811_v21 = vld [vmem:[%s3609_s1 + $0x38] ss:$0 sps:$4 sm:$0x33]   ;;  %v3125_v37 = vld [vmem:[%s3609_s1 + $0x64] sm:$0xff]  }
  0x1e   : > { %v2349_v6 = vcombine.low %v443_v60, %v457_v0  ;;  %v480_v7 = vrot.slane %v479_v62, 4  ;;  %v487_v8 = vshrl.u32 %v3009_v48, 16  ;;  %v490_v12 = vshll.u32 %v3009_v48, 16  ;;  %v3055_v27 = vld [vmem:[%s2944_s18 + $0x34] sm:$0x1]  ;;  %2766 = vmatprep.subr.msk.bf16.mxu0 %vm349_vm0, %v2811_v21 }
  0x1f   : > { %v471_v13 = vsel %vm3004_vm6, %v466_v1, %v470_v61  ;;  %2626 = vmatprep.mubr.msk.bf16.mxu0 %vm336_vm1, %v2335_v3  ;;  %v501_v14 = vshrl.u32 %v3013_v53, 16  ;;  %v504_v15 = vshll.u32 %v3013_v53, 16  ;;  %v2336_v18 = vcombine.low %v3018_v58, %v3021_v59  ;;  %v3061_v35 = vld [vmem:[%s2944_s18 + $0x3c] sm:$0x1]  ;;  %v2814_v60 = vld [vmem:[%s3609_s1 + $0x50] sm:$0xff]  }
  0x20   : > { %2636 = vmatprep.mubr.msk.bf16.mxu1 %vm336_vm1, %v2349_v6  ;;  %v485_v23 = vsel %vm3004_vm6, %v480_v7, %v484_v2  ;;  %v515_v24 = vshrl.u32 %v3018_v58, 16  ;;  %v518_v25 = vshll.u32 %v3018_v58, 16  ;;  %v529_v26 = vshrl.u32 %v3021_v59, 16  ;;  %v2813_v2 = vld [vmem:[%s3609_s1 + $0x4c] ss:$0 sps:$4 sm:$0x33]  }
  0x21   : > { %v2350_v31 = vcombine.low %v471_v13, %v485_v23  ;;  %2627 = vmatmul.mubr.msk.bf16.gmra.mrb[4].mxu0 %vm336_vm1, %v2336_v18  ;;  %v532_v32 = vshll.u32 %v3021_v59, 16  ;;  %v489_v33 = vrot.slane %v487_v8, 4  ;;  %v492_v34 = vrot.slane %v490_v12, 5  ;;  %v3108_v28 = vld [vmem:[%s2944_s18 + $0x8] sm:$0xf]  ;;  %v2089_v51 = vld [vmem:[%s3612_s4 + $0x10] sm:$0xff] }
  0x22   : > { %v496_v38 = vshll.u32 %v3031_v4, 16  ;;  %v503_v42 = vrot.slane %v501_v14, 4  ;;  %v506_v44 = vrot.slane %v504_v15, 5  ;;  %v510_v45 = vshll.u32 %v3034_v5, 16 }
  0x23   : > { %2637 = vmatmul.mubr.msk.bf16.vlgmr.msra.gmra.mrb[0].mxu1 %vm336_vm1, %v2350_v31  ;;  %v493_v46 = vor.u32 %v492_v34, %v489_v33  ;;  %v517_v47 = vrot.slane %v515_v24, 4  ;;  %v520_v49 = vrot.slane %v518_v25, 5  ;;  %v524_v50 = vshll.u32 %v3055_v27, 16 }
  0x24   : > { %v498_v52 = vrot.slane %v496_v38, 5  ;;  %v507_v54 = vor.u32 %v506_v44, %v503_v42  ;;  %v512_v55 = vrot.slane %v510_v45, 5  ;;  %2659 = vmatpush3.bf16.msra.mxu1 %v2967_v17  ;;  %v531_v56 = vrot.slane %v529_v26, 4 }
  0x25   : > { %v494_v61 = vrot.slane %v493_v46, 4  ;;  %v521_v62 = vor.u32 %v520_v49, %v517_v47  ;;  %v526_v0 = vrot.slane %v524_v50, 5  ;;  %v534_v1 = vrot.slane %v532_v32, 5  ;;  %2660 = vmatprep.subr.bf16.mxu1 %v2812_v36  ;;  %v3178_v46 = vld [vmem:[%s2944_s18 + $0x38] sm:$0xf] }
  0x26   : > { %v508_v3 = vrot.slane %v507_v54, 4  ;;  %v538_v6 = vshll.u32 %v3061_v35, 16  ;;  %v768_v17 = vsel %vm349_vm0, %v2811_v21, 0  ;;  %v693_v7 = vsel %vm3072_vm7, %v2360_v19, %v692_v39  ;;  %v3185_v54 = vld [vmem:[%s2944_s18 + $0x40] sm:$0xf] }
  0x27   : > { %v499_v8 = vsel %vm3004_vm6, %v494_v61, %v498_v52  ;;  %v522_v12 = vrot.slane %v521_v62, 4  ;;  %v535_v13 = vor.u32 %v534_v1, %v531_v56  ;;  %2649 = vmatpush3.bf16.msra.mxu0 %v768_v17  ;;  %v697_v14 = vsel %vm3072_vm7, %v2361_v20, %v696_v40  ;;  %v3202_v1 = vld [vmem:[%s2944_s18 + $0x14] sm:$0x1] }
  0x28   : > { %v513_v9 = vsel %vm3004_vm6, %v508_v3, %v512_v55  ;;  %v540_v22 = vrot.slane %v538_v6, 5  ;;  %v2373_v15 = vcombine.low %v693_v7, %v697_v14  ;;  %v701_v19 = vsel %vm3072_vm7, %v2362_v29, %v700_v57  ;;  %2661 = vmatpush3.bf16.msra.mxu1 %v2812_v36  ;;  %2672 = vmatprep.subr.bf16.mxu0 %v2814_v60  ;;  %v3120_v29 = vld [vmem:[%s2944_s18 + $0x10] sm:$0xf]  ;;  %v3166_v36 = vld [vmem:[%s2944_s18 + $0x28] sm:$0xf]  ;;  %v3190_v55 = vld [vmem:[%s3609_s1 + $0x78] sm:$0xff]  }
  0x29   : > { %v2351_v10 = vcombine.low %v499_v8, %v513_v9  ;;  %v527_v20 = vsel %vm3004_vm6, %v522_v12, %v526_v0  ;;  %v536_v39 = vrot.slane %v535_v13, 4  ;;  %v705_v11 = vsel %vm3072_vm7, %v2363_v30, %v704_v63  ;;  %2767 = vmatprep.subr.msk.bf16.mxu1 %vm349_vm0, %v2813_v2  ;;  %v3132_v30 = vld [vmem:[%s2944_s18 + $0x18] sm:$0xf]  ;;  %v3199_v0 = vld [vmem:[%s2944_s18 + $0xc] sm:$0x1] }
  0x2a   : > { %2650 = vmatprep.mubr.msk.bf16.mxu0 %vm336_vm1, %v2373_v15  ;;  %v2374_v40 = vcombine.low %v701_v19, %v705_v11  ;;  %v933_v41 = vsel %vm349_vm0, %v2813_v2, 0  ;;  %v2364_v16 = vrot.slane %v3009_v48, 9  ;;  %v708_v57 = vrot.slane %v3031_v4, 5  ;;  %v2817_v63 = vld [vmem:[%s3609_s1 + $0x58] sm:$0xff]   ;;  %v3144_v48 = vld [vmem:[%s2944_s18 + $0x20] sm:$0xf] }
  0x2b   : > { %2640 = vmatprep.mubr.msk.bf16.mxu1 %vm336_vm1, %v2351_v10  ;;  %v541_v18 = vsel %vm3004_vm6, %v536_v39, %v540_v22  ;;  %v2365_v21 = vrot.slane %v3013_v53, 9  ;;  %v712_v23 = vrot.slane %v3034_v5, 5  ;;  %v2366_v24 = vrot.slane %v3018_v58, 9  ;;  %v2818_v53 = vld [vmem:[%s3609_s1 + $0x60] ss:$0 sps:$4 sm:$0x33]  }
  0x2c   : > { %v2352_v4 = vcombine.low %v527_v20, %v541_v18  ;;  %2651 = vmatmul.mubr.msk.bf16.vlgmr.msra.gmra.mrb[8].mxu0 %vm336_vm1, %v2374_v40  ;;  %2663 = vmatpush3.bf16.msra.mxu1 %v933_v41  ;;  %v709_v25 = vsel %vm3072_vm7, %v2364_v16, %v708_v57  ;;  %v716_v26 = vrot.slane %v3055_v27, 5  ;;  %v2367_v31 = vrot.slane %v3021_v59, 9  ;;  %v3210_v7 = vld [vmem:[%s2944_s18 + $0x1c] sm:$0x1]  ;;  %v2822_v8 = vld [vmem:[%s3609_s1 + $0x6c] sm:$0xff]  }
  0x2d   : > { %2673 = vmatpush3.bf16.msra.mxu0 %v2814_v60  ;;  %v713_v58 = vsel %vm3072_vm7, %v2365_v21, %v712_v23  ;;  %v720_v5 = vrot.slane %v3061_v35, 5  ;;  %v2405_v32 = vcombine.low %v3108_v28, %v3120_v29  ;;  %2686 = vmatprep.subr.bf16.mxu1 %v3125_v37  ;;  %v1025_v33 = vshrl.u32 %v3108_v28, 16  ;;  %v3169_v35 = vld [vmem:[%s2944_s18 + $0x30] sm:$0xf]  ;;  %v3219_v22 = vld [vmem:[%s2944_s18 + $0x24] sm:$0x1] }
  0x2e   : > { %2641 = vmatmul.mubr.msk.bf16.gmra.mrb[4].mxu1 %vm336_vm1, %v2352_v4  ;;  %v2375_v27 = vcombine.low %v709_v25, %v713_v58  ;;  %v717_v59 = vsel %vm3072_vm7, %v2366_v24, %v716_v26  ;;  %v1028_v34 = vshll.u32 %v3108_v28, 16  ;;  %2674 = vmatprep.subr.bf16.mxu0 %v2817_v63  ;;  %v1039_v42 = vshrl.u32 %v3120_v29, 16  ;;  %v2823_v25 = vld [vmem:[%s3609_s1 + $0x74] ss:$0 sps:$4 sm:$0x33]  }
  0x2f   : > { %v721_v38 = vsel %vm3072_vm7, %v2367_v31, %v720_v5  ;;  %2664 = vmatprep.mubr.msk.bf16.mxu1 %vm336_vm1, %v2405_v32  ;;  %v1042_v44 = vshll.u32 %v3120_v29, 16  ;;  %v1053_v45 = vshrl.u32 %v3132_v30, 16  ;;  %v1056_v49 = vshll.u32 %v3132_v30, 16 }
  0x30   : > { %2654 = vmatprep.mubr.msk.bf16.mxu0 %vm336_vm1, %v2375_v27  ;;  %v2376_v47 = vcombine.low %v717_v59, %v721_v38  ;;  %v1067_v50 = vshrl.u32 %v3144_v48, 16  ;;  %v1070_v52 = vshll.u32 %v3144_v48, 16  ;;  %v2406_v56 = vcombine.low %v3132_v30, %v3144_v48  ;;  %v3236_v27 = vld [vmem:[%s2944_s18 + $0x2c] sm:$0x1]  ;;  %v3239_v59 = vld [vmem:[%s2944_s18 + $0x34] sm:$0x1] }
  0x31   : > { %2675 = vmatpush3.bf16.msra.mxu0 %v2817_v63  ;;  %v2407_v60 = vcombine.low %v3166_v36, %v3169_v35  ;;  %v1081_v61 = vshrl.u32 %v3166_v36, 16  ;;  %v1084_v62 = vshll.u32 %v3166_v36, 16  ;;  %v1095_v2 = vshrl.u32 %v3169_v35, 16 }
  0x32   : > { %2768 = vmatprep.subr.msk.bf16.mxu0 %vm349_vm0, %v2818_v53  ;;  %v1098_v3 = vshll.u32 %v3169_v35, 16  ;;  %v1182_v6 = vsel %vm349_vm0, %v2818_v53, 0  ;;  %v1109_v17 = vshrl.u32 %v3178_v46, 16  ;;  %v1112_v12 = vshll.u32 %v3178_v46, 16 }
  0x33   : > { %v1123_v13 = vshrl.u32 %v3185_v54, 16  ;;  %v1126_v14 = vshll.u32 %v3185_v54, 16  ;;  %v1027_v9 = vrot.slane %v1025_v33, 4  ;;  %v1030_v15 = vrot.slane %v1028_v34, 5 }
  0x34   : > { %2655 = vmatmul.mubr.msk.bf16.gmra.mrb[12].mxu0 %vm336_vm1, %v2376_v47  ;;  %v1034_v19 = vshll.u32 %v3199_v0, 16  ;;  %v1041_v10 = vrot.slane %v1039_v42, 4  ;;  %v1044_v20 = vrot.slane %v1042_v44, 5  ;;  %v1048_v39 = vshll.u32 %v3202_v1, 16 }
  0x35   : > { %2677 = vmatpush3.bf16.msra.mxu0 %v1182_v6  ;;  %v1055_v11 = vrot.slane %v1053_v45, 4  ;;  %v1058_v40 = vrot.slane %v1056_v49, 5  ;;  %v1062_v41 = vshll.u32 %v3210_v7, 16  ;;  %v1031_v16 = vor.u32 %v1030_v15, %v1027_v9  ;;  %v3247_v45 = vld [vmem:[%s2944_s18 + $0x3c] sm:$0x1] }
  0x36   : > { %2665 = vmatmul.mubr.msk.bf16.vlgmr.msra.gmra.mrb[8].mxu1 %vm336_vm1, %v2406_v56  ;;  %v1036_v57 = vrot.slane %v1034_v19, 5  ;;  %v1045_v63 = vor.u32 %v1044_v20, %v1041_v10  ;;  %v1069_v18 = vrot.slane %v1067_v50, 4  ;;  %2700 = vmatprep.subr.bf16.mxu0 %v3190_v55  ;;  %v1050_v21 = vrot.slane %v1048_v39, 5  ;;  %v3254_v56 = vld [vmem:[%s3609_s1 + $0x8c] sm:$0xff]   ;;  %v3263_v19 = vld [vmem:[%s2944_s18 + $0x44] sm:$0x1] }
  0x37   : > { %2668 = vmatprep.mubr.msk.bf16.mxu1 %vm336_vm1, %v2407_v60  ;;  %2687 = vmatpush3.bf16.msra.mxu1 %v3125_v37  ;;  %v1059_v23 = vor.u32 %v1058_v40, %v1055_v11  ;;  %v1064_v24 = vrot.slane %v1062_v41, 5  ;;  %v1072_v4 = vrot.slane %v1070_v52, 5  ;;  %v1032_v26 = vrot.slane %v1031_v16, 4  ;;  %v2825_v20 = vld [vmem:[%s3609_s1 + $0x80] sm:$0xff]  }
  0x38   : > { %v1046_v31 = vrot.slane %v1045_v63, 4  ;;  %v1076_v53 = vshll.u32 %v3219_v22, 16  ;;  %2688 = vmatprep.subr.bf16.mxu1 %v2822_v8  ;;  %v1083_v58 = vrot.slane %v1081_v61, 4  ;;  %v2408_v5 = vcombine.low %v3178_v46, %v3185_v54 }
  0x39   : > { %v1060_v32 = vrot.slane %v1059_v23, 4  ;;  %v1073_v37 = vor.u32 %v1072_v4, %v1069_v18  ;;  %v1086_v33 = vrot.slane %v1084_v62, 5  ;;  %v1037_v34 = vsel %vm3004_vm6, %v1032_v26, %v1036_v57 }
  0x3a   : > { %v1051_v38 = vsel %vm3004_vm6, %v1046_v31, %v1050_v21  ;;  %v1078_v42 = vrot.slane %v1076_v53, 5  ;;  %v1090_v44 = vshll.u32 %v3236_v27, 16  ;;  %v1097_v61 = vrot.slane %v1095_v2, 4 }
  0x3b   : > { %v2421_v47 = vcombine.low %v1037_v34, %v1051_v38  ;;  %v1065_v49 = vsel %vm3004_vm6, %v1060_v32, %v1064_v24  ;;  %v1074_v50 = vrot.slane %v1073_v37, 4  ;;  %2689 = vmatpush3.bf16.msra.mxu1 %v2822_v8  ;;  %v1087_v52 = vor.u32 %v1086_v33, %v1083_v58  ;;  %v3303_v32 = vld [vmem:[%s3609_s1 + $0xa0] sm:$0xff]   ;;  %v3311_v34 = vld [vmem:[%s2944_s18 + $0x10] sm:$0xf] }
  0x3c   : > { %2769 = vmatprep.subr.msk.bf16.mxu1 %vm349_vm0, %v2823_v25  ;;  %v1092_v60 = vrot.slane %v1090_v44, 5  ;;  %v1100_v62 = vrot.slane %v1098_v3, 5  ;;  %v1104_v6 = vshll.u32 %v3239_v59, 16  ;;  %v1359_v8 = vsel %vm349_vm0, %v2823_v25, 0 }
  0x3d   : > { %2678 = vmatprep.mubr.msk.bf16.mxu0 %vm336_vm1, %v2421_v47  ;;  %v1079_v9 = vsel %vm3004_vm6, %v1074_v50, %v1078_v42  ;;  %v1088_v15 = vrot.slane %v1087_v52, 4  ;;  %v1111_v10 = vrot.slane %v1109_v17, 4  ;;  %v1114_v11 = vrot.slane %v1112_v12, 5 }
  0x3e   : > { %2669 = vmatmul.mubr.msk.bf16.gmra.mrb[12].mxu1 %vm336_vm1, %v2408_v5  ;;  %v2422_v2 = vcombine.low %v1065_v49, %v1079_v9  ;;  %v1101_v3 = vor.u32 %v1100_v62, %v1097_v61  ;;  %v1106_v39 = vrot.slane %v1104_v6, 5  ;;  %v1118_v41 = vshll.u32 %v3247_v45, 16  ;;  %v3322_v49 = vld [vmem:[%s2944_s18 + $0x20] sm:$0xf] }
  0x3f   : > { %v1093_v40 = vsel %vm3004_vm6, %v1088_v15, %v1092_v60  ;;  %2691 = vmatpush3.bf16.msra.mxu1 %v1359_v8  ;;  %v1125_v17 = vrot.slane %v1123_v13, 4  ;;  %v1128_v16 = vrot.slane %v1126_v14, 5  ;;  %v1115_v63 = vor.u32 %v1114_v11, %v1111_v10  ;;  %v3331_v60 = vld [vmem:[%s2944_s18 + $0x28] sm:$0xf]  ;;  %v3351_v15 = vld [vmem:[%s2944_s18 + $0x30] sm:$0xf] }
  0x40   : > { %2679 = vmatmul.mubr.msk.bf16.vlgmr.msra.gmra.mrb[16].mxu0 %vm336_vm1, %v2422_v2  ;;  %v1102_v57 = vrot.slane %v1101_v3, 4  ;;  %v1132_v18 = vshll.u32 %v3263_v19, 16  ;;  %v2432_v12 = vrot.slane %v3108_v28, 9  ;;  %2714 = vmatprep.subr.bf16.mxu1 %v3254_v56  ;;  %v1120_v21 = vrot.slane %v1118_v41, 5  ;;  %v3354_v8 = vld [vmem:[%s2944_s18 + $0x38] sm:$0xf] }
  0x41   : > { %2701 = vmatpush3.bf16.msra.mxu0 %v3190_v55  ;;  %v1129_v23 = vor.u32 %v1128_v16, %v1125_v17  ;;  %v1283_v24 = vrot.slane %v3199_v0, 5  ;;  %v2433_v13 = vrot.slane %v3120_v29, 9  ;;  %v1116_v4 = vrot.slane %v1115_v63, 4  ;;  %v2826_v28 = vld [vmem:[%s3609_s1 + $0x88] ss:$0 sps:$4 sm:$0x33]  }
  0x42   : > { %v1107_v14 = vsel %vm3004_vm6, %v1102_v57, %v1106_v39  ;;  %v1134_v25 = vrot.slane %v1132_v18, 5  ;;  %v1287_v26 = vrot.slane %v3202_v1, 5  ;;  %2702 = vmatprep.subr.bf16.mxu0 %v2825_v20  ;;  %v2434_v29 = vrot.slane %v3132_v30, 9  ;;  %v3363_v3 = vld [vmem:[%s2944_s18 + $0x40] sm:$0xf] }
  0x43   : > { %v2423_v55 = vcombine.low %v1093_v40, %v1107_v14  ;;  %v1130_v31 = vrot.slane %v1129_v23, 4  ;;  %v1284_v0 = vsel %vm3072_vm7, %v2432_v12, %v1283_v24  ;;  %v1121_v53 = vsel %vm3004_vm6, %v1116_v4, %v1120_v21  ;;  %v3366_v39 = vld [vmem:[%s2944_s18 + $0x48] sm:$0xf]  ;;  %v3377_v16 = vld [vmem:[%s2944_s18 + $0x14] sm:$0x1] }
  0x44   : > { %v1288_v1 = vsel %vm3072_vm7, %v2433_v13, %v1287_v26  ;;  %v1291_v58 = vrot.slane %v3210_v7, 5  ;;  %v2435_v5 = vrot.slane %v3144_v48, 9  ;;  %v1295_v33 = vrot.slane %v3219_v22, 5  ;;  %v3314_v48 = vld [vmem:[%s2944_s18 + $0x18] sm:$0xf] }
  0x45   : > { %2682 = vmatprep.mubr.msk.bf16.mxu0 %vm336_vm1, %v2423_v55  ;;  %v1135_v30 = vsel %vm3004_vm6, %v1130_v31, %v1134_v25  ;;  %v2445_v37 = vcombine.low %v1284_v0, %v1288_v1  ;;  %2703 = vmatpush3.bf16.msra.mxu0 %v2825_v20  ;;  %v2436_v7 = vrot.slane %v3166_v36, 9  ;;  %v1299_v44 = vrot.slane %v3236_v27, 5  ;;  %v3389_v13 = vld [vmem:[%s2944_s18 + $0x1c] sm:$0x1]  ;;  %v2835_v55 = vld [vmem:[%s3609_s1 + $0xa8] sm:$0xff]  }
  0x46   : > { %v2424_v38 = vcombine.low %v1121_v53, %v1135_v30  ;;  %v1292_v42 = vsel %vm3072_vm7, %v2434_v29, %v1291_v58  ;;  %2770 = vmatprep.subr.msk.bf16.mxu0 %vm349_vm0, %v2826_v28  ;;  %v2437_v47 = vrot.slane %v3169_v35, 9  ;;  %v1296_v36 = vsel %vm3072_vm7, %v2435_v5, %v1295_v33 }
  0x47   : > { %2692 = vmatprep.mubr.msk.bf16.mxu1 %vm336_vm1, %v2445_v37  ;;  %v1303_v22 = vrot.slane %v3239_v59, 5  ;;  %v1524_v50 = vsel %vm349_vm0, %v2826_v28, 0  ;;  %v2438_v52 = vrot.slane %v3178_v46, 9  ;;  %v2446_v35 = vcombine.low %v1292_v42, %v1296_v36  ;;  %v2830_v59 = vld [vmem:[%s3609_s1 + $0x94] sm:$0xff]   ;;  %v3397_v28 = vld [vmem:[%s2944_s18 + $0x24] sm:$0x1] }
  0x48   : > { %2683 = vmatmul.mubr.msk.bf16.gmra.mrb[20].mxu0 %vm336_vm1, %v2424_v38  ;;  %v1300_v27 = vsel %vm3072_vm7, %v2436_v7, %v1299_v44  ;;  %v1307_v61 = vrot.slane %v3247_v45, 5  ;;  %v2439_v62 = vrot.slane %v3185_v54, 9  ;;  %v2831_v46 = vld [vmem:[%s3609_s1 + $0x9c] ss:$0 sps:$4 sm:$0x33]   ;;  %v1311_v9 = vrot.slane %v3263_v19, 5 }
  0x49   : > { %v1304_v6 = vsel %vm3072_vm7, %v2437_v47, %v1303_v22  ;;  %2705 = vmatpush3.bf16.msra.mxu0 %v1524_v50  ;;  %v2477_v45 = vcombine.low %v3311_v34, %v3314_v48  ;;  %v1616_v54 = vshrl.u32 %v3311_v34, 16  ;;  %2693 = vmatmul.mubr.msk.bf16.vlgmr.msra.gmra.mrb[16].mxu1 %vm336_vm1, %v2446_v35  ;;  %v1619_v2 = vshll.u32 %v3311_v34, 16  ;;  %v2836_v37 = vld [vmem:[%s3609_s1 + $0xb0] ss:$0 sps:$4 sm:$0x33]  }
  0x4a   : > { %v2447_v10 = vcombine.low %v1300_v27, %v1304_v6  ;;  %v1308_v20 = vsel %vm3072_vm7, %v2438_v52, %v1307_v61  ;;  %v1630_v19 = vshrl.u32 %v3314_v48, 16  ;;  %2728 = vmatprep.subr.bf16.mxu0 %v3303_v32  ;;  %2715 = vmatpush3.bf16.msra.mxu1 %v3254_v56  ;;  %v1312_v11 = vsel %vm3072_vm7, %v2439_v62, %v1311_v9  ;;  %v3415_v7 = vld [vmem:[%s2944_s18 + $0x2c] sm:$0x1]  ;;  %v3420_v52 = vld [vmem:[%s2944_s18 + $0x34] sm:$0x1] }
  0x4b   : > { %2706 = vmatprep.mubr.msk.bf16.mxu0 %vm336_vm1, %v2477_v45  ;;  %v1633_v40 = vshll.u32 %v3314_v48, 16  ;;  %v2478_v41 = vcombine.low %v3322_v49, %v3331_v60  ;;  %v1644_v17 = vshrl.u32 %v3322_v49, 16  ;;  %v2448_v57 = vcombine.low %v1308_v20, %v1312_v11  ;;  %2716 = vmatprep.subr.bf16.mxu1 %v2830_v59 }
  0x4c   : > { %2696 = vmatprep.mubr.msk.bf16.mxu1 %vm336_vm1, %v2447_v10  ;;  %v1647_v56 = vshll.u32 %v3322_v49, 16  ;;  %v1658_v63 = vshrl.u32 %v3331_v60, 16  ;;  %v1661_v18 = vshll.u32 %v3331_v60, 16  ;;  %v2479_v12 = vcombine.low %v3351_v15, %v3354_v8 }
  0x4d   : > { %v1672_v21 = vshrl.u32 %v3351_v15, 16  ;;  %v1675_v23 = vshll.u32 %v3351_v15, 16  ;;  %v1686_v24 = vshrl.u32 %v3354_v8, 16  ;;  %v1689_v14 = vshll.u32 %v3354_v8, 16 }
  0x4e   : > { %v1773_v4 = vsel %vm349_vm0, %v2831_v46, 0  ;;  %v2480_v25 = vcombine.low %v3363_v3, %v3366_v39  ;;  %v1700_v26 = vshrl.u32 %v3363_v3, 16  ;;  %2717 = vmatpush3.bf16.msra.mxu1 %v2830_v59  ;;  %v1703_v31 = vshll.u32 %v3363_v3, 16 }
  0x4f   : > { %v1714_v0 = vshrl.u32 %v3366_v39, 16  ;;  %v1717_v29 = vshll.u32 %v3366_v39, 16  ;;  %v1618_v53 = vrot.slane %v1616_v54, 4  ;;  %2771 = vmatprep.subr.msk.bf16.mxu1 %vm349_vm0, %v2831_v46  ;;  %v1621_v1 = vrot.slane %v1619_v2, 5  ;;  %v3424_v54 = vld [vmem:[%s2944_s18 + $0x3c] sm:$0x1] }
  0x50   : > { %2707 = vmatmul.mubr.msk.bf16.vlgmr.msra.gmra.mrb[24].mxu0 %vm336_vm1, %v2478_v41  ;;  %v1625_v58 = vshll.u32 %v3377_v16, 16  ;;  %v1632_v5 = vrot.slane %v1630_v19, 4  ;;  %v1635_v30 = vrot.slane %v1633_v40, 5  ;;  %v1639_v33 = vshll.u32 %v3389_v13, 16 }
  0x51   : > { %2710 = vmatprep.mubr.msk.bf16.mxu0 %vm336_vm1, %v2479_v12  ;;  %2729 = vmatpush3.bf16.msra.mxu0 %v3303_v32  ;;  %v1646_v38 = vrot.slane %v1644_v17, 4  ;;  %v1649_v42 = vrot.slane %v1647_v56, 5  ;;  %v1653_v44 = vshll.u32 %v3397_v28, 16  ;;  %v1622_v47 = vor.u32 %v1621_v1, %v1618_v53 }
  0x52   : > { %2697 = vmatmul.mubr.msk.bf16.gmra.mrb[20].mxu1 %vm336_vm1, %v2448_v57  ;;  %v1627_v36 = vrot.slane %v1625_v58, 5  ;;  %v1636_v22 = vor.u32 %v1635_v30, %v1632_v5  ;;  %v1660_v50 = vrot.slane %v1658_v63, 4  ;;  %2730 = vmatprep.subr.bf16.mxu0 %v2835_v55  ;;  %v1641_v32 = vrot.slane %v1639_v33, 5  ;;  %v3435_v63 = vld [vmem:[%s2944_s18 + $0x44] sm:$0x1] }
  0x53   : > { %2719 = vmatpush3.bf16.msra.mxu1 %v1773_v4  ;;  %v1650_v35 = vor.u32 %v1649_v42, %v1646_v38  ;;  %v1655_v27 = vrot.slane %v1653_v44, 5  ;;  %v1663_v61 = vrot.slane %v1661_v18, 5  ;;  %v1623_v62 = vrot.slane %v1622_v47, 4 }
  0x54   : > { %v1637_v59 = vrot.slane %v1636_v22, 4  ;;  %v1667_v46 = vshll.u32 %v3415_v7, 16  ;;  %v1674_v6 = vrot.slane %v1672_v21, 4  ;;  %v1677_v10 = vrot.slane %v1675_v23, 5 }
  0x55   : > { %v1651_v9 = vrot.slane %v1650_v35, 4  ;;  %v1664_v45 = vor.u32 %v1663_v61, %v1660_v50  ;;  %2731 = vmatpush3.bf16.msra.mxu0 %v2835_v55  ;;  %v1681_v20 = vshll.u32 %v3420_v52, 16  ;;  %v1628_v2 = vsel %vm3004_vm6, %v1623_v62, %v1627_v36  ;;  %v2471_v55 = vld [vmem:[%s2944_s18 + $0x4c] sm:$0x1] }
  0x56   : > { %v1642_v19 = vsel %vm3004_vm6, %v1637_v59, %v1641_v32  ;;  %v1669_v11 = vrot.slane %v1667_v46, 5  ;;  %2772 = vmatprep.subr.msk.bf16.mxu0 %vm349_vm0, %v2836_v37  ;;  %v1688_v40 = vrot.slane %v1686_v24, 4  ;;  %v1678_v56 = vor.u32 %v1677_v10, %v1674_v6 }
  0x57   : > { %v2493_v41 = vcombine.low %v1628_v2, %v1642_v19  ;;  %v1656_v17 = vsel %vm3004_vm6, %v1651_v9, %v1655_v27  ;;  %v1665_v57 = vrot.slane %v1664_v45, 4  ;;  %v1683_v18 = vrot.slane %v1681_v20, 5 }
  0x58   : > { %2711 = vmatmul.mubr.msk.bf16.gmra.mrb[28].mxu0 %vm336_vm1, %v2480_v25  ;;  %v1691_v12 = vrot.slane %v1689_v14, 5  ;;  %v1695_v21 = vshll.u32 %v3424_v54, 16  ;;  %v1950_v23 = vsel %vm349_vm0, %v2836_v37, 0  ;;  %v1679_v4 = vrot.slane %v1678_v56, 4 }
  0x59   : > { %2720 = vmatprep.mubr.msk.bf16.mxu1 %vm336_vm1, %v2493_v41  ;;  %v1670_v24 = vsel %vm3004_vm6, %v1665_v57, %v1669_v11  ;;  %2733 = vmatpush3.bf16.msra.mxu0 %v1950_v23  ;;  %v1702_v53 = vrot.slane %v1700_v26, 4  ;;  %v1705_v1 = vrot.slane %v1703_v31, 5  ;;  %v1709_v14 = vshll.u32 %v3435_v63, 16  ;;  %v2088_v41 = vld [vmem:[%s3612_s4 + $0x8] sm:$0xff] }
  0x5a   : > { %v2494_v58 = vcombine.low %v1656_v17, %v1670_v24  ;;  %v1692_v25 = vor.u32 %v1691_v12, %v1688_v40  ;;  %v1697_v5 = vrot.slane %v1695_v21, 5  ;;  %v1684_v30 = vsel %vm3004_vm6, %v1679_v4, %v1683_v18 }
  0x5b   : > { %v1706_v37 = vor.u32 %v1705_v1, %v1702_v53  ;;  %v1716_v33 = vrot.slane %v1714_v0, 4  ;;  %v1719_v38 = vrot.slane %v1717_v29, 5  ;;  %v1711_v26 = vrot.slane %v1709_v14, 5 }
  0x5c   : > { %2721 = vmatmul.mubr.msk.bf16.vlgmr.msra.gmra.mrb[24].mxu1 %vm336_vm1, %v2494_v58  ;;  %v1693_v42 = vrot.slane %v1692_v25, 4  ;;  %v1723_v31 = vshll.u32 %v2471_v55, 16  ;;  %v2504_v44 = vrot.slane %v3311_v34, 9  ;;  %v1874_v22 = vrot.slane %v3377_v16, 5 }
  0x5d   : > { %v1707_v47 = vrot.slane %v1706_v37, 4  ;;  %v1720_v36 = vor.u32 %v1719_v38, %v1716_v33  ;;  %v2505_v50 = vrot.slane %v3314_v48, 9  ;;  %v1878_v35 = vrot.slane %v3389_v13, 5 }
  0x5e   : > { %v1698_v32 = vsel %vm3004_vm6, %v1693_v42, %v1697_v5  ;;  %v1725_v0 = vrot.slane %v1723_v31, 5  ;;  %v2506_v29 = vrot.slane %v3322_v49, 9  ;;  %v1875_v34 = vsel %vm3072_vm7, %v2504_v44, %v1874_v22 }
  0x5f   : > { %v2495_v27 = vcombine.low %v1684_v30, %v1698_v32  ;;  %v1712_v61 = vsel %vm3004_vm6, %v1707_v47, %v1711_v26  ;;  %v1721_v62 = vrot.slane %v1720_v36, 4  ;;  %v1879_v16 = vsel %vm3072_vm7, %v2505_v50, %v1878_v35 }
  0x60   : > { %v1882_v48 = vrot.slane %v3397_v28, 5  ;;  %v2507_v59 = vrot.slane %v3331_v60, 9  ;;  %v1886_v46 = vrot.slane %v3415_v7, 5  ;;  %v2517_v13 = vcombine.low %v1875_v34, %v1879_v16 }
  0x61   : > { %2724 = vmatprep.mubr.msk.bf16.mxu1 %vm336_vm1, %v2495_v27  ;;  %v1726_v49 = vsel %vm3004_vm6, %v1721_v62, %v1725_v0  ;;  %v2508_v6 = vrot.slane %v3351_v15, 9  ;;  %v1890_v9 = vrot.slane %v3420_v52, 5  ;;  %v2509_v60 = vrot.slane %v3354_v8, 9 }
  0x62   : > { %v2496_v45 = vcombine.low %v1712_v61, %v1726_v49  ;;  %v1883_v10 = vsel %vm3072_vm7, %v2506_v29, %v1882_v48  ;;  %v1887_v28 = vsel %vm3072_vm7, %v2507_v59, %v1886_v46  ;;  %2734 = vmatprep.mubr.msk.bf16.mxu0 %vm336_vm1, %v2517_v13  ;;  %v1894_v20 = vrot.slane %v3424_v54, 5 }
  0x63   : > { %v2518_v7 = vcombine.low %v1883_v10, %v1887_v28  ;;  %v1891_v43 = vsel %vm3072_vm7, %v2508_v6, %v1890_v9  ;;  %v2510_v15 = vrot.slane %v3363_v3, 9  ;;  %v1898_v52 = vrot.slane %v3435_v63, 5 }
  0x64   : > { %2725 = vmatmul.mubr.msk.bf16.gmra.mrb[28].mxu1 %vm336_vm1, %v2496_v45  ;;  %v2511_v2 = vrot.slane %v3366_v39, 9  ;;  %v1902_v19 = vrot.slane %v2471_v55, 5  ;;  %v1895_v8 = vsel %vm3072_vm7, %v2509_v60, %v1894_v20  ;;  %v2087_v39 = vld [vmem:[%s3612_s4] sm:$0xff] }
  0x65   : > { %2735 = vmatmul.mubr.msk.bf16.vlgmr.msra.gmra.mrb[32].mxu0 %vm336_vm1, %v2518_v7  ;;  %v2519_v11 = vcombine.low %v1891_v43, %v1895_v8  ;;  %v1899_v40 = vsel %vm3072_vm7, %v2510_v15, %v1898_v52  ;;  %v2760_v17 = vpack.c.bf16 %v2088_v41, %v2087_v39 }
  0x66   : > { %v1903_v54 = vsel %vm3072_vm7, %v2511_v2, %v1902_v19 }
  0x67   : > { %v2520_v3 = vcombine.low %v1899_v40, %v1903_v54  ;;  %2738 = vmatprep.mubr.msk.bf16.mxu0 %vm336_vm1, %v2519_v11  ;;  %2761 = vmatprep.subr.bf16.mxu1 %v2760_v17 }
  0x68   : > { %2763 = vmatpush3.bf16.msra.mxu1 %v2760_v17 }
  0x69   : > { %2746 = vmatprep.subr.mxu1 %v2089_v51 }
  0x6c   : > { %2747 = vmatpush3.msra.mxu1 %v2089_v51 }
  0x6d   : > { %2739 = vmatmul.mubr.msk.bf16.gmra.mrb[36].mxu0 %vm336_vm1, %v2520_v3 }
  0xe9   : > { %v2624_v57 = vpop.f32.mrb[0].mxu0 }
  0xea   : > { %421 = vst.msk [vmem:[#allocation2 + $0x10] sm:$0xff] %vm418_vm8, %v2624_v57  ;;  %v387_v56 = vpop.f32.mrb[1].mxu0 }
  0xeb   : > { %419 = vst.msk [vmem:[#allocation2] sm:$0xff] %vm418_vm8, %v387_v56  ;;  %v2625_v63 = vpop.f32.mrb[2].mxu0 }
  0xec   : > { %422 = vst.msk [vmem:[#allocation2 + $0x18] sm:$0xff] %vm418_vm8, %v2625_v63  ;;  %v390_v18 = vpop.f32.mrb[3].mxu0 }
  0xed   : > { %420 = vst.msk [vmem:[#allocation2 + $0x8] sm:$0xff] %vm418_vm8, %v390_v18 }
  0xf1   : > { %v657_v12 = vld [vmem:[#allocation2 + $0x10] sm:$0xff] }
  0xf2   : > { %v655_v23 = vld [vmem:[#allocation2] sm:$0xff] }
  0xf3   : > { %v658_v55 = vld [vmem:[#allocation2 + $0x18] sm:$0xff] }
  0xf4   : > { %v2628_v21 = vpop.f32.mrb[4].mxu0  ;;  %v656_v25 = vld [vmem:[#allocation2 + $0x8] sm:$0xff] }
  0xf5   : > { %425 = vst.msk [vmem:[#allocation2 + $0x30] sm:$0xff] %vm418_vm8, %v2628_v21  ;;  %v403_v24 = vpop.f32.mrb[5].mxu0 }
  0xf6   : > { %v2638_v4 = vpop.f32.mrb[0].mxu1  ;;  %423 = vst.msk [vmem:[#allocation2 + $0x20] sm:$0xff] %vm418_vm8, %v403_v24  ;;  %v2629_v53 = vpop.f32.mrb[6].mxu0 }
  0xf7   : > { %v665_v1 = vadd.f32 %v2638_v4, %v657_v12  ;;  %v624_v58 = vpop.f32.mrb[1].mxu1  ;;  %426 = vst.msk [vmem:[#allocation2 + $0x38] sm:$0xff] %vm418_vm8, %v2629_v53  ;;  %v406_v5 = vpop.f32.mrb[7].mxu0 }
  0xf8   : > { %v663_v14 = vadd.f32 %v655_v23, %v624_v58  ;;  %v2639_v30 = vpop.f32.mrb[2].mxu1  ;;  %424 = vst.msk [vmem:[#allocation2 + $0x28] sm:$0xff] %vm418_vm8, %v406_v5 }
  0xf9   : > { %673 = vst.msk [vmem:[#allocation2 + $0x10] sm:$0xff] %vm418_vm8, %v665_v1  ;;  %v666_v37 = vadd.f32 %v2639_v30, %v658_v55  ;;  %v627_v33 = vpop.f32.mrb[3].mxu1 }
  0xfa   : > { %671 = vst.msk [vmem:[#allocation2] sm:$0xff] %vm418_vm8, %v663_v14  ;;  %v664_v38 = vadd.f32 %v656_v25, %v627_v33 }
  0xfb   : > { %674 = vst.msk [vmem:[#allocation2 + $0x18] sm:$0xff] %vm418_vm8, %v666_v37 }
  0xfc   : > { %672 = vst.msk [vmem:[#allocation2 + $0x8] sm:$0xff] %vm418_vm8, %v664_v38  ;;  %v661_v42 = vld [vmem:[#allocation2 + $0x30] sm:$0xff] }
  0xfd   : > { %v659_v31 = vld [vmem:[#allocation2 + $0x20] sm:$0xff] }
  0xfe   : > { %v662_v22 = vld [vmem:[#allocation2 + $0x38] sm:$0xff] }
  0xff   : > { %v2652_v26 = vpop.f32.mrb[8].mxu0  ;;  %v660_v27 = vld [vmem:[#allocation2 + $0x28] sm:$0xff] }
 0x100   : > { %v837_v44 = vld [vmem:[#allocation2 + $0x10] sm:$0xff]  ;;  %v804_v47 = vpop.f32.mrb[9].mxu0 }
 0x101   : > { %v2642_v36 = vpop.f32.mrb[4].mxu1  ;;  %v845_v50 = vadd.f32 %v2652_v26, %v837_v44  ;;  %v835_v32 = vld [vmem:[#allocation2] sm:$0xff]  ;;  %v2653_v0 = vpop.f32.mrb[10].mxu0 }
 0x102   : > { %v669_v35 = vadd.f32 %v2642_v36, %v661_v42  ;;  %v640_v29 = vpop.f32.mrb[5].mxu1  ;;  %v843_v61 = vadd.f32 %v835_v32, %v804_v47  ;;  %v838_v62 = vld [vmem:[#allocation2 + $0x18] sm:$0xff]  ;;  %v807_v34 = vpop.f32.mrb[11].mxu0 }
 0x103   : > { %v667_v16 = vadd.f32 %v659_v31, %v640_v29  ;;  %v2643_v48 = vpop.f32.mrb[6].mxu1  ;;  %853 = vst.msk [vmem:[#allocation2 + $0x10] sm:$0xff] %vm418_vm8, %v845_v50  ;;  %v846_v59 = vadd.f32 %v2653_v0, %v838_v62  ;;  %v836_v46 = vld [vmem:[#allocation2 + $0x8] sm:$0xff] }
 0x104   : > { %677 = vst.msk [vmem:[#allocation2 + $0x30] sm:$0xff] %vm418_vm8, %v669_v35  ;;  %v670_v49 = vadd.f32 %v2643_v48, %v662_v22  ;;  %v643_v13 = vpop.f32.mrb[7].mxu1  ;;  %851 = vst.msk [vmem:[#allocation2] sm:$0xff] %vm418_vm8, %v843_v61  ;;  %v844_v6 = vadd.f32 %v836_v46, %v807_v34 }
 0x105   : > { %675 = vst.msk [vmem:[#allocation2 + $0x20] sm:$0xff] %vm418_vm8, %v667_v16  ;;  %v668_v9 = vadd.f32 %v660_v27, %v643_v13  ;;  %854 = vst.msk [vmem:[#allocation2 + $0x18] sm:$0xff] %vm418_vm8, %v846_v59 }
 0x106   : > { %678 = vst.msk [vmem:[#allocation2 + $0x38] sm:$0xff] %vm418_vm8, %v670_v49  ;;  %852 = vst.msk [vmem:[#allocation2 + $0x8] sm:$0xff] %vm418_vm8, %v844_v6 }
 0x107   : > { %676 = vst.msk [vmem:[#allocation2 + $0x28] sm:$0xff] %vm418_vm8, %v668_v9  ;;  %v2656_v45 = vpop.f32.mrb[12].mxu0 }
 0x108   : > { %v820_v10 = vpop.f32.mrb[13].mxu0 }
 0x109   : > { %v2666_v28 = vpop.f32.mrb[8].mxu1  ;;  %v2657_v60 = vpop.f32.mrb[14].mxu0 }
 0x10a   : > { %v1002_v7 = vld [vmem:[#allocation2 + $0x10] sm:$0xff]  ;;  %v969_v43 = vpop.f32.mrb[9].mxu1  ;;  %v823_v20 = vpop.f32.mrb[15].mxu0 }
 0x10b   : > { %v841_v15 = vld [vmem:[#allocation2 + $0x30] sm:$0xff]  ;;  %v1010_v52 = vadd.f32 %v2666_v28, %v1002_v7  ;;  %v1000_v2 = vld [vmem:[#allocation2] sm:$0xff]  ;;  %v2667_v19 = vpop.f32.mrb[10].mxu1 }
 0x10c   : > { %v849_v8 = vadd.f32 %v2656_v45, %v841_v15  ;;  %v839_v11 = vld [vmem:[#allocation2 + $0x20] sm:$0xff]  ;;  %v1008_v40 = vadd.f32 %v1000_v2, %v969_v43  ;;  %v1003_v54 = vld [vmem:[#allocation2 + $0x18] sm:$0xff]  ;;  %v972_v3 = vpop.f32.mrb[11].mxu1 }
 0x10d   : > { %v847_v39 = vadd.f32 %v839_v11, %v820_v10  ;;  %1018 = vst.msk [vmem:[#allocation2 + $0x10] sm:$0xff] %vm418_vm8, %v1010_v52  ;;  %v842_v41 = vld [vmem:[#allocation2 + $0x38] sm:$0xff]  ;;  %v1011_v17 = vadd.f32 %v2667_v19, %v1003_v54  ;;  %v1001_v51 = vld [vmem:[#allocation2 + $0x8] sm:$0xff] }
 0x10e   : > { %857 = vst.msk [vmem:[#allocation2 + $0x30] sm:$0xff] %vm418_vm8, %v849_v8  ;;  %v850_v57 = vadd.f32 %v2657_v60, %v842_v41  ;;  %1016 = vst.msk [vmem:[#allocation2] sm:$0xff] %vm418_vm8, %v1008_v40  ;;  %v840_v56 = vld [vmem:[#allocation2 + $0x28] sm:$0xff]  ;;  %v1009_v63 = vadd.f32 %v1001_v51, %v972_v3 }
 0x10f   : > { %855 = vst.msk [vmem:[#allocation2 + $0x20] sm:$0xff] %vm418_vm8, %v847_v39  ;;  %v848_v18 = vadd.f32 %v840_v56, %v823_v20  ;;  %1019 = vst.msk [vmem:[#allocation2 + $0x18] sm:$0xff] %vm418_vm8, %v1011_v17 }
 0x110   : > { %858 = vst.msk [vmem:[#allocation2 + $0x38] sm:$0xff] %vm418_vm8, %v850_v57  ;;  %1017 = vst.msk [vmem:[#allocation2 + $0x8] sm:$0xff] %vm418_vm8, %v1009_v63 }
 0x111   : > { %856 = vst.msk [vmem:[#allocation2 + $0x28] sm:$0xff] %vm418_vm8, %v848_v18  ;;  %v2670_v12 = vpop.f32.mrb[12].mxu1 }
 0x112   : > { %v985_v21 = vpop.f32.mrb[13].mxu1 }
 0x113   : > { %v2671_v23 = vpop.f32.mrb[14].mxu1  ;;  %v2680_v24 = vpop.f32.mrb[16].mxu0 }
 0x114   : > { %v1251_v4 = vld [vmem:[#allocation2 + $0x10] sm:$0xff]  ;;  %v988_v55 = vpop.f32.mrb[15].mxu1  ;;  %v1218_v53 = vpop.f32.mrb[17].mxu0 }
 0x115   : > { %v1006_v1 = vld [vmem:[#allocation2 + $0x30] sm:$0xff]  ;;  %v1259_v58 = vadd.f32 %v2680_v24, %v1251_v4  ;;  %v1249_v25 = vld [vmem:[#allocation2] sm:$0xff]  ;;  %v2681_v5 = vpop.f32.mrb[18].mxu0 }
 0x116   : > { %v1014_v14 = vadd.f32 %v2670_v12, %v1006_v1  ;;  %v1004_v30 = vld [vmem:[#allocation2 + $0x20] sm:$0xff]  ;;  %v1257_v37 = vadd.f32 %v1249_v25, %v1218_v53  ;;  %v1252_v33 = vld [vmem:[#allocation2 + $0x18] sm:$0xff]  ;;  %v1221_v38 = vpop.f32.mrb[19].mxu0 }
 0x117   : > { %v1012_v42 = vadd.f32 %v1004_v30, %v985_v21  ;;  %v1007_v26 = vld [vmem:[#allocation2 + $0x38] sm:$0xff]  ;;  %1267 = vst.msk [vmem:[#allocation2 + $0x10] sm:$0xff] %vm418_vm8, %v1259_v58  ;;  %v1260_v31 = vadd.f32 %v2681_v5, %v1252_v33  ;;  %v1250_v44 = vld [vmem:[#allocation2 + $0x8] sm:$0xff] }
 0x118   : > { %1022 = vst.msk [vmem:[#allocation2 + $0x30] sm:$0xff] %vm418_vm8, %v1014_v14  ;;  %v1015_v47 = vadd.f32 %v2671_v23, %v1007_v26  ;;  %v1005_v36 = vld [vmem:[#allocation2 + $0x28] sm:$0xff]  ;;  %1265 = vst.msk [vmem:[#allocation2] sm:$0xff] %vm418_vm8, %v1257_v37  ;;  %v1258_v22 = vadd.f32 %v1250_v44, %v1221_v38 }
 0x119   : > { %1020 = vst.msk [vmem:[#allocation2 + $0x20] sm:$0xff] %vm418_vm8, %v1012_v42  ;;  %v1013_v50 = vadd.f32 %v1005_v36, %v988_v55  ;;  %1268 = vst.msk [vmem:[#allocation2 + $0x18] sm:$0xff] %vm418_vm8, %v1260_v31 }
 0x11a   : > { %1023 = vst.msk [vmem:[#allocation2 + $0x38] sm:$0xff] %vm418_vm8, %v1015_v47  ;;  %1266 = vst.msk [vmem:[#allocation2 + $0x8] sm:$0xff] %vm418_vm8, %v1258_v22 }
 0x11b   : > { %1021 = vst.msk [vmem:[#allocation2 + $0x28] sm:$0xff] %vm418_vm8, %v1013_v50  ;;  %v2684_v32 = vpop.f32.mrb[20].mxu0 }
 0x11c   : > { %v1234_v0 = vpop.f32.mrb[21].mxu0  ;;  %v2694_v29 = vpop.f32.mrb[16].mxu1 }
 0x11d   : > { %v2685_v35 = vpop.f32.mrb[22].mxu0  ;;  %v1395_v62 = vpop.f32.mrb[17].mxu1 }
 0x11e   : > { %v1428_v27 = vld [vmem:[#allocation2 + $0x10] sm:$0xff]  ;;  %v1237_v61 = vpop.f32.mrb[23].mxu0  ;;  %v2695_v59 = vpop.f32.mrb[18].mxu1 }
 0x11f   : > { %v1255_v34 = vld [vmem:[#allocation2 + $0x30] sm:$0xff]  ;;  %v1436_v16 = vadd.f32 %v2694_v29, %v1428_v27  ;;  %v1426_v48 = vld [vmem:[#allocation2] sm:$0xff]  ;;  %v1398_v9 = vpop.f32.mrb[19].mxu1 }
 0x120   : > { %v1263_v46 = vadd.f32 %v2684_v32, %v1255_v34  ;;  %v1253_v49 = vld [vmem:[#allocation2 + $0x20] sm:$0xff]  ;;  %v1434_v13 = vadd.f32 %v1426_v48, %v1395_v62  ;;  %v1429_v6 = vld [vmem:[#allocation2 + $0x18] sm:$0xff] }
 0x121   : > { %v1261_v45 = vadd.f32 %v1253_v49, %v1234_v0  ;;  %v1256_v10 = vld [vmem:[#allocation2 + $0x38] sm:$0xff]  ;;  %1444 = vst.msk [vmem:[#allocation2 + $0x10] sm:$0xff] %vm418_vm8, %v1436_v16  ;;  %v1437_v28 = vadd.f32 %v2695_v59, %v1429_v6  ;;  %v1427_v60 = vld [vmem:[#allocation2 + $0x8] sm:$0xff] }
 0x122   : > { %1271 = vst.msk [vmem:[#allocation2 + $0x30] sm:$0xff] %vm418_vm8, %v1263_v46  ;;  %v1264_v7 = vadd.f32 %v2685_v35, %v1256_v10  ;;  %v1254_v43 = vld [vmem:[#allocation2 + $0x28] sm:$0xff]  ;;  %1442 = vst.msk [vmem:[#allocation2] sm:$0xff] %vm418_vm8, %v1434_v13  ;;  %v1435_v20 = vadd.f32 %v1427_v60, %v1398_v9 }
 0x123   : > { %1269 = vst.msk [vmem:[#allocation2 + $0x20] sm:$0xff] %vm418_vm8, %v1261_v45  ;;  %v1262_v15 = vadd.f32 %v1254_v43, %v1237_v61  ;;  %1445 = vst.msk [vmem:[#allocation2 + $0x18] sm:$0xff] %vm418_vm8, %v1437_v28  ;;  %v2708_v52 = vpop.f32.mrb[24].mxu0 }
 0x124   : > { %1272 = vst.msk [vmem:[#allocation2 + $0x38] sm:$0xff] %vm418_vm8, %v1264_v7  ;;  %1443 = vst.msk [vmem:[#allocation2 + $0x8] sm:$0xff] %vm418_vm8, %v1435_v20  ;;  %v1560_v2 = vpop.f32.mrb[25].mxu0 }
 0x125   : > { %1270 = vst.msk [vmem:[#allocation2 + $0x28] sm:$0xff] %vm418_vm8, %v1262_v15  ;;  %v2698_v19 = vpop.f32.mrb[20].mxu1  ;;  %v2709_v8 = vpop.f32.mrb[26].mxu0 }
 0x126   : > { %v1411_v11 = vpop.f32.mrb[21].mxu1  ;;  %v1563_v40 = vpop.f32.mrb[27].mxu0 }
 0x127   : > { %v2699_v54 = vpop.f32.mrb[22].mxu1 }
 0x128   : > { %v1593_v3 = vld [vmem:[#allocation2 + $0x10] sm:$0xff]  ;;  %v1414_v39 = vpop.f32.mrb[23].mxu1 }
 0x129   : > { %v1432_v41 = vld [vmem:[#allocation2 + $0x30] sm:$0xff]  ;;  %v1601_v17 = vadd.f32 %v2708_v52, %v1593_v3  ;;  %v1591_v51 = vld [vmem:[#allocation2] sm:$0xff] }
 0x12a   : > { %v1440_v57 = vadd.f32 %v2698_v19, %v1432_v41  ;;  %v1430_v56 = vld [vmem:[#allocation2 + $0x20] sm:$0xff]  ;;  %v1599_v63 = vadd.f32 %v1591_v51, %v1560_v2  ;;  %v1594_v18 = vld [vmem:[#allocation2 + $0x18] sm:$0xff] }
 0x12b   : > { %v1438_v12 = vadd.f32 %v1430_v56, %v1411_v11  ;;  %v1433_v21 = vld [vmem:[#allocation2 + $0x38] sm:$0xff]  ;;  %1609 = vst.msk [vmem:[#allocation2 + $0x10] sm:$0xff] %vm418_vm8, %v1601_v17  ;;  %v1602_v23 = vadd.f32 %v2709_v8, %v1594_v18  ;;  %v1592_v24 = vld [vmem:[#allocation2 + $0x8] sm:$0xff]  ;;  %v2712_v4 = vpop.f32.mrb[28].mxu0 }
 0x12c   : > { %1448 = vst.msk [vmem:[#allocation2 + $0x30] sm:$0xff] %vm418_vm8, %v1440_v57  ;;  %v1441_v55 = vadd.f32 %v2699_v54, %v1433_v21  ;;  %v1431_v53 = vld [vmem:[#allocation2 + $0x28] sm:$0xff]  ;;  %1607 = vst.msk [vmem:[#allocation2] sm:$0xff] %vm418_vm8, %v1599_v63  ;;  %v1600_v1 = vadd.f32 %v1592_v24, %v1563_v40  ;;  %v1576_v58 = vpop.f32.mrb[29].mxu0  ;;  %v2528_v57 = vld [vmem:[%s3610_s2] ss:$0 sm:$0xff] }
 0x12d   : > { %1446 = vst.msk [vmem:[#allocation2 + $0x20] sm:$0xff] %vm418_vm8, %v1438_v12  ;;  %v1439_v25 = vadd.f32 %v1431_v53, %v1414_v39  ;;  %1610 = vst.msk [vmem:[#allocation2 + $0x18] sm:$0xff] %vm418_vm8, %v1602_v23  ;;  %v2713_v5 = vpop.f32.mrb[30].mxu0  ;;  %v2529_v12 = vld [vmem:[%s3611_s3] ss:$0 sm:$0xff] }
 0x12e   : > { %1449 = vst.msk [vmem:[#allocation2 + $0x38] sm:$0xff] %vm418_vm8, %v1441_v55  ;;  %1608 = vst.msk [vmem:[#allocation2 + $0x8] sm:$0xff] %vm418_vm8, %v1600_v1  ;;  %v1579_v14 = vpop.f32.mrb[31].mxu0 }
 0x12f   : > { %1447 = vst.msk [vmem:[#allocation2 + $0x28] sm:$0xff] %vm418_vm8, %v1439_v25  ;;  %v2722_v30 = vpop.f32.mrb[24].mxu1 }
 0x130   : > { %v1809_v37 = vpop.f32.mrb[25].mxu1 }
 0x131   : > { %v2723_v33 = vpop.f32.mrb[26].mxu1 }
 0x132   : > { %v1842_v38 = vld [vmem:[#allocation2 + $0x10] sm:$0xff]  ;;  %v1812_v42 = vpop.f32.mrb[27].mxu1 }
 0x133   : > { %v1597_v26 = vld [vmem:[#allocation2 + $0x30] sm:$0xff]  ;;  %v1850_v31 = vadd.f32 %v2722_v30, %v1842_v38  ;;  %v1840_v44 = vld [vmem:[#allocation2] sm:$0xff] }
 0x134   : > { %v1605_v47 = vadd.f32 %v2712_v4, %v1597_v26  ;;  %v1595_v36 = vld [vmem:[#allocation2 + $0x20] sm:$0xff]  ;;  %v1848_v22 = vadd.f32 %v1840_v44, %v1809_v37  ;;  %v1843_v50 = vld [vmem:[#allocation2 + $0x18] sm:$0xff] }
 0x135   : > { %v1603_v32 = vadd.f32 %v1595_v36, %v1576_v58  ;;  %v1598_v0 = vld [vmem:[#allocation2 + $0x38] sm:$0xff]  ;;  %1858 = vst.msk [vmem:[#allocation2 + $0x10] sm:$0xff] %vm418_vm8, %v1850_v31  ;;  %v1851_v35 = vadd.f32 %v2723_v33, %v1843_v50  ;;  %v1841_v29 = vld [vmem:[#allocation2 + $0x8] sm:$0xff] }
 0x136   : > { %1613 = vst.msk [vmem:[#allocation2 + $0x30] sm:$0xff] %vm418_vm8, %v1605_v47  ;;  %v1606_v27 = vadd.f32 %v2713_v5, %v1598_v0  ;;  %v1596_v61 = vld [vmem:[#allocation2 + $0x28] sm:$0xff]  ;;  %1856 = vst.msk [vmem:[#allocation2] sm:$0xff] %vm418_vm8, %v1848_v22  ;;  %v1849_v62 = vadd.f32 %v1841_v29, %v1812_v42 }
 0x137   : > { %1611 = vst.msk [vmem:[#allocation2 + $0x20] sm:$0xff] %vm418_vm8, %v1603_v32  ;;  %v1604_v34 = vadd.f32 %v1596_v61, %v1579_v14  ;;  %1859 = vst.msk [vmem:[#allocation2 + $0x18] sm:$0xff] %vm418_vm8, %v1851_v35  ;;  %v2726_v16 = vpop.f32.mrb[28].mxu1 }
 0x138   : > { %1614 = vst.msk [vmem:[#allocation2 + $0x38] sm:$0xff] %vm418_vm8, %v1606_v27  ;;  %1857 = vst.msk [vmem:[#allocation2 + $0x8] sm:$0xff] %vm418_vm8, %v1849_v62  ;;  %v1825_v48 = vpop.f32.mrb[29].mxu1  ;;  %v2736_v59 = vpop.f32.mrb[32].mxu0 }
 0x139   : > { %1612 = vst.msk [vmem:[#allocation2 + $0x28] sm:$0xff] %vm418_vm8, %v1604_v34  ;;  %v2727_v46 = vpop.f32.mrb[30].mxu1  ;;  %v1986_v49 = vpop.f32.mrb[33].mxu0 }
 0x13a   : > { %v1828_v13 = vpop.f32.mrb[31].mxu1  ;;  %v2737_v6 = vpop.f32.mrb[34].mxu0 }
 0x13b   : > { %v1989_v9 = vpop.f32.mrb[35].mxu0 }
 0x13c   : > { %v2019_v45 = vld [vmem:[#allocation2 + $0x10] sm:$0xff] }
 0x13d   : > { %v1846_v10 = vld [vmem:[#allocation2 + $0x30] sm:$0xff]  ;;  %v2027_v28 = vadd.f32 %v2736_v59, %v2019_v45  ;;  %v2017_v60 = vld [vmem:[#allocation2] sm:$0xff] }
 0x13e   : > { %v1854_v7 = vadd.f32 %v2726_v16, %v1846_v10  ;;  %v1844_v43 = vld [vmem:[#allocation2 + $0x20] sm:$0xff]  ;;  %v2025_v20 = vadd.f32 %v2017_v60, %v1986_v49  ;;  %v2020_v15 = vld [vmem:[#allocation2 + $0x18] sm:$0xff] }
 0x13f   : > { %v1852_v52 = vadd.f32 %v1844_v43, %v1825_v48  ;;  %v1847_v2 = vld [vmem:[#allocation2 + $0x38] sm:$0xff]  ;;  %2035 = vst.msk [vmem:[#allocation2 + $0x10] sm:$0xff] %vm418_vm8, %v2027_v28  ;;  %v2028_v19 = vadd.f32 %v2737_v6, %v2020_v15  ;;  %v2018_v8 = vld [vmem:[#allocation2 + $0x8] sm:$0xff]  ;;  %v2530_v6 = vld [vmem:[%s3613_s5] ss:$0 sm:$0xff] }
 0x140   : > { %1862 = vst.msk [vmem:[#allocation2 + $0x30] sm:$0xff] %vm418_vm8, %v1854_v7  ;;  %v1855_v11 = vadd.f32 %v2727_v46, %v1847_v2  ;;  %v1845_v40 = vld [vmem:[#allocation2 + $0x28] sm:$0xff]  ;;  %2033 = vst.msk [vmem:[#allocation2] sm:$0xff] %vm418_vm8, %v2025_v20  ;;  %v2026_v54 = vadd.f32 %v2018_v8, %v1989_v9  ;;  %v2740_v3 = vpop.f32.mrb[36].mxu0 }
 0x141   : > { %1860 = vst.msk [vmem:[#allocation2 + $0x20] sm:$0xff] %vm418_vm8, %v1852_v52  ;;  %v1853_v39 = vadd.f32 %v1845_v40, %v1828_v13  ;;  %2036 = vst.msk [vmem:[#allocation2 + $0x18] sm:$0xff] %vm418_vm8, %v2028_v19  ;;  %v2002_v41 = vpop.f32.mrb[37].mxu0 }
 0x142   : > { %1863 = vst.msk [vmem:[#allocation2 + $0x38] sm:$0xff] %vm418_vm8, %v1855_v11  ;;  %2034 = vst.msk [vmem:[#allocation2 + $0x8] sm:$0xff] %vm418_vm8, %v2026_v54  ;;  %v2741_v17 = vpop.f32.mrb[38].mxu0 }
 0x143   : > { %1861 = vst.msk [vmem:[#allocation2 + $0x28] sm:$0xff] %vm418_vm8, %v1853_v39  ;;  %v2005_v51 = vpop.f32.mrb[39].mxu0 }
 0x146   : > { %v2043_v56 = vld [vmem:[#allocation2 + $0x10] sm:$0xff] }
 0x147   : > { %v2023_v63 = vld [vmem:[#allocation2 + $0x30] sm:$0xff]  ;;  %v2041_v18 = vld [vmem:[#allocation2] sm:$0xff]  ;;  %v2058_v21 = vmul.f32 %v2528_v57, %v2043_v56 }
 0x148   : > { %v2031_v23 = vadd.f32 %v2740_v3, %v2023_v63  ;;  %v2021_v24 = vld [vmem:[#allocation2 + $0x20] sm:$0xff]  ;;  %v2056_v4 = vmul.f32 %v2528_v57, %v2041_v18  ;;  %v2044_v55 = vld [vmem:[#allocation2 + $0x18] sm:$0xff] }
 0x149   : > { %v2029_v53 = vadd.f32 %v2021_v24, %v2002_v41  ;;  %v2024_v1 = vld [vmem:[#allocation2 + $0x38] sm:$0xff]  ;;  %v2042_v58 = vld [vmem:[#allocation2 + $0x8] sm:$0xff]  ;;  %v2059_v37 = vmul.f32 %v2528_v57, %v2044_v55  ;;  %v2073_v38 = vadd.f32 %v2529_v12, %v2058_v21 }
 0x14a   : > { %2039 = vst.msk [vmem:[#allocation2 + $0x30] sm:$0xff] %vm418_vm8, %v2031_v23  ;;  %v2032_v25 = vadd.f32 %v2741_v17, %v2024_v1  ;;  %v2022_v5 = vld [vmem:[#allocation2 + $0x28] sm:$0xff]  ;;  %v2071_v14 = vadd.f32 %v2529_v12, %v2056_v4  ;;  %v2057_v30 = vmul.f32 %v2528_v57, %v2042_v58 }
 0x14b   : > { %2037 = vst.msk [vmem:[#allocation2 + $0x20] sm:$0xff] %vm418_vm8, %v2029_v53  ;;  %v2030_v33 = vadd.f32 %v2022_v5, %v2005_v51  ;;  %v2074_v44 = vadd.f32 %v2529_v12, %v2059_v37  ;;  %v2081_v47 = vmax.f32 %v2073_v38, 0.0 }
 0x14c   : > { %2040 = vst.msk [vmem:[#allocation2 + $0x38] sm:$0xff] %vm418_vm8, %v2032_v25  ;;  %v2079_v42 = vmax.f32 %v2071_v14, 0.0  ;;  %v2072_v26 = vadd.f32 %v2529_v12, %v2057_v30 }
 0x14d   : > { %2038 = vst.msk [vmem:[#allocation2 + $0x28] sm:$0xff] %vm418_vm8, %v2030_v33  ;;  %v2082_v22 = vmax.f32 %v2074_v44, 0.0 }
 0x14e   : > { %2748 = vmatprep.mubr.msk.f32.mxu1 %vm418_vm8, %v2079_v42  ;;  %v2080_v31 = vmax.f32 %v2072_v26, 0.0 }
 0x150   : > { %2749 = vmatmul.mubr.msk.f32.vlgmr.msra.gmra.mrb[32].mxu1 %vm418_vm8, %v2080_v31 }
 0x151   : > { %2751 = vmatprep.mubr.msk.f32.mxu1 %vm418_vm8, %v2081_v47  ;;  %v2047_v36 = vld [vmem:[#allocation2 + $0x30] sm:$0xff] }
 0x152   : > { %v2045_v50 = vld [vmem:[#allocation2 + $0x20] sm:$0xff]  ;;  %v2062_v32 = vmul.f32 %v2528_v57, %v2047_v36 }
 0x153   : > { %v2060_v0 = vmul.f32 %v2528_v57, %v2045_v50  ;;  %v2048_v35 = vld [vmem:[#allocation2 + $0x38] sm:$0xff] }
 0x154   : > { %2752 = vmatmul.mubr.msk.f32.gmra.mrb[34].mxu1 %vm418_vm8, %v2082_v22  ;;  %v2046_v29 = vld [vmem:[#allocation2 + $0x28] sm:$0xff]  ;;  %v2063_v62 = vmul.f32 %v2528_v57, %v2048_v35  ;;  %v2077_v34 = vadd.f32 %v2529_v12, %v2062_v32 }
 0x155   : > { %v2075_v27 = vadd.f32 %v2529_v12, %v2060_v0  ;;  %v2061_v61 = vmul.f32 %v2528_v57, %v2046_v29 }
 0x156   : > { %v2078_v46 = vadd.f32 %v2529_v12, %v2063_v62  ;;  %v2085_v49 = vmax.f32 %v2077_v34, 0.0 }
 0x157   : > { %v2083_v16 = vmax.f32 %v2075_v27, 0.0  ;;  %v2076_v48 = vadd.f32 %v2529_v12, %v2061_v61 }
 0x158   : > { %v2086_v13 = vmax.f32 %v2078_v46, 0.0 }
 0x159   : > { %2754 = vmatprep.mubr.msk.f32.mxu1 %vm418_vm8, %v2083_v16  ;;  %v2084_v59 = vmax.f32 %v2076_v48, 0.0 }
 0x15b   : > { %2755 = vmatmul.mubr.msk.f32.gmra.mrb[36].mxu1 %vm418_vm8, %v2084_v59 }
 0x15c   : > { %2757 = vmatprep.mubr.msk.f32.mxu1 %vm418_vm8, %v2085_v49 }
 0x15f   : > { %2758 = vmatmul.mubr.msk.f32.gmra.mrb[38].mxu1 %vm418_vm8, %v2086_v13 }
 0x223   : > { %v2750_v9 = vpop.f32.mrb[32].mxu1 }
 0x224   : > { %v2193_v45 = vadd.f32 %v2750_v9, %v2530_v6  ;;  %v2187_v10 = vpop.f32.mrb[33].mxu1 }
 0x225   : > { %v2188_v28 = vadd.f32 %v2530_v6, %v2187_v10 }
 0x226   : > { %2227 = vst [vmem:[%s273_s15 + $0x8] sm:$0xff] %v2193_v45 }
 0x227   : > { %2226 = vst [vmem:[%s273_s15] sm:$0xff] %v2188_v28  ;;  %v2753_v60 = vpop.f32.mrb[34].mxu1 }
 0x228   : > { %v2203_v7 = vadd.f32 %v2753_v60, %v2530_v6  ;;  %v2197_v43 = vpop.f32.mrb[35].mxu1 }
 0x229   : > { %v2198_v20 = vadd.f32 %v2530_v6, %v2197_v43 }
 0x22a   : > { %2229 = vst [vmem:[%s273_s15 + $0x18] sm:$0xff] %v2203_v7 }
 0x22b   : > { %2228 = vst [vmem:[%s273_s15 + $0x10] sm:$0xff] %v2198_v20 }
 0x22e   : > { %v2756_v15 = vpop.f32.mrb[36].mxu1 }
 0x22f   : > { %v2213_v52 = vadd.f32 %v2756_v15, %v2530_v6  ;;  %v2207_v2 = vpop.f32.mrb[37].mxu1 }
 0x230   : > { %v2208_v19 = vadd.f32 %v2530_v6, %v2207_v2 }
 0x231   : > { %2231 = vst [vmem:[%s273_s15 + $0x28] sm:$0xff] %v2213_v52 }
 0x232   : > { %2230 = vst [vmem:[%s273_s15 + $0x20] sm:$0xff] %v2208_v19  ;;  %v2759_v8 = vpop.f32.mrb[38].mxu1 }
 0x233   : > { %v2223_v11 = vadd.f32 %v2759_v8, %v2530_v6  ;;  %v2217_v40 = vpop.f32.mrb[39].mxu1 }
 0x234   : > { %v2218_v54 = vadd.f32 %v2530_v6, %v2217_v40 }
 0x235   : > { %2233 = vst [vmem:[%s273_s15 + $0x38] sm:$0xff] %v2223_v11 }
 0x236   : > { %2232 = vst [vmem:[%s273_s15 + $0x30] sm:$0xff] %v2218_v54 }
 0x237 PF: > { %s16_s23 = sadd.s32 1, %s2859_s23   ;;  %s3619_s21 = smov %s2855_s22 }
 0x238   : > { %p13_p5 = scmp.ge.s32.totalorder %s16_s23, 4   ;;  %s3620_s22 = smov %s3622_s24 }
 0x23a   :  { %15 = sbr.rel (!%p13_p5) target bundleno = 2 (0x2), region = 85 }

</bundles_post_ra>
